<compile_context>
chip_gen: v7x
topology: tpu7x:2x2x1
jax: 0.10.0
libtpu: 0.0.40
codegen_flags: <defaults>
</compile_context>

<pallas_src>
import math
import functools

import jax
import jax.numpy as jnp
from jax.experimental import pallas as pl
from jax.experimental.pallas import tpu as pltpu


# ----------------------------------------------------------------------------
# Scaled-down config (same structure as the PyTorch `config` class; head_size
# kept at 64 like real BERT).
# ----------------------------------------------------------------------------
class config:
    hidden_size = 256
    intermediate_size = 256 * 4
    num_attention_heads = 4
    layer_norm_eps = 1e-12
    initializer_range = 0.02
    dropout_prob = 0.1  # unused (eval mode)


HEAD_SIZE = config.hidden_size // config.num_attention_heads


def _layer_norm(x, gamma, beta, eps):
    mu = jnp.mean(x, axis=-1, keepdims=True)
    var = jnp.mean((x - mu) ** 2, axis=-1, keepdims=True)
    return (x - mu) * jax.lax.rsqrt(var + eps) * gamma + beta


def _gelu_exact(x):
    # torch.nn.functional.gelu default: exact erf-based gelu
    return 0.5 * x * (1.0 + jax.lax.erf(x * (1.0 / math.sqrt(2.0))))


def bert_layer_kernel(
    x_ref,
    wq_ref, bq_ref, wk_ref, bk_ref, wv_ref, bv_ref,
    wo_ref, bo_ref, g1_ref, be1_ref,
    w1_ref, b1_ref, w2_ref, b2_ref, g2_ref, be2_ref,
    o_ref,
    *, num_heads, eps,
):
    x_f32 = x_ref[0]                                  # (S, H) f32
    x = x_f32.astype(jnp.bfloat16)                    # bf16 MXU operand

    # --- per-head attention; Wo projection fused as an accumulation ---
    # Wq/bq are pre-scaled by 1/sqrt(d) host-side (exact power-of-2), so the
    # scores need no in-kernel scaling.
    attn_out = None
    for h in range(num_heads):
        # Per-head projections (S,H)@(H,d) -> (S,d): zero in-kernel lane slicing.
        qh = jnp.dot(x, wq_ref[h], preferred_element_type=jnp.float32) + bq_ref[h]
        kh = jnp.dot(x, wk_ref[h], preferred_element_type=jnp.float32) + bk_ref[h]
        vh = jnp.dot(x, wv_ref[h], preferred_element_type=jnp.float32) + bv_ref[h]

        # Scores: contract the head dim of both operands (no explicit k.T).
        s = jax.lax.dot_general(
            qh.astype(jnp.bfloat16), kh.astype(jnp.bfloat16),
            dimension_numbers=(((1,), (1,)), ((), ())),
            preferred_element_type=jnp.float32,
        )
        s = s - jnp.max(s, axis=-1, keepdims=True)
        p = jnp.exp(s)
        p = p * pl.reciprocal(jnp.sum(p, axis=-1, keepdims=True), approx=True)

        ctx = jnp.dot(p.astype(jnp.bfloat16), vh.astype(jnp.bfloat16),
                      preferred_element_type=jnp.float32)          # (S, d)
        # Accumulate output projection with the sublane-split Wo (no concat).
        contrib = jnp.dot(ctx.astype(jnp.bfloat16), wo_ref[h],
                          preferred_element_type=jnp.float32)      # (S, H)
        if attn_out is None:
            attn_out = contrib + bo_ref[...]                       # fold bias in
        else:
            attn_out = attn_out + contrib

    hidden = _layer_norm(attn_out + x_f32, g1_ref[...], be1_ref[...], eps)

    # --- FFN: Linear -> GELU -> Linear + residual + LayerNorm ---
    h1 = jnp.dot(hidden.astype(jnp.bfloat16), w1_ref[...],
                 preferred_element_type=jnp.float32) + b1_ref[...]
    h1 = _gelu_exact(h1)
    h2 = jnp.dot(h1.astype(jnp.bfloat16), w2_ref[...],
                 preferred_element_type=jnp.float32) + b2_ref[...]
    out = _layer_norm(h2 + hidden, g2_ref[...], be2_ref[...], eps)

    o_ref[0] = out.astype(o_ref.dtype)


def _prepare_params(params):
    """Cast matmul weights to bf16, pre-split per head, fold the 1/sqrt(d)
    attention scale into Wq/bq (host/XLA side, exact for power-of-2 d)."""
    (wq, bq, wk, bk, wv, bv, wo, bo, g1, be1, w1, b1, w2, b2, g2, be2) = params
    nh, d, H = config.num_attention_heads, HEAD_SIZE, config.hidden_size
    bf = jnp.bfloat16
    scale = 1.0 / math.sqrt(d)

    def split_cols(w, s=1.0):            # (H, H) -> (nh, H, d): out-column split
        return (s * jnp.transpose(w.reshape(H, nh, d), (1, 0, 2))).astype(bf)

    def split_bias(b, s=1.0):            # (1, H) -> (nh, 1, d)
        return (s * b.reshape(nh, d)[:, None, :]).astype(jnp.float32)

    return (
        split_cols(wq, scale), split_bias(bq, scale),
        split_cols(wk), split_bias(bk),
        split_cols(wv), split_bias(bv),
        wo.reshape(nh, d, H).astype(bf),              # in-row (sublane) split
        bo, g1, be1,
        w1.astype(bf), b1, w2.astype(bf), b2, g2, be2,
    )


def bert_layer_pallas(x, params):
    B, S, H = x.shape
    I = config.intermediate_size
    nh, d = config.num_attention_heads, HEAD_SIZE
    kparams = _prepare_params(params)

    def full(shape):
        nd = len(shape)
        return pl.BlockSpec(shape, lambda b, _nd=nd: (0,) * _nd)

    in_specs = [
        pl.BlockSpec((1, S, H), lambda b: (b, 0, 0)),        # hidden_state
        full((nh, H, d)), full((nh, 1, d)),                  # Wq, bq (per-head, pre-scaled)
        full((nh, H, d)), full((nh, 1, d)),                  # Wk, bk
        full((nh, H, d)), full((nh, 1, d)),                  # Wv, bv
        full((nh, d, H)), full((1, H)),                      # Wo (split), bo
        full((1, H)), full((1, H)),                          # attn LN gamma, beta
        full((H, I)), full((1, I)),                          # W1, b1
        full((I, H)), full((1, H)),                          # W2, b2
        full((1, H)), full((1, H)),                          # ffn LN gamma, beta
    ]

    kernel = functools.partial(
        bert_layer_kernel,
        num_heads=nh, eps=config.layer_norm_eps,
    )

    return pl.pallas_call(
        kernel,
        out_shape=jax.ShapeDtypeStruct((B, S, H), x.dtype),
        grid_spec=pltpu.PrefetchScalarGridSpec(
            num_scalar_prefetch=0,
            grid=(B,),                                   # B>=2 parallel units
            in_specs=in_specs,
            out_specs=pl.BlockSpec((1, S, H), lambda b: (b, 0, 0)),
        ),
        compiler_params=pltpu.CompilerParams(
            dimension_semantics=("parallel",),
            # Real need is a few MiB; 32 MiB is a valid scoped budget on
            # v5e/v6e (128 MiB physical) and v7x (64 MiB physical) alike.
            vmem_limit_bytes=32 * 1024 * 1024,
        ),
    )(x, *kparams)


# ----------------------------------------------------------------------------
# Pure-JAX reference with the same bf16-matmul / f32-accumulate numerics.
# ----------------------------------------------------------------------------
def bert_layer_ref(x, params):
    (wq, bq, wk, bk, wv, bv, wo, bo, g1, be1, w1, b1, w2, b2, g2, be2) = params
    B, S, H = x.shape
    nh, d = config.num_attention_heads, HEAD_SIZE
    eps = config.layer_norm_eps
    bf = jnp.bfloat16

    def proj(a, w, b):
        return jnp.einsum("bsh,ho->bso", a.astype(bf), w.astype(bf),
                          preferred_element_type=jnp.float32) + b

    def split_heads(t):
        return t.reshape(B, S, nh, d).transpose(0, 2, 1, 3)

    q = split_heads(proj(x, wq, bq))
    k = split_heads(proj(x, wk, bk))
    v = split_heads(proj(x, wv, bv))
    s = jnp.einsum("bhqd,bhkd->bhqk", q.astype(bf), k.astype(bf),
                   preferred_element_type=jnp.float32) / math.sqrt(d)
    p = jax.nn.softmax(s, axis=-1)
    ctx = jnp.einsum("bhqk,bhkd->bhqd", p.astype(bf), v.astype(bf),
                     preferred_element_type=jnp.float32)
    ctx = ctx.transpose(0, 2, 1, 3).reshape(B, S, H)
    attn = proj(ctx, wo, bo)
    h = _layer_norm(attn + x, g1, be1, eps)
    h1 = _gelu_exact(jnp.einsum("bsh,hi->bsi", h.astype(bf), w1.astype(bf),
                                preferred_element_type=jnp.float32) + b1)
    h2 = jnp.einsum("bsi,ih->bsh", h1.astype(bf), w2.astype(bf),
                    preferred_element_type=jnp.float32) + b2
    return _layer_norm(h2 + h, g2, be2, eps)


def init_params(key, H, I, dtype=jnp.float32):
    ks = jax.random.split(key, 16)
    std = config.initializer_range
    wq = std * jax.random.normal(ks[0], (H, H), dtype)
    wk = std * jax.random.normal(ks[1], (H, H), dtype)
    wv = std * jax.random.normal(ks[2], (H, H), dtype)
    wo = std * jax.random.normal(ks[3], (H, H), dtype)
    w1 = std * jax.random.normal(ks[4], (H, I), dtype)
    w2 = std * jax.random.normal(ks[5], (I, H), dtype)
    bq = std * jax.random.normal(ks[6], (1, H), dtype)
    bk = std * jax.random.normal(ks[7], (1, H), dtype)
    bv = std * jax.random.normal(ks[8], (1, H), dtype)
    bo = std * jax.random.normal(ks[9], (1, H), dtype)
    b1 = std * jax.random.normal(ks[10], (1, I), dtype)
    b2 = std * jax.random.normal(ks[11], (1, H), dtype)
    g1 = 1.0 + std * jax.random.normal(ks[12], (1, H), dtype)
    be1 = std * jax.random.normal(ks[13], (1, H), dtype)
    g2 = 1.0 + std * jax.random.normal(ks[14], (1, H), dtype)
    be2 = std * jax.random.normal(ks[15], (1, H), dtype)
    return (wq, bq, wk, bk, wv, bv, wo, bo, g1, be1, w1, b1, w2, b2, g2, be2)


if __name__ == "__main__":
    B, S, H = 2, 128, config.hidden_size
    I = config.intermediate_size

    key = jax.random.PRNGKey(0)
    k_x, k_p = jax.random.split(key)
    x = jax.random.normal(k_x, (B, S, H), jnp.float32)
    params = init_params(k_p, H, I)

    out = jax.block_until_ready(bert_layer_pallas(x, params))
    ref = jax.block_until_ready(bert_layer_ref(x, params))

    assert out.shape == (B, S, H)
    max_diff = float(jnp.max(jnp.abs(out - ref)))
    assert jnp.allclose(out, ref, atol=5e-3, rtol=5e-3), (
        "mismatch vs reference: max abs diff = %g" % max_diff)

    print("KERNEL_OK")
</pallas_src>

<mosaic_0001>
module attributes {stable_mosaic.version = 11 : i64} {
  func.func @bert_layer_kernel(%arg0: i32, %arg1: memref<1x128x256xf32, #tpu.memory_space<vmem>>, %arg2: memref<4x256x64xbf16, #tpu.memory_space<vmem>>, %arg3: memref<4x1x64xf32, #tpu.memory_space<vmem>>, %arg4: memref<4x256x64xbf16, #tpu.memory_space<vmem>>, %arg5: memref<4x1x64xf32, #tpu.memory_space<vmem>>, %arg6: memref<4x256x64xbf16, #tpu.memory_space<vmem>>, %arg7: memref<4x1x64xf32, #tpu.memory_space<vmem>>, %arg8: memref<4x64x256xbf16, #tpu.memory_space<vmem>>, %arg9: memref<1x256xf32, #tpu.memory_space<vmem>>, %arg10: memref<1x256xf32, #tpu.memory_space<vmem>>, %arg11: memref<1x256xf32, #tpu.memory_space<vmem>>, %arg12: memref<256x1024xbf16, #tpu.memory_space<vmem>>, %arg13: memref<1x1024xf32, #tpu.memory_space<vmem>>, %arg14: memref<1024x256xbf16, #tpu.memory_space<vmem>>, %arg15: memref<1x256xf32, #tpu.memory_space<vmem>>, %arg16: memref<1x256xf32, #tpu.memory_space<vmem>>, %arg17: memref<1x256xf32, #tpu.memory_space<vmem>>, %arg18: memref<1x128x256xf32, #tpu.memory_space<vmem>>) attributes {dimension_semantics = [#tpu.dimension_semantics<parallel>], iteration_bounds = array<i64: 2>, scalar_prefetch = 0 : i64, scratch_operands = 0 : i64, tpu.core_type = #tpu.core_type<tc>, window_params = [{transform_indices = @transform_0, window_bounds = array<i64: 1, 128, 256>}, {pipeline_mode = #tpu.pipeline_mode<synchronous>, transform_indices = @transform_1, window_bounds = array<i64: 4, 256, 64>}, {pipeline_mode = #tpu.pipeline_mode<synchronous>, transform_indices = @transform_2, window_bounds = array<i64: 4, 1, 64>}, {pipeline_mode = #tpu.pipeline_mode<synchronous>, transform_indices = @transform_3, window_bounds = array<i64: 4, 256, 64>}, {pipeline_mode = #tpu.pipeline_mode<synchronous>, transform_indices = @transform_4, window_bounds = array<i64: 4, 1, 64>}, {pipeline_mode = #tpu.pipeline_mode<synchronous>, transform_indices = @transform_5, window_bounds = array<i64: 4, 256, 64>}, {pipeline_mode = #tpu.pipeline_mode<synchronous>, transform_indices = @transform_6, window_bounds = array<i64: 4, 1, 64>}, {pipeline_mode = #tpu.pipeline_mode<synchronous>, transform_indices = @transform_7, window_bounds = array<i64: 4, 64, 256>}, {pipeline_mode = #tpu.pipeline_mode<synchronous>, transform_indices = @transform_8, window_bounds = array<i64: 1, 256>}, {pipeline_mode = #tpu.pipeline_mode<synchronous>, transform_indices = @transform_9, window_bounds = array<i64: 1, 256>}, {pipeline_mode = #tpu.pipeline_mode<synchronous>, transform_indices = @transform_10, window_bounds = array<i64: 1, 256>}, {pipeline_mode = #tpu.pipeline_mode<synchronous>, transform_indices = @transform_11, window_bounds = array<i64: 256, 1024>}, {pipeline_mode = #tpu.pipeline_mode<synchronous>, transform_indices = @transform_12, window_bounds = array<i64: 1, 1024>}, {pipeline_mode = #tpu.pipeline_mode<synchronous>, transform_indices = @transform_13, window_bounds = array<i64: 1024, 256>}, {pipeline_mode = #tpu.pipeline_mode<synchronous>, transform_indices = @transform_14, window_bounds = array<i64: 1, 256>}, {pipeline_mode = #tpu.pipeline_mode<synchronous>, transform_indices = @transform_15, window_bounds = array<i64: 1, 256>}, {pipeline_mode = #tpu.pipeline_mode<synchronous>, transform_indices = @transform_16, window_bounds = array<i64: 1, 256>}, {transform_indices = @transform_17, window_bounds = array<i64: 1, 128, 256>}]} {
    %c0 = arith.constant 0 : index
    %c0_0 = arith.constant 0 : index
    %c0_1 = arith.constant 0 : index
    %0 = vector.load %arg1[%c0, %c0_0, %c0_1] : memref<1x128x256xf32, #tpu.memory_space<vmem>>, vector<1x128x256xf32>
    %1 = vector.shape_cast %0 : vector<1x128x256xf32> to vector<128x256xf32>
    %2 = arith.truncf %1 : vector<128x256xf32> to vector<128x256xbf16>
    %c0_2 = arith.constant 0 : index
    %c0_3 = arith.constant 0 : index
    %c0_4 = arith.constant 0 : index
    %3 = vector.load %arg2[%c0_2, %c0_3, %c0_4] : memref<4x256x64xbf16, #tpu.memory_space<vmem>>, vector<1x256x64xbf16>
    %4 = vector.shape_cast %3 : vector<1x256x64xbf16> to vector<256x64xbf16>
    %cst = arith.constant dense<0.000000e+00> : vector<128x64xf32>
    %5 = tpu.matmul %2, %4, %cst {dimension_numbers = #tpu.dot_dimension_numbers<[1], [0], [0], [1], [0, 0, 1, 1], [], []>} : vector<128x256xbf16>, vector<256x64xbf16>, vector<128x64xf32> -> vector<128x64xf32>
    %c0_5 = arith.constant 0 : index
    %c0_6 = arith.constant 0 : index
    %c0_7 = arith.constant 0 : index
    %6 = vector.load %arg3[%c0_5, %c0_6, %c0_7] : memref<4x1x64xf32, #tpu.memory_space<vmem>>, vector<1x1x64xf32>
    %7 = vector.shape_cast %6 : vector<1x1x64xf32> to vector<1x64xf32>
    %8 = vector.broadcast %7 : vector<1x64xf32> to vector<128x64xf32>
    %9 = arith.addf %5, %8 : vector<128x64xf32>
    %c0_8 = arith.constant 0 : index
    %c0_9 = arith.constant 0 : index
    %c0_10 = arith.constant 0 : index
    %10 = vector.load %arg4[%c0_8, %c0_9, %c0_10] : memref<4x256x64xbf16, #tpu.memory_space<vmem>>, vector<1x256x64xbf16>
    %11 = vector.shape_cast %10 : vector<1x256x64xbf16> to vector<256x64xbf16>
    %cst_11 = arith.constant dense<0.000000e+00> : vector<128x64xf32>
    %12 = tpu.matmul %2, %11, %cst_11 {dimension_numbers = #tpu.dot_dimension_numbers<[1], [0], [0], [1], [0, 0, 1, 1], [], []>} : vector<128x256xbf16>, vector<256x64xbf16>, vector<128x64xf32> -> vector<128x64xf32>
    %c0_12 = arith.constant 0 : index
    %c0_13 = arith.constant 0 : index
    %c0_14 = arith.constant 0 : index
    %13 = vector.load %arg5[%c0_12, %c0_13, %c0_14] : memref<4x1x64xf32, #tpu.memory_space<vmem>>, vector<1x1x64xf32>
    %14 = vector.shape_cast %13 : vector<1x1x64xf32> to vector<1x64xf32>
    %15 = vector.broadcast %14 : vector<1x64xf32> to vector<128x64xf32>
    %16 = arith.addf %12, %15 : vector<128x64xf32>
    %c0_15 = arith.constant 0 : index
    %c0_16 = arith.constant 0 : index
    %c0_17 = arith.constant 0 : index
    %17 = vector.load %arg6[%c0_15, %c0_16, %c0_17] : memref<4x256x64xbf16, #tpu.memory_space<vmem>>, vector<1x256x64xbf16>
    %18 = vector.shape_cast %17 : vector<1x256x64xbf16> to vector<256x64xbf16>
    %cst_18 = arith.constant dense<0.000000e+00> : vector<128x64xf32>
    %19 = tpu.matmul %2, %18, %cst_18 {dimension_numbers = #tpu.dot_dimension_numbers<[1], [0], [0], [1], [0, 0, 1, 1], [], []>} : vector<128x256xbf16>, vector<256x64xbf16>, vector<128x64xf32> -> vector<128x64xf32>
    %c0_19 = arith.constant 0 : index
    %c0_20 = arith.constant 0 : index
    %c0_21 = arith.constant 0 : index
    %20 = vector.load %arg7[%c0_19, %c0_20, %c0_21] : memref<4x1x64xf32, #tpu.memory_space<vmem>>, vector<1x1x64xf32>
    %21 = vector.shape_cast %20 : vector<1x1x64xf32> to vector<1x64xf32>
    %22 = vector.broadcast %21 : vector<1x64xf32> to vector<128x64xf32>
    %23 = arith.addf %19, %22 : vector<128x64xf32>
    %24 = arith.truncf %9 : vector<128x64xf32> to vector<128x64xbf16>
    %25 = arith.truncf %16 : vector<128x64xf32> to vector<128x64xbf16>
    %cst_22 = arith.constant dense<0.000000e+00> : vector<128x128xf32>
    %26 = tpu.matmul %24, %25, %cst_22 {dimension_numbers = #tpu.dot_dimension_numbers<[1], [1], [0], [0], [0, 0, 1, 0], [], []>} : vector<128x64xbf16>, vector<128x64xbf16>, vector<128x128xf32> -> vector<128x128xf32>
    %cst_23 = arith.constant dense<0xFF800000> : vector<128xf32>
    %27 = vector.multi_reduction <maximumf>, %26, %cst_23 [1] : vector<128x128xf32> to vector<128xf32>
    %28 = vector.shape_cast %27 : vector<128xf32> to vector<128x1xf32>
    %29 = vector.broadcast %28 : vector<128x1xf32> to vector<128x128xf32>
    %30 = arith.subf %26, %29 : vector<128x128xf32>
    %31 = math.exp %30 : vector<128x128xf32>
    %cst_24 = arith.constant dense<0.000000e+00> : vector<128xf32>
    %32 = vector.multi_reduction <add>, %31, %cst_24 [1] : vector<128x128xf32> to vector<128xf32>
    %33 = vector.shape_cast %32 : vector<128xf32> to vector<128x1xf32>
    %34 = tpu.reciprocal %33 {approx = true} : vector<128x1xf32> -> vector<128x1xf32>
    %35 = vector.broadcast %34 : vector<128x1xf32> to vector<128x128xf32>
    %36 = arith.mulf %31, %35 : vector<128x128xf32>
    %37 = arith.truncf %36 : vector<128x128xf32> to vector<128x128xbf16>
    %38 = arith.truncf %23 : vector<128x64xf32> to vector<128x64xbf16>
    %cst_25 = arith.constant dense<0.000000e+00> : vector<128x64xf32>
    %39 = tpu.matmul %37, %38, %cst_25 {dimension_numbers = #tpu.dot_dimension_numbers<[1], [0], [0], [1], [0, 0, 1, 1], [], []>} : vector<128x128xbf16>, vector<128x64xbf16>, vector<128x64xf32> -> vector<128x64xf32>
    %40 = arith.truncf %39 : vector<128x64xf32> to vector<128x64xbf16>
    %c0_26 = arith.constant 0 : index
    %c0_27 = arith.constant 0 : index
    %c0_28 = arith.constant 0 : index
    %41 = vector.load %arg8[%c0_26, %c0_27, %c0_28] : memref<4x64x256xbf16, #tpu.memory_space<vmem>>, vector<1x64x256xbf16>
    %42 = vector.shape_cast %41 : vector<1x64x256xbf16> to vector<64x256xbf16>
    %cst_29 = arith.constant dense<0.000000e+00> : vector<128x256xf32>
    %43 = tpu.matmul %40, %42, %cst_29 {dimension_numbers = #tpu.dot_dimension_numbers<[1], [0], [0], [1], [0, 0, 1, 1], [], []>} : vector<128x64xbf16>, vector<64x256xbf16>, vector<128x256xf32> -> vector<128x256xf32>
    %c0_30 = arith.constant 0 : index
    %c0_31 = arith.constant 0 : index
    %44 = vector.load %arg9[%c0_30, %c0_31] : memref<1x256xf32, #tpu.memory_space<vmem>>, vector<1x256xf32>
    %45 = vector.broadcast %44 : vector<1x256xf32> to vector<128x256xf32>
    %46 = arith.addf %43, %45 : vector<128x256xf32>
    %c1 = arith.constant 1 : index
    %c0_32 = arith.constant 0 : index
    %c0_33 = arith.constant 0 : index
    %47 = vector.load %arg2[%c1, %c0_32, %c0_33] : memref<4x256x64xbf16, #tpu.memory_space<vmem>>, vector<1x256x64xbf16>
    %48 = vector.shape_cast %47 : vector<1x256x64xbf16> to vector<256x64xbf16>
    %cst_34 = arith.constant dense<0.000000e+00> : vector<128x64xf32>
    %49 = tpu.matmul %2, %48, %cst_34 {dimension_numbers = #tpu.dot_dimension_numbers<[1], [0], [0], [1], [0, 0, 1, 1], [], []>} : vector<128x256xbf16>, vector<256x64xbf16>, vector<128x64xf32> -> vector<128x64xf32>
    %c1_35 = arith.constant 1 : index
    %c0_36 = arith.constant 0 : index
    %c0_37 = arith.constant 0 : index
    %50 = vector.load %arg3[%c1_35, %c0_36, %c0_37] : memref<4x1x64xf32, #tpu.memory_space<vmem>>, vector<1x1x64xf32>
    %51 = vector.shape_cast %50 : vector<1x1x64xf32> to vector<1x64xf32>
    %52 = vector.broadcast %51 : vector<1x64xf32> to vector<128x64xf32>
    %53 = arith.addf %49, %52 : vector<128x64xf32>
    %c1_38 = arith.constant 1 : index
    %c0_39 = arith.constant 0 : index
    %c0_40 = arith.constant 0 : index
    %54 = vector.load %arg4[%c1_38, %c0_39, %c0_40] : memref<4x256x64xbf16, #tpu.memory_space<vmem>>, vector<1x256x64xbf16>
    %55 = vector.shape_cast %54 : vector<1x256x64xbf16> to vector<256x64xbf16>
    %cst_41 = arith.constant dense<0.000000e+00> : vector<128x64xf32>
    %56 = tpu.matmul %2, %55, %cst_41 {dimension_numbers = #tpu.dot_dimension_numbers<[1], [0], [0], [1], [0, 0, 1, 1], [], []>} : vector<128x256xbf16>, vector<256x64xbf16>, vector<128x64xf32> -> vector<128x64xf32>
    %c1_42 = arith.constant 1 : index
    %c0_43 = arith.constant 0 : index
    %c0_44 = arith.constant 0 : index
    %57 = vector.load %arg5[%c1_42, %c0_43, %c0_44] : memref<4x1x64xf32, #tpu.memory_space<vmem>>, vector<1x1x64xf32>
    %58 = vector.shape_cast %57 : vector<1x1x64xf32> to vector<1x64xf32>
    %59 = vector.broadcast %58 : vector<1x64xf32> to vector<128x64xf32>
    %60 = arith.addf %56, %59 : vector<128x64xf32>
    %c1_45 = arith.constant 1 : index
    %c0_46 = arith.constant 0 : index
    %c0_47 = arith.constant 0 : index
    %61 = vector.load %arg6[%c1_45, %c0_46, %c0_47] : memref<4x256x64xbf16, #tpu.memory_space<vmem>>, vector<1x256x64xbf16>
    %62 = vector.shape_cast %61 : vector<1x256x64xbf16> to vector<256x64xbf16>
    %cst_48 = arith.constant dense<0.000000e+00> : vector<128x64xf32>
    %63 = tpu.matmul %2, %62, %cst_48 {dimension_numbers = #tpu.dot_dimension_numbers<[1], [0], [0], [1], [0, 0, 1, 1], [], []>} : vector<128x256xbf16>, vector<256x64xbf16>, vector<128x64xf32> -> vector<128x64xf32>
    %c1_49 = arith.constant 1 : index
    %c0_50 = arith.constant 0 : index
    %c0_51 = arith.constant 0 : index
    %64 = vector.load %arg7[%c1_49, %c0_50, %c0_51] : memref<4x1x64xf32, #tpu.memory_space<vmem>>, vector<1x1x64xf32>
    %65 = vector.shape_cast %64 : vector<1x1x64xf32> to vector<1x64xf32>
    %66 = vector.broadcast %65 : vector<1x64xf32> to vector<128x64xf32>
    %67 = arith.addf %63, %66 : vector<128x64xf32>
    %68 = arith.truncf %53 : vector<128x64xf32> to vector<128x64xbf16>
    %69 = arith.truncf %60 : vector<128x64xf32> to vector<128x64xbf16>
    %cst_52 = arith.constant dense<0.000000e+00> : vector<128x128xf32>
    %70 = tpu.matmul %68, %69, %cst_52 {dimension_numbers = #tpu.dot_dimension_numbers<[1], [1], [0], [0], [0, 0, 1, 0], [], []>} : vector<128x64xbf16>, vector<128x64xbf16>, vector<128x128xf32> -> vector<128x128xf32>
    %cst_53 = arith.constant dense<0xFF800000> : vector<128xf32>
    %71 = vector.multi_reduction <maximumf>, %70, %cst_53 [1] : vector<128x128xf32> to vector<128xf32>
    %72 = vector.shape_cast %71 : vector<128xf32> to vector<128x1xf32>
    %73 = vector.broadcast %72 : vector<128x1xf32> to vector<128x128xf32>
    %74 = arith.subf %70, %73 : vector<128x128xf32>
    %75 = math.exp %74 : vector<128x128xf32>
    %cst_54 = arith.constant dense<0.000000e+00> : vector<128xf32>
    %76 = vector.multi_reduction <add>, %75, %cst_54 [1] : vector<128x128xf32> to vector<128xf32>
    %77 = vector.shape_cast %76 : vector<128xf32> to vector<128x1xf32>
    %78 = tpu.reciprocal %77 {approx = true} : vector<128x1xf32> -> vector<128x1xf32>
    %79 = vector.broadcast %78 : vector<128x1xf32> to vector<128x128xf32>
    %80 = arith.mulf %75, %79 : vector<128x128xf32>
    %81 = arith.truncf %80 : vector<128x128xf32> to vector<128x128xbf16>
    %82 = arith.truncf %67 : vector<128x64xf32> to vector<128x64xbf16>
    %cst_55 = arith.constant dense<0.000000e+00> : vector<128x64xf32>
    %83 = tpu.matmul %81, %82, %cst_55 {dimension_numbers = #tpu.dot_dimension_numbers<[1], [0], [0], [1], [0, 0, 1, 1], [], []>} : vector<128x128xbf16>, vector<128x64xbf16>, vector<128x64xf32> -> vector<128x64xf32>
    %84 = arith.truncf %83 : vector<128x64xf32> to vector<128x64xbf16>
    %c1_56 = arith.constant 1 : index
    %c0_57 = arith.constant 0 : index
    %c0_58 = arith.constant 0 : index
    %85 = vector.load %arg8[%c1_56, %c0_57, %c0_58] : memref<4x64x256xbf16, #tpu.memory_space<vmem>>, vector<1x64x256xbf16>
    %86 = vector.shape_cast %85 : vector<1x64x256xbf16> to vector<64x256xbf16>
    %cst_59 = arith.constant dense<0.000000e+00> : vector<128x256xf32>
    %87 = tpu.matmul %84, %86, %cst_59 {dimension_numbers = #tpu.dot_dimension_numbers<[1], [0], [0], [1], [0, 0, 1, 1], [], []>} : vector<128x64xbf16>, vector<64x256xbf16>, vector<128x256xf32> -> vector<128x256xf32>
    %88 = arith.addf %46, %87 : vector<128x256xf32>
    %c2 = arith.constant 2 : index
    %c0_60 = arith.constant 0 : index
    %c0_61 = arith.constant 0 : index
    %89 = vector.load %arg2[%c2, %c0_60, %c0_61] : memref<4x256x64xbf16, #tpu.memory_space<vmem>>, vector<1x256x64xbf16>
    %90 = vector.shape_cast %89 : vector<1x256x64xbf16> to vector<256x64xbf16>
    %cst_62 = arith.constant dense<0.000000e+00> : vector<128x64xf32>
    %91 = tpu.matmul %2, %90, %cst_62 {dimension_numbers = #tpu.dot_dimension_numbers<[1], [0], [0], [1], [0, 0, 1, 1], [], []>} : vector<128x256xbf16>, vector<256x64xbf16>, vector<128x64xf32> -> vector<128x64xf32>
    %c2_63 = arith.constant 2 : index
    %c0_64 = arith.constant 0 : index
    %c0_65 = arith.constant 0 : index
    %92 = vector.load %arg3[%c2_63, %c0_64, %c0_65] : memref<4x1x64xf32, #tpu.memory_space<vmem>>, vector<1x1x64xf32>
    %93 = vector.shape_cast %92 : vector<1x1x64xf32> to vector<1x64xf32>
    %94 = vector.broadcast %93 : vector<1x64xf32> to vector<128x64xf32>
    %95 = arith.addf %91, %94 : vector<128x64xf32>
    %c2_66 = arith.constant 2 : index
    %c0_67 = arith.constant 0 : index
    %c0_68 = arith.constant 0 : index
    %96 = vector.load %arg4[%c2_66, %c0_67, %c0_68] : memref<4x256x64xbf16, #tpu.memory_space<vmem>>, vector<1x256x64xbf16>
    %97 = vector.shape_cast %96 : vector<1x256x64xbf16> to vector<256x64xbf16>
    %cst_69 = arith.constant dense<0.000000e+00> : vector<128x64xf32>
    %98 = tpu.matmul %2, %97, %cst_69 {dimension_numbers = #tpu.dot_dimension_numbers<[1], [0], [0], [1], [0, 0, 1, 1], [], []>} : vector<128x256xbf16>, vector<256x64xbf16>, vector<128x64xf32> -> vector<128x64xf32>
    %c2_70 = arith.constant 2 : index
    %c0_71 = arith.constant 0 : index
    %c0_72 = arith.constant 0 : index
    %99 = vector.load %arg5[%c2_70, %c0_71, %c0_72] : memref<4x1x64xf32, #tpu.memory_space<vmem>>, vector<1x1x64xf32>
    %100 = vector.shape_cast %99 : vector<1x1x64xf32> to vector<1x64xf32>
    %101 = vector.broadcast %100 : vector<1x64xf32> to vector<128x64xf32>
    %102 = arith.addf %98, %101 : vector<128x64xf32>
    %c2_73 = arith.constant 2 : index
    %c0_74 = arith.constant 0 : index
    %c0_75 = arith.constant 0 : index
    %103 = vector.load %arg6[%c2_73, %c0_74, %c0_75] : memref<4x256x64xbf16, #tpu.memory_space<vmem>>, vector<1x256x64xbf16>
    %104 = vector.shape_cast %103 : vector<1x256x64xbf16> to vector<256x64xbf16>
    %cst_76 = arith.constant dense<0.000000e+00> : vector<128x64xf32>
    %105 = tpu.matmul %2, %104, %cst_76 {dimension_numbers = #tpu.dot_dimension_numbers<[1], [0], [0], [1], [0, 0, 1, 1], [], []>} : vector<128x256xbf16>, vector<256x64xbf16>, vector<128x64xf32> -> vector<128x64xf32>
    %c2_77 = arith.constant 2 : index
    %c0_78 = arith.constant 0 : index
    %c0_79 = arith.constant 0 : index
    %106 = vector.load %arg7[%c2_77, %c0_78, %c0_79] : memref<4x1x64xf32, #tpu.memory_space<vmem>>, vector<1x1x64xf32>
    %107 = vector.shape_cast %106 : vector<1x1x64xf32> to vector<1x64xf32>
    %108 = vector.broadcast %107 : vector<1x64xf32> to vector<128x64xf32>
    %109 = arith.addf %105, %108 : vector<128x64xf32>
    %110 = arith.truncf %95 : vector<128x64xf32> to vector<128x64xbf16>
    %111 = arith.truncf %102 : vector<128x64xf32> to vector<128x64xbf16>
    %cst_80 = arith.constant dense<0.000000e+00> : vector<128x128xf32>
    %112 = tpu.matmul %110, %111, %cst_80 {dimension_numbers = #tpu.dot_dimension_numbers<[1], [1], [0], [0], [0, 0, 1, 0], [], []>} : vector<128x64xbf16>, vector<128x64xbf16>, vector<128x128xf32> -> vector<128x128xf32>
    %cst_81 = arith.constant dense<0xFF800000> : vector<128xf32>
    %113 = vector.multi_reduction <maximumf>, %112, %cst_81 [1] : vector<128x128xf32> to vector<128xf32>
    %114 = vector.shape_cast %113 : vector<128xf32> to vector<128x1xf32>
    %115 = vector.broadcast %114 : vector<128x1xf32> to vector<128x128xf32>
    %116 = arith.subf %112, %115 : vector<128x128xf32>
    %117 = math.exp %116 : vector<128x128xf32>
    %cst_82 = arith.constant dense<0.000000e+00> : vector<128xf32>
    %118 = vector.multi_reduction <add>, %117, %cst_82 [1] : vector<128x128xf32> to vector<128xf32>
    %119 = vector.shape_cast %118 : vector<128xf32> to vector<128x1xf32>
    %120 = tpu.reciprocal %119 {approx = true} : vector<128x1xf32> -> vector<128x1xf32>
    %121 = vector.broadcast %120 : vector<128x1xf32> to vector<128x128xf32>
    %122 = arith.mulf %117, %121 : vector<128x128xf32>
    %123 = arith.truncf %122 : vector<128x128xf32> to vector<128x128xbf16>
    %124 = arith.truncf %109 : vector<128x64xf32> to vector<128x64xbf16>
    %cst_83 = arith.constant dense<0.000000e+00> : vector<128x64xf32>
    %125 = tpu.matmul %123, %124, %cst_83 {dimension_numbers = #tpu.dot_dimension_numbers<[1], [0], [0], [1], [0, 0, 1, 1], [], []>} : vector<128x128xbf16>, vector<128x64xbf16>, vector<128x64xf32> -> vector<128x64xf32>
    %126 = arith.truncf %125 : vector<128x64xf32> to vector<128x64xbf16>
    %c2_84 = arith.constant 2 : index
    %c0_85 = arith.constant 0 : index
    %c0_86 = arith.constant 0 : index
    %127 = vector.load %arg8[%c2_84, %c0_85, %c0_86] : memref<4x64x256xbf16, #tpu.memory_space<vmem>>, vector<1x64x256xbf16>
    %128 = vector.shape_cast %127 : vector<1x64x256xbf16> to vector<64x256xbf16>
    %cst_87 = arith.constant dense<0.000000e+00> : vector<128x256xf32>
    %129 = tpu.matmul %126, %128, %cst_87 {dimension_numbers = #tpu.dot_dimension_numbers<[1], [0], [0], [1], [0, 0, 1, 1], [], []>} : vector<128x64xbf16>, vector<64x256xbf16>, vector<128x256xf32> -> vector<128x256xf32>
    %130 = arith.addf %88, %129 : vector<128x256xf32>
    %c3 = arith.constant 3 : index
    %c0_88 = arith.constant 0 : index
    %c0_89 = arith.constant 0 : index
    %131 = vector.load %arg2[%c3, %c0_88, %c0_89] : memref<4x256x64xbf16, #tpu.memory_space<vmem>>, vector<1x256x64xbf16>
    %132 = vector.shape_cast %131 : vector<1x256x64xbf16> to vector<256x64xbf16>
    %cst_90 = arith.constant dense<0.000000e+00> : vector<128x64xf32>
    %133 = tpu.matmul %2, %132, %cst_90 {dimension_numbers = #tpu.dot_dimension_numbers<[1], [0], [0], [1], [0, 0, 1, 1], [], []>} : vector<128x256xbf16>, vector<256x64xbf16>, vector<128x64xf32> -> vector<128x64xf32>
    %c3_91 = arith.constant 3 : index
    %c0_92 = arith.constant 0 : index
    %c0_93 = arith.constant 0 : index
    %134 = vector.load %arg3[%c3_91, %c0_92, %c0_93] : memref<4x1x64xf32, #tpu.memory_space<vmem>>, vector<1x1x64xf32>
    %135 = vector.shape_cast %134 : vector<1x1x64xf32> to vector<1x64xf32>
    %136 = vector.broadcast %135 : vector<1x64xf32> to vector<128x64xf32>
    %137 = arith.addf %133, %136 : vector<128x64xf32>
    %c3_94 = arith.constant 3 : index
    %c0_95 = arith.constant 0 : index
    %c0_96 = arith.constant 0 : index
    %138 = vector.load %arg4[%c3_94, %c0_95, %c0_96] : memref<4x256x64xbf16, #tpu.memory_space<vmem>>, vector<1x256x64xbf16>
    %139 = vector.shape_cast %138 : vector<1x256x64xbf16> to vector<256x64xbf16>
    %cst_97 = arith.constant dense<0.000000e+00> : vector<128x64xf32>
    %140 = tpu.matmul %2, %139, %cst_97 {dimension_numbers = #tpu.dot_dimension_numbers<[1], [0], [0], [1], [0, 0, 1, 1], [], []>} : vector<128x256xbf16>, vector<256x64xbf16>, vector<128x64xf32> -> vector<128x64xf32>
    %c3_98 = arith.constant 3 : index
    %c0_99 = arith.constant 0 : index
    %c0_100 = arith.constant 0 : index
    %141 = vector.load %arg5[%c3_98, %c0_99, %c0_100] : memref<4x1x64xf32, #tpu.memory_space<vmem>>, vector<1x1x64xf32>
    %142 = vector.shape_cast %141 : vector<1x1x64xf32> to vector<1x64xf32>
    %143 = vector.broadcast %142 : vector<1x64xf32> to vector<128x64xf32>
    %144 = arith.addf %140, %143 : vector<128x64xf32>
    %c3_101 = arith.constant 3 : index
    %c0_102 = arith.constant 0 : index
    %c0_103 = arith.constant 0 : index
    %145 = vector.load %arg6[%c3_101, %c0_102, %c0_103] : memref<4x256x64xbf16, #tpu.memory_space<vmem>>, vector<1x256x64xbf16>
    %146 = vector.shape_cast %145 : vector<1x256x64xbf16> to vector<256x64xbf16>
    %cst_104 = arith.constant dense<0.000000e+00> : vector<128x64xf32>
    %147 = tpu.matmul %2, %146, %cst_104 {dimension_numbers = #tpu.dot_dimension_numbers<[1], [0], [0], [1], [0, 0, 1, 1], [], []>} : vector<128x256xbf16>, vector<256x64xbf16>, vector<128x64xf32> -> vector<128x64xf32>
    %c3_105 = arith.constant 3 : index
    %c0_106 = arith.constant 0 : index
    %c0_107 = arith.constant 0 : index
    %148 = vector.load %arg7[%c3_105, %c0_106, %c0_107] : memref<4x1x64xf32, #tpu.memory_space<vmem>>, vector<1x1x64xf32>
    %149 = vector.shape_cast %148 : vector<1x1x64xf32> to vector<1x64xf32>
    %150 = vector.broadcast %149 : vector<1x64xf32> to vector<128x64xf32>
    %151 = arith.addf %147, %150 : vector<128x64xf32>
    %152 = arith.truncf %137 : vector<128x64xf32> to vector<128x64xbf16>
    %153 = arith.truncf %144 : vector<128x64xf32> to vector<128x64xbf16>
    %cst_108 = arith.constant dense<0.000000e+00> : vector<128x128xf32>
    %154 = tpu.matmul %152, %153, %cst_108 {dimension_numbers = #tpu.dot_dimension_numbers<[1], [1], [0], [0], [0, 0, 1, 0], [], []>} : vector<128x64xbf16>, vector<128x64xbf16>, vector<128x128xf32> -> vector<128x128xf32>
    %cst_109 = arith.constant dense<0xFF800000> : vector<128xf32>
    %155 = vector.multi_reduction <maximumf>, %154, %cst_109 [1] : vector<128x128xf32> to vector<128xf32>
    %156 = vector.shape_cast %155 : vector<128xf32> to vector<128x1xf32>
    %157 = vector.broadcast %156 : vector<128x1xf32> to vector<128x128xf32>
    %158 = arith.subf %154, %157 : vector<128x128xf32>
    %159 = math.exp %158 : vector<128x128xf32>
    %cst_110 = arith.constant dense<0.000000e+00> : vector<128xf32>
    %160 = vector.multi_reduction <add>, %159, %cst_110 [1] : vector<128x128xf32> to vector<128xf32>
    %161 = vector.shape_cast %160 : vector<128xf32> to vector<128x1xf32>
    %162 = tpu.reciprocal %161 {approx = true} : vector<128x1xf32> -> vector<128x1xf32>
    %163 = vector.broadcast %162 : vector<128x1xf32> to vector<128x128xf32>
    %164 = arith.mulf %159, %163 : vector<128x128xf32>
    %165 = arith.truncf %164 : vector<128x128xf32> to vector<128x128xbf16>
    %166 = arith.truncf %151 : vector<128x64xf32> to vector<128x64xbf16>
    %cst_111 = arith.constant dense<0.000000e+00> : vector<128x64xf32>
    %167 = tpu.matmul %165, %166, %cst_111 {dimension_numbers = #tpu.dot_dimension_numbers<[1], [0], [0], [1], [0, 0, 1, 1], [], []>} : vector<128x128xbf16>, vector<128x64xbf16>, vector<128x64xf32> -> vector<128x64xf32>
    %168 = arith.truncf %167 : vector<128x64xf32> to vector<128x64xbf16>
    %c3_112 = arith.constant 3 : index
    %c0_113 = arith.constant 0 : index
    %c0_114 = arith.constant 0 : index
    %169 = vector.load %arg8[%c3_112, %c0_113, %c0_114] : memref<4x64x256xbf16, #tpu.memory_space<vmem>>, vector<1x64x256xbf16>
    %170 = vector.shape_cast %169 : vector<1x64x256xbf16> to vector<64x256xbf16>
    %cst_115 = arith.constant dense<0.000000e+00> : vector<128x256xf32>
    %171 = tpu.matmul %168, %170, %cst_115 {dimension_numbers = #tpu.dot_dimension_numbers<[1], [0], [0], [1], [0, 0, 1, 1], [], []>} : vector<128x64xbf16>, vector<64x256xbf16>, vector<128x256xf32> -> vector<128x256xf32>
    %172 = arith.addf %130, %171 : vector<128x256xf32>
    %173 = arith.addf %172, %1 : vector<128x256xf32>
    %c0_116 = arith.constant 0 : index
    %c0_117 = arith.constant 0 : index
    %174 = vector.load %arg10[%c0_116, %c0_117] : memref<1x256xf32, #tpu.memory_space<vmem>>, vector<1x256xf32>
    %c0_118 = arith.constant 0 : index
    %c0_119 = arith.constant 0 : index
    %175 = vector.load %arg11[%c0_118, %c0_119] : memref<1x256xf32, #tpu.memory_space<vmem>>, vector<1x256xf32>
    %cst_120 = arith.constant dense<0.000000e+00> : vector<128xf32>
    %176 = vector.multi_reduction <add>, %173, %cst_120 [1] : vector<128x256xf32> to vector<128xf32>
    %177 = vector.shape_cast %176 : vector<128xf32> to vector<128x1xf32>
    %cst_121 = arith.constant 2.560000e+02 : f32
    %178 = vector.broadcast %cst_121 : f32 to vector<128x1xf32>
    %179 = arith.divf %177, %178 : vector<128x1xf32>
    %180 = vector.broadcast %179 : vector<128x1xf32> to vector<128x256xf32>
    %181 = arith.subf %173, %180 : vector<128x256xf32>
    %182 = arith.mulf %181, %181 : vector<128x256xf32>
    %cst_122 = arith.constant dense<0.000000e+00> : vector<128xf32>
    %183 = vector.multi_reduction <add>, %182, %cst_122 [1] : vector<128x256xf32> to vector<128xf32>
    %184 = vector.shape_cast %183 : vector<128xf32> to vector<128x1xf32>
    %cst_123 = arith.constant 2.560000e+02 : f32
    %185 = vector.broadcast %cst_123 : f32 to vector<128x1xf32>
    %186 = arith.divf %184, %185 : vector<128x1xf32>
    %187 = vector.broadcast %179 : vector<128x1xf32> to vector<128x256xf32>
    %188 = arith.subf %173, %187 : vector<128x256xf32>
    %cst_124 = arith.constant 9.99999996E-13 : f32
    %189 = vector.broadcast %cst_124 : f32 to vector<128x1xf32>
    %190 = arith.addf %186, %189 : vector<128x1xf32>
    %191 = math.rsqrt %190 : vector<128x1xf32>
    %192 = vector.broadcast %191 : vector<128x1xf32> to vector<128x256xf32>
    %193 = arith.mulf %188, %192 : vector<128x256xf32>
    %194 = vector.broadcast %174 : vector<1x256xf32> to vector<128x256xf32>
    %195 = arith.mulf %193, %194 : vector<128x256xf32>
    %196 = vector.broadcast %175 : vector<1x256xf32> to vector<128x256xf32>
    %197 = arith.addf %195, %196 : vector<128x256xf32>
    %198 = arith.truncf %197 : vector<128x256xf32> to vector<128x256xbf16>
    %c0_125 = arith.constant 0 : index
    %c0_126 = arith.constant 0 : index
    %199 = vector.load %arg12[%c0_125, %c0_126] : memref<256x1024xbf16, #tpu.memory_space<vmem>>, vector<256x1024xbf16>
    %cst_127 = arith.constant dense<0.000000e+00> : vector<128x1024xf32>
    %200 = tpu.matmul %198, %199, %cst_127 {dimension_numbers = #tpu.dot_dimension_numbers<[1], [0], [0], [1], [0, 0, 1, 1], [], []>} : vector<128x256xbf16>, vector<256x1024xbf16>, vector<128x1024xf32> -> vector<128x1024xf32>
    %c0_128 = arith.constant 0 : index
    %c0_129 = arith.constant 0 : index
    %201 = vector.load %arg13[%c0_128, %c0_129] : memref<1x1024xf32, #tpu.memory_space<vmem>>, vector<1x1024xf32>
    %202 = vector.broadcast %201 : vector<1x1024xf32> to vector<128x1024xf32>
    %203 = arith.addf %200, %202 : vector<128x1024xf32>
    %cst_130 = arith.constant 5.000000e-01 : f32
    %204 = vector.broadcast %cst_130 : f32 to vector<128x1024xf32>
    %205 = arith.mulf %204, %203 : vector<128x1024xf32>
    %cst_131 = arith.constant 0.707106769 : f32
    %206 = vector.broadcast %cst_131 : f32 to vector<128x1024xf32>
    %207 = arith.mulf %203, %206 : vector<128x1024xf32>
    %208 = math.erf %207 : vector<128x1024xf32>
    %cst_132 = arith.constant 1.000000e+00 : f32
    %209 = vector.broadcast %cst_132 : f32 to vector<128x1024xf32>
    %210 = arith.addf %209, %208 : vector<128x1024xf32>
    %211 = arith.mulf %205, %210 : vector<128x1024xf32>
    %212 = arith.truncf %211 : vector<128x1024xf32> to vector<128x1024xbf16>
    %c0_133 = arith.constant 0 : index
    %c0_134 = arith.constant 0 : index
    %213 = vector.load %arg14[%c0_133, %c0_134] : memref<1024x256xbf16, #tpu.memory_space<vmem>>, vector<1024x256xbf16>
    %cst_135 = arith.constant dense<0.000000e+00> : vector<128x256xf32>
    %214 = tpu.matmul %212, %213, %cst_135 {dimension_numbers = #tpu.dot_dimension_numbers<[1], [0], [0], [1], [0, 0, 1, 1], [], []>} : vector<128x1024xbf16>, vector<1024x256xbf16>, vector<128x256xf32> -> vector<128x256xf32>
    %c0_136 = arith.constant 0 : index
    %c0_137 = arith.constant 0 : index
    %215 = vector.load %arg15[%c0_136, %c0_137] : memref<1x256xf32, #tpu.memory_space<vmem>>, vector<1x256xf32>
    %216 = vector.broadcast %215 : vector<1x256xf32> to vector<128x256xf32>
    %217 = arith.addf %214, %216 : vector<128x256xf32>
    %218 = arith.addf %217, %197 : vector<128x256xf32>
    %c0_138 = arith.constant 0 : index
    %c0_139 = arith.constant 0 : index
    %219 = vector.load %arg16[%c0_138, %c0_139] : memref<1x256xf32, #tpu.memory_space<vmem>>, vector<1x256xf32>
    %c0_140 = arith.constant 0 : index
    %c0_141 = arith.constant 0 : index
    %220 = vector.load %arg17[%c0_140, %c0_141] : memref<1x256xf32, #tpu.memory_space<vmem>>, vector<1x256xf32>
    %cst_142 = arith.constant dense<0.000000e+00> : vector<128xf32>
    %221 = vector.multi_reduction <add>, %218, %cst_142 [1] : vector<128x256xf32> to vector<128xf32>
    %222 = vector.shape_cast %221 : vector<128xf32> to vector<128x1xf32>
    %cst_143 = arith.constant 2.560000e+02 : f32
    %223 = vector.broadcast %cst_143 : f32 to vector<128x1xf32>
    %224 = arith.divf %222, %223 : vector<128x1xf32>
    %225 = vector.broadcast %224 : vector<128x1xf32> to vector<128x256xf32>
    %226 = arith.subf %218, %225 : vector<128x256xf32>
    %227 = arith.mulf %226, %226 : vector<128x256xf32>
    %cst_144 = arith.constant dense<0.000000e+00> : vector<128xf32>
    %228 = vector.multi_reduction <add>, %227, %cst_144 [1] : vector<128x256xf32> to vector<128xf32>
    %229 = vector.shape_cast %228 : vector<128xf32> to vector<128x1xf32>
    %cst_145 = arith.constant 2.560000e+02 : f32
    %230 = vector.broadcast %cst_145 : f32 to vector<128x1xf32>
    %231 = arith.divf %229, %230 : vector<128x1xf32>
    %232 = vector.broadcast %224 : vector<128x1xf32> to vector<128x256xf32>
    %233 = arith.subf %218, %232 : vector<128x256xf32>
    %cst_146 = arith.constant 9.99999996E-13 : f32
    %234 = vector.broadcast %cst_146 : f32 to vector<128x1xf32>
    %235 = arith.addf %231, %234 : vector<128x1xf32>
    %236 = math.rsqrt %235 : vector<128x1xf32>
    %237 = vector.broadcast %236 : vector<128x1xf32> to vector<128x256xf32>
    %238 = arith.mulf %233, %237 : vector<128x256xf32>
    %239 = vector.broadcast %219 : vector<1x256xf32> to vector<128x256xf32>
    %240 = arith.mulf %238, %239 : vector<128x256xf32>
    %241 = vector.broadcast %220 : vector<1x256xf32> to vector<128x256xf32>
    %242 = arith.addf %240, %241 : vector<128x256xf32>
    %c0_147 = arith.constant 0 : index
    %c0_148 = arith.constant 0 : index
    %c0_149 = arith.constant 0 : index
    %243 = vector.load %arg18[%c0_147, %c0_148, %c0_149] : memref<1x128x256xf32, #tpu.memory_space<vmem>>, vector<1x128x256xf32>
    %244 = vector.shape_cast %243 : vector<1x128x256xf32> to vector<128x256xf32>
    %245 = vector.shape_cast %242 : vector<128x256xf32> to vector<1x128x256xf32>
    tpu.vector_store %arg18[%c0_147, %c0_148, %c0_149], %245 {strides = array<i32>} : memref<1x128x256xf32, #tpu.memory_space<vmem>>, vector<1x128x256xf32>,
    return
  }
  func.func @transform_0(%arg0: i32) -> (i32, i32, i32) {
    %c0_i32 = arith.constant 0 : i32
    %c0_i32_0 = arith.constant 0 : i32
    %c0_i32_1 = arith.constant 0 : i32
    return %arg0, %c0_i32, %c0_i32_0 : i32, i32, i32
  }
  func.func @transform_1(%arg0: i32) -> (i32, i32, i32) {
    %c0_i32 = arith.constant 0 : i32
    %c0_i32_0 = arith.constant 0 : i32
    %c0_i32_1 = arith.constant 0 : i32
    %c0_i32_2 = arith.constant 0 : i32
    return %c0_i32, %c0_i32_0, %c0_i32_1 : i32, i32, i32
  }
  func.func @transform_2(%arg0: i32) -> (i32, i32, i32) {
    %c0_i32 = arith.constant 0 : i32
    %c0_i32_0 = arith.constant 0 : i32
    %c0_i32_1 = arith.constant 0 : i32
    %c0_i32_2 = arith.constant 0 : i32
    return %c0_i32, %c0_i32_0, %c0_i32_1 : i32, i32, i32
  }
  func.func @transform_3(%arg0: i32) -> (i32, i32, i32) {
    %c0_i32 = arith.constant 0 : i32
    %c0_i32_0 = arith.constant 0 : i32
    %c0_i32_1 = arith.constant 0 : i32
    %c0_i32_2 = arith.constant 0 : i32
    return %c0_i32, %c0_i32_0, %c0_i32_1 : i32, i32, i32
  }
  func.func @transform_4(%arg0: i32) -> (i32, i32, i32) {
    %c0_i32 = arith.constant 0 : i32
    %c0_i32_0 = arith.constant 0 : i32
    %c0_i32_1 = arith.constant 0 : i32
    %c0_i32_2 = arith.constant 0 : i32
    return %c0_i32, %c0_i32_0, %c0_i32_1 : i32, i32, i32
  }
  func.func @transform_5(%arg0: i32) -> (i32, i32, i32) {
    %c0_i32 = arith.constant 0 : i32
    %c0_i32_0 = arith.constant 0 : i32
    %c0_i32_1 = arith.constant 0 : i32
    %c0_i32_2 = arith.constant 0 : i32
    return %c0_i32, %c0_i32_0, %c0_i32_1 : i32, i32, i32
  }
  func.func @transform_6(%arg0: i32) -> (i32, i32, i32) {
    %c0_i32 = arith.constant 0 : i32
    %c0_i32_0 = arith.constant 0 : i32
    %c0_i32_1 = arith.constant 0 : i32
    %c0_i32_2 = arith.constant 0 : i32
    return %c0_i32, %c0_i32_0, %c0_i32_1 : i32, i32, i32
  }
  func.func @transform_7(%arg0: i32) -> (i32, i32, i32) {
    %c0_i32 = arith.constant 0 : i32
    %c0_i32_0 = arith.constant 0 : i32
    %c0_i32_1 = arith.constant 0 : i32
    %c0_i32_2 = arith.constant 0 : i32
    return %c0_i32, %c0_i32_0, %c0_i32_1 : i32, i32, i32
  }
  func.func @transform_8(%arg0: i32) -> (i32, i32) {
    %c0_i32 = arith.constant 0 : i32
    %c0_i32_0 = arith.constant 0 : i32
    %c0_i32_1 = arith.constant 0 : i32
    return %c0_i32, %c0_i32_0 : i32, i32
  }
  func.func @transform_9(%arg0: i32) -> (i32, i32) {
    %c0_i32 = arith.constant 0 : i32
    %c0_i32_0 = arith.constant 0 : i32
    %c0_i32_1 = arith.constant 0 : i32
    return %c0_i32, %c0_i32_0 : i32, i32
  }
  func.func @transform_10(%arg0: i32) -> (i32, i32) {
    %c0_i32 = arith.constant 0 : i32
    %c0_i32_0 = arith.constant 0 : i32
    %c0_i32_1 = arith.constant 0 : i32
    return %c0_i32, %c0_i32_0 : i32, i32
  }
  func.func @transform_11(%arg0: i32) -> (i32, i32) {
    %c0_i32 = arith.constant 0 : i32
    %c0_i32_0 = arith.constant 0 : i32
    %c0_i32_1 = arith.constant 0 : i32
    return %c0_i32, %c0_i32_0 : i32, i32
  }
  func.func @transform_12(%arg0: i32) -> (i32, i32) {
    %c0_i32 = arith.constant 0 : i32
    %c0_i32_0 = arith.constant 0 : i32
    %c0_i32_1 = arith.constant 0 : i32
    return %c0_i32, %c0_i32_0 : i32, i32
  }
  func.func @transform_13(%arg0: i32) -> (i32, i32) {
    %c0_i32 = arith.constant 0 : i32
    %c0_i32_0 = arith.constant 0 : i32
    %c0_i32_1 = arith.constant 0 : i32
    return %c0_i32, %c0_i32_0 : i32, i32
  }
  func.func @transform_14(%arg0: i32) -> (i32, i32) {
    %c0_i32 = arith.constant 0 : i32
    %c0_i32_0 = arith.constant 0 : i32
    %c0_i32_1 = arith.constant 0 : i32
    return %c0_i32, %c0_i32_0 : i32, i32
  }
  func.func @transform_15(%arg0: i32) -> (i32, i32) {
    %c0_i32 = arith.constant 0 : i32
    %c0_i32_0 = arith.constant 0 : i32
    %c0_i32_1 = arith.constant 0 : i32
    return %c0_i32, %c0_i32_0 : i32, i32
  }
  func.func @transform_16(%arg0: i32) -> (i32, i32) {
    %c0_i32 = arith.constant 0 : i32
    %c0_i32_0 = arith.constant 0 : i32
    %c0_i32_1 = arith.constant 0 : i32
    return %c0_i32, %c0_i32_0 : i32, i32
  }
  func.func @transform_17(%arg0: i32) -> (i32, i32, i32) {
    %c0_i32 = arith.constant 0 : i32
    %c0_i32_0 = arith.constant 0 : i32
    %c0_i32_1 = arith.constant 0 : i32
    return %arg0, %c0_i32, %c0_i32_0 : i32, i32, i32
  }
}

</mosaic_0001>

<bundles_post_ra>
// kernel: tpu_custom_call.1
= control target key start
LH: loop header
LB: loop body
LE: loop exit
PB: predicated region body
PF: predicated region fallthrough
CT: control target
= control target key end

     0   :  { %s19531_s0 = inlined_call_operand.hbm [shape: f32[2,128,256], index: 0, kind: input, shape index: {}]   ;;  %s19532_s1 = inlined_call_operand.vmem [shape: bf16[4,256,64], index: 1, kind: input, shape index: {}]   ;;  %s19533_s2 = inlined_call_operand.hbm [shape: f32[4,1,64], index: 2, kind: input, shape index: {}]   ;;  %s19534_s3 = inlined_call_operand.vmem [shape: bf16[4,256,64], index: 3, kind: input, shape index: {}]   ;;  %s19535_s4 = inlined_call_operand.hbm [shape: f32[4,1,64], index: 4, kind: input, shape index: {}]   ;;  %s19536_s5 = inlined_call_operand.vmem [shape: bf16[4,256,64], index: 5, kind: input, shape index: {}]   ;;  %s19537_s6 = inlined_call_operand.hbm [shape: f32[4,1,64], index: 6, kind: input, shape index: {}]   ;;  %s19538_s7 = inlined_call_operand.hbm [shape: bf16[4,64,256], index: 7, kind: input, shape index: {}]   ;;  %s19539_s8 = inlined_call_operand.vmem [shape: f32[1,256], index: 8, kind: input, shape index: {}]   ;;  %s19540_s9 = inlined_call_operand.vmem [shape: f32[1,256], index: 9, kind: input, shape index: {}]   ;;  %s19541_s10 = inlined_call_operand.vmem [shape: f32[1,256], index: 10, kind: input, shape index: {}]   ;;  %s19542_s11 = inlined_call_operand.vmem [shape: bf16[256,1024], index: 11, kind: input, shape index: {}]   ;;  %s19543_s12 = inlined_call_operand.vmem [shape: f32[1,1024], index: 12, kind: input, shape index: {}]   ;;  %s19544_s13 = inlined_call_operand.vmem [shape: bf16[1024,256], index: 13, kind: input, shape index: {}]   ;;  %s19545_s14 = inlined_call_operand.vmem [shape: f32[1,256], index: 14, kind: input, shape index: {}]   ;;  %s19546_s15 = inlined_call_operand.vmem [shape: f32[1,256], index: 15, kind: input, shape index: {}]   ;;  %s19547_s16 = inlined_call_operand.vmem [shape: f32[1,256], index: 16, kind: input, shape index: {}]   ;;  %s19548_s17 = inlined_call_operand.hbm [shape: f32[2,128,256], index: 17, kind: output, shape index: {}]  }
   0x1   :  { %19636 = sst [smem:[#allocation111_spill]] %s19531_s0 }
   0x2   :  { %19637 = sst [smem:[#allocation112_spill]] %s19532_s1 }
   0x3   :  { %19638 = sst [smem:[#allocation113_spill]] %s19541_s10 }
   0x4   :  { %19639 = sst [smem:[#allocation114_spill]] %s19543_s12 }
   0x5   :  { %19640 = sst [smem:[#allocation115_spill]] %s19544_s13 }
   0x6   :  { %19641 = sst [smem:[#allocation116_spill]] %s19545_s14 }
   0x7   :  { %19642 = sst [smem:[#allocation117_spill]] %s19546_s15 }
   0x8   :  { %19643 = sst [smem:[#allocation118_spill]] %s19547_s16 }
   0x9   :  { %19644 = sst [smem:[#allocation119_spill]] %s19548_s17 }
   0xa   :  { %22 = vsyncpa [#allocation3], 0 }
   0xb   :  { %24 = vsyncpa [#allocation3 + $0x1], 0 }
   0xc   :  { %25 = vsyncpa [#allocation6], 0 }
   0xd   :  { %26 = vsyncpa [#allocation9], 0 }
   0xe   :  { %27 = vsyncpa [#allocation4], 0 }
   0xf   :  { %29 = vsyncpa [#allocation4 + $0x1], 0  ;;  %s13921_s24 = smov 0   ;;  %s13923_s25 = smov 0  }
  0x10   :  { %s13925_s26 = smov 0   ;;  %s13927_s27 = smov 0  }
  0x11 LB: > { %19645 = sst [smem:[#allocation16_spill]] %s13803_s24  ;;  %s13942_s28 = sadd.s32 4294967295, %s13815_s27   ;;  %s13815_s27 = sphi %s13927_s27, %s19958_s27   ;;  %s13811_s26 = sphi %s13925_s26, %s19957_s26   ;;  %s13807_s25 = sphi %s13923_s25, %s19956_s25   ;;  %s13803_s24 = sphi %s13921_s24, %s19955_s24  }
  0x12   : > { %s10156_s29 = sadd.s32 4294967294, %s13815_s27   ;;  %p55_p0 = scmp.ne.s32.totalorder %s13807_s25, %s13803_s24 }
  0x13   : > { %p19554_p1 = scmp.eq.s32.totalorder %s13942_s28, 0  ;;  %p421_p3 = scmp.eq.s32.totalorder %s10156_s29, 1 }
  0x14   : > { %p10157_p5 = scmp.ge.s32.totalorder %s13815_s27, 1  ;;  %p428_p7 = scmp.lt.s32.totalorder %s13815_s27, 3 }
  0x15   : > { %p13951_p4 = por %p19554_p1, %p55_p0  ;;  %p13956_p6 = por %p421_p3, %p55_p0 }
  0x16   : > { %p13961_p8 = pnand %p10157_p5, %p428_p7  ;;  %s13817_s19 = smov [#allocation5]  }
  0x17   : > { %s19646_s0 = scalar_select %p13951_p4, 1, 0 }
  0x18   : > { %s19647_s30 = scalar_select %p13956_p6, 1, 0 }
  0x19   : > { %s19649_s18 = scalar_select %p13961_p8, 1, 0 }
  0x1a   : > { %19648 = sst [smem:[#allocation17_spill]] %s19647_s30  ;;  %s443_s1 = sshll.u32 %s13817_s19, 4  ;;  %s13965_s1 = int_to_ptr.vmem [resolvable:$true] %s443_s1 }
  0x1b   : > { %p12484_p9 = pneg %p13961_p8  ;;  %s13818_s21 = smov [#allocation8]  }
  0x1c   : > { %s475_s22 = sshll.u32 %s13818_s21, 4  ;;  %s13819_s23 = smov [#allocation7]   ;;  %s13976_s22 = int_to_ptr.vmem [resolvable:$true] %s475_s22 }
  0x1d   : > { %p13972_p11 = pnand %p12484_p9, %p19554_p1  ;;  %s13978_s29 = sshll.u32 %s13819_s23, 4  ;;  %s460_s29 = int_to_ptr.vmem [resolvable:$true] %s13978_s29 }
  0x1e   : > { %s13599_s24 = scalar_lea.hbm %s19533_s2, 64 }
  0x1f   : > { %p13600_p12 = scmp.ne.s32.totalorder %s19533_s2, %s13599_s24  ;;  %p13988_p13 = pneg %p13972_p11 }
  0x20   : > { %p13606_p5 = scmp.lt.u32.totalorder %s13599_s24, %s19533_s2 }
  0x21   : > { %p13602_p0 = pnand %p13988_p13, %p13600_p12 }
  0x23   : > { %p13603_p3 = pneg %p13602_p0 }
  0x25   : > { %p13608_p7 = pnand %p13606_p5, %p13603_p3 }
  0x27   : > { %13611 = shalt.err (!%p13608_p7)
}
  0x28   : > { %s13612_s16 = scalar_lea.vmem %s13965_s1, 64  ;;  %p13620_p2 = scmp.lt.s32.totalorder %s13965_s1, %s13965_s1 }
  0x29   : > { %p13613_p9 = scmp.ne.s32.totalorder %s13965_s1, %s13612_s16  ;;  %p13621_p6 = scmp.lt.s32.totalorder %s13612_s16, %s13612_s16 }
  0x2b   : > { %p13615_p10 = pnand %p13613_p9, %p13988_p13  ;;  %p13622_p12 = por %p13621_p6, %p13620_p2 }
  0x2d   : > { %p13616_p1 = pneg %p13615_p10 }
  0x2f   : > { %p13623_p0 = pnand %p13622_p12, %p13616_p1 }
  0x31   : > { %13626 = shalt.err (!%p13623_p0)
}
  0x32   : > { %s13820_s17 = smov 16   ;;  %s13821_s24 = smov 1  }
  0x33   : > { %12487 = dma.hbm_to_vmem [thread:$0]  (!%p13972_p11), %s19533_s2, 64, %s13965_s1, [#allocation6], %s13820_s17, %s13820_s17, %s13821_s24  }
  0x34   : > { %s13627_s16 = scalar_lea.hbm %s19537_s6, 64 }
  0x35   : > { %p13628_p1 = scmp.ne.s32.totalorder %s19537_s6, %s13627_s16  ;;  %p13634_p10 = scmp.lt.u32.totalorder %s13627_s16, %s19537_s6 }
  0x37   : > { %p13630_p2 = pnand %p13628_p1, %p13988_p13 }
  0x39   : > { %p13631_p6 = pneg %p13630_p2 }
  0x3b   : > { %p13636_p3 = pnand %p13634_p10, %p13631_p6 }
  0x3d   : > { %13639 = shalt.err (!%p13636_p3)
}
  0x3e   : > { %s13640_s1 = scalar_lea.vmem %s13976_s22, 64  ;;  %p13648_p12 = scmp.lt.s32.totalorder %s13976_s22, %s13976_s22 }
  0x3f   : > { %p13641_p5 = scmp.ne.s32.totalorder %s13976_s22, %s13640_s1  ;;  %p13649_p0 = scmp.lt.s32.totalorder %s13640_s1, %s13640_s1 }
  0x41   : > { %p13643_p7 = pnand %p13641_p5, %p13988_p13  ;;  %p13650_p1 = por %p13649_p0, %p13648_p12 }
  0x43   : > { %p13644_p9 = pneg %p13643_p7 }
  0x45   : > { %p13651_p2 = pnand %p13650_p1, %p13644_p9 }
  0x47   : > { %13654 = shalt.err (!%p13651_p2)
}
  0x48   : > { %12493 = dma.hbm_to_vmem [thread:$0]  (!%p13972_p11), %s19537_s6, 64, %s13976_s22, [#allocation9], %s13820_s17, %s13820_s17, %s13821_s24  }
  0x49   : > { %s13655_s30 = scalar_lea.hbm %s19535_s4, 64 }
  0x4a   : > { %p13656_p6 = scmp.ne.s32.totalorder %s19535_s4, %s13655_s30  ;;  %p13662_p5 = scmp.lt.u32.totalorder %s13655_s30, %s19535_s4 }
  0x4c   : > { %p13658_p10 = pnand %p13656_p6, %p13988_p13 }
  0x4e   : > { %p13659_p3 = pneg %p13658_p10 }
  0x50   : > { %p13664_p7 = pnand %p13662_p5, %p13659_p3 }
  0x52   : > { %13667 = shalt.err (!%p13664_p7)
}
  0x53   : > { %s13668_s1 = scalar_lea.vmem %s460_s29, 64  ;;  %p13676_p1 = scmp.lt.s32.totalorder %s460_s29, %s460_s29 }
  0x54   : > { %p13669_p9 = scmp.ne.s32.totalorder %s460_s29, %s13668_s1  ;;  %p13677_p2 = scmp.lt.s32.totalorder %s13668_s1, %s13668_s1 }
  0x56   : > { %p13671_p12 = pnand %p13669_p9, %p13988_p13  ;;  %p13678_p4 = por %p13677_p2, %p13676_p1 }
  0x58   : > { %p13672_p0 = pneg %p13671_p12 }
  0x5a   : > { %p13679_p8 = pnand %p13678_p4, %p13672_p0 }
  0x5c   : > { %13682 = shalt.err (!%p13679_p8)
}
  0x5d   : > { %12490 = dma.hbm_to_vmem [thread:$0]  (!%p13972_p11), %s19535_s4, 64, %s460_s29, [#allocation6], %s13820_s17, %s13820_s17, %s13821_s24  }
  0x5e   : > { %s13822_s12 = smov [#allocation10]   ;;  %s13683_s19 = scalar_lea.hbm %s19538_s7, 4096 }
  0x5f   : > { %s488_s13 = sshll.u32 %s13822_s12, 4  ;;  %p13684_p4 = scmp.ne.s32.totalorder %s19538_s7, %s13683_s19  ;;  %s489_s13 = int_to_ptr.vmem [resolvable:$true] %s488_s13 }
  0x60   : > { %p13690_p10 = scmp.lt.u32.totalorder %s13683_s19, %s19538_s7 }
  0x61   : > { %p13686_p8 = pnand %p13684_p4, %p13988_p13 }
  0x63   : > { %p13687_p6 = pneg %p13686_p8 }
  0x65   : > { %p13692_p3 = pnand %p13690_p10, %p13687_p6 }
  0x67   : > { %13695 = shalt.err (!%p13692_p3)
}
  0x68   : > { %s13696_s29 = scalar_lea.vmem %s489_s13, 4096  ;;  %p13704_p12 = scmp.lt.s32.totalorder %s489_s13, %s489_s13 }
  0x69   : > { %p13697_p5 = scmp.ne.s32.totalorder %s489_s13, %s13696_s29  ;;  %p13705_p0 = scmp.lt.s32.totalorder %s13696_s29, %s13696_s29 }
  0x6b   : > { %p13699_p7 = pnand %p13697_p5, %p13988_p13  ;;  %p13706_p1 = por %p13705_p0, %p13704_p12 }
  0x6d   : > { %p13700_p9 = pneg %p13699_p7 }
  0x6f   : > { %p13707_p2 = pnand %p13706_p1, %p13700_p9 }
  0x71   : > { %13710 = shalt.err (!%p13707_p2)
}
  0x72   : > { %s13823_s24 = smov 128   ;;  %s13824_s15 = smov 8  }
  0x73   : > { %12496 = dma.hbm_to_vmem [thread:$0]  (!%p13972_p11), %s19538_s7, 4096, %s489_s13, [#allocation9], %s13823_s24, %s13823_s24, %s13824_s15  }
  0x74   : > { %s14079_s12 = sadd.s32 1, %s13815_s27   ;;  %s42_s30 = sadd.s32 1, %s13811_s26 }
  0x75   : > { %s39_s14 = ssub.s32 %s13815_s27, %s14079_s12  ;;  %p49_p4 = scmp.ne.s32.totalorder %s13811_s26, %s13807_s25 }
  0x76   : > { %p40_p13 = scmp.eq.s32.totalorder %s39_s14, 0  ;;  %p50_p8 = scmp.eq.s32.totalorder %s13815_s27, 0 }
  0x77   : > { %p19652_p10 = scmp.eq.s32.totalorder %s13942_s28, 1  ;;  %p12509_p5 = scmp.lt.s32.totalorder %s13815_s27, 2 }
  0x78   : > { %s14088_s19 = scalar_select %p40_p13, %s13811_s26, %s42_s30  }
  0x79   : > { %p51_p6 = por %p50_p8, %p49_p4  ;;  %p14092_p3 = por %p19652_p10, %p49_p4 }
  0x7a   : > { %s529_s20 = sand.u32 1, %s13811_s26   ;;  %s11022_s13 = sshll.u32 %s13815_s27, 12 }
  0x7b   : > { %s10163_s23 = sshll.u32 %s529_s20, 8  ;;  %s19654_s29 = sld [smem:[#allocation111_spill]] }
  0x7c   : > { %s533_s15 = scalar_lea.vmem [#allocation2], %s10163_s23  ;;  %p14106_p11 = pnand %p12509_p5, %p51_p6 }
  0x7d   : > { %s540_s22 = sshll.u32 %s533_s15, 4  ;;  %s14110_s14 = scalar_lea.sflag [#allocation3], %s529_s20  ;;  %s14104_s22 = int_to_ptr.vmem [resolvable:$true] %s540_s22 }
  0x7e   : > { %p13713_p9 = pneg %p14106_p11 }
  0x81   : > { %s14102_s24 = scalar_lea.hbm %s19654_s29, %s11022_s13  ;;  %s13716_s16 = scalar_lea.hbm %s19654_s29, 8192 }
  0x82   : > { %s13711_s30 = scalar_lea.hbm %s14102_s24, 4096  ;;  %p13717_p1 = scmp.lt.u32.totalorder %s14102_s24, %s19654_s29 }
  0x83   : > { %p13712_p7 = scmp.ne.s32.totalorder %s14102_s24, %s13711_s30  ;;  %p13718_p2 = scmp.lt.u32.totalorder %s13716_s16, %s13711_s30 }
  0x84   : > { %p13720_p4 = scmp.lt.u32.totalorder %s13711_s30, %s14102_s24 }
  0x85   : > { %p13714_p12 = pnand %p13713_p9, %p13712_p7  ;;  %p13719_p13 = por %p13718_p2, %p13717_p1 }
  0x87   : > { %p13715_p0 = pneg %p13714_p12  ;;  %p13721_p8 = por %p13720_p4, %p13719_p13 }
  0x89   : > { %p13722_p6 = pnand %p13721_p8, %p13715_p0 }
  0x8b   : > { %13725 = shalt.err (!%p13722_p6)
}
  0x8c   : > { %s13726_s20 = scalar_lea.vmem %s14104_s22, 4096  ;;  %s13825_s23 = smov [#allocation2]  }
  0x8d   : > { %p13727_p10 = scmp.ne.s32.totalorder %s14104_s22, %s13726_s20  ;;  %s13731_s13 = sshll.u32 %s13825_s23, 4  ;;  %s13732_s13 = int_to_ptr.vmem [resolvable:$false] %s13731_s13 }
  0x8e   : > { %s13733_s1 = scalar_lea.vmem %s13732_s13, 8192  ;;  %p13734_p12 = scmp.lt.s32.totalorder %s14104_s22, %s13732_s13 }
  0x8f   : > { %p13729_p5 = pnand %p13727_p10, %p13713_p9  ;;  %p13735_p1 = scmp.lt.s32.totalorder %s13733_s1, %s13726_s20 }
  0x91   : > { %p13730_p7 = pneg %p13729_p5  ;;  %p13736_p2 = por %p13735_p1, %p13734_p12 }
  0x93   : > { %p13737_p13 = pnand %p13736_p2, %p13730_p7 }
  0x95   : > { %13740 = shalt.err (!%p13737_p13)
}
  0x96   : > { %s13826_s30 = smov 256   ;;  %p19656_p9 = scmp.ne.s32.totalorder %s19649_s18, 0 }
  0x97   : > { %12500 = dma.hbm_to_vmem [thread:$0]  (!%p14106_p11), %s14102_s24, 4096, %s14104_s22, %s14110_s14, %s13826_s30, %s13826_s30, %s13820_s17  }
  0x98   : > { %552 = sbr.rel (%p19656_p9) target bundleno = 6242 (0x1862), region = 88 }
  0x9f   : > { %s14142_s16 = sand.u32 1, %s13807_s25   ;;  %p19657_p0 = scmp.ne.s32.totalorder %s19646_s0, 0 }
  0xa0   : > { %s10167_s15 = sshll.u32 %s14142_s16, 8  ;;  %s555_s20 = scalar_lea.sflag [#allocation3], %s14142_s16 }
  0xa1   : > { %s14148_s23 = scalar_lea.vmem [#allocation2], %s10167_s15 }
  0xa2   : > { %13786 = dma.done.wait (%p19657_p0), %s555_s20, 4096  }
  0xa3   : > { %13788 = vsyncadd (%p19657_p0), %s555_s20, 4294963200  ;;  %p19658_p11 = scmp.eq.s32.totalorder %s13942_s28, 0 }
  0xa5   : > { %13790 = dma.done.wait (%p19658_p11), [#allocation6], 128   ;;  %p19659_p4 = pmov %p19658_p11 }
  0xa7   : > { %13792 = vsyncadd (%p19659_p4), [#allocation6], 4294967168  ;;  %p19660_p8 = pmov %p19659_p4 }
  0xa8   : > { %p19661_p6 = pmov %p19659_p4 }
  0xa9   : > { %13794 = dma.done.wait (%p19660_p8), [#allocation9], 4160  }
  0xaa   : > { %13796 = vsyncadd (%p19661_p6), [#allocation9], 4294963136  ;;  %v12559_v0 = vld [vmem:[%s19534_s3 + $0x40] sm:$0xff]   ;;  %v12561_v2 = vld [vmem:[%s19534_s3 + $0x48] sm:$0xff]   ;;  %s19662_s0 = sld [smem:[#allocation112_spill]]  ;;  %vm1386_vm0 = vcmask 523264  }
  0xab   : > { %v12560_v1 = vld [vmem:[%s19534_s3] sm:$0xff]   ;;  %11088 = vmatprep.subr.bf16.mxu1 %v12559_v0  ;;  %v12562_v3 = vld [vmem:[%s19534_s3 + $0x8] sm:$0xff]   ;;  %v12563_v4 = vld [vmem:[%s19534_s3 + $0x50] sm:$0xff]   ;;  %s19665_s17 = sld [smem:[#allocation113_spill]]  ;;  %s19698_s22 = sld [smem:[#allocation115_spill]] }
  0xac   : > { %11089 = vmatpush3.bf16.msra.mxu1 %v12560_v1  ;;  %v12564_v5 = vld [vmem:[%s19534_s3 + $0x10] sm:$0xff]   ;;  %v12565_v6 = vld [vmem:[%s19534_s3 + $0x58] sm:$0xff]   ;;  %v12567_v8 = vld [vmem:[%s19534_s3 + $0x60] sm:$0xff]   ;;  %s19699_s20 = sld [smem:[#allocation114_spill]]  ;;  %s19913_s24 = sld [smem:[#allocation116_spill]] }
  0xad   : > { %11090 = vmatprep.subr.bf16.mxu1 %v12561_v2  ;;  %v12566_v7 = vld [vmem:[%s19534_s3 + $0x18] sm:$0xff]   ;;  %v12568_v9 = vld [vmem:[%s19534_s3 + $0x20] sm:$0xff]   ;;  %v12569_v10 = vld [vmem:[%s19534_s3 + $0x68] sm:$0xff]   ;;  %s19948_s13 = sld [smem:[#allocation117_spill]]  ;;  %s19950_s10 = sld [smem:[#allocation119_spill]] }
  0xae   : > { %v627_v11 = vld [vmem:[%s14148_s23 + $0x8] sm:$0xff]  ;;  %v629_v12 = vld [vmem:[%s14148_s23 + $0x18] sm:$0xff]  ;;  %v12571_v16 = vld [vmem:[%s19534_s3 + $0x70] sm:$0xff]   ;;  %s13828_s1 = smov [#allocation11]  }
  0xaf   : > { %v12570_v13 = vld [vmem:[%s19534_s3 + $0x28] sm:$0xff]   ;;  %v14200_v14 = vpack.c.bf16 %v629_v12, %v627_v11  ;;  %v12572_v21 = vld [vmem:[%s19534_s3 + $0x30] sm:$0xff]   ;;  %v12573_v22 = vld [vmem:[%s19534_s3 + $0x78] sm:$0xff]   ;;  %s13745_s30 = sshll.u32 %s13828_s1, 4  ;;  %s13746_s30 = int_to_ptr.vmem [resolvable:$false] %s13745_s30 }
  0xb0   : > { %11091 = vmatpush3.bf16.msra.mxu1 %v12562_v3  ;;  %v12575_v15 = vld [vmem:[%s19662_s0 + $0x40] sm:$0xff]   ;;  %v12577_v18 = vld [vmem:[%s19662_s0 + $0x48] sm:$0xff]   ;;  %v12579_v20 = vld [vmem:[%s19662_s0 + $0x50] sm:$0xff]  }
  0xb1   : > { %11092 = vmatprep.subr.bf16.mxu1 %v12563_v4  ;;  %1073 = vmatprep.mubr.bf16.mxu1 %v14200_v14  ;;  %v12576_v17 = vld [vmem:[%s19662_s0] sm:$0xff]   ;;  %v12578_v19 = vld [vmem:[%s19662_s0 + $0x8] sm:$0xff]   ;;  %v12574_v23 = vld [vmem:[%s19534_s3 + $0x38] sm:$0xff]  }
  0xb2   : > { %11024 = vmatprep.subr.bf16.mxu0 %v12575_v15  ;;  %841 = vmatprep.mubr.bf16.mxu0 %v14200_v14  ;;  %v12580_v24 = vld [vmem:[%s19662_s0 + $0x10] sm:$0xff]   ;;  %v626_v25 = vld [vmem:[%s14148_s23] sm:$0xff]  ;;  %v12581_v26 = vld [vmem:[%s19662_s0 + $0x58] sm:$0xff]  }
  0xb3   : > { %11025 = vmatpush3.bf16.msra.mxu0 %v12576_v17  ;;  %v628_v27 = vld [vmem:[%s14148_s23 + $0x10] sm:$0xff]  ;;  %v631_v28 = vld [vmem:[%s14148_s23 + $0x28] sm:$0xff]  ;;  %v633_v29 = vld [vmem:[%s14148_s23 + $0x38] sm:$0xff] }
  0xb4   : > { %11093 = vmatpush3.bf16.msra.mxu1 %v12564_v5  ;;  %11026 = vmatprep.subr.bf16.mxu0 %v12577_v18  ;;  %v12582_v30 = vld [vmem:[%s19662_s0 + $0x18] sm:$0xff]   ;;  %v14244_v31 = vpack.c.bf16 %v628_v27, %v626_v25  ;;  %v12583_v32 = vld [vmem:[%s19662_s0 + $0x60] sm:$0xff]   ;;  %v14249_v33 = vpack.c.bf16 %v633_v29, %v631_v28  ;;  %v632_v35 = vld [vmem:[%s14148_s23 + $0x30] sm:$0xff] }
  0xb5   : > { %11094 = vmatprep.subr.bf16.mxu1 %v12565_v6  ;;  %v630_v34 = vld [vmem:[%s14148_s23 + $0x20] sm:$0xff]  ;;  %v12585_v37 = vld [vmem:[%s19662_s0 + $0x68] sm:$0xff]   ;;  %v637_v39 = vld [vmem:[%s14148_s23 + $0x58] sm:$0xff] }
  0xb6   : > { %v12584_v36 = vld [vmem:[%s19662_s0 + $0x20] sm:$0xff]   ;;  %v635_v38 = vld [vmem:[%s14148_s23 + $0x48] sm:$0xff]  ;;  %v14266_v41 = vpack.c.bf16 %v632_v35, %v630_v34  ;;  %v12587_v42 = vld [vmem:[%s19662_s0 + $0x70] sm:$0xff]  }
  0xb7   : > { %11027 = vmatpush3.bf16.msra.mxu0 %v12578_v19  ;;  %v12586_v40 = vld [vmem:[%s19662_s0 + $0x28] sm:$0xff]   ;;  %v14271_v43 = vpack.c.bf16 %v637_v39, %v635_v38  ;;  %v634_v44 = vld [vmem:[%s14148_s23 + $0x40] sm:$0xff]  ;;  %v636_v45 = vld [vmem:[%s14148_s23 + $0x50] sm:$0xff] }
  0xb8   : > { %11095 = vmatpush3.bf16.msra.mxu1 %v12566_v7  ;;  %11028 = vmatprep.subr.bf16.mxu0 %v12579_v20  ;;  %v12588_v46 = vld [vmem:[%s19662_s0 + $0x30] sm:$0xff]   ;;  %v639_v47 = vld [vmem:[%s14148_s23 + $0x68] sm:$0xff]  ;;  %v641_v48 = vld [vmem:[%s14148_s23 + $0x78] sm:$0xff]  ;;  %v14288_v51 = vpack.c.bf16 %v636_v45, %v634_v44 }
  0xb9   : > { %11096 = vmatprep.subr.bf16.mxu1 %v12567_v8  ;;  %v12589_v49 = vld [vmem:[%s19662_s0 + $0x78] sm:$0xff]   ;;  %v14290_v52 = vpack.c.bf16 %v641_v48, %v639_v47  ;;  %v638_v53 = vld [vmem:[%s14148_s23 + $0x60] sm:$0xff]  ;;  %v640_v54 = vld [vmem:[%s14148_s23 + $0x70] sm:$0xff] }
  0xba   : > { %v12590_v50 = vld [vmem:[%s19662_s0 + $0x38] sm:$0xff]   ;;  %v643_v55 = vld [vmem:[%s14148_s23 + $0x88] sm:$0xff]  ;;  %v14300_v57 = vpack.c.bf16 %v640_v54, %v638_v53  ;;  %v642_v59 = vld [vmem:[%s14148_s23 + $0x80] sm:$0xff] }
  0xbb   : > { %11029 = vmatpush3.bf16.msra.mxu0 %v12580_v24  ;;  %v645_v56 = vld [vmem:[%s14148_s23 + $0x98] sm:$0xff]  ;;  %v644_v60 = vld [vmem:[%s14148_s23 + $0x90] sm:$0xff]  ;;  %v647_v61 = vld [vmem:[%s14148_s23 + $0xa8] sm:$0xff] }
  0xbc   : > { %11097 = vmatpush3.bf16.msra.mxu1 %v12568_v9  ;;  %11030 = vmatprep.subr.bf16.mxu0 %v12581_v26  ;;  %v14302_v58 = vpack.c.bf16 %v645_v56, %v643_v55  ;;  %v649_v62 = vld [vmem:[%s14148_s23 + $0xb8] sm:$0xff]  ;;  %v14312_v63 = vpack.c.bf16 %v644_v60, %v642_v59  ;;  %v646_v1 = vld [vmem:[%s14148_s23 + $0xa0] sm:$0xff]  ;;  %v648_v2 = vld [vmem:[%s14148_s23 + $0xb0] sm:$0xff] }
  0xbd   : > { %11098 = vmatprep.subr.bf16.mxu1 %v12569_v10  ;;  %v14314_v0 = vpack.c.bf16 %v649_v62, %v647_v61  ;;  %v651_v3 = vld [vmem:[%s14148_s23 + $0xc8] sm:$0xff]  ;;  %v653_v4 = vld [vmem:[%s14148_s23 + $0xd8] sm:$0xff]  ;;  %v14324_v5 = vpack.c.bf16 %v648_v2, %v646_v1  ;;  %v650_v7 = vld [vmem:[%s14148_s23 + $0xc0] sm:$0xff] }
  0xbe   : > { %v14326_v6 = vpack.c.bf16 %v653_v4, %v651_v3  ;;  %v652_v8 = vld [vmem:[%s14148_s23 + $0xd0] sm:$0xff]  ;;  %v655_v9 = vld [vmem:[%s14148_s23 + $0xe8] sm:$0xff]  ;;  %v657_v10 = vld [vmem:[%s14148_s23 + $0xf8] sm:$0xff] }
  0xbf   : > { %11031 = vmatpush3.bf16.msra.mxu0 %v12582_v30  ;;  %v14336_v11 = vpack.c.bf16 %v652_v8, %v650_v7  ;;  %v14338_v12 = vpack.c.bf16 %v657_v10, %v655_v9  ;;  %v656_v15 = vld [vmem:[%s14148_s23 + $0xf0] sm:$0xff]  ;;  %v12591_v17 = vld [vmem:[%s19536_s5 + $0x40] sm:$0xff]   ;;  %v12593_v19 = vld [vmem:[%s19536_s5 + $0x48] sm:$0xff]  }
  0xc0   : > { %11099 = vmatpush3.bf16.msra.mxu1 %v12570_v13  ;;  %11032 = vmatprep.subr.bf16.mxu0 %v12583_v32  ;;  %v654_v13 = vld [vmem:[%s14148_s23 + $0xe0] sm:$0xff]  ;;  %v12594_v20 = vld [vmem:[%s19536_s5 + $0x8] sm:$0xff]  }
  0xc1   : > { %11100 = vmatprep.subr.bf16.mxu1 %v12571_v16  ;;  %v14346_v16 = vpack.c.bf16 %v656_v15, %v654_v13  ;;  %v12592_v18 = vld [vmem:[%s19536_s5] sm:$0xff]  }
  0xc2   : > { %v14373_v27 = vld [vmem:[#allocation7] ss:$0 sm:$0xff]  ;;  %v14383_v56 = vld [vmem:[#allocation5] ss:$0 sm:$0xff] }
  0xc3   : > { %11033 = vmatpush3.bf16.msra.mxu0 %v12584_v36 }
  0xc4   : > { %11101 = vmatpush3.bf16.msra.mxu1 %v12572_v21  ;;  %11034 = vmatprep.subr.bf16.mxu0 %v12585_v37  ;;  %v12595_v21 = vld [vmem:[%s19536_s5 + $0x50] sm:$0xff]  }
  0xc5   : > { %11102 = vmatprep.subr.bf16.mxu1 %v12573_v22  ;;  %v12596_v22 = vld [vmem:[%s19536_s5 + $0x10] sm:$0xff]  }
  0xc7   : > { %11035 = vmatpush3.bf16.msra.mxu0 %v12586_v40 }
  0xc8   : > { %11103 = vmatpush3.bf16.msra.mxu1 %v12574_v23  ;;  %11036 = vmatprep.subr.bf16.mxu0 %v12587_v42 }
  0xcb   : > { %1074 = vmatmul.mubr.bf16.vlgmr.msra.gmra.mrb[0].mxu1 %v14244_v31  ;;  %11037 = vmatpush3.bf16.msra.mxu0 %v12588_v46 }
  0xcc   : > { %1081 = vmatprep.mubr.bf16.mxu1 %v14249_v33  ;;  %11038 = vmatprep.subr.bf16.mxu0 %v12589_v49 }
  0xcf   : > { %11039 = vmatpush3.bf16.msra.mxu0 %v12590_v50 }
  0xd0   : > { %11152 = vmatprep.subr.bf16.mxu0 %v12591_v17 }
  0xd2   : > { %842 = vmatmul.mubr.bf16.vlgmr.msra.gmra.mrb[0].mxu0 %v14244_v31 }
  0xd3   : > { %1082 = vmatmul.mubr.bf16.gmra.mrb[4].mxu1 %v14266_v41  ;;  %849 = vmatprep.mubr.bf16.mxu0 %v14249_v33 }
  0xd4   : > { %1089 = vmatprep.mubr.bf16.mxu1 %v14271_v43  ;;  %11153 = vmatpush3.bf16.msra.mxu0 %v12592_v18 }
  0xd5   : > { %11154 = vmatprep.subr.bf16.mxu0 %v12593_v19 }
  0xd8   : > { %11155 = vmatpush3.bf16.msra.mxu0 %v12594_v20 }
  0xd9   : > { %11156 = vmatprep.subr.bf16.mxu0 %v12595_v21 }
  0xda   : > { %850 = vmatmul.mubr.bf16.gmra.mrb[4].mxu0 %v14266_v41 }
  0xdb   : > { %1090 = vmatmul.mubr.bf16.gmra.mrb[8].mxu1 %v14288_v51  ;;  %857 = vmatprep.mubr.bf16.mxu0 %v14271_v43 }
  0xdc   : > { %1097 = vmatprep.mubr.bf16.mxu1 %v14290_v52  ;;  %11157 = vmatpush3.bf16.msra.mxu0 %v12596_v22 }
  0xe2   : > { %858 = vmatmul.mubr.bf16.gmra.mrb[8].mxu0 %v14288_v51 }
  0xe3   : > { %1098 = vmatmul.mubr.bf16.gmra.mrb[12].mxu1 %v14300_v57  ;;  %865 = vmatprep.mubr.bf16.mxu0 %v14290_v52 }
  0xe4   : > { %1105 = vmatprep.mubr.bf16.mxu1 %v14302_v58 }
  0xea   : > { %866 = vmatmul.mubr.bf16.gmra.mrb[12].mxu0 %v14300_v57 }
  0xeb   : > { %1106 = vmatmul.mubr.bf16.gmra.mrb[16].mxu1 %v14312_v63  ;;  %873 = vmatprep.mubr.bf16.mxu0 %v14302_v58 }
  0xec   : > { %1113 = vmatprep.mubr.bf16.mxu1 %v14314_v0 }
  0xf2   : > { %874 = vmatmul.mubr.bf16.gmra.mrb[16].mxu0 %v14312_v63 }
  0xf3   : > { %1114 = vmatmul.mubr.bf16.gmra.mrb[20].mxu1 %v14324_v5  ;;  %881 = vmatprep.mubr.bf16.mxu0 %v14314_v0 }
  0xf4   : > { %1121 = vmatprep.mubr.bf16.mxu1 %v14326_v6 }
  0xfa   : > { %882 = vmatmul.mubr.bf16.gmra.mrb[20].mxu0 %v14324_v5 }
  0xfb   : > { %1122 = vmatmul.mubr.bf16.gmra.mrb[24].mxu1 %v14336_v11  ;;  %889 = vmatprep.mubr.bf16.mxu0 %v14326_v6 }
  0xfc   : > { %1129 = vmatprep.mubr.bf16.mxu1 %v14338_v12 }
 0x102   : > { %890 = vmatmul.mubr.bf16.gmra.mrb[24].mxu0 %v14336_v11 }
 0x103   : > { %1130 = vmatmul.mubr.bf16.gmra.mrb[28].mxu1 %v14346_v16  ;;  %897 = vmatprep.mubr.bf16.mxu0 %v14338_v12 }
 0x10a   : > { %898 = vmatmul.mubr.bf16.gmra.mrb[28].mxu0 %v14346_v16 }
 0x10b   : > { %1305 = vmatprep.mubr.bf16.mxu0 %v14200_v14 }
 0x19e   : > { %v11104_v23 = vpop.f32.mrb[0].mxu1 }
 0x19f   : > { %v11105_v24 = vpop.f32.mrb[1].mxu1 }
 0x1a0   : > { %v11106_v25 = vadd.f32 %v11105_v24, %v11104_v23  ;;  %v11107_v26 = vpop.f32.mrb[2].mxu1 }
 0x1a1   : > { %v11108_v28 = vpop.f32.mrb[3].mxu1 }
 0x1a2   : > { %v11109_v29 = vadd.f32 %v11108_v28, %v11107_v26  ;;  %v1076_v30 = vadd.f32 %v11106_v25, %v14373_v27 }
 0x1a4   : > { %v1079_v32 = vadd.f32 %v11109_v29, %v14373_v27 }
 0x1a5   : > { %v11040_v54 = vpop.f32.mrb[0].mxu0 }
 0x1a6   : > { %v11110_v34 = vpop.f32.mrb[4].mxu1  ;;  %v1378_v35 = vpack.c.bf16 %v1079_v32, %v1076_v30  ;;  %v11041_v59 = vpop.f32.mrb[1].mxu0 }
 0x1a7   : > { %v11111_v36 = vpop.f32.mrb[5].mxu1  ;;  %v11042_v61 = vadd.f32 %v11041_v59, %v11040_v54  ;;  %v11043_v62 = vpop.f32.mrb[2].mxu0 }
 0x1a8   : > { %v11112_v37 = vadd.f32 %v11111_v36, %v11110_v34  ;;  %v11113_v38 = vpop.f32.mrb[6].mxu1  ;;  %12432 = vmatprep.subr.msk.bf16.mxu1 %vm1386_vm0, %v1378_v35  ;;  %v1412_v39 = vsel %vm1386_vm0, %v1378_v35, 0  ;;  %v11044_v1 = vpop.f32.mrb[3].mxu0 }
 0x1a9   : > { %v11114_v40 = vpop.f32.mrb[7].mxu1  ;;  %11921 = vmatpush3.bf16.xpose.msra.mxu1 %v1412_v39  ;;  %v844_v4 = vadd.f32 %v11042_v61, %v14383_v56  ;;  %v11045_v7 = vadd.f32 %v11044_v1, %v11043_v62 }
 0x1aa   : > { %v11115_v42 = vadd.f32 %v11114_v40, %v11113_v38  ;;  %v1084_v44 = vadd.f32 %v11112_v37, %v14373_v27 }
 0x1ab   : > { %v847_v10 = vadd.f32 %v11045_v7, %v14383_v56 }
 0x1ac   : > { %v1087_v45 = vadd.f32 %v11115_v42, %v14373_v27 }
 0x1ad   : > { %v11046_v19 = vpop.f32.mrb[4].mxu0  ;;  %v1370_v20 = vpack.c.bf16 %v847_v10, %v844_v4 }
 0x1ae   : > { %v11116_v46 = vpop.f32.mrb[8].mxu1  ;;  %v1379_v47 = vpack.c.bf16 %v1087_v45, %v1084_v44  ;;  %v11047_v22 = vpop.f32.mrb[5].mxu0 }
 0x1af   : > { %v11117_v48 = vpop.f32.mrb[9].mxu1  ;;  %v11048_v24 = vadd.f32 %v11047_v22, %v11046_v19  ;;  %v11049_v25 = vpop.f32.mrb[6].mxu0  ;;  %11936 = vmatprep.mubr.msk.bf16.mxu1 %vm1386_vm0, %v1370_v20 }
 0x1b0   : > { %v11118_v49 = vadd.f32 %v11117_v48, %v11116_v46  ;;  %v11119_v50 = vpop.f32.mrb[10].mxu1  ;;  %12433 = vmatprep.subr.msk.bf16.mxu1 %vm1386_vm0, %v1379_v47  ;;  %v1415_v53 = vsel %vm1386_vm0, %v1379_v47, 0  ;;  %v11050_v26 = vpop.f32.mrb[7].mxu0 }
 0x1b1   : > { %v11120_v55 = vpop.f32.mrb[11].mxu1  ;;  %11923 = vmatpush3.bf16.xpose.msra.mxu1 %v1415_v53  ;;  %v14395_v30 = vadd.f32 %v11048_v24, %v14383_v56  ;;  %v11051_v32 = vadd.f32 %v11050_v26, %v11049_v25 }
 0x1b2   : > { %v11121_v60 = vadd.f32 %v11120_v55, %v11119_v50  ;;  %v1092_v2 = vadd.f32 %v11118_v49, %v14373_v27 }
 0x1b3   : > { %v14398_v36 = vadd.f32 %v11051_v32, %v14383_v56 }
 0x1b4   : > { %v1095_v3 = vadd.f32 %v11121_v60, %v14373_v27 }
 0x1b5   : > { %v1371_v42 = vpack.c.bf16 %v14398_v36, %v14395_v30  ;;  %v11052_v44 = vpop.f32.mrb[8].mxu0  ;;  %v12597_v36 = vld [vmem:[%s19536_s5 + $0x58] sm:$0xff]  }
 0x1b6   : > { %v11122_v8 = vpop.f32.mrb[12].mxu1  ;;  %v1380_v9 = vpack.c.bf16 %v1095_v3, %v1092_v2  ;;  %v11053_v46 = vpop.f32.mrb[9].mxu0  ;;  %11158 = vmatprep.subr.bf16.mxu0 %v12597_v36 }
 0x1b7   : > { %v11123_v13 = vpop.f32.mrb[13].mxu1  ;;  %v11054_v48 = vadd.f32 %v11053_v46, %v11052_v44  ;;  %v11055_v49 = vpop.f32.mrb[10].mxu0 }
 0x1b8   : > { %v11124_v15 = vadd.f32 %v11123_v13, %v11122_v8  ;;  %v11125_v17 = vpop.f32.mrb[14].mxu1  ;;  %12434 = vmatprep.subr.msk.bf16.mxu1 %vm1386_vm0, %v1380_v9  ;;  %v1418_v18 = vsel %vm1386_vm0, %v1380_v9, 0  ;;  %v11056_v50 = vpop.f32.mrb[11].mxu0 }
 0x1b9   : > { %v11126_v21 = vpop.f32.mrb[15].mxu1  ;;  %11925 = vmatpush3.bf16.xpose.msra.mxu1 %v1418_v18  ;;  %v14407_v55 = vadd.f32 %v11054_v48, %v14383_v56  ;;  %v11057_v59 = vadd.f32 %v11056_v50, %v11055_v49 }
 0x1ba   : > { %v11127_v23 = vadd.f32 %v11126_v21, %v11125_v17  ;;  %v1100_v28 = vadd.f32 %v11124_v15, %v14373_v27 }
 0x1bb   : > { %v14410_v62 = vadd.f32 %v11057_v59, %v14383_v56 }
 0x1bc   : > { %v1103_v29 = vadd.f32 %v11127_v23, %v14373_v27 }
 0x1bd   : > { %v11058_v7 = vpop.f32.mrb[12].mxu0  ;;  %v1372_v8 = vpack.c.bf16 %v14410_v62, %v14407_v55  ;;  %v12600_v55 = vld [vmem:[%s19536_s5 + $0x20] sm:$0xff]   ;;  %v12601_v62 = vld [vmem:[%s19536_s5 + $0x68] sm:$0xff]  }
 0x1be   : > { %v11128_v34 = vpop.f32.mrb[16].mxu1  ;;  %v1381_v35 = vpack.c.bf16 %v1103_v29, %v1100_v28  ;;  %v11059_v10 = vpop.f32.mrb[13].mxu0 }
 0x1bf   : > { %v11129_v37 = vpop.f32.mrb[17].mxu1  ;;  %v11060_v15 = vadd.f32 %v11059_v10, %v11058_v7  ;;  %v11061_v17 = vpop.f32.mrb[14].mxu0 }
 0x1c0   : > { %v11130_v38 = vadd.f32 %v11129_v37, %v11128_v34  ;;  %v11131_v39 = vpop.f32.mrb[18].mxu1  ;;  %12435 = vmatprep.subr.msk.bf16.mxu1 %vm1386_vm0, %v1381_v35  ;;  %v1421_v40 = vsel %vm1386_vm0, %v1381_v35, 0  ;;  %v11062_v18 = vpop.f32.mrb[15].mxu0 }
 0x1c1   : > { %v11132_v45 = vpop.f32.mrb[19].mxu1  ;;  %11927 = vmatpush3.bf16.xpose.msra.mxu1 %v1421_v40  ;;  %v14419_v21 = vadd.f32 %v11060_v15, %v14383_v56  ;;  %v11063_v22 = vadd.f32 %v11062_v18, %v11061_v17 }
 0x1c2   : > { %v11133_v47 = vadd.f32 %v11132_v45, %v11131_v39  ;;  %v1108_v53 = vadd.f32 %v11130_v38, %v14373_v27 }
 0x1c3   : > { %v14422_v25 = vadd.f32 %v11063_v22, %v14383_v56 }
 0x1c4   : > { %v1111_v54 = vadd.f32 %v11133_v47, %v14373_v27 }
 0x1c5   : > { %v11064_v34 = vpop.f32.mrb[16].mxu0  ;;  %v1373_v35 = vpack.c.bf16 %v14422_v25, %v14419_v21 }
 0x1c6   : > { %v11134_v60 = vpop.f32.mrb[20].mxu1  ;;  %v1382_v61 = vpack.c.bf16 %v1111_v54, %v1108_v53  ;;  %v11065_v38 = vpop.f32.mrb[17].mxu0 }
 0x1c7   : > { %v11135_v1 = vpop.f32.mrb[21].mxu1  ;;  %v11066_v40 = vadd.f32 %v11065_v38, %v11064_v34  ;;  %v11067_v44 = vpop.f32.mrb[18].mxu0 }
 0x1c8   : > { %v11136_v2 = vadd.f32 %v11135_v1, %v11134_v60  ;;  %v11137_v3 = vpop.f32.mrb[22].mxu1  ;;  %12436 = vmatprep.subr.msk.bf16.mxu1 %vm1386_vm0, %v1382_v61  ;;  %v1424_v4 = vsel %vm1386_vm0, %v1382_v61, 0  ;;  %v11068_v45 = vpop.f32.mrb[19].mxu0 }
 0x1c9   : > { %v11138_v9 = vpop.f32.mrb[23].mxu1  ;;  %11929 = vmatpush3.bf16.xpose.msra.mxu1 %v1424_v4  ;;  %v876_v48 = vadd.f32 %v11066_v40, %v14383_v56  ;;  %v11069_v49 = vadd.f32 %v11068_v45, %v11067_v44 }
 0x1ca   : > { %v11139_v13 = vadd.f32 %v11138_v9, %v11137_v3  ;;  %v1116_v19 = vadd.f32 %v11136_v2, %v14373_v27 }
 0x1cb   : > { %v879_v54 = vadd.f32 %v11069_v49, %v14383_v56 }
 0x1cc   : > { %v1119_v20 = vadd.f32 %v11139_v13, %v14373_v27 }
 0x1cd   : > { %v11070_v2 = vpop.f32.mrb[20].mxu0  ;;  %v1374_v3 = vpack.c.bf16 %v879_v54, %v876_v48  ;;  %v12606_v54 = vld [vmem:[%s19536_s5 + $0x38] sm:$0xff]  }
 0x1ce   : > { %v11140_v23 = vpop.f32.mrb[24].mxu1  ;;  %v1383_v24 = vpack.c.bf16 %v1119_v20, %v1116_v19  ;;  %v11071_v7 = vpop.f32.mrb[21].mxu0 }
 0x1cf   : > { %v11141_v26 = vpop.f32.mrb[25].mxu1  ;;  %v11072_v10 = vadd.f32 %v11071_v7, %v11070_v2  ;;  %v11073_v13 = vpop.f32.mrb[22].mxu0 }
 0x1d0   : > { %v11142_v28 = vadd.f32 %v11141_v26, %v11140_v23  ;;  %v11143_v29 = vpop.f32.mrb[26].mxu1  ;;  %12437 = vmatprep.subr.msk.bf16.mxu1 %vm1386_vm0, %v1383_v24  ;;  %v1427_v32 = vsel %vm1386_vm0, %v1383_v24, 0  ;;  %v11074_v15 = vpop.f32.mrb[23].mxu0 }
 0x1d1   : > { %v11144_v37 = vpop.f32.mrb[27].mxu1  ;;  %11931 = vmatpush3.bf16.xpose.msra.mxu1 %v1427_v32  ;;  %v884_v19 = vadd.f32 %v11072_v10, %v14383_v56  ;;  %v11075_v20 = vadd.f32 %v11074_v15, %v11073_v13 }
 0x1d2   : > { %v11145_v39 = vadd.f32 %v11144_v37, %v11143_v29  ;;  %v1124_v46 = vadd.f32 %v11142_v28, %v14373_v27 }
 0x1d3   : > { %v887_v22 = vadd.f32 %v11075_v20, %v14383_v56 }
 0x1d4   : > { %v1127_v47 = vadd.f32 %v11145_v39, %v14373_v27 }
 0x1d5   : > { %v11076_v24 = vpop.f32.mrb[24].mxu0  ;;  %v1375_v25 = vpack.c.bf16 %v887_v22, %v884_v19  ;;  %v14550_v22 = vld [vmem:[#allocation8] ss:$0 sm:$0xff] }
 0x1d6   : > { %v11146_v50 = vpop.f32.mrb[28].mxu1  ;;  %v1384_v53 = vpack.c.bf16 %v1127_v47, %v1124_v46  ;;  %v11077_v26 = vpop.f32.mrb[25].mxu0 }
 0x1d7   : > { %v11147_v59 = vpop.f32.mrb[29].mxu1  ;;  %v11078_v28 = vadd.f32 %v11077_v26, %v11076_v24  ;;  %v11079_v29 = vpop.f32.mrb[26].mxu0 }
 0x1d8   : > { %v11148_v60 = vadd.f32 %v11147_v59, %v11146_v50  ;;  %v11149_v61 = vpop.f32.mrb[30].mxu1  ;;  %12438 = vmatprep.subr.msk.bf16.mxu1 %vm1386_vm0, %v1384_v53  ;;  %v1430_v1 = vsel %vm1386_vm0, %v1384_v53, 0  ;;  %v11080_v32 = vpop.f32.mrb[27].mxu0  ;;  %v12604_v50 = vld [vmem:[%s19536_s5 + $0x30] sm:$0xff]   ;;  %v12605_v53 = vld [vmem:[%s19536_s5 + $0x78] sm:$0xff]  }
 0x1d9   : > { %v11150_v4 = vpop.f32.mrb[31].mxu1  ;;  %11933 = vmatpush3.bf16.xpose.msra.mxu1 %v1430_v1  ;;  %v892_v34 = vadd.f32 %v11078_v28, %v14383_v56 }
 0x1da   : > { %v11151_v9 = vadd.f32 %v11150_v4, %v11149_v61  ;;  %v1132_v17 = vadd.f32 %v11148_v60, %v14373_v27 }
 0x1dc   : > { %v1135_v18 = vadd.f32 %v11151_v9, %v14373_v27  ;;  %v11081_v27 = vadd.f32 %v11080_v32, %v11079_v29 }
 0x1dd   : > { %v11082_v38 = vpop.f32.mrb[28].mxu0 }
 0x1de   : > { %v1385_v21 = vpack.c.bf16 %v1135_v18, %v1132_v17  ;;  %v895_v37 = vadd.f32 %v11081_v27, %v14383_v56  ;;  %v11083_v40 = vpop.f32.mrb[29].mxu0 }
 0x1df   : > { %v11084_v44 = vadd.f32 %v11083_v40, %v11082_v38  ;;  %v11085_v45 = vpop.f32.mrb[30].mxu0 }
 0x1e0   : > { %12439 = vmatprep.subr.msk.bf16.mxu1 %vm1386_vm0, %v1385_v21  ;;  %v1433_v23 = vsel %vm1386_vm0, %v1385_v21, 0  ;;  %v1376_v39 = vpack.c.bf16 %v895_v37, %v892_v34  ;;  %v11086_v46 = vpop.f32.mrb[31].mxu0 }
 0x1e1   : > { %11935 = vmatpush3.bf16.xpose.msra.mxu1 %v1433_v23  ;;  %v900_v47 = vadd.f32 %v11084_v44, %v14383_v56  ;;  %v11087_v48 = vadd.f32 %v11086_v46, %v11085_v45 }
 0x1e3   : > { %v903_v49 = vadd.f32 %v11087_v48, %v14383_v56  ;;  %v12599_v56 = vld [vmem:[%s19536_s5 + $0x60] sm:$0xff]  }
 0x1e5   : > { %v1377_v30 = vpack.c.bf16 %v903_v49, %v900_v47 }
 0x1e8   : > { %11937 = vmatmul.mubr.msk.bf16.vlgmr.msra.gmra.mrb[32].mxu1 %vm1386_vm0, %v1371_v42  ;;  %v12598_v42 = vld [vmem:[%s19536_s5 + $0x18] sm:$0xff]  }
 0x1e9   : > { %11940 = vmatprep.mubr.msk.bf16.mxu1 %vm1386_vm0, %v1372_v8  ;;  %11159 = vmatpush3.bf16.msra.mxu0 %v12598_v42  ;;  %v12602_v8 = vld [vmem:[%s19536_s5 + $0x28] sm:$0xff]  }
 0x1ea   : > { %11160 = vmatprep.subr.bf16.mxu0 %v12599_v56 }
 0x1ed   : > { %11161 = vmatpush3.bf16.msra.mxu0 %v12600_v55 }
 0x1ee   : > { %11162 = vmatprep.subr.bf16.mxu0 %v12601_v62 }
 0x1f0   : > { %11941 = vmatmul.mubr.msk.bf16.gmra.mrb[36].mxu1 %vm1386_vm0, %v1373_v35  ;;  %v12603_v35 = vld [vmem:[%s19536_s5 + $0x70] sm:$0xff]  }
 0x1f1   : > { %11944 = vmatprep.mubr.msk.bf16.mxu1 %vm1386_vm0, %v1374_v3  ;;  %11163 = vmatpush3.bf16.msra.mxu0 %v12602_v8 }
 0x1f2   : > { %11164 = vmatprep.subr.bf16.mxu0 %v12603_v35 }
 0x1f5   : > { %11165 = vmatpush3.bf16.msra.mxu0 %v12604_v50 }
 0x1f6   : > { %11166 = vmatprep.subr.bf16.mxu0 %v12605_v53 }
 0x1f8   : > { %11945 = vmatmul.mubr.msk.bf16.gmra.mrb[40].mxu1 %vm1386_vm0, %v1375_v25 }
 0x1f9   : > { %11948 = vmatprep.mubr.msk.bf16.mxu1 %vm1386_vm0, %v1376_v39  ;;  %11167 = vmatpush3.bf16.msra.mxu0 %v12606_v54 }
 0x1fc   : > { %1306 = vmatmul.mubr.bf16.vlgmr.msra.gmra.mrb[32].mxu0 %v14244_v31 }
 0x1fd   : > { %1313 = vmatprep.mubr.bf16.mxu0 %v14249_v33 }
 0x200   : > { %11949 = vmatmul.mubr.msk.bf16.gmra.mrb[44].mxu1 %vm1386_vm0, %v1377_v30 }
 0x204   : > { %1314 = vmatmul.mubr.bf16.gmra.mrb[36].mxu0 %v14266_v41 }
 0x205   : > { %1321 = vmatprep.mubr.bf16.mxu0 %v14271_v43 }
 0x20c   : > { %1322 = vmatmul.mubr.bf16.gmra.mrb[40].mxu0 %v14288_v51 }
 0x20d   : > { %1329 = vmatprep.mubr.bf16.mxu0 %v14290_v52 }
 0x214   : > { %1330 = vmatmul.mubr.bf16.gmra.mrb[44].mxu0 %v14300_v57 }
 0x215   : > { %1337 = vmatprep.mubr.bf16.mxu0 %v14302_v58 }
 0x21c   : > { %1338 = vmatmul.mubr.bf16.gmra.mrb[48].mxu0 %v14312_v63 }
 0x21d   : > { %1345 = vmatprep.mubr.bf16.mxu0 %v14314_v0 }
 0x224   : > { %1346 = vmatmul.mubr.bf16.gmra.mrb[52].mxu0 %v14324_v5 }
 0x225   : > { %1353 = vmatprep.mubr.bf16.mxu0 %v14326_v6 }
 0x22c   : > { %1354 = vmatmul.mubr.bf16.gmra.mrb[56].mxu0 %v14336_v11 }
 0x22d   : > { %1361 = vmatprep.mubr.bf16.mxu0 %v14338_v12 }
 0x234   : > { %1362 = vmatmul.mubr.bf16.gmra.mrb[60].mxu0 %v14346_v16 }
 0x2bb   : > { %v14502_v59 = vpop.f32.mrb[32].mxu1 }
 0x2bc   : > { %1536 = vmax.xlane.f32.xlu1 %v14502_v59  ;;  %v14505_v60 = vpop.f32.mrb[33].mxu1 }
 0x2bd   : > { %1532 = vmax.xlane.f32.xlu0 %v14505_v60  ;;  %v14508_v61 = vpop.f32.mrb[34].mxu1 }
 0x2be   : > { %v14510_v1 = vpop.f32.mrb[35].mxu1 }
 0x2c0   : > { %1538 = vmax.xlane.f32.xlu1 %v14508_v61 }
 0x2c1   : > { %1534 = vmax.xlane.f32.xlu0 %v14510_v1 }
 0x2c3   : > { %v14514_v2 = vpop.f32.mrb[36].mxu1 }
 0x2c4   : > { %v14516_v3 = vpop.f32.mrb[37].mxu1 }
 0x2c5   : > { %1540 = vmax.xlane.f32.xlu0 %v14516_v3  ;;  %v14519_v4 = vpop.f32.mrb[38].mxu1 }
 0x2c6   : > { %v14521_v7 = vpop.f32.mrb[39].mxu1 }
 0x2c7   : > { %1542 = vmax.xlane.f32.xlu1 %v14521_v7 }
 0x2c9   : > { %1544 = vmax.xlane.f32.xlu0 %v14514_v2 }
 0x2cb   : > { %1546 = vmax.xlane.f32.xlu1 %v14519_v4  ;;  %v14526_v9 = vpop.f32.mrb[40].mxu1 }
 0x2cc   : > { %v14528_v10 = vpop.f32.mrb[41].mxu1 }
 0x2cd   : > { %1548 = vmax.xlane.f32.xlu0 %v14528_v10  ;;  %v14531_v13 = vpop.f32.mrb[42].mxu1 }
 0x2ce   : > { %v14533_v15 = vpop.f32.mrb[43].mxu1 }
 0x2cf   : > { %1550 = vmax.xlane.f32.xlu1 %v14533_v15  ;;  %v11168_v21 = vpop.f32.mrb[32].mxu0 }
 0x2d0   : > { %v11169_v23 = vpop.f32.mrb[33].mxu0 }
 0x2d1   : > { %1552 = vmax.xlane.f32.xlu0 %v14526_v9  ;;  %v11170_v24 = vadd.f32 %v11169_v23, %v11168_v21  ;;  %v11171_v25 = vpop.f32.mrb[34].mxu0 }
 0x2d2   : > { %v11172_v26 = vpop.f32.mrb[35].mxu0 }
 0x2d3   : > { %1554 = vmax.xlane.f32.xlu1 %v14531_v13  ;;  %v14538_v17 = vpop.f32.mrb[44].mxu1  ;;  %v1308_v28 = vadd.f32 %v11170_v24, %v14550_v22  ;;  %v11173_v29 = vadd.f32 %v11172_v26, %v11171_v25 }
 0x2d4   : > { %v14540_v18 = vpop.f32.mrb[45].mxu1 }
 0x2d5   : > { %1556 = vmax.xlane.f32.xlu0 %v14540_v18  ;;  %v14543_v19 = vpop.f32.mrb[46].mxu1  ;;  %v1311_v32 = vadd.f32 %v11173_v29, %v14550_v22 }
 0x2d6   : > { %v14545_v20 = vpop.f32.mrb[47].mxu1 }
 0x2d7   : > { %1558 = vmax.xlane.f32.xlu1 %v14545_v20  ;;  %v11174_v34 = vpop.f32.mrb[36].mxu0  ;;  %v1684_v27 = vpack.c.bf16 %v1311_v32, %v1308_v28 }
 0x2d8   : > { %v11175_v37 = vpop.f32.mrb[37].mxu0 }
 0x2d9   : > { %1560 = vmax.xlane.f32.xlu0 %v14538_v17  ;;  %v11176_v38 = vadd.f32 %v11175_v37, %v11174_v34  ;;  %v11177_v39 = vpop.f32.mrb[38].mxu0  ;;  %11952 = vmatprep.subr.bf16.mxu1 %v1684_v27 }
 0x2da   : > { %v11178_v40 = vpop.f32.mrb[39].mxu0  ;;  %11953 = vmatpush3.bf16.msra.mxu1 %v1684_v27 }
 0x2db   : > { %1562 = vmax.xlane.f32.xlu1 %v14543_v19  ;;  %v1316_v44 = vadd.f32 %v11176_v38, %v14550_v22  ;;  %v11179_v45 = vadd.f32 %v11178_v40, %v11177_v39 }
 0x2dd   : > { %v1319_v46 = vadd.f32 %v11179_v45, %v14550_v22 }
 0x2df   : > { %v11180_v47 = vpop.f32.mrb[40].mxu0  ;;  %v1685_v48 = vpack.c.bf16 %v1319_v46, %v1316_v44 }
 0x2e0   : > { %v11181_v49 = vpop.f32.mrb[41].mxu0 }
 0x2e1   : > { %v11182_v30 = vadd.f32 %v11181_v49, %v11180_v47  ;;  %v11183_v36 = vpop.f32.mrb[42].mxu0  ;;  %11954 = vmatprep.subr.bf16.mxu1 %v1685_v48 }
 0x2e2   : > { %v11184_v42 = vpop.f32.mrb[43].mxu0  ;;  %11955 = vmatpush3.bf16.msra.mxu1 %v1685_v48 }
 0x2e3   : > { %v1324_v56 = vadd.f32 %v11182_v30, %v14550_v22  ;;  %v11185_v55 = vadd.f32 %v11184_v42, %v11183_v36 }
 0x2e5   : > { %v1327_v50 = vadd.f32 %v11185_v55, %v14550_v22 }
 0x2e7   : > { %v11186_v54 = vpop.f32.mrb[44].mxu0  ;;  %v1686_v21 = vpack.c.bf16 %v1327_v50, %v1324_v56 }
 0x2e8   : > { %v11187_v25 = vpop.f32.mrb[45].mxu0 }
 0x2e9   : > { %v11188_v32 = vadd.f32 %v11187_v25, %v11186_v54  ;;  %v11189_v34 = vpop.f32.mrb[46].mxu0  ;;  %11956 = vmatprep.subr.bf16.mxu1 %v1686_v21 }
 0x2ea   : > { %v11190_v27 = vpop.f32.mrb[47].mxu0  ;;  %11957 = vmatpush3.bf16.msra.mxu1 %v1686_v21 }
 0x2eb   : > { %v1332_v37 = vadd.f32 %v11188_v32, %v14550_v22 }
 0x2ef   : > { %v11192_v46 = vpop.f32.mrb[48].mxu0 }
 0x2f0   : > { %v11193_v49 = vpop.f32.mrb[49].mxu0 }
 0x2f1   : > { %v11194_v36 = vadd.f32 %v11193_v49, %v11192_v46  ;;  %v11195_v42 = vpop.f32.mrb[50].mxu0 }
 0x349   : > { %v1537_v62 = vpop.xlane.xlu1 %1536 }
 0x34a   : > { %v1566_v8 = vsub.f32 %v14502_v59, %v1537_v62  ;;  %v1533_v35 = vpop.xlane.xlu0 %1532  ;;  %v11196_v62 = vpop.f32.mrb[51].mxu0 }
 0x34b   : > { %v1564_v53 = vsub.f32 %v14505_v60, %v1533_v35  ;;  %v11191_v60 = vadd.f32 %v11190_v27, %v11189_v34  ;;  %v11197_v35 = vadd.f32 %v11196_v62, %v11195_v42 }
 0x34c   : > { %v1584_v26 = vmul.f32 1.442695, %v1566_v8 }
 0x34d   : > { %v1580_v23 = vmul.f32 1.442695, %v1564_v53  ;;  %v1539_v24 = vpop.xlane.xlu1 %1538  ;;  %v1335_v44 = vadd.f32 %v11191_v60, %v14550_v22  ;;  %v1343_v21 = vadd.f32 %v11197_v35, %v14550_v22 }
 0x34e   : > { %v1567_v28 = vsub.f32 %v14508_v61, %v1539_v24  ;;  %v1535_v29 = vpop.xlane.xlu0 %1534 }
 0x34f   : > { %12991 = vpow2.f32 %v1580_v23  ;;  %v1565_v59 = vsub.f32 %v14510_v1, %v1535_v29  ;;  %v1687_v47 = vpack.c.bf16 %v1335_v44, %v1332_v37 }
 0x350   : > { %12993 = vpow2.f32 %v1584_v26  ;;  %v1586_v39 = vmul.f32 1.442695, %v1567_v28  ;;  %v11198_v26 = vpop.f32.mrb[52].mxu0 }
 0x351   : > { %v1582_v38 = vmul.f32 1.442695, %v1565_v59  ;;  %11958 = vmatprep.subr.bf16.mxu1 %v1687_v47  ;;  %v11199_v34 = vpop.f32.mrb[53].mxu0 }
 0x352   : > { %v1541_v40 = vpop.xlane.xlu0 %1540  ;;  %11959 = vmatpush3.bf16.msra.mxu1 %v1687_v47  ;;  %v11200_v27 = vadd.f32 %v11199_v34, %v11198_v26  ;;  %v11201_v37 = vpop.f32.mrb[54].mxu0 }
 0x353   : > { %12995 = vpow2.f32 %v1582_v38  ;;  %v1568_v61 = vsub.f32 %v14516_v3, %v1541_v40  ;;  %v1340_v3 = vadd.f32 %v11194_v36, %v14550_v22  ;;  %v11202_v38 = vpop.f32.mrb[55].mxu0 }
 0x354   : > { %v1543_v45 = vpop.xlane.xlu1 %1542  ;;  %12997 = vpow2.f32 %v1586_v39  ;;  %v11203_v44 = vadd.f32 %v11202_v38, %v11201_v37  ;;  %v11204_v36 = vpop.f32.mrb[56].mxu0 }
 0x355   : > { %v1588_v48 = vmul.f32 1.442695, %v1568_v61  ;;  %v1569_v1 = vsub.f32 %v14521_v7, %v1543_v45  ;;  %v1688_v28 = vpack.c.bf16 %v1343_v21, %v1340_v3  ;;  %v11205_v62 = vpop.f32.mrb[57].mxu0 }
 0x356   : > { %v1545_v30 = vpop.xlane.xlu0 %1544  ;;  %v11206_v3 = vadd.f32 %v11205_v62, %v11204_v36  ;;  %v11207_v35 = vpop.f32.mrb[58].mxu0  ;;  %v12610_v36 = vld [vmem:[#allocation10 + $0x10] ss:$8 sps:$4 sm:$0xff]  }
 0x357   : > { %12999 = vpow2.f32 %v1588_v48  ;;  %v1590_v56 = vmul.f32 1.442695, %v1569_v1  ;;  %v1570_v55 = vsub.f32 %v14514_v2, %v1545_v30  ;;  %11960 = vmatprep.subr.bf16.mxu1 %v1688_v28  ;;  %v11208_v21 = vpop.f32.mrb[59].mxu0 }
 0x358   : > { %v1547_v8 = vpop.xlane.xlu1 %1546  ;;  %11961 = vmatpush3.bf16.msra.mxu1 %v1688_v28  ;;  %v1356_v26 = vadd.f32 %v11206_v3, %v14550_v22 }
 0x359   : > { %v14568_v50 = vpop.eup %12991  ;;  %v1592_v53 = vmul.f32 1.442695, %v1570_v55  ;;  %v1571_v7 = vsub.f32 %v14519_v4, %v1547_v8  ;;  %13001 = vpow2.f32 %v1590_v56 }
 0x35a   : > { %v1549_v54 = vpop.xlane.xlu0 %1548  ;;  %1612 = vadd.xlane.f32.xlu0 %v14568_v50  ;;  %v14574_v24 = vpop.eup %12993 }
 0x35b   : > { %13003 = vpow2.f32 %v1592_v53  ;;  %v1594_v23 = vmul.f32 1.442695, %v1571_v7  ;;  %v1572_v2 = vsub.f32 %v14528_v10, %v1549_v54 }
 0x35c   : > { %v1551_v25 = vpop.xlane.xlu1 %1550 }
 0x35d   : > { %v14576_v29 = vpop.eup %12995  ;;  %v1596_v32 = vmul.f32 1.442695, %v1572_v2  ;;  %v1573_v4 = vsub.f32 %v14533_v15, %v1551_v25  ;;  %13005 = vpow2.f32 %v1594_v23  ;;  %v1348_v15 = vadd.f32 %v11200_v27, %v14550_v22 }
 0x35e   : > { %v1553_v59 = vpop.xlane.xlu0 %1552  ;;  %1616 = vadd.xlane.f32.xlu0 %v14574_v24  ;;  %1614 = vadd.xlane.f32.xlu1 %v14576_v29  ;;  %v14582_v39 = vpop.eup %12997  ;;  %v11209_v25 = vadd.f32 %v11208_v21, %v11207_v35 }
 0x35f   : > { %13007 = vpow2.f32 %v1596_v32  ;;  %v1598_v10 = vmul.f32 1.442695, %v1573_v4  ;;  %v1574_v60 = vsub.f32 %v14526_v9, %v1553_v59  ;;  %v1351_v9 = vadd.f32 %v11203_v44, %v14550_v22 }
 0x360   : > { %v1555_v40 = vpop.xlane.xlu1 %1554  ;;  %v1359_v28 = vadd.f32 %v11209_v25, %v14550_v22 }
 0x361   : > { %v14585_v61 = vpop.eup %12999  ;;  %v1600_v45 = vmul.f32 1.442695, %v1574_v60  ;;  %v1575_v46 = vsub.f32 %v14531_v13, %v1555_v40  ;;  %13009 = vpow2.f32 %v1598_v10  ;;  %v1689_v42 = vpack.c.bf16 %v1351_v9, %v1348_v15 }
 0x362   : > { %1620 = vadd.xlane.f32.xlu0 %v14585_v61  ;;  %v1557_v47 = vpop.xlane.xlu0 %1556  ;;  %1618 = vadd.xlane.f32.xlu1 %v14582_v39  ;;  %v1690_v34 = vpack.c.bf16 %v1359_v28, %v1356_v26 }
 0x363   : > { %13011 = vpow2.f32 %v1600_v45  ;;  %v1602_v48 = vmul.f32 1.442695, %v1575_v46  ;;  %v1576_v1 = vsub.f32 %v14540_v18, %v1557_v47  ;;  %v14592_v49 = vpop.eup %13001  ;;  %11962 = vmatprep.subr.bf16.mxu1 %v1689_v42 }
 0x364   : > { %v1559_v30 = vpop.xlane.xlu1 %1558  ;;  %11963 = vmatpush3.bf16.msra.mxu1 %v1689_v42  ;;  %v12613_v42 = vld [vmem:[#allocation10 + $0x20] ss:$8 sps:$4 sm:$0xff]  }
 0x365   : > { %v14594_v56 = vpop.eup %13003  ;;  %v1604_v13 = vmul.f32 1.442695, %v1576_v1  ;;  %v1577_v55 = vsub.f32 %v14545_v20, %v1559_v30  ;;  %13013 = vpow2.f32 %v1602_v48  ;;  %11964 = vmatprep.subr.bf16.mxu1 %v1690_v34  ;;  %v12607_v48 = vld [vmem:[#allocation10] ss:$8 sps:$4 sm:$0xff]   ;;  %v12609_v1 = vld [vmem:[#allocation10 + $0x4] ss:$8 sps:$4 sm:$0xff]  }
 0x366   : > { %1624 = vadd.xlane.f32.xlu0 %v14594_v56  ;;  %v1561_v8 = vpop.xlane.xlu0 %1560  ;;  %1622 = vadd.xlane.f32.xlu1 %v14592_v49  ;;  %v12612_v30 = vld [vmem:[#allocation10 + $0x14] ss:$8 sps:$4 sm:$0xff]  }
 0x367   : > { %13015 = vpow2.f32 %v1604_v13  ;;  %v1606_v18 = vmul.f32 1.442695, %v1577_v55  ;;  %v1578_v53 = vsub.f32 %v14538_v17, %v1561_v8  ;;  %v14600_v7 = vpop.eup %13005  ;;  %1881 = vmatprep.subr.bf16.mxu0 %v12609_v1  ;;  %v12618_v13 = vld [vmem:[#allocation10 + $0x34] ss:$8 sps:$4 sm:$0xff]   ;;  %v12616_v55 = vld [vmem:[#allocation10 + $0x30] ss:$8 sps:$4 sm:$0xff]  }
 0x368   : > { %v1563_v54 = vpop.xlane.xlu1 %1562  ;;  %11965 = vmatpush3.bf16.msra.mxu1 %v1690_v34  ;;  %1882 = vmatpush1.bf16.msra.mxu0 %v12607_v48 }
 0x369   : > { %v14602_v20 = vpop.eup %13007  ;;  %v1608_v23 = vmul.f32 1.442695, %v1578_v53  ;;  %v1579_v2 = vsub.f32 %v14543_v19, %v1563_v54  ;;  %13017 = vpow2.f32 %v1606_v18  ;;  %v11210_v19 = vpop.f32.mrb[60].mxu0  ;;  %1883 = vmatprep.subr.bf16.mxu0 %v12612_v30 }
 0x36a   : > { %1628 = vadd.xlane.f32.xlu0 %v14602_v20  ;;  %1626 = vadd.xlane.f32.xlu1 %v14600_v7  ;;  %v11211_v59 = vpop.f32.mrb[61].mxu0 }
 0x36b   : > { %13019 = vpow2.f32 %v1608_v23  ;;  %v1610_v17 = vmul.f32 1.442695, %v1579_v2  ;;  %v14609_v32 = vpop.eup %13009  ;;  %v11213_v37 = vpop.f32.mrb[62].mxu0  ;;  %v11212_v38 = vadd.f32 %v11211_v59, %v11210_v19 }
 0x36c   : > { %v11214_v60 = vpop.f32.mrb[63].mxu0  ;;  %1884 = vmatpush1.bf16.msra.mxu0 %v12610_v36 }
 0x36d   : > { %v14611_v4 = vpop.eup %13011  ;;  %13021 = vpow2.f32 %v1610_v17  ;;  %v11215_v40 = vadd.f32 %v11214_v60, %v11213_v37  ;;  %v1364_v44 = vadd.f32 %v11212_v38, %v14550_v22 }
 0x36e   : > { %1632 = vadd.xlane.f32.xlu0 %v14611_v4  ;;  %1630 = vadd.xlane.f32.xlu1 %v14609_v32 }
 0x36f   : > { %v14615_v27 = vpop.eup %13013  ;;  %v1367_v45 = vadd.f32 %v11215_v40, %v14550_v22  ;;  %v12615_v22 = vld [vmem:[#allocation10 + $0x24] ss:$8 sps:$4 sm:$0xff]  }
 0x370   : > { %1885 = vmatprep.subr.bf16.mxu0 %v12615_v22 }
 0x371   : > { %v14617_v10 = vpop.eup %13015  ;;  %v1691_v47 = vpack.c.bf16 %v1367_v45, %v1364_v44  ;;  %1886 = vmatpush1.bf16.msra.mxu0 %v12613_v42 }
 0x372   : > { %1636 = vadd.xlane.f32.xlu0 %v14617_v10  ;;  %1634 = vadd.xlane.f32.xlu1 %v14615_v27 }
 0x373   : > { %v14621_v15 = vpop.eup %13017  ;;  %11966 = vmatprep.subr.bf16.mxu1 %v1691_v47  ;;  %1887 = vmatprep.subr.bf16.mxu0 %v12618_v13 }
 0x374   : > { %11967 = vmatpush3.bf16.msra.mxu1 %v1691_v47 }
 0x375   : > { %v14625_v46 = vpop.eup %13019  ;;  %1888 = vmatpush1.bf16.msra.mxu0 %v12616_v55 }
 0x376   : > { %1640 = vadd.xlane.f32.xlu0 %v14625_v46  ;;  %1638 = vadd.xlane.f32.xlu1 %v14621_v15 }
 0x377   : > { %v14629_v9 = vpop.eup %13021 }
 0x37a   : > { %1642 = vadd.xlane.f32.xlu1 %v14629_v9 }
 0x3e7   : > { %v1613_v62 = vpop.xlane.xlu0 %1612 }
 0x3e8   : > { %13023 = vrcp.f32 %v1613_v62 }
 0x3eb   : > { %v1617_v8 = vpop.xlane.xlu0 %1616  ;;  %v1615_v3 = vpop.xlane.xlu1 %1614 }
 0x3ec   : > { %13025 = vrcp.f32 %v1615_v3 }
 0x3ed   : > { %13027 = vrcp.f32 %v1617_v8 }
 0x3ef   : > { %v1621_v35 = vpop.xlane.xlu0 %1620  ;;  %v1619_v18 = vpop.xlane.xlu1 %1618 }
 0x3f0   : > { %13029 = vrcp.f32 %v1619_v18 }
 0x3f1   : > { %13031 = vrcp.f32 %v1621_v35 }
 0x3f2   : > { %v13024_v21 = vpop.eup %13023 }
 0x3f3   : > { %v1625_v53 = vpop.xlane.xlu0 %1624  ;;  %v1623_v54 = vpop.xlane.xlu1 %1622  ;;  %v1660_v26 = vmul.f32 %v13024_v21, %v14568_v50 }
 0x3f4   : > { %13033 = vrcp.f32 %v1623_v54 }
 0x3f5   : > { %13035 = vrcp.f32 %v1625_v53 }
 0x3f6   : > { %v13026_v23 = vpop.eup %13025 }
 0x3f7   : > { %v1629_v2 = vpop.xlane.xlu0 %1628  ;;  %v1627_v25 = vpop.xlane.xlu1 %1626  ;;  %v1661_v17 = vmul.f32 %v13026_v23, %v14576_v29 }
 0x3f8   : > { %v13028_v28 = vpop.eup %13027  ;;  %13037 = vrcp.f32 %v1627_v25 }
 0x3f9   : > { %v1676_v19 = vpack.c.bf16 %v1661_v17, %v1660_v26  ;;  %13039 = vrcp.f32 %v1629_v2  ;;  %v1662_v60 = vmul.f32 %v13028_v28, %v14574_v24 }
 0x3fa   : > { %v13030_v34 = vpop.eup %13029 }
 0x3fb   : > { %v1633_v59 = vpop.xlane.xlu0 %1632  ;;  %v1631_v37 = vpop.xlane.xlu1 %1630  ;;  %v1663_v38 = vmul.f32 %v13030_v34, %v14582_v39  ;;  %11968 = vmatprep.mubr.bf16.mxu1 %v1676_v19 }
 0x3fc   : > { %v13032_v40 = vpop.eup %13031  ;;  %13041 = vrcp.f32 %v1631_v37  ;;  %v12621_v37 = vld [vmem:[%s19662_s0 + $0xc8] sm:$0xff]  }
 0x3fd   : > { %v1677_v44 = vpack.c.bf16 %v1663_v38, %v1662_v60  ;;  %13043 = vrcp.f32 %v1633_v59  ;;  %v1664_v29 = vmul.f32 %v13032_v40, %v14585_v61  ;;  %v12622_v60 = vld [vmem:[%s19662_s0 + $0x88] sm:$0xff]   ;;  %v12623_v40 = vld [vmem:[%s19662_s0 + $0xd0] sm:$0xff]  }
 0x3fe   : > { %v13034_v45 = vpop.eup %13033 }
 0x3ff   : > { %v1637_v50 = vpop.xlane.xlu0 %1636  ;;  %v1635_v47 = vpop.xlane.xlu1 %1634  ;;  %11969 = vmatmul.mubr.bf16.vlgmr.msra.gmra.mrb[48].mxu1 %v1677_v44  ;;  %v1665_v48 = vmul.f32 %v13034_v45, %v14592_v49 }
 0x400   : > { %v13036_v1 = vpop.eup %13035  ;;  %13045 = vrcp.f32 %v1635_v47 }
 0x401   : > { %v1678_v30 = vpack.c.bf16 %v1665_v48, %v1664_v29  ;;  %13047 = vrcp.f32 %v1637_v50  ;;  %v1666_v22 = vmul.f32 %v13036_v1, %v14594_v56  ;;  %v12624_v29 = vld [vmem:[%s19662_s0 + $0x90] sm:$0xff]   ;;  %v12625_v1 = vld [vmem:[%s19662_s0 + $0xd8] sm:$0xff]  }
 0x402   : > { %v13038_v36 = vpop.eup %13037 }
 0x403   : > { %v1641_v24 = vpop.xlane.xlu0 %1640  ;;  %v1639_v39 = vpop.xlane.xlu1 %1638  ;;  %11972 = vmatprep.mubr.bf16.mxu1 %v1678_v30  ;;  %v1667_v42 = vmul.f32 %v13038_v36, %v14600_v7  ;;  %v12626_v30 = vld [vmem:[%s19662_s0 + $0x98] sm:$0xff]  }
 0x404   : > { %v13040_v13 = vpop.eup %13039  ;;  %13049 = vrcp.f32 %v1639_v39 }
 0x405   : > { %13051 = vrcp.f32 %v1641_v24  ;;  %v1679_v55 = vpack.c.bf16 %v1667_v42, %v1666_v22  ;;  %v1668_v49 = vmul.f32 %v13040_v13, %v14602_v20  ;;  %v12627_v24 = vld [vmem:[%s19662_s0 + $0xe0] sm:$0xff]  }
 0x406   : > { %v13042_v62 = vpop.eup %13041 }
 0x407   : > { %v1643_v61 = vpop.xlane.xlu1 %1642  ;;  %11973 = vmatmul.mubr.bf16.gmra.mrb[52].mxu1 %v1679_v55  ;;  %v1669_v8 = vmul.f32 %v13042_v62, %v14609_v32  ;;  %v13044_v3 = vpop.eup %13043  ;;  %v12628_v55 = vld [vmem:[%s19662_s0 + $0xa0] sm:$0xff]  }
 0x408   : > { %13053 = vrcp.f32 %v1643_v61  ;;  %v1670_v56 = vmul.f32 %v13044_v3, %v14611_v4  ;;  %v13827_v4 = vmov 0   ;;  %v12629_v61 = vld [vmem:[%s19662_s0 + $0xe8] sm:$0xff]   ;;  %v12631_v3 = vld [vmem:[%s19662_s0 + $0xf0] sm:$0xff]  }
 0x409   : > { %v1680_v35 = vpack.c.bf16 %v1669_v8, %v1668_v49  ;;  %1913 = vmatprep.mubr.bf16.mxu0 %v13827_v4  ;;  %v12630_v49 = vld [vmem:[%s19662_s0 + $0xa8] sm:$0xff]  }
 0x40a   : > { %v13046_v18 = vpop.eup %13045 }
 0x40b   : > { %11976 = vmatprep.mubr.bf16.mxu1 %v1680_v35  ;;  %v1671_v7 = vmul.f32 %v13046_v18, %v14615_v27  ;;  %v13048_v53 = vpop.eup %13047  ;;  %v12619_v27 = vld [vmem:[%s19662_s0 + $0xc0] sm:$0xff]  }
 0x40c   : > { %v1672_v2 = vmul.f32 %v13048_v53, %v14617_v10  ;;  %11248 = vmatprep.subr.bf16.mxu0 %v12619_v27  ;;  %v12632_v53 = vld [vmem:[%s19662_s0 + $0xb0] sm:$0xff]   ;;  %v12642_v27 = vld [vmem:[%s19534_s3 + $0x98] sm:$0xff]  }
 0x40d   : > { %v1681_v54 = vpack.c.bf16 %v1671_v7, %v1670_v56 }
 0x40e   : > { %v13050_v21 = vpop.eup %13049 }
 0x40f   : > { %v13052_v23 = vpop.eup %13051  ;;  %11977 = vmatmul.mubr.bf16.gmra.mrb[56].mxu1 %v1681_v54  ;;  %v1673_v25 = vmul.f32 %v13050_v21, %v14621_v15  ;;  %v12633_v21 = vld [vmem:[%s19662_s0 + $0xf8] sm:$0xff]  }
 0x410   : > { %v1674_v32 = vmul.f32 %v13052_v23, %v14625_v46  ;;  %v12634_v23 = vld [vmem:[%s19662_s0 + $0xb8] sm:$0xff]  }
 0x411   : > { %v1682_v26 = vpack.c.bf16 %v1673_v25, %v1672_v2  ;;  %v12635_v2 = vld [vmem:[%s19534_s3 + $0xc0] sm:$0xff]  }
 0x412   : > { %v13054_v20 = vpop.eup %13053  ;;  %v12636_v25 = vld [vmem:[%s19534_s3 + $0x80] sm:$0xff]  }
 0x413   : > { %v1675_v17 = vmul.f32 %v13054_v20, %v14629_v9  ;;  %11980 = vmatprep.mubr.bf16.mxu1 %v1682_v26  ;;  %v12620_v9 = vld [vmem:[%s19662_s0 + $0x80] sm:$0xff]   ;;  %v12637_v20 = vld [vmem:[%s19534_s3 + $0xc8] sm:$0xff]  }
 0x414   : > { %v12638_v26 = vld [vmem:[%s19534_s3 + $0x88] sm:$0xff]  }
 0x415   : > { %v1683_v28 = vpack.c.bf16 %v1675_v17, %v1674_v32  ;;  %v12639_v32 = vld [vmem:[%s19534_s3 + $0xd0] sm:$0xff]  }
 0x416   : > { %v12640_v17 = vld [vmem:[%s19534_s3 + $0x90] sm:$0xff]  }
 0x417   : > { %11981 = vmatmul.mubr.bf16.gmra.mrb[60].mxu1 %v1683_v28  ;;  %v12641_v28 = vld [vmem:[%s19534_s3 + $0xd8] sm:$0xff]  }
 0x418   : > { %2631 = vmatprep.mubr.bf16.mxu1 %v14200_v14 }
 0x4d2   : > { %v11970_v10 = vpop.f32.mrb[48].mxu1 }
 0x4d3   : > { %v1726_v15 = vpop.f32.mrb[49].mxu1 }
 0x4d4   : > { %v11971_v19 = vpop.f32.mrb[50].mxu1 }
 0x4d5   : > { %v1790_v34 = vpack.c.bf16 %v11971_v19, %v11970_v10  ;;  %v1729_v46 = vpop.f32.mrb[51].mxu1  ;;  %v12643_v10 = vld [vmem:[%s19534_s3 + $0xe0] sm:$0xff]   ;;  %v12645_v19 = vld [vmem:[%s19534_s3 + $0xe8] sm:$0xff]  }
 0x4d6   : > { %v1789_v59 = vpack.c.bf16 %v1729_v46, %v1726_v15  ;;  %v12644_v15 = vld [vmem:[%s19534_s3 + $0xa0] sm:$0xff]   ;;  %v12647_v46 = vld [vmem:[%s19534_s3 + $0xf0] sm:$0xff]  }
 0x4d8   : > { %10240 = vmatmul.mubr.msk.bf16.vlgmr.msra.gmra.mrb[64].mxu0 %vm1386_vm0, %v1789_v59  ;;  %v12649_v59 = vld [vmem:[%s19534_s3 + $0xf8] sm:$0xff]  }
 0x4d9   : > { %11249 = vmatpush3.bf16.msra.mxu0 %v12620_v9  ;;  %1923 = vmatprep.mubr.bf16.mxu0 %v13827_v4  ;;  %v12648_v9 = vld [vmem:[%s19534_s3 + $0xb0] sm:$0xff]  }
 0x4da   : > { %v11974_v38 = vpop.f32.mrb[52].mxu1  ;;  %11250 = vmatprep.subr.bf16.mxu0 %v12621_v37  ;;  %v12650_v37 = vld [vmem:[%s19534_s3 + $0xb8] sm:$0xff]  }
 0x4db   : > { %v1742_v44 = vpop.f32.mrb[53].mxu1 }
 0x4dc   : > { %v11975_v45 = vpop.f32.mrb[54].mxu1 }
 0x4dd   : > { %v1792_v50 = vpack.c.bf16 %v11975_v45, %v11974_v38  ;;  %v1745_v47 = vpop.f32.mrb[55].mxu1  ;;  %11251 = vmatpush3.bf16.msra.mxu0 %v12622_v60  ;;  %v14793_v45 = vld [vmem:[#allocation5 + $0x1] ss:$0 sm:$0xff] }
 0x4de   : > { %v1791_v48 = vpack.c.bf16 %v1745_v47, %v1742_v44  ;;  %11252 = vmatprep.subr.bf16.mxu0 %v12623_v40 }
 0x4e0   : > { %10241 = vmatmul.mubr.msk.bf16.gmra.mrb[68].mxu0 %vm1386_vm0, %v1790_v34  ;;  %v12646_v34 = vld [vmem:[%s19534_s3 + $0xa8] sm:$0xff]  }
 0x4e1   : > { %1933 = vmatprep.mubr.bf16.mxu0 %v13827_v4  ;;  %11253 = vmatpush3.bf16.msra.mxu0 %v12624_v29 }
 0x4e2   : > { %v11978_v36 = vpop.f32.mrb[56].mxu1  ;;  %11254 = vmatprep.subr.bf16.mxu0 %v12625_v1 }
 0x4e3   : > { %v1758_v39 = vpop.f32.mrb[57].mxu1 }
 0x4e4   : > { %v11979_v22 = vpop.f32.mrb[58].mxu1 }
 0x4e5   : > { %v1794_v42 = vpack.c.bf16 %v11979_v22, %v11978_v36  ;;  %v1761_v13 = vpop.f32.mrb[59].mxu1  ;;  %11255 = vmatpush3.bf16.msra.mxu0 %v12626_v30 }
 0x4e6   : > { %v1793_v62 = vpack.c.bf16 %v1761_v13, %v1758_v39  ;;  %11256 = vmatprep.subr.bf16.mxu0 %v12627_v24 }
 0x4e8   : > { %10242 = vmatmul.mubr.msk.bf16.gmra.mrb[72].mxu0 %vm1386_vm0, %v1791_v48 }
 0x4e9   : > { %1943 = vmatprep.mubr.bf16.mxu0 %v13827_v4  ;;  %11257 = vmatpush3.bf16.msra.mxu0 %v12628_v55 }
 0x4ea   : > { %v11982_v8 = vpop.f32.mrb[60].mxu1  ;;  %11258 = vmatprep.subr.bf16.mxu0 %v12629_v61 }
 0x4eb   : > { %v1774_v35 = vpop.f32.mrb[61].mxu1 }
 0x4ec   : > { %v11983_v18 = vpop.f32.mrb[62].mxu1 }
 0x4ed   : > { %v1796_v56 = vpack.c.bf16 %v11983_v18, %v11982_v8  ;;  %v1777_v7 = vpop.f32.mrb[63].mxu1  ;;  %11259 = vmatpush3.bf16.msra.mxu0 %v12630_v49 }
 0x4ee   : > { %v1795_v54 = vpack.c.bf16 %v1777_v7, %v1774_v35  ;;  %11260 = vmatprep.subr.bf16.mxu0 %v12631_v3 }
 0x4f0   : > { %10243 = vmatmul.mubr.msk.bf16.gmra.mrb[76].mxu0 %vm1386_vm0, %v1792_v50 }
 0x4f1   : > { %1953 = vmatprep.mubr.bf16.mxu0 %v13827_v4  ;;  %11261 = vmatpush3.bf16.msra.mxu0 %v12632_v53 }
 0x4f2   : > { %11262 = vmatprep.subr.bf16.mxu0 %v12633_v21 }
 0x4f5   : > { %11263 = vmatpush3.bf16.msra.mxu0 %v12634_v23 }
 0x4f6   : > { %11312 = vmatprep.subr.bf16.mxu0 %v12635_v2 }
 0x4f8   : > { %10244 = vmatmul.mubr.msk.bf16.gmra.mrb[80].mxu0 %vm1386_vm0, %v1793_v62 }
 0x4f9   : > { %1963 = vmatprep.mubr.bf16.mxu0 %v13827_v4 }
 0x500   : > { %10245 = vmatmul.mubr.msk.bf16.gmra.mrb[84].mxu0 %vm1386_vm0, %v1794_v42 }
 0x501   : > { %1973 = vmatprep.mubr.bf16.mxu0 %v13827_v4 }
 0x508   : > { %10246 = vmatmul.mubr.msk.bf16.gmra.mrb[88].mxu0 %vm1386_vm0, %v1795_v54 }
 0x509   : > { %1983 = vmatprep.mubr.bf16.mxu0 %v13827_v4 }
 0x510   : > { %10247 = vmatmul.mubr.msk.bf16.gmra.mrb[92].mxu0 %vm1386_vm0, %v1796_v56 }
 0x511   : > { %2163 = vmatprep.mubr.bf16.mxu0 %v14200_v14 }
 0x518   : > { %2164 = vmatmul.mubr.bf16.vlgmr.msra.gmra.mrb[96].mxu0 %v14244_v31 }
 0x519   : > { %11313 = vmatpush3.bf16.msra.mxu0 %v12636_v25  ;;  %2171 = vmatprep.mubr.bf16.mxu0 %v14249_v33 }
 0x51a   : > { %11314 = vmatprep.subr.bf16.mxu0 %v12637_v20 }
 0x51d   : > { %11315 = vmatpush3.bf16.msra.mxu0 %v12638_v26 }
 0x51e   : > { %11316 = vmatprep.subr.bf16.mxu0 %v12639_v32 }
 0x520   : > { %2172 = vmatmul.mubr.bf16.gmra.mrb[100].mxu0 %v14266_v41 }
 0x521   : > { %2179 = vmatprep.mubr.bf16.mxu0 %v14271_v43  ;;  %11317 = vmatpush3.bf16.msra.mxu0 %v12640_v17 }
 0x522   : > { %11318 = vmatprep.subr.bf16.mxu0 %v12641_v28 }
 0x525   : > { %11319 = vmatpush3.bf16.msra.mxu0 %v12642_v27 }
 0x526   : > { %11320 = vmatprep.subr.bf16.mxu0 %v12643_v10 }
 0x528   : > { %2180 = vmatmul.mubr.bf16.gmra.mrb[104].mxu0 %v14288_v51 }
 0x529   : > { %2187 = vmatprep.mubr.bf16.mxu0 %v14290_v52  ;;  %11321 = vmatpush3.bf16.msra.mxu0 %v12644_v15 }
 0x52a   : > { %11322 = vmatprep.subr.bf16.mxu0 %v12645_v19 }
 0x52d   : > { %11323 = vmatpush3.bf16.msra.mxu0 %v12646_v34 }
 0x52e   : > { %11324 = vmatprep.subr.bf16.mxu0 %v12647_v46 }
 0x530   : > { %2188 = vmatmul.mubr.bf16.gmra.mrb[108].mxu0 %v14300_v57 }
 0x531   : > { %2195 = vmatprep.mubr.bf16.mxu0 %v14302_v58  ;;  %11325 = vmatpush3.bf16.msra.mxu0 %v12648_v9 }
 0x532   : > { %11326 = vmatprep.subr.bf16.mxu0 %v12649_v59 }
 0x535   : > { %11327 = vmatpush3.bf16.msra.mxu0 %v12650_v37 }
 0x538   : > { %2196 = vmatmul.mubr.bf16.gmra.mrb[112].mxu0 %v14312_v63 }
 0x539   : > { %2203 = vmatprep.mubr.bf16.mxu0 %v14314_v0 }
 0x540   : > { %2204 = vmatmul.mubr.bf16.gmra.mrb[116].mxu0 %v14324_v5 }
 0x541   : > { %2211 = vmatprep.mubr.bf16.mxu0 %v14326_v6 }
 0x548   : > { %2212 = vmatmul.mubr.bf16.gmra.mrb[120].mxu0 %v14336_v11 }
 0x549   : > { %2219 = vmatprep.mubr.bf16.mxu0 %v14338_v12 }
 0x550   : > { %2220 = vmatmul.mubr.bf16.gmra.mrb[124].mxu0 %v14346_v16 }
 0x551   : > { %2397 = vmatprep.mubr.bf16.mxu0 %v14200_v14 }
 0x558   : > { %2398 = vmatmul.mubr.bf16.vlgmr.msra.gmra.mrb[128].mxu0 %v14244_v31 }
 0x559   : > { %2405 = vmatprep.mubr.bf16.mxu0 %v14249_v33 }
 0x560   : > { %2406 = vmatmul.mubr.bf16.gmra.mrb[132].mxu0 %v14266_v41 }
 0x561   : > { %2413 = vmatprep.mubr.bf16.mxu0 %v14271_v43 }
 0x568   : > { %2414 = vmatmul.mubr.bf16.gmra.mrb[136].mxu0 %v14288_v51 }
 0x569   : > { %2421 = vmatprep.mubr.bf16.mxu0 %v14290_v52 }
 0x570   : > { %2422 = vmatmul.mubr.bf16.gmra.mrb[140].mxu0 %v14300_v57 }
 0x571   : > { %2429 = vmatprep.mubr.bf16.mxu0 %v14302_v58 }
 0x578   : > { %2430 = vmatmul.mubr.bf16.gmra.mrb[144].mxu0 %v14312_v63 }
 0x579   : > { %2437 = vmatprep.mubr.bf16.mxu0 %v14314_v0 }
 0x580   : > { %2438 = vmatmul.mubr.bf16.gmra.mrb[148].mxu0 %v14324_v5 }
 0x581   : > { %2445 = vmatprep.mubr.bf16.mxu0 %v14326_v6 }
 0x588   : > { %2446 = vmatmul.mubr.bf16.gmra.mrb[152].mxu0 %v14336_v11 }
 0x589   : > { %2453 = vmatprep.mubr.bf16.mxu0 %v14338_v12 }
 0x590   : > { %2454 = vmatmul.mubr.bf16.gmra.mrb[156].mxu0 %v14346_v16 }
 0x5eb   : > { %v11264_v60 = vpop.f32.mrb[96].mxu0 }
 0x5ec   : > { %v11265_v38 = vpop.f32.mrb[97].mxu0 }
 0x5ed   : > { %v11266_v40 = vadd.f32 %v11265_v38, %v11264_v60  ;;  %v11267_v44 = vpop.f32.mrb[98].mxu0 }
 0x5ee   : > { %v11268_v50 = vpop.f32.mrb[99].mxu0 }
 0x5ef   : > { %v11269_v47 = vadd.f32 %v11268_v50, %v11267_v44  ;;  %v2166_v29 = vadd.f32 %v11266_v40, %v14793_v45 }
 0x5f1   : > { %v2169_v48 = vadd.f32 %v11269_v47, %v14793_v45 }
 0x5f3   : > { %v11270_v1 = vpop.f32.mrb[100].mxu0  ;;  %v2696_v30 = vpack.c.bf16 %v2169_v48, %v2166_v29 }
 0x5f4   : > { %v11271_v36 = vpop.f32.mrb[101].mxu0 }
 0x5f5   : > { %v11272_v24 = vadd.f32 %v11271_v36, %v11270_v1  ;;  %v11273_v39 = vpop.f32.mrb[102].mxu0  ;;  %12000 = vmatprep.mubr.msk.bf16.mxu0 %vm1386_vm0, %v2696_v30 }
 0x5f6   : > { %v11274_v22 = vpop.f32.mrb[103].mxu0 }
 0x5f7   : > { %v14799_v42 = vadd.f32 %v11272_v24, %v14793_v45  ;;  %v11275_v13 = vadd.f32 %v11274_v22, %v11273_v39 }
 0x5f9   : > { %v14802_v55 = vadd.f32 %v11275_v13, %v14793_v45 }
 0x5fb   : > { %v2697_v62 = vpack.c.bf16 %v14802_v55, %v14799_v42  ;;  %v11276_v61 = vpop.f32.mrb[104].mxu0  ;;  %v12651_v42 = vld [vmem:[%s19536_s5 + $0xc0] sm:$0xff]  }
 0x5fc   : > { %v11277_v49 = vpop.f32.mrb[105].mxu0  ;;  %v12652_v55 = vld [vmem:[%s19536_s5 + $0x80] sm:$0xff]   ;;  %11376 = vmatprep.subr.bf16.mxu1 %v12651_v42 }
 0x5fd   : > { %v11278_v8 = vadd.f32 %v11277_v49, %v11276_v61  ;;  %v11279_v3 = vpop.f32.mrb[106].mxu0  ;;  %11377 = vmatpush3.bf16.msra.mxu1 %v12652_v55 }
 0x5fe   : > { %v11280_v35 = vpop.f32.mrb[107].mxu0 }
 0x5ff   : > { %v14807_v18 = vadd.f32 %v11278_v8, %v14793_v45  ;;  %v11281_v56 = vadd.f32 %v11280_v35, %v11279_v3 }
 0x601   : > { %v14810_v7 = vadd.f32 %v11281_v56, %v14793_v45 }
 0x603   : > { %v11282_v53 = vpop.f32.mrb[108].mxu0  ;;  %v2698_v54 = vpack.c.bf16 %v14810_v7, %v14807_v18  ;;  %v12654_v18 = vld [vmem:[%s19536_s5 + $0x88] sm:$0xff]   ;;  %v12655_v7 = vld [vmem:[%s19536_s5 + $0xd0] sm:$0xff]  }
 0x604   : > { %v11283_v21 = vpop.f32.mrb[109].mxu0 }
 0x605   : > { %v11284_v23 = vadd.f32 %v11283_v21, %v11282_v53  ;;  %v11285_v2 = vpop.f32.mrb[110].mxu0 }
 0x606   : > { %v11286_v25 = vpop.f32.mrb[111].mxu0 }
 0x607   : > { %v14815_v20 = vadd.f32 %v11284_v23, %v14793_v45  ;;  %v11287_v26 = vadd.f32 %v11286_v25, %v11285_v2 }
 0x609   : > { %v14818_v32 = vadd.f32 %v11287_v26, %v14793_v45 }
 0x60b   : > { %v11288_v17 = vpop.f32.mrb[112].mxu0  ;;  %v2699_v28 = vpack.c.bf16 %v14818_v32, %v14815_v20  ;;  %v12657_v20 = vld [vmem:[%s19536_s5 + $0xd8] sm:$0xff]  }
 0x60c   : > { %v11289_v27 = vpop.f32.mrb[113].mxu0  ;;  %v12658_v32 = vld [vmem:[%s19536_s5 + $0x98] sm:$0xff]  }
 0x60d   : > { %v11290_v10 = vadd.f32 %v11289_v27, %v11288_v17  ;;  %v11291_v15 = vpop.f32.mrb[114].mxu0 }
 0x60e   : > { %v11292_v19 = vpop.f32.mrb[115].mxu0 }
 0x60f   : > { %v14823_v34 = vadd.f32 %v11290_v10, %v14793_v45  ;;  %v11293_v46 = vadd.f32 %v11292_v19, %v11291_v15  ;;  %v14854_v15 = vld [vmem:[#allocation7 + $0x1] ss:$0 sm:$0xff] }
 0x611   : > { %v14826_v9 = vadd.f32 %v11293_v46, %v14793_v45 }
 0x613   : > { %v11294_v59 = vpop.f32.mrb[116].mxu0  ;;  %v2700_v37 = vpack.c.bf16 %v14826_v9, %v14823_v34  ;;  %v12660_v34 = vld [vmem:[%s19536_s5 + $0xa0] sm:$0xff]   ;;  %v12661_v9 = vld [vmem:[%s19536_s5 + $0xe8] sm:$0xff]  }
 0x614   : > { %v11295_v60 = vpop.f32.mrb[117].mxu0 }
 0x615   : > { %v11296_v38 = vadd.f32 %v11295_v60, %v11294_v59  ;;  %v11297_v40 = vpop.f32.mrb[118].mxu0 }
 0x616   : > { %v11298_v44 = vpop.f32.mrb[119].mxu0 }
 0x617   : > { %v14831_v50 = vadd.f32 %v11296_v38, %v14793_v45  ;;  %v11299_v47 = vadd.f32 %v11298_v44, %v11297_v40 }
 0x619   : > { %v14834_v29 = vadd.f32 %v11299_v47, %v14793_v45 }
 0x61b   : > { %v11300_v48 = vpop.f32.mrb[120].mxu0  ;;  %v2701_v1 = vpack.c.bf16 %v14834_v29, %v14831_v50  ;;  %v12663_v50 = vld [vmem:[%s19536_s5 + $0xf0] sm:$0xff]  }
 0x61c   : > { %v11301_v30 = vpop.f32.mrb[121].mxu0  ;;  %v12664_v29 = vld [vmem:[%s19536_s5 + $0xb0] sm:$0xff]  }
 0x61d   : > { %v11302_v36 = vadd.f32 %v11301_v30, %v11300_v48  ;;  %v11303_v24 = vpop.f32.mrb[122].mxu0 }
 0x61e   : > { %v11304_v39 = vpop.f32.mrb[123].mxu0 }
 0x61f   : > { %v14839_v22 = vadd.f32 %v11302_v36, %v14793_v45  ;;  %v11305_v13 = vadd.f32 %v11304_v39, %v11303_v24 }
 0x621   : > { %v14842_v61 = vadd.f32 %v11305_v13, %v14793_v45 }
 0x623   : > { %v11306_v49 = vpop.f32.mrb[124].mxu0  ;;  %v2702_v8 = vpack.c.bf16 %v14842_v61, %v14839_v22  ;;  %v12666_v22 = vld [vmem:[%s19536_s5 + $0xb8] sm:$0xff]  }
 0x624   : > { %v11307_v3 = vpop.f32.mrb[125].mxu0 }
 0x625   : > { %v11308_v35 = vadd.f32 %v11307_v3, %v11306_v49  ;;  %v11309_v56 = vpop.f32.mrb[126].mxu0 }
 0x626   : > { %v11310_v53 = vpop.f32.mrb[127].mxu0 }
 0x627   : > { %v14847_v21 = vadd.f32 %v11308_v35, %v14793_v45  ;;  %v11311_v23 = vadd.f32 %v11310_v53, %v11309_v56 }
 0x629   : > { %v14850_v2 = vadd.f32 %v11311_v23, %v14793_v45 }
 0x62b   : > { %v11328_v25 = vpop.f32.mrb[128].mxu0  ;;  %v2703_v26 = vpack.c.bf16 %v14850_v2, %v14847_v21 }
 0x62c   : > { %v11329_v17 = vpop.f32.mrb[129].mxu0 }
 0x62d   : > { %v11330_v27 = vadd.f32 %v11329_v17, %v11328_v25  ;;  %v11331_v10 = vpop.f32.mrb[130].mxu0 }
 0x62e   : > { %v11332_v19 = vpop.f32.mrb[131].mxu0 }
 0x62f   : > { %v11333_v46 = vadd.f32 %v11332_v19, %v11331_v10  ;;  %v2400_v59 = vadd.f32 %v11330_v27, %v14854_v15 }
 0x631   : > { %v2403_v60 = vadd.f32 %v11333_v46, %v14854_v15 }
 0x633   : > { %v2704_v38 = vpack.c.bf16 %v2403_v60, %v2400_v59  ;;  %v11334_v40 = vpop.f32.mrb[132].mxu0 }
 0x634   : > { %v11335_v44 = vpop.f32.mrb[133].mxu0 }
 0x635   : > { %v11336_v45 = vadd.f32 %v11335_v44, %v11334_v40  ;;  %v11337_v47 = vpop.f32.mrb[134].mxu0  ;;  %12440 = vmatprep.subr.msk.bf16.mxu0 %vm1386_vm0, %v2704_v38  ;;  %v2737_v48 = vsel %vm1386_vm0, %v2704_v38, 0 }
 0x636   : > { %v11338_v30 = vpop.f32.mrb[135].mxu0  ;;  %11985 = vmatpush3.bf16.xpose.msra.mxu0 %v2737_v48 }
 0x637   : > { %v11339_v36 = vadd.f32 %v11338_v30, %v11337_v47  ;;  %v2408_v24 = vadd.f32 %v11336_v45, %v14854_v15 }
 0x639   : > { %v2411_v39 = vadd.f32 %v11339_v36, %v14854_v15 }
 0x63b   : > { %v2705_v13 = vpack.c.bf16 %v2411_v39, %v2408_v24  ;;  %v11340_v49 = vpop.f32.mrb[136].mxu0 }
 0x63c   : > { %v11341_v3 = vpop.f32.mrb[137].mxu0 }
 0x63d   : > { %v11342_v35 = vadd.f32 %v11341_v3, %v11340_v49  ;;  %v11343_v56 = vpop.f32.mrb[138].mxu0  ;;  %12441 = vmatprep.subr.msk.bf16.mxu0 %vm1386_vm0, %v2705_v13  ;;  %v2740_v53 = vsel %vm1386_vm0, %v2705_v13, 0 }
 0x63e   : > { %v11344_v23 = vpop.f32.mrb[139].mxu0  ;;  %11987 = vmatpush3.bf16.xpose.msra.mxu0 %v2740_v53 }
 0x63f   : > { %v11345_v25 = vadd.f32 %v11344_v23, %v11343_v56  ;;  %v2416_v17 = vadd.f32 %v11342_v35, %v14854_v15 }
 0x641   : > { %v2419_v27 = vadd.f32 %v11345_v25, %v14854_v15 }
 0x643   : > { %v2706_v10 = vpack.c.bf16 %v2419_v27, %v2416_v17  ;;  %v11346_v19 = vpop.f32.mrb[140].mxu0 }
 0x644   : > { %v11347_v46 = vpop.f32.mrb[141].mxu0 }
 0x645   : > { %v11348_v59 = vadd.f32 %v11347_v46, %v11346_v19  ;;  %v11349_v60 = vpop.f32.mrb[142].mxu0  ;;  %12442 = vmatprep.subr.msk.bf16.mxu0 %vm1386_vm0, %v2706_v10  ;;  %v2743_v38 = vsel %vm1386_vm0, %v2706_v10, 0 }
 0x646   : > { %v11350_v40 = vpop.f32.mrb[143].mxu0  ;;  %11989 = vmatpush3.bf16.xpose.msra.mxu0 %v2743_v38 }
 0x647   : > { %v11351_v44 = vadd.f32 %v11350_v40, %v11349_v60  ;;  %v2424_v45 = vadd.f32 %v11348_v59, %v14854_v15 }
 0x649   : > { %v2427_v47 = vadd.f32 %v11351_v44, %v14854_v15 }
 0x64b   : > { %v2707_v48 = vpack.c.bf16 %v2427_v47, %v2424_v45  ;;  %v11352_v30 = vpop.f32.mrb[144].mxu0 }
 0x64c   : > { %v11353_v36 = vpop.f32.mrb[145].mxu0 }
 0x64d   : > { %v11354_v24 = vadd.f32 %v11353_v36, %v11352_v30  ;;  %v11355_v39 = vpop.f32.mrb[146].mxu0  ;;  %12443 = vmatprep.subr.msk.bf16.mxu0 %vm1386_vm0, %v2707_v48  ;;  %v2746_v13 = vsel %vm1386_vm0, %v2707_v48, 0 }
 0x64e   : > { %v11356_v49 = vpop.f32.mrb[147].mxu0  ;;  %11991 = vmatpush3.bf16.xpose.msra.mxu0 %v2746_v13 }
 0x64f   : > { %v11357_v3 = vadd.f32 %v11356_v49, %v11355_v39  ;;  %v2432_v35 = vadd.f32 %v11354_v24, %v14854_v15 }
 0x651   : > { %v2435_v56 = vadd.f32 %v11357_v3, %v14854_v15 }
 0x653   : > { %v2708_v53 = vpack.c.bf16 %v2435_v56, %v2432_v35  ;;  %v11358_v23 = vpop.f32.mrb[148].mxu0 }
 0x654   : > { %v11359_v25 = vpop.f32.mrb[149].mxu0 }
 0x655   : > { %v11360_v17 = vadd.f32 %v11359_v25, %v11358_v23  ;;  %v11361_v27 = vpop.f32.mrb[150].mxu0  ;;  %12444 = vmatprep.subr.msk.bf16.mxu0 %vm1386_vm0, %v2708_v53  ;;  %v2749_v10 = vsel %vm1386_vm0, %v2708_v53, 0 }
 0x656   : > { %v11362_v19 = vpop.f32.mrb[151].mxu0  ;;  %11993 = vmatpush3.bf16.xpose.msra.mxu0 %v2749_v10 }
 0x657   : > { %v11363_v46 = vadd.f32 %v11362_v19, %v11361_v27  ;;  %v2440_v59 = vadd.f32 %v11360_v17, %v14854_v15 }
 0x659   : > { %v2443_v60 = vadd.f32 %v11363_v46, %v14854_v15 }
 0x65b   : > { %v2709_v38 = vpack.c.bf16 %v2443_v60, %v2440_v59  ;;  %v11364_v40 = vpop.f32.mrb[152].mxu0 }
 0x65c   : > { %v11365_v44 = vpop.f32.mrb[153].mxu0 }
 0x65d   : > { %v11366_v45 = vadd.f32 %v11365_v44, %v11364_v40  ;;  %v11367_v47 = vpop.f32.mrb[154].mxu0  ;;  %12445 = vmatprep.subr.msk.bf16.mxu0 %vm1386_vm0, %v2709_v38  ;;  %v2752_v48 = vsel %vm1386_vm0, %v2709_v38, 0 }
 0x65e   : > { %v11368_v30 = vpop.f32.mrb[155].mxu0  ;;  %11995 = vmatpush3.bf16.xpose.msra.mxu0 %v2752_v48 }
 0x65f   : > { %v11369_v36 = vadd.f32 %v11368_v30, %v11367_v47  ;;  %v2448_v24 = vadd.f32 %v11366_v45, %v14854_v15 }
 0x661   : > { %v2451_v39 = vadd.f32 %v11369_v36, %v14854_v15 }
 0x663   : > { %v2710_v13 = vpack.c.bf16 %v2451_v39, %v2448_v24  ;;  %v11370_v49 = vpop.f32.mrb[156].mxu0  ;;  %v15028_v39 = vld [vmem:[#allocation8 + $0x1] ss:$0 sm:$0xff] }
 0x664   : > { %v11371_v3 = vpop.f32.mrb[157].mxu0 }
 0x665   : > { %v11372_v35 = vadd.f32 %v11371_v3, %v11370_v49  ;;  %v11373_v56 = vpop.f32.mrb[158].mxu0  ;;  %12446 = vmatprep.subr.msk.bf16.mxu0 %vm1386_vm0, %v2710_v13  ;;  %v2755_v53 = vsel %vm1386_vm0, %v2710_v13, 0 }
 0x666   : > { %v11374_v23 = vpop.f32.mrb[159].mxu0  ;;  %11997 = vmatpush3.bf16.xpose.msra.mxu0 %v2755_v53 }
 0x667   : > { %v11375_v25 = vadd.f32 %v11374_v23, %v11373_v56  ;;  %v2456_v17 = vadd.f32 %v11372_v35, %v14854_v15 }
 0x669   : > { %v2459_v27 = vadd.f32 %v11375_v25, %v14854_v15 }
 0x66b   : > { %v2711_v10 = vpack.c.bf16 %v2459_v27, %v2456_v17 }
 0x66d   : > { %12447 = vmatprep.subr.msk.bf16.mxu0 %vm1386_vm0, %v2711_v10  ;;  %v2758_v19 = vsel %vm1386_vm0, %v2711_v10, 0 }
 0x66e   : > { %11999 = vmatpush3.bf16.xpose.msra.mxu0 %v2758_v19 }
 0x675   : > { %12001 = vmatmul.mubr.msk.bf16.vlgmr.msra.gmra.mrb[160].mxu0 %vm1386_vm0, %v2697_v62  ;;  %v12653_v62 = vld [vmem:[%s19536_s5 + $0xc8] sm:$0xff]  }
 0x676   : > { %12004 = vmatprep.mubr.msk.bf16.mxu0 %vm1386_vm0, %v2698_v54  ;;  %11378 = vmatprep.subr.bf16.mxu1 %v12653_v62  ;;  %v12656_v54 = vld [vmem:[%s19536_s5 + $0x90] sm:$0xff]  }
 0x677   : > { %11379 = vmatpush3.bf16.msra.mxu1 %v12654_v18 }
 0x678   : > { %11380 = vmatprep.subr.bf16.mxu1 %v12655_v7 }
 0x67b   : > { %11381 = vmatpush3.bf16.msra.mxu1 %v12656_v54 }
 0x67c   : > { %11382 = vmatprep.subr.bf16.mxu1 %v12657_v20 }
 0x67d   : > { %12005 = vmatmul.mubr.msk.bf16.gmra.mrb[164].mxu0 %vm1386_vm0, %v2699_v28  ;;  %v12659_v28 = vld [vmem:[%s19536_s5 + $0xe0] sm:$0xff]  }
 0x67e   : > { %12008 = vmatprep.mubr.msk.bf16.mxu0 %vm1386_vm0, %v2700_v37  ;;  %v12662_v37 = vld [vmem:[%s19536_s5 + $0xa8] sm:$0xff]  }
 0x67f   : > { %11383 = vmatpush3.bf16.msra.mxu1 %v12658_v32 }
 0x680   : > { %11384 = vmatprep.subr.bf16.mxu1 %v12659_v28 }
 0x683   : > { %11385 = vmatpush3.bf16.msra.mxu1 %v12660_v34 }
 0x684   : > { %11386 = vmatprep.subr.bf16.mxu1 %v12661_v9 }
 0x685   : > { %12009 = vmatmul.mubr.msk.bf16.gmra.mrb[168].mxu0 %vm1386_vm0, %v2701_v1  ;;  %v12665_v1 = vld [vmem:[%s19536_s5 + $0xf8] sm:$0xff]  }
 0x686   : > { %12012 = vmatprep.mubr.msk.bf16.mxu0 %vm1386_vm0, %v2702_v8 }
 0x687   : > { %11387 = vmatpush3.bf16.msra.mxu1 %v12662_v37 }
 0x688   : > { %11388 = vmatprep.subr.bf16.mxu1 %v12663_v50 }
 0x68b   : > { %11389 = vmatpush3.bf16.msra.mxu1 %v12664_v29 }
 0x68c   : > { %11390 = vmatprep.subr.bf16.mxu1 %v12665_v1 }
 0x68d   : > { %12013 = vmatmul.mubr.msk.bf16.gmra.mrb[172].mxu0 %vm1386_vm0, %v2703_v26 }
 0x68e   : > { %3227 = vmatprep.mubr.bf16.mxu0 %v13827_v4 }
 0x68f   : > { %11391 = vmatpush3.bf16.msra.mxu1 %v12666_v22 }
 0x692   : > { %2632 = vmatmul.mubr.bf16.vlgmr.msra.gmra.mrb[64].mxu1 %v14244_v31 }
 0x693   : > { %2639 = vmatprep.mubr.bf16.mxu1 %v14249_v33 }
 0x69a   : > { %2640 = vmatmul.mubr.bf16.gmra.mrb[68].mxu1 %v14266_v41 }
 0x69b   : > { %2647 = vmatprep.mubr.bf16.mxu1 %v14271_v43 }
 0x6a2   : > { %2648 = vmatmul.mubr.bf16.gmra.mrb[72].mxu1 %v14288_v51 }
 0x6a3   : > { %2655 = vmatprep.mubr.bf16.mxu1 %v14290_v52 }
 0x6aa   : > { %2656 = vmatmul.mubr.bf16.gmra.mrb[76].mxu1 %v14300_v57 }
 0x6ab   : > { %2663 = vmatprep.mubr.bf16.mxu1 %v14302_v58 }
 0x6b2   : > { %2664 = vmatmul.mubr.bf16.gmra.mrb[80].mxu1 %v14312_v63 }
 0x6b3   : > { %2671 = vmatprep.mubr.bf16.mxu1 %v14314_v0 }
 0x6ba   : > { %2672 = vmatmul.mubr.bf16.gmra.mrb[84].mxu1 %v14324_v5 }
 0x6bb   : > { %2679 = vmatprep.mubr.bf16.mxu1 %v14326_v6 }
 0x6c2   : > { %2680 = vmatmul.mubr.bf16.gmra.mrb[88].mxu1 %v14336_v11 }
 0x6c3   : > { %2687 = vmatprep.mubr.bf16.mxu1 %v14338_v12 }
 0x6ca   : > { %2688 = vmatmul.mubr.bf16.gmra.mrb[92].mxu1 %v14346_v16 }
 0x748   : > { %v14980_v61 = vpop.f32.mrb[160].mxu0 }
 0x749   : > { %v14982_v8 = vpop.f32.mrb[161].mxu0 }
 0x74a   : > { %2857 = vmax.xlane.f32.xlu0 %v14982_v8  ;;  %v14985_v21 = vpop.f32.mrb[162].mxu0 }
 0x74b   : > { %v14987_v2 = vpop.f32.mrb[163].mxu0 }
 0x74c   : > { %2859 = vmax.xlane.f32.xlu1 %v14987_v2 }
 0x74e   : > { %2861 = vmax.xlane.f32.xlu0 %v14980_v61 }
 0x750   : > { %2863 = vmax.xlane.f32.xlu1 %v14985_v21  ;;  %v14992_v26 = vpop.f32.mrb[164].mxu0 }
 0x751   : > { %v14994_v15 = vpop.f32.mrb[165].mxu0 }
 0x752   : > { %2865 = vmax.xlane.f32.xlu0 %v14994_v15  ;;  %v14997_v46 = vpop.f32.mrb[166].mxu0 }
 0x753   : > { %v14999_v59 = vpop.f32.mrb[167].mxu0 }
 0x754   : > { %2867 = vmax.xlane.f32.xlu1 %v14999_v59 }
 0x756   : > { %2869 = vmax.xlane.f32.xlu0 %v14992_v26 }
 0x758   : > { %2871 = vmax.xlane.f32.xlu1 %v14997_v46  ;;  %v15004_v60 = vpop.f32.mrb[168].mxu0 }
 0x759   : > { %v15006_v38 = vpop.f32.mrb[169].mxu0 }
 0x75a   : > { %2873 = vmax.xlane.f32.xlu0 %v15006_v38  ;;  %v15009_v40 = vpop.f32.mrb[170].mxu0 }
 0x75b   : > { %v15011_v44 = vpop.f32.mrb[171].mxu0 }
 0x75c   : > { %2875 = vmax.xlane.f32.xlu1 %v15011_v44 }
 0x75e   : > { %2877 = vmax.xlane.f32.xlu0 %v15004_v60 }
 0x760   : > { %2879 = vmax.xlane.f32.xlu1 %v15009_v40  ;;  %v15016_v45 = vpop.f32.mrb[172].mxu0 }
 0x761   : > { %v15018_v47 = vpop.f32.mrb[173].mxu0 }
 0x762   : > { %2881 = vmax.xlane.f32.xlu0 %v15018_v47  ;;  %v15021_v48 = vpop.f32.mrb[174].mxu0 }
 0x763   : > { %v15023_v30 = vpop.f32.mrb[175].mxu0 }
 0x764   : > { %2883 = vmax.xlane.f32.xlu1 %v15023_v30 }
 0x765   : > { %v11392_v36 = vpop.f32.mrb[64].mxu1 }
 0x766   : > { %2885 = vmax.xlane.f32.xlu0 %v15016_v45  ;;  %v11393_v24 = vpop.f32.mrb[65].mxu1 }
 0x767   : > { %v11395_v13 = vpop.f32.mrb[66].mxu1  ;;  %v11394_v49 = vadd.f32 %v11393_v24, %v11392_v36 }
 0x768   : > { %2887 = vmax.xlane.f32.xlu1 %v15021_v48  ;;  %v11396_v3 = vpop.f32.mrb[67].mxu1 }
 0x769   : > { %v2634_v35 = vadd.f32 %v11394_v49, %v15028_v39  ;;  %v11397_v56 = vadd.f32 %v11396_v3, %v11395_v13 }
 0x76b   : > { %v2637_v53 = vadd.f32 %v11397_v56, %v15028_v39 }
 0x76d   : > { %v11398_v23 = vpop.f32.mrb[68].mxu1  ;;  %v3009_v25 = vpack.c.bf16 %v2637_v53, %v2634_v35 }
 0x76e   : > { %v11399_v17 = vpop.f32.mrb[69].mxu1 }
 0x76f   : > { %v11401_v27 = vpop.f32.mrb[70].mxu1  ;;  %12016 = vmatprep.subr.bf16.mxu1 %v3009_v25  ;;  %v11400_v10 = vadd.f32 %v11399_v17, %v11398_v23 }
 0x770   : > { %v11402_v19 = vpop.f32.mrb[71].mxu1  ;;  %12017 = vmatpush3.bf16.msra.mxu1 %v3009_v25 }
 0x771   : > { %v2642_v42 = vadd.f32 %v11400_v10, %v15028_v39  ;;  %v11403_v55 = vadd.f32 %v11402_v19, %v11401_v27 }
 0x773   : > { %v2645_v62 = vadd.f32 %v11403_v55, %v15028_v39 }
 0x775   : > { %v11404_v18 = vpop.f32.mrb[72].mxu1  ;;  %v3010_v7 = vpack.c.bf16 %v2645_v62, %v2642_v42 }
 0x776   : > { %v11405_v54 = vpop.f32.mrb[73].mxu1 }
 0x777   : > { %v11407_v20 = vpop.f32.mrb[74].mxu1  ;;  %12018 = vmatprep.subr.bf16.mxu1 %v3010_v7  ;;  %v11406_v32 = vadd.f32 %v11405_v54, %v11404_v18 }
 0x778   : > { %v11408_v28 = vpop.f32.mrb[75].mxu1  ;;  %12019 = vmatpush3.bf16.msra.mxu1 %v3010_v7 }
 0x779   : > { %v2650_v34 = vadd.f32 %v11406_v32, %v15028_v39  ;;  %v11409_v9 = vadd.f32 %v11408_v28, %v11407_v20 }
 0x77b   : > { %v2653_v37 = vadd.f32 %v11409_v9, %v15028_v39 }
 0x77d   : > { %v11410_v50 = vpop.f32.mrb[76].mxu1  ;;  %v3011_v29 = vpack.c.bf16 %v2653_v37, %v2650_v34 }
 0x77e   : > { %v11411_v1 = vpop.f32.mrb[77].mxu1 }
 0x77f   : > { %v11413_v36 = vpop.f32.mrb[78].mxu1  ;;  %12020 = vmatprep.subr.bf16.mxu1 %v3011_v29  ;;  %v11412_v24 = vadd.f32 %v11411_v1, %v11410_v50 }
 0x780   : > { %v11414_v49 = vpop.f32.mrb[79].mxu1  ;;  %12021 = vmatpush3.bf16.msra.mxu1 %v3011_v29 }
 0x781   : > { %v2658_v35 = vadd.f32 %v11412_v24, %v15028_v39  ;;  %v11415_v56 = vadd.f32 %v11414_v49, %v11413_v36 }
 0x783   : > { %v2661_v17 = vadd.f32 %v11415_v56, %v15028_v39 }
 0x785   : > { %v11416_v42 = vpop.f32.mrb[80].mxu1  ;;  %v3012_v55 = vpack.c.bf16 %v2661_v17, %v2658_v35 }
 0x786   : > { %v11417_v18 = vpop.f32.mrb[81].mxu1 }
 0x787   : > { %v11419_v54 = vpop.f32.mrb[82].mxu1  ;;  %12022 = vmatprep.subr.bf16.mxu1 %v3012_v55  ;;  %v11418_v20 = vadd.f32 %v11417_v18, %v11416_v42 }
 0x788   : > { %v11420_v28 = vpop.f32.mrb[83].mxu1  ;;  %12023 = vmatpush3.bf16.msra.mxu1 %v3012_v55 }
 0x789   : > { %v11421_v9 = vadd.f32 %v11420_v28, %v11419_v54 }
 0x78b   : > { %v2669_v29 = vadd.f32 %v11421_v9, %v15028_v39 }
 0x78d   : > { %v11422_v24 = vpop.f32.mrb[84].mxu1 }
 0x78e   : > { %v11423_v35 = vpop.f32.mrb[85].mxu1 }
 0x7d7   : > { %v2858_v22 = vpop.xlane.xlu0 %2857 }
 0x7d8   : > { %v2889_v13 = vsub.f32 %v14982_v8, %v2858_v22 }
 0x7d9   : > { %v2860_v3 = vpop.xlane.xlu1 %2859 }
 0x7da   : > { %v2905_v53 = vmul.f32 1.442695, %v2889_v13  ;;  %v2890_v23 = vsub.f32 %v14987_v2, %v2860_v3 }
 0x7db   : > { %v2862_v25 = vpop.xlane.xlu0 %2861 }
 0x7dc   : > { %13055 = vpow2.f32 %v2905_v53  ;;  %v2907_v27 = vmul.f32 1.442695, %v2890_v23  ;;  %v2891_v10 = vsub.f32 %v14980_v61, %v2862_v25  ;;  %v2666_v61 = vadd.f32 %v11418_v20, %v15028_v39 }
 0x7dd   : > { %v2864_v19 = vpop.xlane.xlu1 %2863  ;;  %v11424_v53 = vadd.f32 %v11423_v35, %v11422_v24 }
 0x7de   : > { %13057 = vpow2.f32 %v2907_v27  ;;  %v2909_v8 = vmul.f32 1.442695, %v2891_v10  ;;  %v2892_v62 = vsub.f32 %v14985_v21, %v2864_v19 }
 0x7df   : > { %v2866_v7 = vpop.xlane.xlu0 %2865 }
 0x7e0   : > { %13059 = vpow2.f32 %v2909_v8  ;;  %v2911_v2 = vmul.f32 1.442695, %v2892_v62  ;;  %v2893_v32 = vsub.f32 %v14994_v15, %v2866_v7  ;;  %v3013_v15 = vpack.c.bf16 %v2669_v29, %v2666_v61 }
 0x7e1   : > { %v2868_v34 = vpop.xlane.xlu1 %2867 }
 0x7e2   : > { %13061 = vpow2.f32 %v2911_v2  ;;  %v2913_v37 = vmul.f32 1.442695, %v2893_v32  ;;  %v2894_v50 = vsub.f32 %v14999_v59, %v2868_v34  ;;  %v11425_v59 = vpop.f32.mrb[86].mxu1  ;;  %12024 = vmatprep.subr.bf16.mxu1 %v3013_v15 }
 0x7e3   : > { %v2870_v21 = vpop.xlane.xlu0 %2869  ;;  %v11426_v17 = vpop.f32.mrb[87].mxu1  ;;  %12025 = vmatpush3.bf16.msra.mxu1 %v3013_v15 }
 0x7e4   : > { %13063 = vpow2.f32 %v2913_v37  ;;  %v2915_v1 = vmul.f32 1.442695, %v2894_v50  ;;  %v2895_v22 = vsub.f32 %v14992_v26, %v2870_v21  ;;  %v11427_v10 = vadd.f32 %v11426_v17, %v11425_v59  ;;  %v11428_v20 = vpop.f32.mrb[88].mxu1 }
 0x7e5   : > { %v2872_v36 = vpop.xlane.xlu1 %2871  ;;  %v11429_v34 = vpop.f32.mrb[89].mxu1 }
 0x7e6   : > { %v15047_v13 = vpop.eup %13055  ;;  %13065 = vpow2.f32 %v2915_v1  ;;  %v2917_v49 = vmul.f32 1.442695, %v2895_v22  ;;  %v2896_v3 = vsub.f32 %v14997_v46, %v2872_v36  ;;  %v2674_v46 = vadd.f32 %v11424_v53, %v15028_v39  ;;  %v11431_v9 = vpop.f32.mrb[90].mxu1 }
 0x7e7   : > { %v2874_v56 = vpop.xlane.xlu0 %2873  ;;  %2937 = vadd.xlane.f32.xlu0 %v15047_v13  ;;  %v2677_v62 = vadd.f32 %v11427_v10, %v15028_v39  ;;  %v11432_v21 = vpop.f32.mrb[91].mxu1 }
 0x7e8   : > { %v15051_v23 = vpop.eup %13057  ;;  %13067 = vpow2.f32 %v2917_v49  ;;  %v2919_v26 = vmul.f32 1.442695, %v2896_v3  ;;  %v2897_v25 = vsub.f32 %v15006_v38, %v2874_v56  ;;  %v11430_v49 = vadd.f32 %v11429_v34, %v11428_v20  ;;  %v11434_v35 = vpop.f32.mrb[92].mxu1  ;;  %v12667_v34 = vld [vmem:[#allocation10 + $0x40] ss:$8 sps:$4 sm:$0xff]  }
 0x7e9   : > { %v2876_v27 = vpop.xlane.xlu1 %2875  ;;  %2939 = vadd.xlane.f32.xlu1 %v15051_v23  ;;  %v3014_v2 = vpack.c.bf16 %v2677_v62, %v2674_v46  ;;  %v11433_v56 = vadd.f32 %v11432_v21, %v11431_v9  ;;  %v12670_v9 = vld [vmem:[#allocation10 + $0x50] ss:$8 sps:$4 sm:$0xff]   ;;  %v12678_v21 = vld [vmem:[#allocation10 + $0x74] ss:$8 sps:$4 sm:$0xff]  }
 0x7ea   : > { %v15056_v19 = vpop.eup %13059  ;;  %13069 = vpow2.f32 %v2919_v26  ;;  %v2921_v42 = vmul.f32 1.442695, %v2897_v25  ;;  %v2898_v55 = vsub.f32 %v15011_v44, %v2876_v27  ;;  %v11435_v26 = vpop.f32.mrb[93].mxu1  ;;  %v2682_v25 = vadd.f32 %v11430_v49, %v15028_v39 }
 0x7eb   : > { %v2878_v8 = vpop.xlane.xlu0 %2877  ;;  %2941 = vadd.xlane.f32.xlu0 %v15056_v19  ;;  %12026 = vmatprep.subr.bf16.mxu1 %v3014_v2  ;;  %v11437_v17 = vpop.f32.mrb[94].mxu1 }
 0x7ec   : > { %v15061_v38 = vpop.eup %13061  ;;  %13071 = vpow2.f32 %v2921_v42  ;;  %v2923_v18 = vmul.f32 1.442695, %v2898_v55  ;;  %v2899_v7 = vsub.f32 %v15004_v60, %v2878_v8  ;;  %12027 = vmatpush3.bf16.msra.mxu1 %v3014_v2  ;;  %v11438_v10 = vpop.f32.mrb[95].mxu1  ;;  %v11436_v8 = vadd.f32 %v11435_v26, %v11434_v35 }
 0x7ed   : > { %v2880_v54 = vpop.xlane.xlu1 %2879  ;;  %2943 = vadd.xlane.f32.xlu1 %v15061_v38  ;;  %v11439_v62 = vadd.f32 %v11438_v10, %v11437_v17 }
 0x7ee   : > { %v15065_v32 = vpop.eup %13063  ;;  %13073 = vpow2.f32 %v2923_v18  ;;  %v2925_v44 = vmul.f32 1.442695, %v2899_v7  ;;  %v2900_v28 = vsub.f32 %v15009_v40, %v2880_v54  ;;  %v2690_v7 = vadd.f32 %v11436_v8, %v15028_v39 }
 0x7ef   : > { %2945 = vadd.xlane.f32.xlu0 %v15065_v32  ;;  %v2882_v61 = vpop.xlane.xlu0 %2881  ;;  %v2693_v54 = vadd.f32 %v11439_v62, %v15028_v39 }
 0x7f0   : > { %v15069_v37 = vpop.eup %13065  ;;  %13075 = vpow2.f32 %v2925_v44  ;;  %v2927_v60 = vmul.f32 1.442695, %v2900_v28  ;;  %v2901_v50 = vsub.f32 %v15018_v47, %v2882_v61  ;;  %v12669_v61 = vld [vmem:[#allocation10 + $0x44] ss:$8 sps:$4 sm:$0xff]  }
 0x7f1   : > { %2947 = vadd.xlane.f32.xlu1 %v15069_v37  ;;  %v2884_v29 = vpop.xlane.xlu1 %2883  ;;  %v3016_v2 = vpack.c.bf16 %v2693_v54, %v2690_v7  ;;  %3195 = vmatprep.subr.bf16.mxu0 %v12669_v61 }
 0x7f2   : > { %v15073_v1 = vpop.eup %13067  ;;  %13077 = vpow2.f32 %v2927_v60  ;;  %v2929_v40 = vmul.f32 1.442695, %v2901_v50  ;;  %v2902_v22 = vsub.f32 %v15023_v30, %v2884_v29  ;;  %3196 = vmatpush1.bf16.msra.mxu0 %v12667_v34  ;;  %v12675_v60 = vld [vmem:[#allocation10 + $0x64] ss:$8 sps:$4 sm:$0xff]   ;;  %v12673_v50 = vld [vmem:[#allocation10 + $0x60] ss:$8 sps:$4 sm:$0xff]  }
 0x7f3   : > { %2949 = vadd.xlane.f32.xlu0 %v15073_v1  ;;  %v2886_v36 = vpop.xlane.xlu0 %2885  ;;  %v12676_v29 = vld [vmem:[#allocation10 + $0x70] ss:$8 sps:$4 sm:$0xff]  }
 0x7f4   : > { %v15077_v24 = vpop.eup %13069  ;;  %13079 = vpow2.f32 %v2929_v40  ;;  %v2931_v15 = vmul.f32 1.442695, %v2902_v22  ;;  %v2903_v47 = vsub.f32 %v15016_v45, %v2886_v36  ;;  %v2685_v45 = vadd.f32 %v11433_v56, %v15028_v39  ;;  %v12672_v39 = vld [vmem:[#allocation10 + $0x54] ss:$8 sps:$4 sm:$0xff]  }
 0x7f5   : > { %2951 = vadd.xlane.f32.xlu1 %v15077_v24  ;;  %v2888_v3 = vpop.xlane.xlu1 %2887  ;;  %3197 = vmatprep.subr.bf16.mxu0 %v12672_v39 }
 0x7f6   : > { %v15081_v59 = vpop.eup %13071  ;;  %13081 = vpow2.f32 %v2931_v15  ;;  %v2933_v53 = vmul.f32 1.442695, %v2903_v47  ;;  %v2904_v30 = vsub.f32 %v15021_v48, %v2888_v3  ;;  %v3015_v42 = vpack.c.bf16 %v2685_v45, %v2682_v25  ;;  %3198 = vmatpush1.bf16.msra.mxu0 %v12670_v9 }
 0x7f7   : > { %2953 = vadd.xlane.f32.xlu0 %v15081_v59  ;;  %3199 = vmatprep.subr.bf16.mxu0 %v12675_v60 }
 0x7f8   : > { %v15087_v27 = vpop.eup %13073  ;;  %13083 = vpow2.f32 %v2933_v53  ;;  %v2935_v46 = vmul.f32 1.442695, %v2904_v30  ;;  %12028 = vmatprep.subr.bf16.mxu1 %v3015_v42 }
 0x7f9   : > { %2955 = vadd.xlane.f32.xlu1 %v15087_v27  ;;  %12029 = vmatpush3.bf16.msra.mxu1 %v3015_v42 }
 0x7fa   : > { %v15090_v55 = vpop.eup %13075  ;;  %13085 = vpow2.f32 %v2935_v46  ;;  %12030 = vmatprep.subr.bf16.mxu1 %v3016_v2  ;;  %3200 = vmatpush1.bf16.msra.mxu0 %v12673_v50 }
 0x7fb   : > { %2957 = vadd.xlane.f32.xlu0 %v15090_v55  ;;  %3201 = vmatprep.subr.bf16.mxu0 %v12678_v21 }
 0x7fc   : > { %v15093_v48 = vpop.eup %13077 }
 0x7fd   : > { %2959 = vadd.xlane.f32.xlu1 %v15093_v48  ;;  %12031 = vmatpush3.bf16.msra.mxu1 %v3016_v2 }
 0x7fe   : > { %v15096_v18 = vpop.eup %13079  ;;  %3202 = vmatpush1.bf16.msra.mxu0 %v12676_v29 }
 0x7ff   : > { %2961 = vadd.xlane.f32.xlu0 %v15096_v18 }
 0x800   : > { %v15101_v20 = vpop.eup %13081 }
 0x801   : > { %2963 = vadd.xlane.f32.xlu1 %v15101_v20 }
 0x802   : > { %v15104_v44 = vpop.eup %13083 }
 0x803   : > { %2965 = vadd.xlane.f32.xlu0 %v15104_v44 }
 0x804   : > { %v15107_v28 = vpop.eup %13085 }
 0x805   : > { %2967 = vadd.xlane.f32.xlu1 %v15107_v28 }
 0x874   : > { %v2938_v40 = vpop.xlane.xlu0 %2937 }
 0x875   : > { %13087 = vrcp.f32 %v2938_v40 }
 0x876   : > { %v2940_v22 = vpop.xlane.xlu1 %2939 }
 0x877   : > { %13089 = vrcp.f32 %v2940_v22 }
 0x878   : > { %v2942_v36 = vpop.xlane.xlu0 %2941 }
 0x879   : > { %13091 = vrcp.f32 %v2942_v36 }
 0x87a   : > { %v2944_v15 = vpop.xlane.xlu1 %2943 }
 0x87b   : > { %13093 = vrcp.f32 %v2944_v15 }
 0x87c   : > { %v2946_v47 = vpop.xlane.xlu0 %2945 }
 0x87d   : > { %13095 = vrcp.f32 %v2946_v47 }
 0x87e   : > { %v2948_v49 = vpop.xlane.xlu1 %2947 }
 0x87f   : > { %v13088_v3 = vpop.eup %13087  ;;  %13097 = vrcp.f32 %v2948_v49 }
 0x880   : > { %v2950_v35 = vpop.xlane.xlu0 %2949  ;;  %v2985_v30 = vmul.f32 %v13088_v3, %v15047_v13 }
 0x881   : > { %v13090_v56 = vpop.eup %13089  ;;  %13099 = vrcp.f32 %v2950_v35 }
 0x882   : > { %v2952_v53 = vpop.xlane.xlu1 %2951  ;;  %v2986_v26 = vmul.f32 %v13090_v56, %v15051_v23 }
 0x883   : > { %v13092_v25 = vpop.eup %13091  ;;  %13101 = vrcp.f32 %v2952_v53 }
 0x884   : > { %v2954_v17 = vpop.xlane.xlu0 %2953  ;;  %v3001_v45 = vpack.c.bf16 %v2986_v26, %v2985_v30  ;;  %v2987_v10 = vmul.f32 %v13092_v25, %v15056_v19 }
 0x885   : > { %v13094_v46 = vpop.eup %13093  ;;  %13103 = vrcp.f32 %v2954_v17 }
 0x886   : > { %v2988_v42 = vmul.f32 %v13094_v46, %v15061_v38  ;;  %12032 = vmatprep.mubr.bf16.mxu1 %v3001_v45  ;;  %v2956_v8 = vpop.xlane.xlu1 %2955  ;;  %v12700_v46 = vld [vmem:[%s19662_s0 + $0x110] sm:$0xff]  }
 0x887   : > { %v13096_v62 = vpop.eup %13095  ;;  %13105 = vrcp.f32 %v2956_v8  ;;  %v12703_v8 = vld [vmem:[%s19662_s0 + $0x160] sm:$0xff]  }
 0x888   : > { %v2958_v7 = vpop.xlane.xlu0 %2957  ;;  %v3002_v54 = vpack.c.bf16 %v2988_v42, %v2987_v10  ;;  %v2989_v23 = vmul.f32 %v13096_v62, %v15065_v32  ;;  %v12701_v10 = vld [vmem:[%s19662_s0 + $0x158] sm:$0xff]   ;;  %v12704_v62 = vld [vmem:[%s19662_s0 + $0x120] sm:$0xff]  }
 0x889   : > { %v13098_v2 = vpop.eup %13097  ;;  %13107 = vrcp.f32 %v2958_v7  ;;  %v12702_v42 = vld [vmem:[%s19662_s0 + $0x118] sm:$0xff]   ;;  %v12705_v7 = vld [vmem:[%s19662_s0 + $0x168] sm:$0xff]  }
 0x88a   : > { %12033 = vmatmul.mubr.bf16.vlgmr.msra.gmra.mrb[96].mxu1 %v3002_v54  ;;  %v2960_v13 = vpop.xlane.xlu1 %2959  ;;  %v2990_v34 = vmul.f32 %v13098_v2, %v15069_v37  ;;  %v12706_v54 = vld [vmem:[%s19662_s0 + $0x128] sm:$0xff]   ;;  %v12707_v2 = vld [vmem:[%s19662_s0 + $0x170] sm:$0xff]  }
 0x88b   : > { %v13100_v61 = vpop.eup %13099  ;;  %13109 = vrcp.f32 %v2960_v13  ;;  %v12708_v13 = vld [vmem:[%s19662_s0 + $0x130] sm:$0xff]  }
 0x88c   : > { %v2962_v39 = vpop.xlane.xlu0 %2961  ;;  %v3003_v19 = vpack.c.bf16 %v2990_v34, %v2989_v23  ;;  %v2991_v60 = vmul.f32 %v13100_v61, %v15073_v1  ;;  %v12709_v23 = vld [vmem:[%s19662_s0 + $0x178] sm:$0xff]  }
 0x88d   : > { %v13102_v9 = vpop.eup %13101  ;;  %13111 = vrcp.f32 %v2962_v39  ;;  %v12710_v34 = vld [vmem:[%s19662_s0 + $0x138] sm:$0xff]  }
 0x88e   : > { %12036 = vmatprep.mubr.bf16.mxu1 %v3003_v19  ;;  %v2964_v38 = vpop.xlane.xlu1 %2963  ;;  %v2992_v50 = vmul.f32 %v13102_v9, %v15077_v24 }
 0x88f   : > { %v13104_v21 = vpop.eup %13103  ;;  %13113 = vrcp.f32 %v2964_v38 }
 0x890   : > { %v2966_v29 = vpop.xlane.xlu0 %2965  ;;  %v3004_v40 = vpack.c.bf16 %v2992_v50, %v2991_v60  ;;  %v2993_v37 = vmul.f32 %v13104_v21, %v15081_v59  ;;  %v12680_v60 = vld [vmem:[%s19534_s3 + $0x100] sm:$0xff]   ;;  %v12681_v21 = vld [vmem:[%s19534_s3 + $0x148] sm:$0xff]  }
 0x891   : > { %v13106_v22 = vpop.eup %13105  ;;  %13115 = vrcp.f32 %v2966_v29  ;;  %v12682_v29 = vld [vmem:[%s19534_s3 + $0x108] sm:$0xff]  }
 0x892   : > { %12037 = vmatmul.mubr.bf16.gmra.mrb[100].mxu1 %v3004_v40  ;;  %v2968_v32 = vpop.xlane.xlu1 %2967  ;;  %v2994_v36 = vmul.f32 %v13106_v22, %v15087_v27  ;;  %v12683_v22 = vld [vmem:[%s19534_s3 + $0x150] sm:$0xff]  }
 0x893   : > { %v13108_v15 = vpop.eup %13107  ;;  %13117 = vrcp.f32 %v2968_v32 }
 0x894   : > { %v3005_v47 = vpack.c.bf16 %v2994_v36, %v2993_v37  ;;  %v2995_v1 = vmul.f32 %v13108_v15, %v15090_v55  ;;  %v12679_v55 = vld [vmem:[%s19534_s3 + $0x140] sm:$0xff]  }
 0x895   : > { %v13110_v49 = vpop.eup %13109  ;;  %11536 = vmatprep.subr.bf16.mxu0 %v12679_v55  ;;  %v12691_v55 = vld [vmem:[%s19534_s3 + $0x170] sm:$0xff]  }
 0x896   : > { %12040 = vmatprep.mubr.bf16.mxu1 %v3005_v47  ;;  %v2996_v24 = vmul.f32 %v13110_v49, %v15093_v48  ;;  %v12695_v48 = vld [vmem:[%s19662_s0 + $0x140] sm:$0xff]   ;;  %v12684_v47 = vld [vmem:[%s19534_s3 + $0x110] sm:$0xff]  }
 0x897   : > { %v13112_v3 = vpop.eup %13111  ;;  %11472 = vmatprep.subr.bf16.mxu1 %v12695_v48 }
 0x898   : > { %v3006_v35 = vpack.c.bf16 %v2996_v24, %v2995_v1  ;;  %v2997_v53 = vmul.f32 %v13112_v3, %v15096_v18  ;;  %v12696_v18 = vld [vmem:[%s19662_s0 + $0x100] sm:$0xff]   ;;  %v12685_v1 = vld [vmem:[%s19534_s3 + $0x158] sm:$0xff]  }
 0x899   : > { %v13114_v56 = vpop.eup %13113  ;;  %11473 = vmatpush3.bf16.msra.mxu1 %v12696_v18  ;;  %v12686_v24 = vld [vmem:[%s19534_s3 + $0x118] sm:$0xff]  }
 0x89a   : > { %12041 = vmatmul.mubr.bf16.gmra.mrb[104].mxu1 %v3006_v35  ;;  %v2998_v30 = vmul.f32 %v13114_v56, %v15101_v20  ;;  %v12697_v20 = vld [vmem:[%s19662_s0 + $0x148] sm:$0xff]   ;;  %v12687_v35 = vld [vmem:[%s19534_s3 + $0x160] sm:$0xff]  }
 0x89b   : > { %v13116_v59 = vpop.eup %13115  ;;  %11474 = vmatprep.subr.bf16.mxu1 %v12697_v20 }
 0x89c   : > { %v3007_v26 = vpack.c.bf16 %v2998_v30, %v2997_v53  ;;  %v2999_v25 = vmul.f32 %v13116_v59, %v15104_v44  ;;  %v12698_v44 = vld [vmem:[%s19662_s0 + $0x108] sm:$0xff]  }
 0x89d   : > { %v13118_v27 = vpop.eup %13117  ;;  %11475 = vmatpush3.bf16.msra.mxu1 %v12698_v44 }
 0x89e   : > { %12044 = vmatprep.mubr.bf16.mxu1 %v3007_v26  ;;  %v3000_v17 = vmul.f32 %v13118_v27, %v15107_v28  ;;  %v12699_v28 = vld [vmem:[%s19662_s0 + $0x150] sm:$0xff]   ;;  %v12688_v26 = vld [vmem:[%s19534_s3 + $0x120] sm:$0xff]  }
 0x89f   : > { %11476 = vmatprep.subr.bf16.mxu1 %v12699_v28  ;;  %v12692_v28 = vld [vmem:[%s19534_s3 + $0x130] sm:$0xff]  }
 0x8a0   : > { %v3008_v45 = vpack.c.bf16 %v3000_v17, %v2999_v25  ;;  %v12689_v25 = vld [vmem:[%s19534_s3 + $0x168] sm:$0xff]  }
 0x8a1   : > { %11477 = vmatpush3.bf16.msra.mxu1 %v12700_v46  ;;  %v12690_v17 = vld [vmem:[%s19534_s3 + $0x128] sm:$0xff]  }
 0x8a2   : > { %12045 = vmatmul.mubr.bf16.gmra.mrb[108].mxu1 %v3008_v45  ;;  %11478 = vmatprep.subr.bf16.mxu1 %v12701_v10  ;;  %v12693_v10 = vld [vmem:[%s19534_s3 + $0x178] sm:$0xff]  }
 0x8a3   : > { %3509 = vmatprep.mubr.bf16.mxu1 %v14200_v14 }
 0x8a5   : > { %11479 = vmatpush3.bf16.msra.mxu1 %v12702_v42  ;;  %v12694_v42 = vld [vmem:[%s19534_s3 + $0x138] sm:$0xff]  }
 0x8a6   : > { %11480 = vmatprep.subr.bf16.mxu1 %v12703_v8 }
 0x8a9   : > { %11481 = vmatpush3.bf16.msra.mxu1 %v12704_v62 }
 0x8aa   : > { %11482 = vmatprep.subr.bf16.mxu1 %v12705_v7 }
 0x8ad   : > { %11483 = vmatpush3.bf16.msra.mxu1 %v12706_v54  ;;  %v15270_v54 = vld [vmem:[#allocation5 + $0x2] ss:$0 sm:$0xff] }
 0x8ae   : > { %11484 = vmatprep.subr.bf16.mxu1 %v12707_v2 }
 0x8b1   : > { %11485 = vmatpush3.bf16.msra.mxu1 %v12708_v13 }
 0x8b2   : > { %11486 = vmatprep.subr.bf16.mxu1 %v12709_v23 }
 0x8b5   : > { %11487 = vmatpush3.bf16.msra.mxu1 %v12710_v34 }
 0x8b8   : > { %3510 = vmatmul.mubr.bf16.vlgmr.msra.gmra.mrb[112].mxu1 %v14244_v31 }
 0x8b9   : > { %3517 = vmatprep.mubr.bf16.mxu1 %v14249_v33 }
 0x8c0   : > { %3518 = vmatmul.mubr.bf16.gmra.mrb[116].mxu1 %v14266_v41 }
 0x8c1   : > { %3525 = vmatprep.mubr.bf16.mxu1 %v14271_v43 }
 0x8c8   : > { %3526 = vmatmul.mubr.bf16.gmra.mrb[120].mxu1 %v14288_v51 }
 0x8c9   : > { %3533 = vmatprep.mubr.bf16.mxu1 %v14290_v52 }
 0x8d0   : > { %3534 = vmatmul.mubr.bf16.gmra.mrb[124].mxu1 %v14300_v57 }
 0x8d1   : > { %3541 = vmatprep.mubr.bf16.mxu1 %v14302_v58 }
 0x8d8   : > { %3542 = vmatmul.mubr.bf16.gmra.mrb[128].mxu1 %v14312_v63 }
 0x8d9   : > { %3549 = vmatprep.mubr.bf16.mxu1 %v14314_v0 }
 0x8e0   : > { %3550 = vmatmul.mubr.bf16.gmra.mrb[132].mxu1 %v14324_v5 }
 0x8e1   : > { %3557 = vmatprep.mubr.bf16.mxu1 %v14326_v6 }
 0x8e8   : > { %3558 = vmatmul.mubr.bf16.gmra.mrb[136].mxu1 %v14336_v11 }
 0x8e9   : > { %3565 = vmatprep.mubr.bf16.mxu1 %v14338_v12 }
 0x8f0   : > { %3566 = vmatmul.mubr.bf16.gmra.mrb[140].mxu1 %v14346_v16 }
 0x8f1   : > { %3977 = vmatprep.mubr.bf16.mxu1 %v14200_v14 }
 0x95d   : > { %v12034_v61 = vpop.f32.mrb[96].mxu1 }
 0x95e   : > { %v3051_v39 = vpop.f32.mrb[97].mxu1 }
 0x95f   : > { %v12035_v19 = vpop.f32.mrb[98].mxu1 }
 0x960   : > { %v3115_v9 = vpack.c.bf16 %v12035_v19, %v12034_v61  ;;  %v3054_v38 = vpop.f32.mrb[99].mxu1 }
 0x961   : > { %v3114_v50 = vpack.c.bf16 %v3054_v38, %v3051_v39 }
 0x963   : > { %10411 = vmatmul.mubr.msk.bf16.vlgmr.msra.gmra.mrb[64].mxu0 %vm1386_vm0, %v3114_v50 }
 0x964   : > { %11537 = vmatpush3.bf16.msra.mxu0 %v12680_v60  ;;  %3237 = vmatprep.mubr.bf16.mxu0 %v13827_v4 }
 0x965   : > { %v12038_v40 = vpop.f32.mrb[100].mxu1  ;;  %11538 = vmatprep.subr.bf16.mxu0 %v12681_v21 }
 0x966   : > { %v3067_v32 = vpop.f32.mrb[101].mxu1 }
 0x967   : > { %v12039_v37 = vpop.f32.mrb[102].mxu1 }
 0x968   : > { %v3117_v36 = vpack.c.bf16 %v12039_v37, %v12038_v40  ;;  %v3070_v15 = vpop.f32.mrb[103].mxu1  ;;  %11539 = vmatpush3.bf16.msra.mxu0 %v12682_v29 }
 0x969   : > { %v3116_v49 = vpack.c.bf16 %v3070_v15, %v3067_v32  ;;  %11540 = vmatprep.subr.bf16.mxu0 %v12683_v22 }
 0x96b   : > { %10412 = vmatmul.mubr.msk.bf16.gmra.mrb[68].mxu0 %vm1386_vm0, %v3115_v9 }
 0x96c   : > { %3247 = vmatprep.mubr.bf16.mxu0 %v13827_v4  ;;  %11541 = vmatpush3.bf16.msra.mxu0 %v12684_v47 }
 0x96d   : > { %v12042_v3 = vpop.f32.mrb[104].mxu1  ;;  %11542 = vmatprep.subr.bf16.mxu0 %v12685_v1 }
 0x96e   : > { %v3083_v56 = vpop.f32.mrb[105].mxu1 }
 0x96f   : > { %v12043_v53 = vpop.f32.mrb[106].mxu1 }
 0x970   : > { %v3119_v30 = vpack.c.bf16 %v12043_v53, %v12042_v3  ;;  %v3086_v59 = vpop.f32.mrb[107].mxu1  ;;  %11543 = vmatpush3.bf16.msra.mxu0 %v12686_v24 }
 0x971   : > { %v3118_v27 = vpack.c.bf16 %v3086_v59, %v3083_v56  ;;  %11544 = vmatprep.subr.bf16.mxu0 %v12687_v35 }
 0x973   : > { %10413 = vmatmul.mubr.msk.bf16.gmra.mrb[72].mxu0 %vm1386_vm0, %v3116_v49 }
 0x974   : > { %3257 = vmatprep.mubr.bf16.mxu0 %v13827_v4  ;;  %11545 = vmatpush3.bf16.msra.mxu0 %v12688_v26 }
 0x975   : > { %v12046_v45 = vpop.f32.mrb[108].mxu1  ;;  %11546 = vmatprep.subr.bf16.mxu0 %v12689_v25 }
 0x976   : > { %v3099_v48 = vpop.f32.mrb[109].mxu1 }
 0x977   : > { %v12047_v18 = vpop.f32.mrb[110].mxu1 }
 0x978   : > { %v3121_v20 = vpack.c.bf16 %v12047_v18, %v12046_v45  ;;  %v3102_v44 = vpop.f32.mrb[111].mxu1  ;;  %11547 = vmatpush3.bf16.msra.mxu0 %v12690_v17 }
 0x979   : > { %v3120_v46 = vpack.c.bf16 %v3102_v44, %v3099_v48  ;;  %11548 = vmatprep.subr.bf16.mxu0 %v12691_v55 }
 0x97b   : > { %10414 = vmatmul.mubr.msk.bf16.gmra.mrb[76].mxu0 %vm1386_vm0, %v3117_v36 }
 0x97c   : > { %3267 = vmatprep.mubr.bf16.mxu0 %v13827_v4  ;;  %11549 = vmatpush3.bf16.msra.mxu0 %v12692_v28 }
 0x97d   : > { %11550 = vmatprep.subr.bf16.mxu0 %v12693_v10 }
 0x980   : > { %11551 = vmatpush3.bf16.msra.mxu0 %v12694_v42 }
 0x983   : > { %10415 = vmatmul.mubr.msk.bf16.gmra.mrb[80].mxu0 %vm1386_vm0, %v3118_v27 }
 0x984   : > { %3277 = vmatprep.mubr.bf16.mxu0 %v13827_v4 }
 0x98b   : > { %10416 = vmatmul.mubr.msk.bf16.gmra.mrb[84].mxu0 %vm1386_vm0, %v3119_v30  ;;  %v11488_v8 = vpop.f32.mrb[112].mxu1 }
 0x98c   : > { %3287 = vmatprep.mubr.bf16.mxu0 %v13827_v4  ;;  %v11489_v62 = vpop.f32.mrb[113].mxu1 }
 0x98d   : > { %v11491_v7 = vpop.f32.mrb[114].mxu1  ;;  %v11490_v2 = vadd.f32 %v11489_v62, %v11488_v8 }
 0x98e   : > { %v11492_v13 = vpop.f32.mrb[115].mxu1 }
 0x98f   : > { %v11493_v23 = vadd.f32 %v11492_v13, %v11491_v7  ;;  %v3512_v34 = vadd.f32 %v11490_v2, %v15270_v54 }
 0x991   : > { %v3515_v61 = vadd.f32 %v11493_v23, %v15270_v54 }
 0x993   : > { %10417 = vmatmul.mubr.msk.bf16.gmra.mrb[88].mxu0 %vm1386_vm0, %v3120_v46  ;;  %v4042_v39 = vpack.c.bf16 %v3515_v61, %v3512_v34  ;;  %v11494_v19 = vpop.f32.mrb[116].mxu1 }
 0x994   : > { %3297 = vmatprep.mubr.bf16.mxu0 %v13827_v4  ;;  %v11495_v9 = vpop.f32.mrb[117].mxu1 }
 0x995   : > { %v11497_v38 = vpop.f32.mrb[118].mxu1  ;;  %v11496_v60 = vadd.f32 %v11495_v9, %v11494_v19 }
 0x996   : > { %v11498_v50 = vpop.f32.mrb[119].mxu1 }
 0x997   : > { %v11499_v21 = vadd.f32 %v11498_v50, %v11497_v38  ;;  %v15276_v29 = vadd.f32 %v11496_v60, %v15270_v54 }
 0x999   : > { %v15279_v40 = vadd.f32 %v11499_v21, %v15270_v54 }
 0x99b   : > { %10418 = vmatmul.mubr.msk.bf16.gmra.mrb[92].mxu0 %vm1386_vm0, %v3121_v20  ;;  %v11500_v22 = vpop.f32.mrb[120].mxu1  ;;  %v4043_v37 = vpack.c.bf16 %v15279_v40, %v15276_v29  ;;  %v12717_v29 = vld [vmem:[%s19536_s5 + $0x158] sm:$0xff]  }
 0x99c   : > { %3743 = vmatprep.mubr.bf16.mxu0 %v14200_v14  ;;  %v11501_v32 = vpop.f32.mrb[121].mxu1  ;;  %v12718_v40 = vld [vmem:[%s19536_s5 + $0x118] sm:$0xff]  }
 0x99d   : > { %v11502_v36 = vadd.f32 %v11501_v32, %v11500_v22  ;;  %v11503_v15 = vpop.f32.mrb[122].mxu1 }
 0x99e   : > { %v11504_v47 = vpop.f32.mrb[123].mxu1 }
 0x99f   : > { %v15284_v49 = vadd.f32 %v11502_v36, %v15270_v54  ;;  %v11505_v1 = vadd.f32 %v11504_v47, %v11503_v15 }
 0x9a1   : > { %v15287_v35 = vadd.f32 %v11505_v1, %v15270_v54 }
 0x9a3   : > { %3744 = vmatmul.mubr.bf16.vlgmr.msra.gmra.mrb[176].mxu0 %v14244_v31  ;;  %v11506_v24 = vpop.f32.mrb[124].mxu1  ;;  %v4044_v59 = vpack.c.bf16 %v15287_v35, %v15284_v49  ;;  %v12720_v49 = vld [vmem:[%s19536_s5 + $0x120] sm:$0xff]   ;;  %v12721_v35 = vld [vmem:[%s19536_s5 + $0x168] sm:$0xff]  }
 0x9a4   : > { %3751 = vmatprep.mubr.bf16.mxu0 %v14249_v33  ;;  %v11507_v3 = vpop.f32.mrb[125].mxu1 }
 0x9a5   : > { %v11508_v56 = vadd.f32 %v11507_v3, %v11506_v24  ;;  %v11509_v53 = vpop.f32.mrb[126].mxu1 }
 0x9a6   : > { %v11510_v30 = vpop.f32.mrb[127].mxu1 }
 0x9a7   : > { %v15292_v26 = vadd.f32 %v11508_v56, %v15270_v54  ;;  %v11511_v27 = vadd.f32 %v11510_v30, %v11509_v53 }
 0x9a9   : > { %v15295_v45 = vadd.f32 %v11511_v27, %v15270_v54  ;;  %v12711_v27 = vld [vmem:[%s19536_s5 + $0x140] sm:$0xff]  }
 0x9aa   : > { %11600 = vmatprep.subr.bf16.mxu1 %v12711_v27 }
 0x9ab   : > { %3752 = vmatmul.mubr.bf16.gmra.mrb[180].mxu0 %v14266_v41  ;;  %v11512_v25 = vpop.f32.mrb[128].mxu1  ;;  %v4045_v20 = vpack.c.bf16 %v15295_v45, %v15292_v26  ;;  %v12723_v26 = vld [vmem:[%s19536_s5 + $0x170] sm:$0xff]  }
 0x9ac   : > { %3759 = vmatprep.mubr.bf16.mxu0 %v14271_v43  ;;  %v11513_v17 = vpop.f32.mrb[129].mxu1  ;;  %v12724_v45 = vld [vmem:[%s19536_s5 + $0x130] sm:$0xff]  }
 0x9ad   : > { %v11514_v55 = vadd.f32 %v11513_v17, %v11512_v25  ;;  %v11515_v48 = vpop.f32.mrb[130].mxu1  ;;  %v12712_v25 = vld [vmem:[%s19536_s5 + $0x100] sm:$0xff]   ;;  %v12713_v17 = vld [vmem:[%s19536_s5 + $0x148] sm:$0xff]  }
 0x9ae   : > { %v11516_v18 = vpop.f32.mrb[131].mxu1  ;;  %11601 = vmatpush3.bf16.msra.mxu1 %v12712_v25 }
 0x9af   : > { %v15300_v44 = vadd.f32 %v11514_v55, %v15270_v54  ;;  %v11517_v28 = vadd.f32 %v11516_v18, %v11515_v48  ;;  %11602 = vmatprep.subr.bf16.mxu1 %v12713_v17  ;;  %v12715_v55 = vld [vmem:[%s19536_s5 + $0x150] sm:$0xff]  }
 0x9b0   : > { %v12716_v48 = vld [vmem:[%s19536_s5 + $0x110] sm:$0xff]  }
 0x9b1   : > { %v15303_v42 = vadd.f32 %v11517_v28, %v15270_v54 }
 0x9b3   : > { %3760 = vmatmul.mubr.bf16.gmra.mrb[184].mxu0 %v14288_v51  ;;  %v11518_v46 = vpop.f32.mrb[132].mxu1  ;;  %v4046_v2 = vpack.c.bf16 %v15303_v42, %v15300_v44  ;;  %v12726_v44 = vld [vmem:[%s19536_s5 + $0x138] sm:$0xff]  }
 0x9b4   : > { %3767 = vmatprep.mubr.bf16.mxu0 %v14290_v52  ;;  %v11519_v10 = vpop.f32.mrb[133].mxu1 }
 0x9b5   : > { %v11520_v8 = vadd.f32 %v11519_v10, %v11518_v46  ;;  %v11521_v62 = vpop.f32.mrb[134].mxu1 }
 0x9b6   : > { %v11522_v7 = vpop.f32.mrb[135].mxu1 }
 0x9b7   : > { %v15308_v13 = vadd.f32 %v11520_v8, %v15270_v54  ;;  %v11523_v23 = vadd.f32 %v11522_v7, %v11521_v62  ;;  %v15349_v8 = vld [vmem:[#allocation7 + $0x2] ss:$0 sm:$0xff] }
 0x9bb   : > { %3768 = vmatmul.mubr.bf16.gmra.mrb[188].mxu0 %v14300_v57  ;;  %v11524_v34 = vpop.f32.mrb[136].mxu1 }
 0x9bc   : > { %3775 = vmatprep.mubr.bf16.mxu0 %v14302_v58  ;;  %v11525_v61 = vpop.f32.mrb[137].mxu1 }
 0x9bd   : > { %v11526_v19 = vadd.f32 %v11525_v61, %v11524_v34  ;;  %v11527_v9 = vpop.f32.mrb[138].mxu1 }
 0x9be   : > { %v11528_v38 = vpop.f32.mrb[139].mxu1 }
 0x9bf   : > { %v15316_v50 = vadd.f32 %v11526_v19, %v15270_v54  ;;  %v11529_v21 = vadd.f32 %v11528_v38, %v11527_v9 }
 0x9c1   : > { %v15319_v32 = vadd.f32 %v11529_v21, %v15270_v54 }
 0x9c3   : > { %3776 = vmatmul.mubr.bf16.gmra.mrb[192].mxu0 %v14312_v63  ;;  %v11530_v22 = vpop.f32.mrb[140].mxu1  ;;  %v4048_v1 = vpack.c.bf16 %v15319_v32, %v15316_v50 }
 0x9c4   : > { %3783 = vmatprep.mubr.bf16.mxu0 %v14314_v0  ;;  %v11531_v36 = vpop.f32.mrb[141].mxu1 }
 0x9c5   : > { %v11532_v15 = vadd.f32 %v11531_v36, %v11530_v22  ;;  %v11533_v47 = vpop.f32.mrb[142].mxu1 }
 0x9c6   : > { %v11534_v24 = vpop.f32.mrb[143].mxu1 }
 0x9c7   : > { %v15324_v3 = vadd.f32 %v11532_v15, %v15270_v54  ;;  %v11535_v56 = vadd.f32 %v11534_v24, %v11533_v47 }
 0x9c9   : > { %v15327_v53 = vadd.f32 %v11535_v56, %v15270_v54 }
 0x9cb   : > { %3784 = vmatmul.mubr.bf16.gmra.mrb[196].mxu0 %v14324_v5  ;;  %v4049_v30 = vpack.c.bf16 %v15327_v53, %v15324_v3 }
 0x9cc   : > { %3791 = vmatprep.mubr.bf16.mxu0 %v14326_v6 }
 0x9d3   : > { %3792 = vmatmul.mubr.bf16.gmra.mrb[200].mxu0 %v14336_v11 }
 0x9d4   : > { %3799 = vmatprep.mubr.bf16.mxu0 %v14338_v12 }
 0x9db   : > { %3800 = vmatmul.mubr.bf16.gmra.mrb[204].mxu0 %v14346_v16 }
 0x9dc   : > { %12064 = vmatprep.mubr.msk.bf16.mxu0 %vm1386_vm0, %v4042_v39  ;;  %v15311_v39 = vadd.f32 %v11523_v23, %v15270_v54  ;;  %v12714_v54 = vld [vmem:[%s19536_s5 + $0x108] sm:$0xff]  }
 0x9dd   : > { %11603 = vmatpush3.bf16.msra.mxu1 %v12714_v54 }
 0x9de   : > { %v4047_v60 = vpack.c.bf16 %v15311_v39, %v15308_v13  ;;  %11604 = vmatprep.subr.bf16.mxu1 %v12715_v55 }
 0x9e1   : > { %11605 = vmatpush3.bf16.msra.mxu1 %v12716_v48 }
 0x9e2   : > { %11606 = vmatprep.subr.bf16.mxu1 %v12717_v29 }
 0x9e5   : > { %11607 = vmatpush3.bf16.msra.mxu1 %v12718_v40 }
 0xa76   : > { %v11552_v18 = vpop.f32.mrb[176].mxu0 }
 0xa77   : > { %v11553_v28 = vpop.f32.mrb[177].mxu0 }
 0xa78   : > { %v11554_v46 = vadd.f32 %v11553_v28, %v11552_v18  ;;  %v11555_v10 = vpop.f32.mrb[178].mxu0 }
 0xa79   : > { %v11556_v62 = vpop.f32.mrb[179].mxu0 }
 0xa7a   : > { %v11557_v7 = vadd.f32 %v11556_v62, %v11555_v10  ;;  %v3746_v23 = vadd.f32 %v11554_v46, %v15349_v8 }
 0xa7c   : > { %v3749_v34 = vadd.f32 %v11557_v7, %v15349_v8 }
 0xa7e   : > { %v4050_v61 = vpack.c.bf16 %v3749_v34, %v3746_v23  ;;  %v11558_v19 = vpop.f32.mrb[180].mxu0 }
 0xa7f   : > { %v11559_v9 = vpop.f32.mrb[181].mxu0 }
 0xa80   : > { %v11560_v38 = vadd.f32 %v11559_v9, %v11558_v19  ;;  %v11561_v21 = vpop.f32.mrb[182].mxu0  ;;  %12448 = vmatprep.subr.msk.bf16.mxu0 %vm1386_vm0, %v4050_v61  ;;  %v4083_v22 = vsel %vm1386_vm0, %v4050_v61, 0 }
 0xa81   : > { %v11562_v36 = vpop.f32.mrb[183].mxu0  ;;  %12049 = vmatpush3.bf16.xpose.msra.mxu0 %v4083_v22 }
 0xa82   : > { %v11563_v15 = vadd.f32 %v11562_v36, %v11561_v21  ;;  %v3754_v47 = vadd.f32 %v11560_v38, %v15349_v8 }
 0xa84   : > { %v3757_v24 = vadd.f32 %v11563_v15, %v15349_v8 }
 0xa86   : > { %v4051_v56 = vpack.c.bf16 %v3757_v24, %v3754_v47  ;;  %v11564_v27 = vpop.f32.mrb[184].mxu0 }
 0xa87   : > { %v11565_v25 = vpop.f32.mrb[185].mxu0 }
 0xa88   : > { %v11566_v17 = vadd.f32 %v11565_v25, %v11564_v27  ;;  %v11567_v54 = vpop.f32.mrb[186].mxu0  ;;  %12449 = vmatprep.subr.msk.bf16.mxu0 %vm1386_vm0, %v4051_v56  ;;  %v4086_v55 = vsel %vm1386_vm0, %v4051_v56, 0 }
 0xa89   : > { %v11568_v48 = vpop.f32.mrb[187].mxu0  ;;  %12051 = vmatpush3.bf16.xpose.msra.mxu0 %v4086_v55 }
 0xa8a   : > { %v11569_v18 = vadd.f32 %v11568_v48, %v11567_v54  ;;  %v3762_v28 = vadd.f32 %v11566_v17, %v15349_v8 }
 0xa8c   : > { %v3765_v46 = vadd.f32 %v11569_v18, %v15349_v8 }
 0xa8e   : > { %v4052_v10 = vpack.c.bf16 %v3765_v46, %v3762_v28  ;;  %v11570_v62 = vpop.f32.mrb[188].mxu0 }
 0xa8f   : > { %v11571_v7 = vpop.f32.mrb[189].mxu0 }
 0xa90   : > { %v11572_v23 = vadd.f32 %v11571_v7, %v11570_v62  ;;  %v11573_v34 = vpop.f32.mrb[190].mxu0  ;;  %12450 = vmatprep.subr.msk.bf16.mxu0 %vm1386_vm0, %v4052_v10  ;;  %v4089_v61 = vsel %vm1386_vm0, %v4052_v10, 0 }
 0xa91   : > { %v11574_v19 = vpop.f32.mrb[191].mxu0  ;;  %12053 = vmatpush3.bf16.xpose.msra.mxu0 %v4089_v61 }
 0xa92   : > { %v11575_v9 = vadd.f32 %v11574_v19, %v11573_v34  ;;  %v3770_v38 = vadd.f32 %v11572_v23, %v15349_v8 }
 0xa94   : > { %v3773_v21 = vadd.f32 %v11575_v9, %v15349_v8 }
 0xa96   : > { %v4053_v22 = vpack.c.bf16 %v3773_v21, %v3770_v38  ;;  %v11576_v36 = vpop.f32.mrb[192].mxu0 }
 0xa97   : > { %v11577_v15 = vpop.f32.mrb[193].mxu0 }
 0xa98   : > { %v11578_v47 = vadd.f32 %v11577_v15, %v11576_v36  ;;  %v11579_v24 = vpop.f32.mrb[194].mxu0  ;;  %12451 = vmatprep.subr.msk.bf16.mxu0 %vm1386_vm0, %v4053_v22  ;;  %v4092_v56 = vsel %vm1386_vm0, %v4053_v22, 0 }
 0xa99   : > { %v11580_v27 = vpop.f32.mrb[195].mxu0  ;;  %12055 = vmatpush3.bf16.xpose.msra.mxu0 %v4092_v56 }
 0xa9a   : > { %v11581_v25 = vadd.f32 %v11580_v27, %v11579_v24  ;;  %v3778_v17 = vadd.f32 %v11578_v47, %v15349_v8 }
 0xa9c   : > { %v3781_v54 = vadd.f32 %v11581_v25, %v15349_v8 }
 0xa9e   : > { %v4054_v55 = vpack.c.bf16 %v3781_v54, %v3778_v17  ;;  %v11582_v48 = vpop.f32.mrb[196].mxu0 }
 0xa9f   : > { %v11583_v18 = vpop.f32.mrb[197].mxu0 }
 0xaa0   : > { %v11584_v28 = vadd.f32 %v11583_v18, %v11582_v48  ;;  %v11585_v46 = vpop.f32.mrb[198].mxu0  ;;  %12452 = vmatprep.subr.msk.bf16.mxu0 %vm1386_vm0, %v4054_v55  ;;  %v4095_v10 = vsel %vm1386_vm0, %v4054_v55, 0 }
 0xaa1   : > { %v11586_v62 = vpop.f32.mrb[199].mxu0  ;;  %12057 = vmatpush3.bf16.xpose.msra.mxu0 %v4095_v10 }
 0xaa2   : > { %v11587_v7 = vadd.f32 %v11586_v62, %v11585_v46  ;;  %v3786_v23 = vadd.f32 %v11584_v28, %v15349_v8 }
 0xaa4   : > { %v3789_v34 = vadd.f32 %v11587_v7, %v15349_v8 }
 0xaa6   : > { %v4055_v61 = vpack.c.bf16 %v3789_v34, %v3786_v23  ;;  %v11588_v19 = vpop.f32.mrb[200].mxu0 }
 0xaa7   : > { %v11589_v9 = vpop.f32.mrb[201].mxu0 }
 0xaa8   : > { %v11590_v38 = vadd.f32 %v11589_v9, %v11588_v19  ;;  %v11591_v21 = vpop.f32.mrb[202].mxu0  ;;  %12453 = vmatprep.subr.msk.bf16.mxu0 %vm1386_vm0, %v4055_v61  ;;  %v4098_v22 = vsel %vm1386_vm0, %v4055_v61, 0  ;;  %v15505_v9 = vld [vmem:[#allocation8 + $0x2] ss:$0 sm:$0xff] }
 0xaa9   : > { %v11592_v36 = vpop.f32.mrb[203].mxu0  ;;  %12059 = vmatpush3.bf16.xpose.msra.mxu0 %v4098_v22 }
 0xaaa   : > { %v11593_v15 = vadd.f32 %v11592_v36, %v11591_v21  ;;  %v3794_v47 = vadd.f32 %v11590_v38, %v15349_v8 }
 0xaac   : > { %v3797_v24 = vadd.f32 %v11593_v15, %v15349_v8 }
 0xaae   : > { %v4056_v56 = vpack.c.bf16 %v3797_v24, %v3794_v47  ;;  %v11594_v27 = vpop.f32.mrb[204].mxu0 }
 0xaaf   : > { %v11595_v25 = vpop.f32.mrb[205].mxu0 }
 0xab0   : > { %v11596_v17 = vadd.f32 %v11595_v25, %v11594_v27  ;;  %v11597_v54 = vpop.f32.mrb[206].mxu0  ;;  %12454 = vmatprep.subr.msk.bf16.mxu0 %vm1386_vm0, %v4056_v56  ;;  %v4101_v55 = vsel %vm1386_vm0, %v4056_v56, 0 }
 0xab1   : > { %v11598_v48 = vpop.f32.mrb[207].mxu0  ;;  %12061 = vmatpush3.bf16.xpose.msra.mxu0 %v4101_v55 }
 0xab2   : > { %v11599_v18 = vadd.f32 %v11598_v48, %v11597_v54  ;;  %v3802_v28 = vadd.f32 %v11596_v17, %v15349_v8 }
 0xab4   : > { %v3805_v46 = vadd.f32 %v11599_v18, %v15349_v8 }
 0xab6   : > { %v4057_v10 = vpack.c.bf16 %v3805_v46, %v3802_v28 }
 0xab8   : > { %12455 = vmatprep.subr.msk.bf16.mxu0 %vm1386_vm0, %v4057_v10  ;;  %v4104_v62 = vsel %vm1386_vm0, %v4057_v10, 0 }
 0xab9   : > { %12063 = vmatpush3.bf16.xpose.msra.mxu0 %v4104_v62 }
 0xac0   : > { %12065 = vmatmul.mubr.msk.bf16.vlgmr.msra.gmra.mrb[208].mxu0 %vm1386_vm0, %v4043_v37  ;;  %v12719_v37 = vld [vmem:[%s19536_s5 + $0x160] sm:$0xff]  }
 0xac1   : > { %12068 = vmatprep.mubr.msk.bf16.mxu0 %vm1386_vm0, %v4044_v59  ;;  %11608 = vmatprep.subr.bf16.mxu1 %v12719_v37  ;;  %v12722_v59 = vld [vmem:[%s19536_s5 + $0x128] sm:$0xff]  }
 0xac2   : > { %11609 = vmatpush3.bf16.msra.mxu1 %v12720_v49 }
 0xac3   : > { %11610 = vmatprep.subr.bf16.mxu1 %v12721_v35 }
 0xac6   : > { %11611 = vmatpush3.bf16.msra.mxu1 %v12722_v59 }
 0xac7   : > { %11612 = vmatprep.subr.bf16.mxu1 %v12723_v26 }
 0xac8   : > { %12069 = vmatmul.mubr.msk.bf16.gmra.mrb[212].mxu0 %vm1386_vm0, %v4045_v20  ;;  %v12725_v20 = vld [vmem:[%s19536_s5 + $0x178] sm:$0xff]  }
 0xac9   : > { %12072 = vmatprep.mubr.msk.bf16.mxu0 %vm1386_vm0, %v4046_v2 }
 0xaca   : > { %11613 = vmatpush3.bf16.msra.mxu1 %v12724_v45 }
 0xacb   : > { %11614 = vmatprep.subr.bf16.mxu1 %v12725_v20 }
 0xace   : > { %11615 = vmatpush3.bf16.msra.mxu1 %v12726_v44 }
 0xad0   : > { %12073 = vmatmul.mubr.msk.bf16.gmra.mrb[216].mxu0 %vm1386_vm0, %v4047_v60 }
 0xad1   : > { %12076 = vmatprep.mubr.msk.bf16.mxu0 %vm1386_vm0, %v4048_v1  ;;  %3978 = vmatmul.mubr.bf16.vlgmr.msra.gmra.mrb[144].mxu1 %v14244_v31 }
 0xad2   : > { %3985 = vmatprep.mubr.bf16.mxu1 %v14249_v33 }
 0xad8   : > { %12077 = vmatmul.mubr.msk.bf16.gmra.mrb[220].mxu0 %vm1386_vm0, %v4049_v30 }
 0xad9   : > { %4573 = vmatprep.mubr.bf16.mxu0 %v13827_v4  ;;  %3986 = vmatmul.mubr.bf16.gmra.mrb[148].mxu1 %v14266_v41 }
 0xada   : > { %3993 = vmatprep.mubr.bf16.mxu1 %v14271_v43 }
 0xae1   : > { %3994 = vmatmul.mubr.bf16.gmra.mrb[152].mxu1 %v14288_v51 }
 0xae2   : > { %4001 = vmatprep.mubr.bf16.mxu1 %v14290_v52 }
 0xae9   : > { %4002 = vmatmul.mubr.bf16.gmra.mrb[156].mxu1 %v14300_v57 }
 0xaea   : > { %4009 = vmatprep.mubr.bf16.mxu1 %v14302_v58 }
 0xaf1   : > { %4010 = vmatmul.mubr.bf16.gmra.mrb[160].mxu1 %v14312_v63 }
 0xaf2   : > { %4017 = vmatprep.mubr.bf16.mxu1 %v14314_v0 }
 0xaf9   : > { %4018 = vmatmul.mubr.bf16.gmra.mrb[164].mxu1 %v14324_v5 }
 0xafa   : > { %4025 = vmatprep.mubr.bf16.mxu1 %v14326_v6 }
 0xb01   : > { %4026 = vmatmul.mubr.bf16.gmra.mrb[168].mxu1 %v14336_v11 }
 0xb02   : > { %4033 = vmatprep.mubr.bf16.mxu1 %v14338_v12 }
 0xb09   : > { %4034 = vmatmul.mubr.bf16.gmra.mrb[172].mxu1 %v14346_v16 }
 0xb93   : > { %v15457_v42 = vpop.f32.mrb[208].mxu0 }
 0xb94   : > { %v15459_v2 = vpop.f32.mrb[209].mxu0 }
 0xb95   : > { %4203 = vmax.xlane.f32.xlu0 %v15459_v2  ;;  %v15462_v13 = vpop.f32.mrb[210].mxu0 }
 0xb96   : > { %v15464_v39 = vpop.f32.mrb[211].mxu0 }
 0xb97   : > { %4205 = vmax.xlane.f32.xlu1 %v15464_v39 }
 0xb99   : > { %4207 = vmax.xlane.f32.xlu0 %v15457_v42 }
 0xb9b   : > { %4209 = vmax.xlane.f32.xlu1 %v15462_v13  ;;  %v15469_v60 = vpop.f32.mrb[212].mxu0 }
 0xb9c   : > { %v15471_v50 = vpop.f32.mrb[213].mxu0 }
 0xb9d   : > { %4211 = vmax.xlane.f32.xlu0 %v15471_v50  ;;  %v15474_v32 = vpop.f32.mrb[214].mxu0 }
 0xb9e   : > { %v15476_v1 = vpop.f32.mrb[215].mxu0 }
 0xb9f   : > { %4213 = vmax.xlane.f32.xlu1 %v15476_v1 }
 0xba1   : > { %4215 = vmax.xlane.f32.xlu0 %v15469_v60 }
 0xba3   : > { %4217 = vmax.xlane.f32.xlu1 %v15474_v32  ;;  %v15481_v3 = vpop.f32.mrb[216].mxu0 }
 0xba4   : > { %v15483_v53 = vpop.f32.mrb[217].mxu0  ;;  %v11616_v19 = vpop.f32.mrb[144].mxu1 }
 0xba5   : > { %4219 = vmax.xlane.f32.xlu0 %v15483_v53  ;;  %v15486_v30 = vpop.f32.mrb[218].mxu0  ;;  %v11617_v38 = vpop.f32.mrb[145].mxu1 }
 0xba6   : > { %v15488_v8 = vpop.f32.mrb[219].mxu0  ;;  %v11618_v21 = vadd.f32 %v11617_v38, %v11616_v19  ;;  %v11619_v22 = vpop.f32.mrb[146].mxu1 }
 0xba7   : > { %4221 = vmax.xlane.f32.xlu1 %v15488_v8  ;;  %v11620_v36 = vpop.f32.mrb[147].mxu1 }
 0xba8   : > { %v3980_v15 = vadd.f32 %v11618_v21, %v15505_v9  ;;  %v11621_v47 = vadd.f32 %v11620_v36, %v11619_v22 }
 0xba9   : > { %4223 = vmax.xlane.f32.xlu0 %v15481_v3 }
 0xbaa   : > { %v3983_v24 = vadd.f32 %v11621_v47, %v15505_v9 }
 0xbab   : > { %4225 = vmax.xlane.f32.xlu1 %v15486_v30  ;;  %v15493_v7 = vpop.f32.mrb[220].mxu0 }
 0xbac   : > { %v15495_v23 = vpop.f32.mrb[221].mxu0  ;;  %v11622_v56 = vpop.f32.mrb[148].mxu1  ;;  %v4355_v27 = vpack.c.bf16 %v3983_v24, %v3980_v15 }
 0xbad   : > { %4227 = vmax.xlane.f32.xlu0 %v15495_v23  ;;  %v15498_v34 = vpop.f32.mrb[222].mxu0  ;;  %v11623_v25 = vpop.f32.mrb[149].mxu1 }
 0xbae   : > { %v15500_v61 = vpop.f32.mrb[223].mxu0  ;;  %v11624_v17 = vadd.f32 %v11623_v25, %v11622_v56  ;;  %v11625_v54 = vpop.f32.mrb[150].mxu1  ;;  %12080 = vmatprep.subr.bf16.mxu1 %v4355_v27 }
 0xbaf   : > { %4229 = vmax.xlane.f32.xlu1 %v15500_v61  ;;  %v11626_v55 = vpop.f32.mrb[151].mxu1  ;;  %12081 = vmatpush3.bf16.msra.mxu1 %v4355_v27 }
 0xbb0   : > { %v3988_v48 = vadd.f32 %v11624_v17, %v15505_v9  ;;  %v11627_v18 = vadd.f32 %v11626_v55, %v11625_v54 }
 0xbb1   : > { %4231 = vmax.xlane.f32.xlu0 %v15493_v7 }
 0xbb2   : > { %v3991_v28 = vadd.f32 %v11627_v18, %v15505_v9 }
 0xbb3   : > { %4233 = vmax.xlane.f32.xlu1 %v15498_v34 }
 0xbb4   : > { %v11628_v46 = vpop.f32.mrb[152].mxu1  ;;  %v4356_v10 = vpack.c.bf16 %v3991_v28, %v3988_v48 }
 0xbb5   : > { %v11629_v62 = vpop.f32.mrb[153].mxu1 }
 0xbb6   : > { %v11630_v29 = vadd.f32 %v11629_v62, %v11628_v46  ;;  %v11631_v40 = vpop.f32.mrb[154].mxu1  ;;  %12082 = vmatprep.subr.bf16.mxu1 %v4356_v10 }
 0xbb7   : > { %v11632_v37 = vpop.f32.mrb[155].mxu1  ;;  %12083 = vmatpush3.bf16.msra.mxu1 %v4356_v10 }
 0xbb8   : > { %v3996_v49 = vadd.f32 %v11630_v29, %v15505_v9  ;;  %v11633_v35 = vadd.f32 %v11632_v37, %v11631_v40 }
 0xbba   : > { %v3999_v59 = vadd.f32 %v11633_v35, %v15505_v9 }
 0xbbc   : > { %v11634_v26 = vpop.f32.mrb[156].mxu1  ;;  %v4357_v45 = vpack.c.bf16 %v3999_v59, %v3996_v49 }
 0xbbd   : > { %v11635_v20 = vpop.f32.mrb[157].mxu1 }
 0xbbe   : > { %v11636_v19 = vadd.f32 %v11635_v20, %v11634_v26  ;;  %v11637_v38 = vpop.f32.mrb[158].mxu1  ;;  %12084 = vmatprep.subr.bf16.mxu1 %v4357_v45 }
 0xbbf   : > { %v11638_v22 = vpop.f32.mrb[159].mxu1  ;;  %12085 = vmatpush3.bf16.msra.mxu1 %v4357_v45 }
 0xbc0   : > { %v4004_v15 = vadd.f32 %v11636_v19, %v15505_v9  ;;  %v11639_v47 = vadd.f32 %v11638_v22, %v11637_v38 }
 0xbc2   : > { %v4007_v25 = vadd.f32 %v11639_v47, %v15505_v9 }
 0xbc4   : > { %v11640_v48 = vpop.f32.mrb[160].mxu1  ;;  %v4358_v18 = vpack.c.bf16 %v4007_v25, %v4004_v15 }
 0xbc5   : > { %v11641_v46 = vpop.f32.mrb[161].mxu1 }
 0xbc6   : > { %v11642_v62 = vadd.f32 %v11641_v46, %v11640_v48  ;;  %v11643_v29 = vpop.f32.mrb[162].mxu1  ;;  %12086 = vmatprep.subr.bf16.mxu1 %v4358_v18 }
 0xbc7   : > { %v11644_v37 = vpop.f32.mrb[163].mxu1  ;;  %12087 = vmatpush3.bf16.msra.mxu1 %v4358_v18 }
 0xbc8   : > { %v11645_v35 = vadd.f32 %v11644_v37, %v11643_v29 }
 0xbca   : > { %v4015_v45 = vadd.f32 %v11645_v35, %v15505_v9 }
 0xbcc   : > { %v11646_v38 = vpop.f32.mrb[164].mxu1 }
 0xbcd   : > { %v11647_v15 = vpop.f32.mrb[165].mxu1 }
 0xc22   : > { %v4204_v44 = vpop.xlane.xlu0 %4203 }
 0xc23   : > { %v4235_v21 = vsub.f32 %v15459_v2, %v4204_v44 }
 0xc24   : > { %v4206_v36 = vpop.xlane.xlu1 %4205 }
 0xc25   : > { %v4251_v24 = vmul.f32 1.442695, %v4235_v21  ;;  %v4236_v56 = vsub.f32 %v15464_v39, %v4206_v36 }
 0xc26   : > { %v4208_v27 = vpop.xlane.xlu0 %4207 }
 0xc27   : > { %13119 = vpow2.f32 %v4251_v24  ;;  %v4253_v17 = vmul.f32 1.442695, %v4236_v56  ;;  %v4237_v54 = vsub.f32 %v15457_v42, %v4208_v27  ;;  %v4012_v42 = vadd.f32 %v11642_v62, %v15505_v9  ;;  %v11649_v24 = vpop.f32.mrb[166].mxu1 }
 0xc28   : > { %v4210_v55 = vpop.xlane.xlu1 %4209  ;;  %v11650_v25 = vpop.f32.mrb[167].mxu1 }
 0xc29   : > { %13121 = vpow2.f32 %v4253_v17  ;;  %v4255_v2 = vmul.f32 1.442695, %v4237_v54  ;;  %v4238_v28 = vsub.f32 %v15462_v13, %v4210_v55  ;;  %v11651_v54 = vadd.f32 %v11650_v25, %v11649_v24  ;;  %v11652_v29 = vpop.f32.mrb[168].mxu1 }
 0xc2a   : > { %v4212_v10 = vpop.xlane.xlu0 %4211 }
 0xc2b   : > { %13123 = vpow2.f32 %v4255_v2  ;;  %v4257_v39 = vmul.f32 1.442695, %v4238_v28  ;;  %v4239_v40 = vsub.f32 %v15471_v50, %v4212_v10  ;;  %v4359_v50 = vpack.c.bf16 %v4015_v45, %v4012_v42 }
 0xc2c   : > { %v4214_v49 = vpop.xlane.xlu1 %4213  ;;  %v4023_v28 = vadd.f32 %v11651_v54, %v15505_v9 }
 0xc2d   : > { %13125 = vpow2.f32 %v4257_v39  ;;  %v4259_v59 = vmul.f32 1.442695, %v4239_v40  ;;  %v4240_v26 = vsub.f32 %v15476_v1, %v4214_v49  ;;  %v11648_v1 = vadd.f32 %v11647_v15, %v11646_v38  ;;  %12088 = vmatprep.subr.bf16.mxu1 %v4359_v50  ;;  %v11653_v49 = vpop.f32.mrb[169].mxu1 }
 0xc2e   : > { %v4216_v13 = vpop.xlane.xlu0 %4215  ;;  %12089 = vmatpush3.bf16.msra.mxu1 %v4359_v50  ;;  %v11654_v35 = vadd.f32 %v11653_v49, %v11652_v29  ;;  %v12729_v49 = vld [vmem:[#allocation10 + $0x84] ss:$8 sps:$4 sm:$0xff]  }
 0xc2f   : > { %13127 = vpow2.f32 %v4259_v59  ;;  %v4261_v20 = vmul.f32 1.442695, %v4240_v26  ;;  %v4241_v44 = vsub.f32 %v15469_v60, %v4216_v13  ;;  %v11655_v59 = vpop.f32.mrb[170].mxu1  ;;  %4541 = vmatprep.subr.bf16.mxu0 %v12729_v49 }
 0xc30   : > { %v4218_v19 = vpop.xlane.xlu1 %4217  ;;  %v11656_v45 = vpop.f32.mrb[171].mxu1 }
 0xc31   : > { %v15524_v21 = vpop.eup %13119  ;;  %13129 = vpow2.f32 %v4261_v20  ;;  %v4263_v22 = vmul.f32 1.442695, %v4241_v44  ;;  %v4242_v36 = vsub.f32 %v15474_v32, %v4218_v19  ;;  %v4020_v32 = vadd.f32 %v11648_v1, %v15505_v9  ;;  %v11658_v24 = vpop.f32.mrb[172].mxu1 }
 0xc32   : > { %v4220_v47 = vpop.xlane.xlu0 %4219  ;;  %4283 = vadd.xlane.f32.xlu0 %v15524_v21  ;;  %v11657_v44 = vadd.f32 %v11656_v45, %v11655_v59  ;;  %v12735_v59 = vld [vmem:[#allocation10 + $0xa4] ss:$8 sps:$4 sm:$0xff]   ;;  %v12736_v45 = vld [vmem:[#allocation10 + $0xb0] ss:$8 sps:$4 sm:$0xff]  }
 0xc33   : > { %v15528_v56 = vpop.eup %13121  ;;  %13131 = vpow2.f32 %v4263_v22  ;;  %v4265_v60 = vmul.f32 1.442695, %v4242_v36  ;;  %v4243_v27 = vsub.f32 %v15483_v53, %v4220_v47  ;;  %v4360_v39 = vpack.c.bf16 %v4023_v28, %v4020_v32 }
 0xc34   : > { %v4222_v17 = vpop.xlane.xlu1 %4221  ;;  %4285 = vadd.xlane.f32.xlu1 %v15528_v56  ;;  %v4031_v36 = vadd.f32 %v11657_v44, %v15505_v9 }
 0xc35   : > { %v15533_v55 = vpop.eup %13123  ;;  %13133 = vpow2.f32 %v4265_v60  ;;  %v4267_v48 = vmul.f32 1.442695, %v4243_v27  ;;  %v4244_v18 = vsub.f32 %v15488_v8, %v4222_v17  ;;  %12090 = vmatprep.subr.bf16.mxu1 %v4360_v39  ;;  %v11659_v17 = vpop.f32.mrb[173].mxu1 }
 0xc36   : > { %v4224_v2 = vpop.xlane.xlu0 %4223  ;;  %4287 = vadd.xlane.f32.xlu0 %v15533_v55  ;;  %12091 = vmatpush3.bf16.msra.mxu1 %v4360_v39  ;;  %v11660_v32 = vadd.f32 %v11659_v17, %v11658_v24  ;;  %v11661_v54 = vpop.f32.mrb[174].mxu1 }
 0xc37   : > { %v15538_v53 = vpop.eup %13125  ;;  %13135 = vpow2.f32 %v4267_v48  ;;  %v4269_v46 = vmul.f32 1.442695, %v4244_v18  ;;  %v4245_v10 = vsub.f32 %v15481_v3, %v4224_v2  ;;  %v11662_v18 = vpop.f32.mrb[175].mxu1 }
 0xc38   : > { %v4226_v62 = vpop.xlane.xlu1 %4225  ;;  %4289 = vadd.xlane.f32.xlu1 %v15538_v53  ;;  %v11663_v2 = vadd.f32 %v11662_v18, %v11661_v54 }
 0xc39   : > { %v15542_v40 = vpop.eup %13127  ;;  %13137 = vpow2.f32 %v4269_v46  ;;  %v4271_v8 = vmul.f32 1.442695, %v4245_v10  ;;  %v4246_v37 = vsub.f32 %v15486_v30, %v4226_v62  ;;  %v4028_v30 = vadd.f32 %v11654_v35, %v15505_v9  ;;  %v12730_v35 = vld [vmem:[#allocation10 + $0x90] ss:$8 sps:$4 sm:$0xff]  }
 0xc3a   : > { %4291 = vadd.xlane.f32.xlu0 %v15542_v40  ;;  %v4228_v42 = vpop.xlane.xlu0 %4227  ;;  %v4036_v46 = vadd.f32 %v11660_v32, %v15505_v9  ;;  %v4039_v10 = vadd.f32 %v11663_v2, %v15505_v9  ;;  %v12727_v9 = vld [vmem:[#allocation10 + $0x80] ss:$8 sps:$4 sm:$0xff]  }
 0xc3b   : > { %v15546_v26 = vpop.eup %13129  ;;  %13139 = vpow2.f32 %v4271_v8  ;;  %v4273_v3 = vmul.f32 1.442695, %v4246_v37  ;;  %v4247_v13 = vsub.f32 %v15495_v23, %v4228_v42  ;;  %v4361_v60 = vpack.c.bf16 %v4031_v36, %v4028_v30  ;;  %v12732_v42 = vld [vmem:[#allocation10 + $0x94] ss:$8 sps:$4 sm:$0xff]   ;;  %4542 = vmatpush1.bf16.msra.mxu0 %v12727_v9 }
 0xc3c   : > { %4293 = vadd.xlane.f32.xlu1 %v15546_v26  ;;  %v4230_v20 = vpop.xlane.xlu1 %4229  ;;  %v4362_v39 = vpack.c.bf16 %v4039_v10, %v4036_v46  ;;  %4543 = vmatprep.subr.bf16.mxu0 %v12732_v42 }
 0xc3d   : > { %v15551_v19 = vpop.eup %13131  ;;  %13141 = vpow2.f32 %v4273_v3  ;;  %v4275_v38 = vmul.f32 1.442695, %v4247_v13  ;;  %v4248_v50 = vsub.f32 %v15500_v61, %v4230_v20  ;;  %12092 = vmatprep.subr.bf16.mxu1 %v4361_v60  ;;  %v12733_v3 = vld [vmem:[#allocation10 + $0xa0] ss:$8 sps:$4 sm:$0xff]   ;;  %v12738_v13 = vld [vmem:[#allocation10 + $0xb4] ss:$8 sps:$4 sm:$0xff]  }
 0xc3e   : > { %4295 = vadd.xlane.f32.xlu0 %v15551_v19  ;;  %v4232_v22 = vpop.xlane.xlu0 %4231  ;;  %12093 = vmatpush3.bf16.msra.mxu1 %v4361_v60 }
 0xc3f   : > { %v15556_v23 = vpop.eup %13133  ;;  %13143 = vpow2.f32 %v4275_v38  ;;  %v4277_v15 = vmul.f32 1.442695, %v4248_v50  ;;  %v4249_v47 = vsub.f32 %v15493_v7, %v4232_v22  ;;  %12094 = vmatprep.subr.bf16.mxu1 %v4362_v39  ;;  %4544 = vmatpush1.bf16.msra.mxu0 %v12730_v35 }
 0xc40   : > { %4297 = vadd.xlane.f32.xlu1 %v15556_v23  ;;  %v4234_v1 = vpop.xlane.xlu1 %4233  ;;  %4545 = vmatprep.subr.bf16.mxu0 %v12735_v59 }
 0xc41   : > { %v15560_v27 = vpop.eup %13135  ;;  %13145 = vpow2.f32 %v4277_v15  ;;  %v4279_v61 = vmul.f32 1.442695, %v4249_v47  ;;  %v4250_v25 = vsub.f32 %v15498_v34, %v4234_v1 }
 0xc42   : > { %4299 = vadd.xlane.f32.xlu0 %v15560_v27  ;;  %12095 = vmatpush3.bf16.msra.mxu1 %v4362_v39 }
 0xc43   : > { %v15564_v48 = vpop.eup %13137  ;;  %13147 = vpow2.f32 %v4279_v61  ;;  %v4281_v7 = vmul.f32 1.442695, %v4250_v25  ;;  %4546 = vmatpush1.bf16.msra.mxu0 %v12733_v3 }
 0xc44   : > { %4301 = vadd.xlane.f32.xlu1 %v15564_v48  ;;  %4547 = vmatprep.subr.bf16.mxu0 %v12738_v13 }
 0xc45   : > { %v15567_v28 = vpop.eup %13139  ;;  %13149 = vpow2.f32 %v4281_v7 }
 0xc46   : > { %4303 = vadd.xlane.f32.xlu0 %v15567_v28 }
 0xc47   : > { %v15570_v34 = vpop.eup %13141  ;;  %4548 = vmatpush1.bf16.msra.mxu0 %v12736_v45 }
 0xc48   : > { %4305 = vadd.xlane.f32.xlu1 %v15570_v34 }
 0xc49   : > { %v15575_v62 = vpop.eup %13143 }
 0xc4a   : > { %4307 = vadd.xlane.f32.xlu0 %v15575_v62 }
 0xc4b   : > { %v15578_v29 = vpop.eup %13145 }
 0xc4c   : > { %4309 = vadd.xlane.f32.xlu1 %v15578_v29 }
 0xc4d   : > { %v15581_v8 = vpop.eup %13147 }
 0xc4e   : > { %4311 = vadd.xlane.f32.xlu0 %v15581_v8 }
 0xc4f   : > { %v15584_v37 = vpop.eup %13149 }
 0xc50   : > { %4313 = vadd.xlane.f32.xlu1 %v15584_v37 }
 0xcbf   : > { %v4284_v20 = vpop.xlane.xlu0 %4283 }
 0xcc0   : > { %13151 = vrcp.f32 %v4284_v20 }
 0xcc1   : > { %v4286_v30 = vpop.xlane.xlu1 %4285 }
 0xcc2   : > { %13153 = vrcp.f32 %v4286_v30 }
 0xcc3   : > { %v4288_v44 = vpop.xlane.xlu0 %4287 }
 0xcc4   : > { %13155 = vrcp.f32 %v4288_v44 }
 0xcc5   : > { %v4290_v38 = vpop.xlane.xlu1 %4289 }
 0xcc6   : > { %13157 = vrcp.f32 %v4290_v38 }
 0xcc7   : > { %v4292_v50 = vpop.xlane.xlu0 %4291 }
 0xcc8   : > { %13159 = vrcp.f32 %v4292_v50 }
 0xcc9   : > { %v4294_v22 = vpop.xlane.xlu1 %4293 }
 0xcca   : > { %v13152_v36 = vpop.eup %13151  ;;  %13161 = vrcp.f32 %v4294_v22 }
 0xccb   : > { %v4296_v15 = vpop.xlane.xlu0 %4295  ;;  %v4331_v24 = vmul.f32 %v13152_v36, %v15524_v21 }
 0xccc   : > { %v13154_v47 = vpop.eup %13153  ;;  %13163 = vrcp.f32 %v4296_v15 }
 0xccd   : > { %v4298_v1 = vpop.xlane.xlu1 %4297  ;;  %v4332_v60 = vmul.f32 %v13154_v47, %v15528_v56 }
 0xcce   : > { %v13156_v61 = vpop.eup %13155  ;;  %13165 = vrcp.f32 %v4298_v1 }
 0xccf   : > { %v4300_v25 = vpop.xlane.xlu0 %4299  ;;  %v4347_v17 = vpack.c.bf16 %v4332_v60, %v4331_v24  ;;  %v4333_v54 = vmul.f32 %v13156_v61, %v15533_v55 }
 0xcd0   : > { %v13158_v32 = vpop.eup %13157  ;;  %13167 = vrcp.f32 %v4300_v25 }
 0xcd1   : > { %v4334_v7 = vmul.f32 %v13158_v32, %v15538_v53  ;;  %12096 = vmatprep.mubr.bf16.mxu1 %v4347_v17  ;;  %v4302_v18 = vpop.xlane.xlu1 %4301  ;;  %v12760_v32 = vld [vmem:[%s19662_s0 + $0x190] sm:$0xff]  }
 0xcd2   : > { %v13160_v2 = vpop.eup %13159  ;;  %13169 = vrcp.f32 %v4302_v18  ;;  %v12763_v18 = vld [vmem:[%s19662_s0 + $0x1e0] sm:$0xff]  }
 0xcd3   : > { %v4304_v46 = vpop.xlane.xlu0 %4303  ;;  %v4348_v10 = vpack.c.bf16 %v4334_v7, %v4333_v54  ;;  %v4335_v56 = vmul.f32 %v13160_v2, %v15542_v40  ;;  %v12761_v54 = vld [vmem:[%s19662_s0 + $0x1d8] sm:$0xff]   ;;  %v12764_v2 = vld [vmem:[%s19662_s0 + $0x1a0] sm:$0xff]  }
 0xcd4   : > { %v13162_v39 = vpop.eup %13161  ;;  %13171 = vrcp.f32 %v4304_v46  ;;  %v12762_v7 = vld [vmem:[%s19662_s0 + $0x198] sm:$0xff]   ;;  %v12765_v46 = vld [vmem:[%s19662_s0 + $0x1e8] sm:$0xff]  }
 0xcd5   : > { %12097 = vmatmul.mubr.bf16.vlgmr.msra.gmra.mrb[176].mxu1 %v4348_v10  ;;  %v4306_v21 = vpop.xlane.xlu1 %4305  ;;  %v4336_v9 = vmul.f32 %v13162_v39, %v15546_v26  ;;  %v12766_v10 = vld [vmem:[%s19662_s0 + $0x1a8] sm:$0xff]   ;;  %v12767_v39 = vld [vmem:[%s19662_s0 + $0x1f0] sm:$0xff]  }
 0xcd6   : > { %v13164_v49 = vpop.eup %13163  ;;  %13173 = vrcp.f32 %v4306_v21  ;;  %v12768_v21 = vld [vmem:[%s19662_s0 + $0x1b0] sm:$0xff]  }
 0xcd7   : > { %v4308_v42 = vpop.xlane.xlu0 %4307  ;;  %v4349_v55 = vpack.c.bf16 %v4336_v9, %v4335_v56  ;;  %v4337_v59 = vmul.f32 %v13164_v49, %v15551_v19  ;;  %v12769_v56 = vld [vmem:[%s19662_s0 + $0x1f8] sm:$0xff]  }
 0xcd8   : > { %v13166_v35 = vpop.eup %13165  ;;  %13175 = vrcp.f32 %v4308_v42  ;;  %v12770_v9 = vld [vmem:[%s19662_s0 + $0x1b8] sm:$0xff]  }
 0xcd9   : > { %12100 = vmatprep.mubr.bf16.mxu1 %v4349_v55  ;;  %v4310_v53 = vpop.xlane.xlu1 %4309  ;;  %v4338_v3 = vmul.f32 %v13166_v35, %v15556_v23 }
 0xcda   : > { %v13168_v13 = vpop.eup %13167  ;;  %13177 = vrcp.f32 %v4310_v53 }
 0xcdb   : > { %v4312_v45 = vpop.xlane.xlu0 %4311  ;;  %v4350_v20 = vpack.c.bf16 %v4338_v3, %v4337_v59  ;;  %v4339_v26 = vmul.f32 %v13168_v13, %v15560_v27  ;;  %v12740_v59 = vld [vmem:[%s19534_s3 + $0x180] sm:$0xff]   ;;  %v12741_v13 = vld [vmem:[%s19534_s3 + $0x1c8] sm:$0xff]  }
 0xcdc   : > { %v13170_v30 = vpop.eup %13169  ;;  %13179 = vrcp.f32 %v4312_v45  ;;  %v12742_v45 = vld [vmem:[%s19534_s3 + $0x188] sm:$0xff]  }
 0xcdd   : > { %12101 = vmatmul.mubr.bf16.gmra.mrb[180].mxu1 %v4350_v20  ;;  %v4314_v40 = vpop.xlane.xlu1 %4313  ;;  %v4340_v44 = vmul.f32 %v13170_v30, %v15564_v48  ;;  %v12743_v30 = vld [vmem:[%s19534_s3 + $0x1d0] sm:$0xff]  }
 0xcde   : > { %v13172_v38 = vpop.eup %13171  ;;  %13181 = vrcp.f32 %v4314_v40 }
 0xcdf   : > { %v4351_v50 = vpack.c.bf16 %v4340_v44, %v4339_v26  ;;  %v4341_v19 = vmul.f32 %v13172_v38, %v15567_v28  ;;  %v12739_v28 = vld [vmem:[%s19534_s3 + $0x1c0] sm:$0xff]  }
 0xce0   : > { %v13174_v22 = vpop.eup %13173  ;;  %11760 = vmatprep.subr.bf16.mxu0 %v12739_v28  ;;  %v12751_v28 = vld [vmem:[%s19534_s3 + $0x1f0] sm:$0xff]  }
 0xce1   : > { %12104 = vmatprep.mubr.bf16.mxu1 %v4351_v50  ;;  %v4342_v23 = vmul.f32 %v13174_v22, %v15570_v34  ;;  %v12755_v34 = vld [vmem:[%s19662_s0 + $0x1c0] sm:$0xff]   ;;  %v12744_v50 = vld [vmem:[%s19534_s3 + $0x190] sm:$0xff]  }
 0xce2   : > { %v13176_v36 = vpop.eup %13175  ;;  %11696 = vmatprep.subr.bf16.mxu1 %v12755_v34 }
 0xce3   : > { %v4352_v15 = vpack.c.bf16 %v4342_v23, %v4341_v19  ;;  %v4343_v1 = vmul.f32 %v13176_v36, %v15575_v62  ;;  %v12756_v62 = vld [vmem:[%s19662_s0 + $0x180] sm:$0xff]   ;;  %v12745_v19 = vld [vmem:[%s19534_s3 + $0x1d8] sm:$0xff]  }
 0xce4   : > { %v13178_v47 = vpop.eup %13177  ;;  %11697 = vmatpush3.bf16.msra.mxu1 %v12756_v62  ;;  %v12746_v23 = vld [vmem:[%s19534_s3 + $0x198] sm:$0xff]  }
 0xce5   : > { %12105 = vmatmul.mubr.bf16.gmra.mrb[184].mxu1 %v4352_v15  ;;  %v4344_v24 = vmul.f32 %v13178_v47, %v15578_v29  ;;  %v12757_v29 = vld [vmem:[%s19662_s0 + $0x1c8] sm:$0xff]   ;;  %v12747_v15 = vld [vmem:[%s19534_s3 + $0x1e0] sm:$0xff]  }
 0xce6   : > { %v13180_v27 = vpop.eup %13179  ;;  %11698 = vmatprep.subr.bf16.mxu1 %v12757_v29 }
 0xce7   : > { %v4353_v60 = vpack.c.bf16 %v4344_v24, %v4343_v1  ;;  %v4345_v61 = vmul.f32 %v13180_v27, %v15581_v8  ;;  %v12758_v8 = vld [vmem:[%s19662_s0 + $0x188] sm:$0xff]  }
 0xce8   : > { %v13182_v48 = vpop.eup %13181  ;;  %11699 = vmatpush3.bf16.msra.mxu1 %v12758_v8 }
 0xce9   : > { %12108 = vmatprep.mubr.bf16.mxu1 %v4353_v60  ;;  %v4346_v25 = vmul.f32 %v13182_v48, %v15584_v37  ;;  %v12759_v37 = vld [vmem:[%s19662_s0 + $0x1d0] sm:$0xff]   ;;  %v12748_v60 = vld [vmem:[%s19534_s3 + $0x1a0] sm:$0xff]  }
 0xcea   : > { %11700 = vmatprep.subr.bf16.mxu1 %v12759_v37  ;;  %v12752_v37 = vld [vmem:[%s19534_s3 + $0x1b0] sm:$0xff]  }
 0xceb   : > { %v4354_v17 = vpack.c.bf16 %v4346_v25, %v4345_v61  ;;  %v12749_v61 = vld [vmem:[%s19534_s3 + $0x1e8] sm:$0xff]  }
 0xcec   : > { %11701 = vmatpush3.bf16.msra.mxu1 %v12760_v32  ;;  %v12750_v25 = vld [vmem:[%s19534_s3 + $0x1a8] sm:$0xff]  }
 0xced   : > { %12109 = vmatmul.mubr.bf16.gmra.mrb[188].mxu1 %v4354_v17  ;;  %11702 = vmatprep.subr.bf16.mxu1 %v12761_v54  ;;  %v12753_v54 = vld [vmem:[%s19534_s3 + $0x1f8] sm:$0xff]  }
 0xcee   : > { %4855 = vmatprep.mubr.bf16.mxu1 %v14200_v14 }
 0xcf0   : > { %11703 = vmatpush3.bf16.msra.mxu1 %v12762_v7  ;;  %v12754_v7 = vld [vmem:[%s19534_s3 + $0x1b8] sm:$0xff]  }
 0xcf1   : > { %11704 = vmatprep.subr.bf16.mxu1 %v12763_v18 }
 0xcf4   : > { %11705 = vmatpush3.bf16.msra.mxu1 %v12764_v2 }
 0xcf5   : > { %11706 = vmatprep.subr.bf16.mxu1 %v12765_v46  ;;  %v15747_v46 = vld [vmem:[#allocation5 + $0x3] ss:$0 sm:$0xff] }
 0xcf8   : > { %11707 = vmatpush3.bf16.msra.mxu1 %v12766_v10 }
 0xcf9   : > { %11708 = vmatprep.subr.bf16.mxu1 %v12767_v39 }
 0xcfc   : > { %11709 = vmatpush3.bf16.msra.mxu1 %v12768_v21 }
 0xcfd   : > { %11710 = vmatprep.subr.bf16.mxu1 %v12769_v56 }
 0xd00   : > { %11711 = vmatpush3.bf16.msra.mxu1 %v12770_v9 }
 0xd03   : > { %4856 = vmatmul.mubr.bf16.vlgmr.msra.gmra.mrb[192].mxu1 %v14244_v31 }
 0xd04   : > { %4863 = vmatprep.mubr.bf16.mxu1 %v14249_v33 }
 0xd0b   : > { %4864 = vmatmul.mubr.bf16.gmra.mrb[196].mxu1 %v14266_v41 }
 0xd0c   : > { %4871 = vmatprep.mubr.bf16.mxu1 %v14271_v43 }
 0xd13   : > { %4872 = vmatmul.mubr.bf16.gmra.mrb[200].mxu1 %v14288_v51 }
 0xd14   : > { %4879 = vmatprep.mubr.bf16.mxu1 %v14290_v52 }
 0xd1b   : > { %4880 = vmatmul.mubr.bf16.gmra.mrb[204].mxu1 %v14300_v57 }
 0xd1c   : > { %4887 = vmatprep.mubr.bf16.mxu1 %v14302_v58 }
 0xd23   : > { %4888 = vmatmul.mubr.bf16.gmra.mrb[208].mxu1 %v14312_v63 }
 0xd24   : > { %4895 = vmatprep.mubr.bf16.mxu1 %v14314_v0 }
 0xd2b   : > { %4896 = vmatmul.mubr.bf16.gmra.mrb[212].mxu1 %v14324_v5 }
 0xd2c   : > { %4903 = vmatprep.mubr.bf16.mxu1 %v14326_v6 }
 0xd33   : > { %4904 = vmatmul.mubr.bf16.gmra.mrb[216].mxu1 %v14336_v11 }
 0xd34   : > { %4911 = vmatprep.mubr.bf16.mxu1 %v14338_v12 }
 0xd3b   : > { %4912 = vmatmul.mubr.bf16.gmra.mrb[220].mxu1 %v14346_v16 }
 0xd3c   : > { %5323 = vmatprep.mubr.bf16.mxu1 %v14200_v14 }
 0xda8   : > { %v12098_v49 = vpop.f32.mrb[176].mxu1 }
 0xda9   : > { %v4397_v42 = vpop.f32.mrb[177].mxu1 }
 0xdaa   : > { %v12099_v55 = vpop.f32.mrb[178].mxu1 }
 0xdab   : > { %v4461_v35 = vpack.c.bf16 %v12099_v55, %v12098_v49  ;;  %v4400_v53 = vpop.f32.mrb[179].mxu1 }
 0xdac   : > { %v4460_v3 = vpack.c.bf16 %v4400_v53, %v4397_v42 }
 0xdae   : > { %10582 = vmatmul.mubr.msk.bf16.vlgmr.msra.gmra.mrb[64].mxu0 %vm1386_vm0, %v4460_v3 }
 0xdaf   : > { %11761 = vmatpush3.bf16.msra.mxu0 %v12740_v59  ;;  %4583 = vmatprep.mubr.bf16.mxu0 %v13827_v4 }
 0xdb0   : > { %v12102_v20 = vpop.f32.mrb[180].mxu1  ;;  %11762 = vmatprep.subr.bf16.mxu0 %v12741_v13 }
 0xdb1   : > { %v4413_v40 = vpop.f32.mrb[181].mxu1 }
 0xdb2   : > { %v12103_v26 = vpop.f32.mrb[182].mxu1 }
 0xdb3   : > { %v4463_v44 = vpack.c.bf16 %v12103_v26, %v12102_v20  ;;  %v4416_v38 = vpop.f32.mrb[183].mxu1  ;;  %11763 = vmatpush3.bf16.msra.mxu0 %v12742_v45 }
 0xdb4   : > { %v4462_v22 = vpack.c.bf16 %v4416_v38, %v4413_v40  ;;  %11764 = vmatprep.subr.bf16.mxu0 %v12743_v30 }
 0xdb6   : > { %10583 = vmatmul.mubr.msk.bf16.gmra.mrb[68].mxu0 %vm1386_vm0, %v4461_v35 }
 0xdb7   : > { %4593 = vmatprep.mubr.bf16.mxu0 %v13827_v4  ;;  %11765 = vmatpush3.bf16.msra.mxu0 %v12744_v50 }
 0xdb8   : > { %v12106_v36 = vpop.f32.mrb[184].mxu1  ;;  %11766 = vmatprep.subr.bf16.mxu0 %v12745_v19 }
 0xdb9   : > { %v4429_v47 = vpop.f32.mrb[185].mxu1 }
 0xdba   : > { %v12107_v1 = vpop.f32.mrb[186].mxu1 }
 0xdbb   : > { %v4465_v24 = vpack.c.bf16 %v12107_v1, %v12106_v36  ;;  %v4432_v27 = vpop.f32.mrb[187].mxu1  ;;  %11767 = vmatpush3.bf16.msra.mxu0 %v12746_v23 }
 0xdbc   : > { %v4464_v48 = vpack.c.bf16 %v4432_v27, %v4429_v47  ;;  %11768 = vmatprep.subr.bf16.mxu0 %v12747_v15 }
 0xdbe   : > { %10584 = vmatmul.mubr.msk.bf16.gmra.mrb[72].mxu0 %vm1386_vm0, %v4462_v22 }
 0xdbf   : > { %4603 = vmatprep.mubr.bf16.mxu0 %v13827_v4  ;;  %11769 = vmatpush3.bf16.msra.mxu0 %v12748_v60 }
 0xdc0   : > { %v12110_v17 = vpop.f32.mrb[188].mxu1  ;;  %11770 = vmatprep.subr.bf16.mxu0 %v12749_v61 }
 0xdc1   : > { %v4445_v34 = vpop.f32.mrb[189].mxu1 }
 0xdc2   : > { %v12111_v62 = vpop.f32.mrb[190].mxu1 }
 0xdc3   : > { %v4467_v29 = vpack.c.bf16 %v12111_v62, %v12110_v17  ;;  %v4448_v8 = vpop.f32.mrb[191].mxu1  ;;  %11771 = vmatpush3.bf16.msra.mxu0 %v12750_v25 }
 0xdc4   : > { %v4466_v32 = vpack.c.bf16 %v4448_v8, %v4445_v34  ;;  %11772 = vmatprep.subr.bf16.mxu0 %v12751_v28 }
 0xdc6   : > { %10585 = vmatmul.mubr.msk.bf16.gmra.mrb[76].mxu0 %vm1386_vm0, %v4463_v44 }
 0xdc7   : > { %4613 = vmatprep.mubr.bf16.mxu0 %v13827_v4  ;;  %11773 = vmatpush3.bf16.msra.mxu0 %v12752_v37 }
 0xdc8   : > { %11774 = vmatprep.subr.bf16.mxu0 %v12753_v54 }
 0xdcb   : > { %11775 = vmatpush3.bf16.msra.mxu0 %v12754_v7 }
 0xdce   : > { %10586 = vmatmul.mubr.msk.bf16.gmra.mrb[80].mxu0 %vm1386_vm0, %v4464_v48 }
 0xdcf   : > { %4623 = vmatprep.mubr.bf16.mxu0 %v13827_v4 }
 0xdd6   : > { %10587 = vmatmul.mubr.msk.bf16.gmra.mrb[84].mxu0 %vm1386_vm0, %v4465_v24 }
 0xdd7   : > { %4633 = vmatprep.mubr.bf16.mxu0 %v13827_v4 }
 0xdde   : > { %10588 = vmatmul.mubr.msk.bf16.gmra.mrb[88].mxu0 %vm1386_vm0, %v4466_v32 }
 0xddf   : > { %4643 = vmatprep.mubr.bf16.mxu0 %v13827_v4 }
 0xde6   : > { %10589 = vmatmul.mubr.msk.bf16.gmra.mrb[92].mxu0 %vm1386_vm0, %v4467_v29 }
 0xde7   : > { %5089 = vmatprep.mubr.bf16.mxu0 %v14200_v14  ;;  %v11712_v14 = vpop.f32.mrb[192].mxu1 }
 0xde8   : > { %v11713_v18 = vpop.f32.mrb[193].mxu1 }
 0xde9   : > { %v11715_v2 = vpop.f32.mrb[194].mxu1  ;;  %v11714_v10 = vadd.f32 %v11713_v18, %v11712_v14 }
 0xdea   : > { %v11716_v39 = vpop.f32.mrb[195].mxu1 }
 0xdeb   : > { %v11717_v21 = vadd.f32 %v11716_v39, %v11715_v2  ;;  %v4858_v56 = vadd.f32 %v11714_v10, %v15747_v46  ;;  %v11718_v42 = vpop.f32.mrb[196].mxu1 }
 0xdec   : > { %v11719_v55 = vpop.f32.mrb[197].mxu1 }
 0xded   : > { %v4861_v9 = vadd.f32 %v11717_v21, %v15747_v46  ;;  %v11721_v35 = vpop.f32.mrb[198].mxu1  ;;  %v11720_v53 = vadd.f32 %v11719_v55, %v11718_v42 }
 0xdee   : > { %5090 = vmatmul.mubr.bf16.vlgmr.msra.gmra.mrb[224].mxu0 %v14244_v31  ;;  %v11722_v59 = vpop.f32.mrb[199].mxu1 }
 0xdef   : > { %5097 = vmatprep.mubr.bf16.mxu0 %v14249_v33  ;;  %v5388_v49 = vpack.c.bf16 %v4861_v9, %v4858_v56  ;;  %v11723_v3 = vadd.f32 %v11722_v59, %v11721_v35  ;;  %v15753_v13 = vadd.f32 %v11720_v53, %v15747_v46  ;;  %v11724_v20 = vpop.f32.mrb[200].mxu1 }
 0xdf0   : > { %v11725_v30 = vpop.f32.mrb[201].mxu1 }
 0xdf1   : > { %v15756_v45 = vadd.f32 %v11723_v3, %v15747_v46  ;;  %v11726_v26 = vadd.f32 %v11725_v30, %v11724_v20  ;;  %v11727_v44 = vpop.f32.mrb[202].mxu1 }
 0xdf2   : > { %v11728_v38 = vpop.f32.mrb[203].mxu1 }
 0xdf3   : > { %v5389_v40 = vpack.c.bf16 %v15756_v45, %v15753_v13  ;;  %v15761_v50 = vadd.f32 %v11726_v26, %v15747_v46  ;;  %v11729_v22 = vadd.f32 %v11728_v38, %v11727_v44  ;;  %v11730_v19 = vpop.f32.mrb[204].mxu1  ;;  %v12777_v13 = vld [vmem:[%s19536_s5 + $0x1d8] sm:$0xff]  }
 0xdf4   : > { %v11731_v23 = vpop.f32.mrb[205].mxu1  ;;  %v12778_v45 = vld [vmem:[%s19536_s5 + $0x198] sm:$0xff]  }
 0xdf5   : > { %v15764_v36 = vadd.f32 %v11729_v22, %v15747_v46  ;;  %v11732_v15 = vadd.f32 %v11731_v23, %v11730_v19  ;;  %v11733_v47 = vpop.f32.mrb[206].mxu1 }
 0xdf6   : > { %5098 = vmatmul.mubr.bf16.gmra.mrb[228].mxu0 %v14266_v41  ;;  %v11734_v1 = vpop.f32.mrb[207].mxu1 }
 0xdf7   : > { %5105 = vmatprep.mubr.bf16.mxu0 %v14271_v43  ;;  %v5390_v24 = vpack.c.bf16 %v15764_v36, %v15761_v50  ;;  %v15769_v27 = vadd.f32 %v11732_v15, %v15747_v46  ;;  %v11735_v60 = vadd.f32 %v11734_v1, %v11733_v47  ;;  %v11736_v48 = vpop.f32.mrb[208].mxu1  ;;  %v12771_v1 = vld [vmem:[%s19536_s5 + $0x1c0] sm:$0xff]   ;;  %v12781_v36 = vld [vmem:[%s19536_s5 + $0x1e8] sm:$0xff]  }
 0xdf8   : > { %v11737_v61 = vpop.f32.mrb[209].mxu1  ;;  %11824 = vmatprep.subr.bf16.mxu1 %v12771_v1  ;;  %v12780_v50 = vld [vmem:[%s19536_s5 + $0x1a0] sm:$0xff]  }
 0xdf9   : > { %v15772_v25 = vadd.f32 %v11735_v60, %v15747_v46  ;;  %v11738_v17 = vadd.f32 %v11737_v61, %v11736_v48  ;;  %v11739_v28 = vpop.f32.mrb[210].mxu1  ;;  %v12772_v60 = vld [vmem:[%s19536_s5 + $0x180] sm:$0xff]   ;;  %v12773_v48 = vld [vmem:[%s19536_s5 + $0x1c8] sm:$0xff]   ;;  %v12775_v61 = vld [vmem:[%s19536_s5 + $0x1d0] sm:$0xff]  }
 0xdfa   : > { %v11740_v34 = vpop.f32.mrb[211].mxu1  ;;  %11825 = vmatpush3.bf16.msra.mxu1 %v12772_v60 }
 0xdfb   : > { %v5391_v62 = vpack.c.bf16 %v15772_v25, %v15769_v27  ;;  %v15777_v29 = vadd.f32 %v11738_v17, %v15747_v46  ;;  %v11741_v8 = vadd.f32 %v11740_v34, %v11739_v28  ;;  %11826 = vmatprep.subr.bf16.mxu1 %v12773_v48  ;;  %v12776_v17 = vld [vmem:[%s19536_s5 + $0x190] sm:$0xff]  }
 0xdfc   : > { %v12783_v27 = vld [vmem:[%s19536_s5 + $0x1f0] sm:$0xff]  }
 0xdfd   : > { %v15780_v54 = vadd.f32 %v11741_v8, %v15747_v46  ;;  %v12784_v25 = vld [vmem:[%s19536_s5 + $0x1b0] sm:$0xff]  }
 0xdfe   : > { %5106 = vmatmul.mubr.bf16.gmra.mrb[232].mxu0 %v14288_v51  ;;  %v11742_v37 = vpop.f32.mrb[212].mxu1 }
 0xdff   : > { %5113 = vmatprep.mubr.bf16.mxu0 %v14290_v52  ;;  %v11743_v32 = vpop.f32.mrb[213].mxu1  ;;  %v5392_v2 = vpack.c.bf16 %v15780_v54, %v15777_v29  ;;  %v12786_v29 = vld [vmem:[%s19536_s5 + $0x1b8] sm:$0xff]  }
 0xe00   : > { %v11744_v7 = vadd.f32 %v11743_v32, %v11742_v37  ;;  %v11745_v14 = vpop.f32.mrb[214].mxu1  ;;  %v15826_v32 = vld [vmem:[#allocation7 + $0x3] ss:$0 sm:$0xff] }
 0xe01   : > { %v11746_v18 = vpop.f32.mrb[215].mxu1 }
 0xe02   : > { %v15785_v10 = vadd.f32 %v11744_v7, %v15747_v46  ;;  %v11747_v39 = vadd.f32 %v11746_v18, %v11745_v14 }
 0xe04   : > { %v15788_v9 = vadd.f32 %v11747_v39, %v15747_v46 }
 0xe06   : > { %5114 = vmatmul.mubr.bf16.gmra.mrb[236].mxu0 %v14300_v57  ;;  %v11748_v21 = vpop.f32.mrb[216].mxu1  ;;  %v5393_v35 = vpack.c.bf16 %v15788_v9, %v15785_v10  ;;  %v15981_v10 = vld [vmem:[#allocation8 + $0x3] ss:$0 sm:$0xff] }
 0xe07   : > { %5121 = vmatprep.mubr.bf16.mxu0 %v14302_v58  ;;  %v11749_v56 = vpop.f32.mrb[217].mxu1 }
 0xe08   : > { %v11751_v42 = vpop.f32.mrb[218].mxu1 }
 0xe09   : > { %v11752_v55 = vpop.f32.mrb[219].mxu1 }
 0xe0a   : > { %v11753_v59 = vadd.f32 %v11752_v55, %v11751_v42 }
 0xe0c   : > { %v15796_v20 = vadd.f32 %v11753_v59, %v15747_v46 }
 0xe0e   : > { %5122 = vmatmul.mubr.bf16.gmra.mrb[240].mxu0 %v14312_v63  ;;  %v11754_v3 = vpop.f32.mrb[220].mxu1 }
 0xe0f   : > { %5129 = vmatprep.mubr.bf16.mxu0 %v14314_v0  ;;  %v11755_v30 = vpop.f32.mrb[221].mxu1 }
 0xe10   : > { %v11756_v26 = vadd.f32 %v11755_v30, %v11754_v3  ;;  %v11757_v44 = vpop.f32.mrb[222].mxu1 }
 0xe11   : > { %v11758_v22 = vpop.f32.mrb[223].mxu1 }
 0xe12   : > { %v15801_v19 = vadd.f32 %v11756_v26, %v15747_v46  ;;  %v11759_v23 = vadd.f32 %v11758_v22, %v11757_v44 }
 0xe14   : > { %v15804_v15 = vadd.f32 %v11759_v23, %v15747_v46 }
 0xe16   : > { %5130 = vmatmul.mubr.bf16.gmra.mrb[244].mxu0 %v14324_v5  ;;  %v5395_v47 = vpack.c.bf16 %v15804_v15, %v15801_v19 }
 0xe17   : > { %5137 = vmatprep.mubr.bf16.mxu0 %v14326_v6 }
 0xe1e   : > { %5138 = vmatmul.mubr.bf16.gmra.mrb[248].mxu0 %v14336_v11 }
 0xe1f   : > { %5145 = vmatprep.mubr.bf16.mxu0 %v14338_v12 }
 0xe26   : > { %5146 = vmatmul.mubr.bf16.gmra.mrb[252].mxu0 %v14346_v16 }
 0xe27   : > { %12128 = vmatprep.mubr.msk.bf16.mxu0 %vm1386_vm0, %v5388_v49  ;;  %v11750_v49 = vadd.f32 %v11749_v56, %v11748_v21 }
 0xe29   : > { %v15793_v53 = vadd.f32 %v11750_v49, %v15747_v46  ;;  %v12774_v46 = vld [vmem:[%s19536_s5 + $0x188] sm:$0xff]  }
 0xe2a   : > { %11827 = vmatpush3.bf16.msra.mxu1 %v12774_v46 }
 0xe2b   : > { %v5394_v38 = vpack.c.bf16 %v15796_v20, %v15793_v53  ;;  %11828 = vmatprep.subr.bf16.mxu1 %v12775_v61 }
 0xe2e   : > { %11829 = vmatpush3.bf16.msra.mxu1 %v12776_v17 }
 0xe2f   : > { %11830 = vmatprep.subr.bf16.mxu1 %v12777_v13 }
 0xe32   : > { %11831 = vmatpush3.bf16.msra.mxu1 %v12778_v45 }
 0xec1   : > { %v11776_v28 = vpop.f32.mrb[224].mxu0 }
 0xec2   : > { %v11777_v34 = vpop.f32.mrb[225].mxu0 }
 0xec3   : > { %v11778_v8 = vadd.f32 %v11777_v34, %v11776_v28  ;;  %v11779_v37 = vpop.f32.mrb[226].mxu0 }
 0xec4   : > { %v11780_v7 = vpop.f32.mrb[227].mxu0 }
 0xec5   : > { %v11781_v14 = vadd.f32 %v11780_v7, %v11779_v37  ;;  %v5092_v18 = vadd.f32 %v11778_v8, %v15826_v32 }
 0xec7   : > { %v5095_v39 = vadd.f32 %v11781_v14, %v15826_v32 }
 0xec9   : > { %v5396_v21 = vpack.c.bf16 %v5095_v39, %v5092_v18  ;;  %v11782_v56 = vpop.f32.mrb[228].mxu0 }
 0xeca   : > { %v11783_v49 = vpop.f32.mrb[229].mxu0 }
 0xecb   : > { %v11784_v42 = vadd.f32 %v11783_v49, %v11782_v56  ;;  %v11785_v55 = vpop.f32.mrb[230].mxu0  ;;  %12456 = vmatprep.subr.msk.bf16.mxu0 %vm1386_vm0, %v5396_v21  ;;  %v5429_v59 = vsel %vm1386_vm0, %v5396_v21, 0 }
 0xecc   : > { %v11786_v3 = vpop.f32.mrb[231].mxu0  ;;  %12113 = vmatpush3.bf16.xpose.msra.mxu0 %v5429_v59 }
 0xecd   : > { %v11787_v30 = vadd.f32 %v11786_v3, %v11785_v55  ;;  %v5100_v26 = vadd.f32 %v11784_v42, %v15826_v32 }
 0xecf   : > { %v5103_v44 = vadd.f32 %v11787_v30, %v15826_v32 }
 0xed1   : > { %v5397_v22 = vpack.c.bf16 %v5103_v44, %v5100_v26  ;;  %v11788_v23 = vpop.f32.mrb[232].mxu0 }
 0xed2   : > { %v11789_v1 = vpop.f32.mrb[233].mxu0 }
 0xed3   : > { %v11790_v60 = vadd.f32 %v11789_v1, %v11788_v23  ;;  %v11791_v48 = vpop.f32.mrb[234].mxu0  ;;  %12457 = vmatprep.subr.msk.bf16.mxu0 %vm1386_vm0, %v5397_v22  ;;  %v5432_v46 = vsel %vm1386_vm0, %v5397_v22, 0 }
 0xed4   : > { %v11792_v61 = vpop.f32.mrb[235].mxu0  ;;  %12115 = vmatpush3.bf16.xpose.msra.mxu0 %v5432_v46 }
 0xed5   : > { %v11793_v17 = vadd.f32 %v11792_v61, %v11791_v48  ;;  %v5108_v28 = vadd.f32 %v11790_v60, %v15826_v32 }
 0xed7   : > { %v5111_v34 = vadd.f32 %v11793_v17, %v15826_v32 }
 0xed9   : > { %v5398_v8 = vpack.c.bf16 %v5111_v34, %v5108_v28  ;;  %v11794_v37 = vpop.f32.mrb[236].mxu0 }
 0xeda   : > { %v11795_v7 = vpop.f32.mrb[237].mxu0 }
 0xedb   : > { %v11796_v14 = vadd.f32 %v11795_v7, %v11794_v37  ;;  %v11797_v18 = vpop.f32.mrb[238].mxu0  ;;  %12458 = vmatprep.subr.msk.bf16.mxu0 %vm1386_vm0, %v5398_v8  ;;  %v5435_v39 = vsel %vm1386_vm0, %v5398_v8, 0 }
 0xedc   : > { %v11798_v21 = vpop.f32.mrb[239].mxu0  ;;  %12117 = vmatpush3.bf16.xpose.msra.mxu0 %v5435_v39 }
 0xedd   : > { %v11799_v56 = vadd.f32 %v11798_v21, %v11797_v18  ;;  %v5116_v49 = vadd.f32 %v11796_v14, %v15826_v32 }
 0xedf   : > { %v5119_v42 = vadd.f32 %v11799_v56, %v15826_v32 }
 0xee1   : > { %v5399_v55 = vpack.c.bf16 %v5119_v42, %v5116_v49  ;;  %v11800_v59 = vpop.f32.mrb[240].mxu0 }
 0xee2   : > { %v11801_v3 = vpop.f32.mrb[241].mxu0 }
 0xee3   : > { %v11802_v30 = vadd.f32 %v11801_v3, %v11800_v59  ;;  %v11803_v26 = vpop.f32.mrb[242].mxu0  ;;  %12459 = vmatprep.subr.msk.bf16.mxu0 %vm1386_vm0, %v5399_v55  ;;  %v5438_v44 = vsel %vm1386_vm0, %v5399_v55, 0 }
 0xee4   : > { %v11804_v22 = vpop.f32.mrb[243].mxu0  ;;  %12119 = vmatpush3.bf16.xpose.msra.mxu0 %v5438_v44 }
 0xee5   : > { %v11805_v23 = vadd.f32 %v11804_v22, %v11803_v26  ;;  %v5124_v1 = vadd.f32 %v11802_v30, %v15826_v32 }
 0xee7   : > { %v5127_v60 = vadd.f32 %v11805_v23, %v15826_v32 }
 0xee9   : > { %v5400_v48 = vpack.c.bf16 %v5127_v60, %v5124_v1  ;;  %v11806_v46 = vpop.f32.mrb[244].mxu0 }
 0xeea   : > { %v11807_v61 = vpop.f32.mrb[245].mxu0 }
 0xeeb   : > { %v11808_v17 = vadd.f32 %v11807_v61, %v11806_v46  ;;  %v11809_v28 = vpop.f32.mrb[246].mxu0  ;;  %12460 = vmatprep.subr.msk.bf16.mxu0 %vm1386_vm0, %v5400_v48  ;;  %v5441_v34 = vsel %vm1386_vm0, %v5400_v48, 0 }
 0xeec   : > { %v11810_v8 = vpop.f32.mrb[247].mxu0  ;;  %12121 = vmatpush3.bf16.xpose.msra.mxu0 %v5441_v34 }
 0xeed   : > { %v11811_v37 = vadd.f32 %v11810_v8, %v11809_v28  ;;  %v5132_v7 = vadd.f32 %v11808_v17, %v15826_v32 }
 0xeef   : > { %v5135_v14 = vadd.f32 %v11811_v37, %v15826_v32 }
 0xef1   : > { %v5401_v18 = vpack.c.bf16 %v5135_v14, %v5132_v7  ;;  %v11812_v39 = vpop.f32.mrb[248].mxu0 }
 0xef2   : > { %v11813_v21 = vpop.f32.mrb[249].mxu0 }
 0xef3   : > { %v11814_v56 = vadd.f32 %v11813_v21, %v11812_v39  ;;  %v11815_v49 = vpop.f32.mrb[250].mxu0  ;;  %12461 = vmatprep.subr.msk.bf16.mxu0 %vm1386_vm0, %v5401_v18  ;;  %v5444_v42 = vsel %vm1386_vm0, %v5401_v18, 0 }
 0xef4   : > { %v11816_v55 = vpop.f32.mrb[251].mxu0  ;;  %12123 = vmatpush3.bf16.xpose.msra.mxu0 %v5444_v42 }
 0xef5   : > { %v11817_v59 = vadd.f32 %v11816_v55, %v11815_v49  ;;  %v5140_v3 = vadd.f32 %v11814_v56, %v15826_v32 }
 0xef7   : > { %v5143_v30 = vadd.f32 %v11817_v59, %v15826_v32 }
 0xef9   : > { %v5402_v26 = vpack.c.bf16 %v5143_v30, %v5140_v3  ;;  %v11818_v44 = vpop.f32.mrb[252].mxu0 }
 0xefa   : > { %v11819_v22 = vpop.f32.mrb[253].mxu0 }
 0xefb   : > { %v11820_v23 = vadd.f32 %v11819_v22, %v11818_v44  ;;  %v11821_v1 = vpop.f32.mrb[254].mxu0  ;;  %12462 = vmatprep.subr.msk.bf16.mxu0 %vm1386_vm0, %v5402_v26  ;;  %v5447_v60 = vsel %vm1386_vm0, %v5402_v26, 0 }
 0xefc   : > { %v11822_v48 = vpop.f32.mrb[255].mxu0  ;;  %12125 = vmatpush3.bf16.xpose.msra.mxu0 %v5447_v60 }
 0xefd   : > { %v11823_v46 = vadd.f32 %v11822_v48, %v11821_v1  ;;  %v5148_v61 = vadd.f32 %v11820_v23, %v15826_v32 }
 0xeff   : > { %v5151_v17 = vadd.f32 %v11823_v46, %v15826_v32 }
 0xf01   : > { %v5403_v28 = vpack.c.bf16 %v5151_v17, %v5148_v61 }
 0xf03   : > { %12463 = vmatprep.subr.msk.bf16.mxu0 %vm1386_vm0, %v5403_v28  ;;  %v5450_v34 = vsel %vm1386_vm0, %v5403_v28, 0 }
 0xf04   : > { %12127 = vmatpush3.bf16.xpose.msra.mxu0 %v5450_v34 }
 0xf0b   : > { %12129 = vmatmul.mubr.msk.bf16.vlgmr.msra.gmra.mrb[0].mxu0 %vm1386_vm0, %v5389_v40  ;;  %v12779_v40 = vld [vmem:[%s19536_s5 + $0x1e0] sm:$0xff]  }
 0xf0c   : > { %12132 = vmatprep.mubr.msk.bf16.mxu0 %vm1386_vm0, %v5390_v24  ;;  %11832 = vmatprep.subr.bf16.mxu1 %v12779_v40  ;;  %v12782_v24 = vld [vmem:[%s19536_s5 + $0x1a8] sm:$0xff]  }
 0xf0d   : > { %11833 = vmatpush3.bf16.msra.mxu1 %v12780_v50 }
 0xf0e   : > { %11834 = vmatprep.subr.bf16.mxu1 %v12781_v36 }
 0xf11   : > { %11835 = vmatpush3.bf16.msra.mxu1 %v12782_v24 }
 0xf12   : > { %11836 = vmatprep.subr.bf16.mxu1 %v12783_v27 }
 0xf13   : > { %12133 = vmatmul.mubr.msk.bf16.gmra.mrb[4].mxu0 %vm1386_vm0, %v5391_v62  ;;  %v12785_v62 = vld [vmem:[%s19536_s5 + $0x1f8] sm:$0xff]  }
 0xf14   : > { %12136 = vmatprep.mubr.msk.bf16.mxu0 %vm1386_vm0, %v5392_v2 }
 0xf15   : > { %11837 = vmatpush3.bf16.msra.mxu1 %v12784_v25 }
 0xf16   : > { %11838 = vmatprep.subr.bf16.mxu1 %v12785_v62 }
 0xf19   : > { %11839 = vmatpush3.bf16.msra.mxu1 %v12786_v29 }
 0xf1b   : > { %12137 = vmatmul.mubr.msk.bf16.gmra.mrb[8].mxu0 %vm1386_vm0, %v5393_v35 }
 0xf1c   : > { %12140 = vmatprep.mubr.msk.bf16.mxu0 %vm1386_vm0, %v5394_v38  ;;  %5324 = vmatmul.mubr.bf16.vlgmr.msra.gmra.mrb[224].mxu1 %v14244_v31 }
 0xf1d   : > { %5331 = vmatprep.mubr.bf16.mxu1 %v14249_v33 }
 0xf23   : > { %12141 = vmatmul.mubr.msk.bf16.gmra.mrb[12].mxu0 %vm1386_vm0, %v5395_v47 }
 0xf24   : > { %5332 = vmatmul.mubr.bf16.gmra.mrb[228].mxu1 %v14266_v41 }
 0xf25   : > { %5339 = vmatprep.mubr.bf16.mxu1 %v14271_v43 }
 0xf2c   : > { %5340 = vmatmul.mubr.bf16.gmra.mrb[232].mxu1 %v14288_v51 }
 0xf2d   : > { %5347 = vmatprep.mubr.bf16.mxu1 %v14290_v52 }
 0xf34   : > { %5348 = vmatmul.mubr.bf16.gmra.mrb[236].mxu1 %v14300_v57 }
 0xf35   : > { %5355 = vmatprep.mubr.bf16.mxu1 %v14302_v58 }
 0xf3c   : > { %5356 = vmatmul.mubr.bf16.gmra.mrb[240].mxu1 %v14312_v63 }
 0xf3d   : > { %5363 = vmatprep.mubr.bf16.mxu1 %v14314_v0 }
 0xf44   : > { %5364 = vmatmul.mubr.bf16.gmra.mrb[244].mxu1 %v14324_v5 }
 0xf45   : > { %5371 = vmatprep.mubr.bf16.mxu1 %v14326_v6 }
 0xf4c   : > { %5372 = vmatmul.mubr.bf16.gmra.mrb[248].mxu1 %v14336_v11 }
 0xf4d   : > { %5379 = vmatprep.mubr.bf16.mxu1 %v14338_v12 }
 0xf54   : > { %5380 = vmatmul.mubr.bf16.gmra.mrb[252].mxu1 %v14346_v16 }
 0xfde   : > { %v15933_v31 = vpop.f32.mrb[0].mxu0 }
 0xfdf   : > { %v15935_v33 = vpop.f32.mrb[1].mxu0 }
 0xfe0   : > { %5549 = vmax.xlane.f32.xlu0 %v15935_v33  ;;  %v15938_v41 = vpop.f32.mrb[2].mxu0 }
 0xfe1   : > { %v15940_v43 = vpop.f32.mrb[3].mxu0 }
 0xfe2   : > { %5551 = vmax.xlane.f32.xlu1 %v15940_v43 }
 0xfe4   : > { %5553 = vmax.xlane.f32.xlu0 %v15933_v31 }
 0xfe6   : > { %5555 = vmax.xlane.f32.xlu1 %v15938_v41  ;;  %v15945_v51 = vpop.f32.mrb[4].mxu0 }
 0xfe7   : > { %v15947_v52 = vpop.f32.mrb[5].mxu0 }
 0xfe8   : > { %5557 = vmax.xlane.f32.xlu0 %v15947_v52  ;;  %v15950_v57 = vpop.f32.mrb[6].mxu0 }
 0xfe9   : > { %v15952_v58 = vpop.f32.mrb[7].mxu0 }
 0xfea   : > { %5559 = vmax.xlane.f32.xlu1 %v15952_v58 }
 0xfec   : > { %5561 = vmax.xlane.f32.xlu0 %v15945_v51 }
 0xfee   : > { %5563 = vmax.xlane.f32.xlu1 %v15950_v57  ;;  %v15957_v63 = vpop.f32.mrb[8].mxu0 }
 0xfef   : > { %v15959_v0 = vpop.f32.mrb[9].mxu0  ;;  %v11840_v2 = vpop.f32.mrb[224].mxu1 }
 0xff0   : > { %5565 = vmax.xlane.f32.xlu0 %v15959_v0  ;;  %v15962_v5 = vpop.f32.mrb[10].mxu0  ;;  %v11841_v9 = vpop.f32.mrb[225].mxu1 }
 0xff1   : > { %v15964_v6 = vpop.f32.mrb[11].mxu0  ;;  %v11842_v35 = vadd.f32 %v11841_v9, %v11840_v2  ;;  %v11843_v53 = vpop.f32.mrb[226].mxu1 }
 0xff2   : > { %5567 = vmax.xlane.f32.xlu1 %v15964_v6  ;;  %v11844_v20 = vpop.f32.mrb[227].mxu1 }
 0xff3   : > { %v5326_v38 = vadd.f32 %v11842_v35, %v15981_v10  ;;  %v11845_v19 = vadd.f32 %v11844_v20, %v11843_v53 }
 0xff4   : > { %5569 = vmax.xlane.f32.xlu0 %v15957_v63 }
 0xff5   : > { %v5329_v15 = vadd.f32 %v11845_v19, %v15981_v10 }
 0xff6   : > { %5571 = vmax.xlane.f32.xlu1 %v15962_v5  ;;  %v15969_v11 = vpop.f32.mrb[12].mxu0 }
 0xff7   : > { %v15971_v12 = vpop.f32.mrb[13].mxu0  ;;  %v11846_v47 = vpop.f32.mrb[228].mxu1  ;;  %v5701_v32 = vpack.c.bf16 %v5329_v15, %v5326_v38 }
 0xff8   : > { %5573 = vmax.xlane.f32.xlu0 %v15971_v12  ;;  %v15974_v16 = vpop.f32.mrb[14].mxu0  ;;  %v11847_v8 = vpop.f32.mrb[229].mxu1 }
 0xff9   : > { %v15976_v54 = vpop.f32.mrb[15].mxu0  ;;  %v11848_v37 = vadd.f32 %v11847_v8, %v11846_v47  ;;  %v11849_v7 = vpop.f32.mrb[230].mxu1  ;;  %12144 = vmatprep.subr.bf16.mxu0 %v5701_v32 }
 0xffa   : > { %5575 = vmax.xlane.f32.xlu1 %v15976_v54  ;;  %v11850_v14 = vpop.f32.mrb[231].mxu1  ;;  %12145 = vmatpush3.bf16.msra.mxu0 %v5701_v32 }
 0xffb   : > { %v5334_v18 = vadd.f32 %v11848_v37, %v15981_v10  ;;  %v11851_v39 = vadd.f32 %v11850_v14, %v11849_v7 }
 0xffc   : > { %5577 = vmax.xlane.f32.xlu0 %v15969_v11 }
 0xffd   : > { %v5337_v21 = vadd.f32 %v11851_v39, %v15981_v10 }
 0xffe   : > { %5579 = vmax.xlane.f32.xlu1 %v15974_v16 }
 0xfff   : > { %v11852_v56 = vpop.f32.mrb[232].mxu1  ;;  %v5702_v49 = vpack.c.bf16 %v5337_v21, %v5334_v18 }
0x1000   : > { %v11853_v42 = vpop.f32.mrb[233].mxu1 }
0x1001   : > { %v11854_v55 = vadd.f32 %v11853_v42, %v11852_v56  ;;  %v11855_v59 = vpop.f32.mrb[234].mxu1  ;;  %12146 = vmatprep.subr.bf16.mxu0 %v5702_v49 }
0x1002   : > { %v11856_v3 = vpop.f32.mrb[235].mxu1  ;;  %12147 = vmatpush3.bf16.msra.mxu0 %v5702_v49 }
0x1003   : > { %v5342_v30 = vadd.f32 %v11854_v55, %v15981_v10  ;;  %v11857_v26 = vadd.f32 %v11856_v3, %v11855_v59 }
0x1005   : > { %v5345_v44 = vadd.f32 %v11857_v26, %v15981_v10 }
0x1007   : > { %v11858_v1 = vpop.f32.mrb[236].mxu1  ;;  %v5703_v60 = vpack.c.bf16 %v5345_v44, %v5342_v30 }
0x1008   : > { %v11859_v46 = vpop.f32.mrb[237].mxu1 }
0x1009   : > { %v11860_v28 = vadd.f32 %v11859_v46, %v11858_v1  ;;  %v11861_v34 = vpop.f32.mrb[238].mxu1  ;;  %12148 = vmatprep.subr.bf16.mxu0 %v5703_v60 }
0x100a   : > { %v11862_v45 = vpop.f32.mrb[239].mxu1  ;;  %12149 = vmatpush3.bf16.msra.mxu0 %v5703_v60 }
0x100b   : > { %v5350_v24 = vadd.f32 %v11860_v28, %v15981_v10  ;;  %v11863_v27 = vadd.f32 %v11862_v45, %v11861_v34 }
0x100f   : > { %v11864_v9 = vpop.f32.mrb[240].mxu1 }
0x1010   : > { %v11865_v53 = vpop.f32.mrb[241].mxu1 }
0x1011   : > { %v11866_v19 = vadd.f32 %v11865_v53, %v11864_v9  ;;  %v11867_v15 = vpop.f32.mrb[242].mxu1 }
0x106d   : > { %v5550_v22 = vpop.xlane.xlu0 %5549 }
0x106e   : > { %v5581_v23 = vsub.f32 %v15935_v33, %v5550_v22  ;;  %v5353_v33 = vadd.f32 %v11863_v27, %v15981_v10 }
0x106f   : > { %v5552_v48 = vpop.xlane.xlu1 %5551 }
0x1070   : > { %v5597_v61 = vmul.f32 1.442695, %v5581_v23  ;;  %v5582_v17 = vsub.f32 %v15940_v43, %v5552_v48  ;;  %v5704_v20 = vpack.c.bf16 %v5353_v33, %v5350_v24 }
0x1071   : > { %v5554_v13 = vpop.xlane.xlu0 %5553 }
0x1072   : > { %13183 = vpow2.f32 %v5597_v61  ;;  %v5599_v40 = vmul.f32 1.442695, %v5582_v17  ;;  %v5583_v50 = vsub.f32 %v15933_v31, %v5554_v13  ;;  %12150 = vmatprep.subr.bf16.mxu0 %v5704_v20 }
0x1073   : > { %v5556_v36 = vpop.xlane.xlu1 %5555  ;;  %12151 = vmatpush3.bf16.msra.mxu0 %v5704_v20 }
0x1074   : > { %13185 = vpow2.f32 %v5599_v40  ;;  %v5601_v25 = vmul.f32 1.442695, %v5583_v50  ;;  %v5584_v62 = vsub.f32 %v15938_v41, %v5556_v36  ;;  %v11868_v41 = vpop.f32.mrb[243].mxu1 }
0x1075   : > { %v5558_v29 = vpop.xlane.xlu0 %5557  ;;  %v11869_v7 = vadd.f32 %v11868_v41, %v11867_v15  ;;  %v11870_v42 = vpop.f32.mrb[244].mxu1 }
0x1076   : > { %13187 = vpow2.f32 %v5601_v25  ;;  %v5603_v43 = vmul.f32 1.442695, %v5584_v62  ;;  %v5585_v2 = vsub.f32 %v15947_v52, %v5558_v29  ;;  %v5358_v52 = vadd.f32 %v11866_v19, %v15981_v10  ;;  %v11871_v59 = vpop.f32.mrb[245].mxu1 }
0x1077   : > { %v5560_v35 = vpop.xlane.xlu1 %5559  ;;  %v5361_v21 = vadd.f32 %v11869_v7, %v15981_v10  ;;  %v11872_v44 = vadd.f32 %v11871_v59, %v11870_v42  ;;  %v11873_v22 = vpop.f32.mrb[246].mxu1 }
0x1078   : > { %13189 = vpow2.f32 %v5603_v43  ;;  %v5605_v31 = vmul.f32 1.442695, %v5585_v2  ;;  %v5586_v38 = vsub.f32 %v15952_v58, %v5560_v35  ;;  %v11874_v1 = vpop.f32.mrb[247].mxu1 }
0x1079   : > { %v5562_v47 = vpop.xlane.xlu0 %5561  ;;  %v5705_v3 = vpack.c.bf16 %v5361_v21, %v5358_v52  ;;  %v5366_v61 = vadd.f32 %v11872_v44, %v15981_v10  ;;  %v11876_v36 = vpop.f32.mrb[248].mxu1 }
0x107a   : > { %13191 = vpow2.f32 %v5605_v31  ;;  %v5607_v32 = vmul.f32 1.442695, %v5586_v38  ;;  %v5587_v8 = vsub.f32 %v15945_v51, %v5562_v47  ;;  %v11877_v27 = vpop.f32.mrb[249].mxu1 }
0x107b   : > { %v5564_v37 = vpop.xlane.xlu1 %5563  ;;  %12152 = vmatprep.subr.bf16.mxu0 %v5705_v3  ;;  %v11878_v33 = vadd.f32 %v11877_v27, %v11876_v36  ;;  %v11879_v43 = vpop.f32.mrb[250].mxu1 }
0x107c   : > { %v15999_v14 = vpop.eup %13183  ;;  %13193 = vpow2.f32 %v5607_v32  ;;  %v5609_v18 = vmul.f32 1.442695, %v5587_v8  ;;  %v5588_v58 = vsub.f32 %v15950_v57, %v5564_v37  ;;  %12153 = vmatpush3.bf16.msra.mxu0 %v5705_v3  ;;  %v11880_v9 = vpop.f32.mrb[251].mxu1 }
0x107d   : > { %v5566_v39 = vpop.xlane.xlu0 %5565  ;;  %5629 = vadd.xlane.f32.xlu0 %v15999_v14  ;;  %v5374_v31 = vadd.f32 %v11878_v33, %v15981_v10  ;;  %v11882_v32 = vpop.f32.mrb[252].mxu1 }
0x107e   : > { %v16004_v56 = vpop.eup %13185  ;;  %13195 = vpow2.f32 %v5609_v18  ;;  %v5611_v51 = vmul.f32 1.442695, %v5588_v58  ;;  %v5589_v49 = vsub.f32 %v15959_v0, %v5566_v39  ;;  %v11883_v8 = vpop.f32.mrb[253].mxu1 }
0x107f   : > { %v5568_v55 = vpop.xlane.xlu1 %5567  ;;  %5631 = vadd.xlane.f32.xlu1 %v16004_v56  ;;  %v11885_v7 = vpop.f32.mrb[254].mxu1  ;;  %v11884_v58 = vadd.f32 %v11883_v8, %v11882_v32 }
0x1080   : > { %v16008_v30 = vpop.eup %13187  ;;  %13197 = vpow2.f32 %v5611_v51  ;;  %v5613_v57 = vmul.f32 1.442695, %v5589_v49  ;;  %v5590_v26 = vsub.f32 %v15964_v6, %v5568_v55  ;;  %v11875_v6 = vadd.f32 %v11874_v1, %v11873_v22 }
0x1081   : > { %v5570_v23 = vpop.xlane.xlu0 %5569  ;;  %5633 = vadd.xlane.f32.xlu0 %v16008_v30  ;;  %v5382_v51 = vadd.f32 %v11884_v58, %v15981_v10 }
0x1082   : > { %v16012_v0 = vpop.eup %13189  ;;  %13199 = vpow2.f32 %v5613_v57  ;;  %v5615_v60 = vmul.f32 1.442695, %v5590_v26  ;;  %v5591_v48 = vsub.f32 %v15957_v63, %v5570_v23  ;;  %v5369_v45 = vadd.f32 %v11875_v6, %v15981_v10  ;;  %v12789_v57 = vld [vmem:[#allocation10 + $0xc4] ss:$8 sps:$4 sm:$0xff]  }
0x1083   : > { %v5572_v46 = vpop.xlane.xlu1 %5571  ;;  %5635 = vadd.xlane.f32.xlu1 %v16012_v0 }
0x1084   : > { %v16017_v17 = vpop.eup %13191  ;;  %13201 = vpow2.f32 %v5615_v60  ;;  %v5617_v28 = vmul.f32 1.442695, %v5591_v48  ;;  %v5592_v34 = vsub.f32 %v15962_v5, %v5572_v46  ;;  %v5706_v25 = vpack.c.bf16 %v5369_v45, %v5366_v61 }
0x1085   : > { %5637 = vadd.xlane.f32.xlu0 %v16017_v17  ;;  %v5574_v13 = vpop.xlane.xlu0 %5573 }
0x1086   : > { %v16022_v40 = vpop.eup %13193  ;;  %13203 = vpow2.f32 %v5617_v28  ;;  %v5619_v63 = vmul.f32 1.442695, %v5592_v34  ;;  %v5593_v50 = vsub.f32 %v15971_v12, %v5574_v13  ;;  %12154 = vmatprep.subr.bf16.mxu0 %v5706_v25 }
0x1087   : > { %5639 = vadd.xlane.f32.xlu1 %v16022_v40  ;;  %v5576_v24 = vpop.xlane.xlu1 %5575  ;;  %12155 = vmatpush3.bf16.msra.mxu0 %v5706_v25  ;;  %v12787_v25 = vld [vmem:[#allocation10 + $0xc0] ss:$8 sps:$4 sm:$0xff]  }
0x1088   : > { %v16026_v62 = vpop.eup %13195  ;;  %13205 = vpow2.f32 %v5619_v63  ;;  %v5621_v5 = vmul.f32 1.442695, %v5593_v50  ;;  %v5594_v29 = vsub.f32 %v15976_v54, %v5576_v24  ;;  %v11881_v54 = vadd.f32 %v11880_v9, %v11879_v43 }
0x1089   : > { %5641 = vadd.xlane.f32.xlu0 %v16026_v62  ;;  %v5578_v2 = vpop.xlane.xlu0 %5577 }
0x108a   : > { %v16030_v12 = vpop.eup %13197  ;;  %13207 = vpow2.f32 %v5621_v5  ;;  %v5623_v35 = vmul.f32 1.442695, %v5594_v29  ;;  %v5595_v53 = vsub.f32 %v15969_v11, %v5578_v2  ;;  %v5377_v47 = vadd.f32 %v11881_v54, %v15981_v10 }
0x108b   : > { %5643 = vadd.xlane.f32.xlu1 %v16030_v12  ;;  %v5580_v20 = vpop.xlane.xlu1 %5579 }
0x108c   : > { %v16035_v38 = vpop.eup %13199  ;;  %13209 = vpow2.f32 %v5623_v35  ;;  %v5625_v19 = vmul.f32 1.442695, %v5595_v53  ;;  %v5596_v15 = vsub.f32 %v15974_v16, %v5580_v20  ;;  %v5707_v37 = vpack.c.bf16 %v5377_v47, %v5374_v31  ;;  %v11886_v16 = vpop.f32.mrb[255].mxu1  ;;  %v12795_v53 = vld [vmem:[#allocation10 + $0xe4] ss:$8 sps:$4 sm:$0xff]  }
0x108d   : > { %5645 = vadd.xlane.f32.xlu0 %v16035_v38  ;;  %v11887_v39 = vadd.f32 %v11886_v16, %v11885_v7 }
0x108e   : > { %v16040_v41 = vpop.eup %13201  ;;  %13211 = vpow2.f32 %v5625_v19  ;;  %v5627_v11 = vmul.f32 1.442695, %v5596_v15  ;;  %12156 = vmatprep.subr.bf16.mxu0 %v5707_v37 }
0x108f   : > { %5647 = vadd.xlane.f32.xlu1 %v16040_v41  ;;  %12157 = vmatpush3.bf16.msra.mxu0 %v5707_v37  ;;  %v5385_v49 = vadd.f32 %v11887_v39, %v15981_v10 }
0x1090   : > { %v16043_v52 = vpop.eup %13203  ;;  %13213 = vpow2.f32 %v5627_v11  ;;  %v12798_v11 = vld [vmem:[#allocation10 + $0xf4] ss:$8 sps:$4 sm:$0xff]  }
0x1091   : > { %5649 = vadd.xlane.f32.xlu0 %v16043_v52  ;;  %v5708_v55 = vpack.c.bf16 %v5385_v49, %v5382_v51 }
0x1092   : > { %v16046_v18 = vpop.eup %13205 }
0x1093   : > { %5651 = vadd.xlane.f32.xlu1 %v16046_v18  ;;  %12158 = vmatprep.subr.bf16.mxu0 %v5708_v55 }
0x1094   : > { %v16049_v21 = vpop.eup %13207  ;;  %12159 = vmatpush3.bf16.msra.mxu0 %v5708_v55 }
0x1095   : > { %5653 = vadd.xlane.f32.xlu0 %v16049_v21  ;;  %5887 = vmatprep.subr.bf16.mxu0 %v12789_v57 }
0x1096   : > { %v16054_v42 = vpop.eup %13209 }
0x1097   : > { %5655 = vadd.xlane.f32.xlu1 %v16054_v42 }
0x1098   : > { %v16057_v59 = vpop.eup %13211 }
0x1099   : > { %5657 = vadd.xlane.f32.xlu0 %v16057_v59 }
0x109a   : > { %v16060_v3 = vpop.eup %13213 }
0x109b   : > { %5659 = vadd.xlane.f32.xlu1 %v16060_v3 }
0x110a   : > { %v5630_v10 = vpop.xlane.xlu0 %5629 }
0x110b   : > { %13215 = vrcp.f32 %v5630_v10 }
0x110c   : > { %v5632_v26 = vpop.xlane.xlu1 %5631 }
0x110d   : > { %13217 = vrcp.f32 %v5632_v26 }
0x110e   : > { %v5634_v44 = vpop.xlane.xlu0 %5633 }
0x110f   : > { %13219 = vrcp.f32 %v5634_v44 }
0x1110   : > { %v5636_v22 = vpop.xlane.xlu1 %5635 }
0x1111   : > { %13221 = vrcp.f32 %v5636_v22 }
0x1112   : > { %v5638_v23 = vpop.xlane.xlu0 %5637 }
0x1113   : > { %13223 = vrcp.f32 %v5638_v23 }
0x1114   : > { %v5640_v1 = vpop.xlane.xlu1 %5639 }
0x1115   : > { %v13216_v60 = vpop.eup %13215  ;;  %13225 = vrcp.f32 %v5640_v1 }
0x1116   : > { %v5642_v48 = vpop.xlane.xlu0 %5641  ;;  %v5677_v6 = vmul.f32 %v13216_v60, %v15999_v14  ;;  %v12792_v14 = vld [vmem:[#allocation10 + $0xd4] ss:$8 sps:$4 sm:$0xff]  }
0x1117   : > { %v13218_v46 = vpop.eup %13217  ;;  %13227 = vrcp.f32 %v5642_v48 }
0x1118   : > { %v5644_v61 = vpop.xlane.xlu1 %5643  ;;  %v5678_v28 = vmul.f32 %v13218_v46, %v16004_v56 }
0x1119   : > { %v13220_v34 = vpop.eup %13219  ;;  %13229 = vrcp.f32 %v5644_v61 }
0x111a   : > { %v5646_v13 = vpop.xlane.xlu0 %5645  ;;  %v5693_v45 = vpack.c.bf16 %v5678_v28, %v5677_v6  ;;  %v5679_v50 = vmul.f32 %v13220_v34, %v16008_v30  ;;  %v12790_v30 = vld [vmem:[#allocation10 + $0xd0] ss:$8 sps:$4 sm:$0xff]  }
0x111b   : > { %v13222_v63 = vpop.eup %13221  ;;  %13231 = vrcp.f32 %v5646_v13 }
0x111c   : > { %v5680_v36 = vmul.f32 %v13222_v63, %v16012_v0  ;;  %12160 = vmatprep.mubr.bf16.mxu0 %v5693_v45  ;;  %v5648_v24 = vpop.xlane.xlu1 %5647 }
0x111d   : > { %v13224_v27 = vpop.eup %13223  ;;  %13233 = vrcp.f32 %v5648_v24 }
0x111e   : > { %v5694_v5 = vpack.c.bf16 %v5680_v36, %v5679_v50  ;;  %v5650_v29 = vpop.xlane.xlu0 %5649  ;;  %v5681_v43 = vmul.f32 %v13224_v27, %v16017_v17  ;;  %v12793_v17 = vld [vmem:[#allocation10 + $0xe0] ss:$8 sps:$4 sm:$0xff]  }
0x111f   : > { %v13226_v33 = vpop.eup %13225  ;;  %13235 = vrcp.f32 %v5650_v29 }
0x1120   : > { %12161 = vmatmul.mubr.bf16.vlgmr.msra.gmra.mrb[16].mxu0 %v5694_v5  ;;  %v5652_v56 = vpop.xlane.xlu1 %5651  ;;  %v5682_v2 = vmul.f32 %v13226_v33, %v16022_v40  ;;  %v1807_v33 = vlaneseq }
0x1121   : > { %v13228_v9 = vpop.eup %13227  ;;  %13237 = vrcp.f32 %v5652_v56  ;;  %5888 = vmatpush1.bf16.msra.mxu0 %v12787_v25 }
0x1122   : > { %v5654_v0 = vpop.xlane.xlu0 %5653  ;;  %v5695_v35 = vpack.c.bf16 %v5682_v2, %v5681_v43  ;;  %5889 = vmatprep.subr.bf16.mxu0 %v12792_v14  ;;  %v5683_v31 = vmul.f32 %v13228_v9, %v16026_v62  ;;  %v16095_v56 = vshrl.u32 %v1807_v33, 7  ;;  %v1805_v2 = vld [vmem:[%s19539_s8] sm:$0x3] }
0x1123   : > { %v13230_v20 = vpop.eup %13229  ;;  %13239 = vrcp.f32 %v5654_v0 }
0x1124   : > { %v5684_v54 = vmul.f32 %v13230_v20, %v16030_v12  ;;  %12164 = vmatprep.mubr.bf16.mxu0 %v5695_v35  ;;  %v5656_v19 = vpop.xlane.xlu1 %5655  ;;  %v12796_v12 = vld [vmem:[#allocation10 + $0xf0] ss:$8 sps:$4 sm:$0xff]   ;;  %v16098_v43 = vsub.s32 0, %v16095_v56  ;;  %v16104_v9 = vsub.s32 1, %v16095_v56 }
0x1125   : > { %v13232_v15 = vpop.eup %13231  ;;  %13241 = vrcp.f32 %v5656_v19  ;;  %5890 = vmatpush1.bf16.msra.mxu0 %v12790_v30 }
0x1126   : > { %v5696_v40 = vpack.c.bf16 %v5684_v54, %v5683_v31  ;;  %v5658_v47 = vpop.xlane.xlu0 %5657  ;;  %5891 = vmatprep.subr.bf16.mxu0 %v12795_v53  ;;  %v5685_v37 = vmul.f32 %v13232_v15, %v16035_v38  ;;  %19663 = vst [vmem:[#allocation18_spill] sm:$0xff] %v16098_v43  ;;  %19664 = vst [vmem:[#allocation19_spill] sm:$0xff] %v16104_v9  ;;  %v16107_v30 = vrot.slane %v1805_v2, %v16098_v43  ;;  %v13567_v54 = vld [vmem:[%s14148_s23] sm:$0xff] }
0x1127   : > { %v13234_v32 = vpop.eup %13233  ;;  %13243 = vrcp.f32 %v5658_v47 }
0x1128   : > { %12165 = vmatmul.mubr.bf16.gmra.mrb[20].mxu0 %v5696_v40  ;;  %v5660_v8 = vpop.xlane.xlu1 %5659  ;;  %v5686_v62 = vmul.f32 %v13234_v32, %v16040_v41  ;;  %v13568_v40 = vld [vmem:[%s14148_s23 + $0x8] sm:$0xff]  ;;  %v13569_v32 = vld [vmem:[%s14148_s23 + $0x10] sm:$0xff] }
0x1129   : > { %v13236_v7 = vpop.eup %13235  ;;  %13245 = vrcp.f32 %v5660_v8  ;;  %5892 = vmatpush1.bf16.msra.mxu0 %v12793_v17 }
0x112a   : > { %v5697_v16 = vpack.c.bf16 %v5686_v62, %v5685_v37  ;;  %5893 = vmatprep.subr.bf16.mxu0 %v12798_v11  ;;  %v5687_v39 = vmul.f32 %v13236_v7, %v16043_v52  ;;  %v13570_v37 = vld [vmem:[%s14148_s23 + $0x18] sm:$0xff] }
0x112b   : > { %v13238_v58 = vpop.eup %13237 }
0x112c   : > { %v5688_v51 = vmul.f32 %v13238_v58, %v16046_v18  ;;  %12168 = vmatprep.mubr.bf16.mxu0 %v5697_v16 }
0x112d   : > { %v13240_v49 = vpop.eup %13239  ;;  %5894 = vmatpush1.bf16.msra.mxu0 %v12796_v12 }
0x112e   : > { %v5698_v55 = vpack.c.bf16 %v5688_v51, %v5687_v39  ;;  %v5689_v38 = vmul.f32 %v13240_v49, %v16049_v21 }
0x112f   : > { %v13242_v57 = vpop.eup %13241 }
0x1130   : > { %12169 = vmatmul.mubr.bf16.gmra.mrb[24].mxu0 %v5698_v55  ;;  %v5690_v41 = vmul.f32 %v13242_v57, %v16054_v42  ;;  %v13571_v55 = vld [vmem:[%s14148_s23 + $0x20] sm:$0xff] }
0x1131   : > { %v13244_v10 = vpop.eup %13243 }
0x1132   : > { %v5699_v26 = vpack.c.bf16 %v5690_v41, %v5689_v38  ;;  %v5691_v22 = vmul.f32 %v13244_v10, %v16057_v59  ;;  %v13572_v10 = vld [vmem:[%s14148_s23 + $0x28] sm:$0xff] }
0x1133   : > { %v13246_v44 = vpop.eup %13245 }
0x1134   : > { %v5692_v23 = vmul.f32 %v13246_v44, %v16060_v3  ;;  %12172 = vmatprep.mubr.bf16.mxu0 %v5699_v26 }
0x1136   : > { %v5700_v52 = vpack.c.bf16 %v5692_v23, %v5691_v22  ;;  %v13573_v22 = vld [vmem:[%s14148_s23 + $0x30] sm:$0xff] }
0x1138   : > { %12173 = vmatmul.mubr.bf16.gmra.mrb[28].mxu0 %v5700_v52  ;;  %v13574_v52 = vld [vmem:[%s14148_s23 + $0x38] sm:$0xff] }
0x1139   : > { %5919 = vmatprep.mubr.bf16.mxu0 %v13827_v4 }
0x11f3   : > { %v12162_v18 = vpop.f32.mrb[16].mxu0 }
0x11f4   : > { %v5743_v1 = vpop.f32.mrb[17].mxu0 }
0x11f5   : > { %v12163_v60 = vpop.f32.mrb[18].mxu0 }
0x11f6   : > { %v5807_v48 = vpack.c.bf16 %v12163_v60, %v12162_v18  ;;  %v5746_v46 = vpop.f32.mrb[19].mxu0 }
0x11f7   : > { %v5806_v21 = vpack.c.bf16 %v5746_v46, %v5743_v1 }
0x11f9   : > { %10753 = vmatmul.mubr.msk.bf16.vlgmr.msra.gmra.mrb[64].mxu0 %vm1386_vm0, %v5806_v21 }
0x11fa   : > { %5929 = vmatprep.mubr.bf16.mxu0 %v13827_v4 }
0x11fb   : > { %v12166_v42 = vpop.f32.mrb[20].mxu0 }
0x11fc   : > { %v5759_v61 = vpop.f32.mrb[21].mxu0 }
0x11fd   : > { %v12167_v59 = vpop.f32.mrb[22].mxu0 }
0x11fe   : > { %v5809_v6 = vpack.c.bf16 %v12167_v59, %v12166_v42  ;;  %v5762_v3 = vpop.f32.mrb[23].mxu0  ;;  %v13575_v59 = vld [vmem:[%s14148_s23 + $0x40] sm:$0xff] }
0x11ff   : > { %v5808_v28 = vpack.c.bf16 %v5762_v3, %v5759_v61 }
0x1201   : > { %10754 = vmatmul.mubr.msk.bf16.gmra.mrb[68].mxu0 %vm1386_vm0, %v5807_v48 }
0x1202   : > { %5939 = vmatprep.mubr.bf16.mxu0 %v13827_v4 }
0x1203   : > { %v12170_v34 = vpop.f32.mrb[24].mxu0 }
0x1204   : > { %v5775_v13 = vpop.f32.mrb[25].mxu0 }
0x1205   : > { %v12171_v45 = vpop.f32.mrb[26].mxu0 }
0x1206   : > { %v5811_v63 = vpack.c.bf16 %v12171_v45, %v12170_v34  ;;  %v5778_v50 = vpop.f32.mrb[27].mxu0  ;;  %v13576_v34 = vld [vmem:[%s14148_s23 + $0x48] sm:$0xff] }
0x1207   : > { %v5810_v36 = vpack.c.bf16 %v5778_v50, %v5775_v13 }
0x1209   : > { %10755 = vmatmul.mubr.msk.bf16.gmra.mrb[72].mxu0 %vm1386_vm0, %v5808_v28 }
0x120a   : > { %5949 = vmatprep.mubr.bf16.mxu0 %v13827_v4 }
0x120b   : > { %v12174_v24 = vpop.f32.mrb[28].mxu0 }
0x120c   : > { %v5791_v27 = vpop.f32.mrb[29].mxu0 }
0x120d   : > { %v12175_v25 = vpop.f32.mrb[30].mxu0 }
0x120e   : > { %v5813_v5 = vpack.c.bf16 %v12175_v25, %v12174_v24  ;;  %v5794_v29 = vpop.f32.mrb[31].mxu0 }
0x120f   : > { %v5812_v14 = vpack.c.bf16 %v5794_v29, %v5791_v27 }
0x1211   : > { %10756 = vmatmul.mubr.msk.bf16.gmra.mrb[76].mxu0 %vm1386_vm0, %v5809_v6 }
0x1212   : > { %5959 = vmatprep.mubr.bf16.mxu0 %v13827_v4 }
0x1219   : > { %10757 = vmatmul.mubr.msk.bf16.gmra.mrb[80].mxu0 %vm1386_vm0, %v5810_v36  ;;  %v13578_v36 = vld [vmem:[%s14148_s23 + $0x58] sm:$0xff] }
0x121a   : > { %5969 = vmatprep.mubr.bf16.mxu0 %v13827_v4 }
0x1221   : > { %10758 = vmatmul.mubr.msk.bf16.gmra.mrb[84].mxu0 %vm1386_vm0, %v5811_v63  ;;  %v13577_v63 = vld [vmem:[%s14148_s23 + $0x50] sm:$0xff] }
0x1222   : > { %5979 = vmatprep.mubr.bf16.mxu0 %v13827_v4 }
0x1229   : > { %10759 = vmatmul.mubr.msk.bf16.gmra.mrb[88].mxu0 %vm1386_vm0, %v5812_v14 }
0x122a   : > { %5989 = vmatprep.mubr.bf16.mxu0 %v13827_v4  ;;  %v16110_v4 = vrot.slane %v1805_v2, %v16104_v9 }
0x1231   : > { %10760 = vmatmul.mubr.msk.bf16.gmra.mrb[92].mxu0 %vm1386_vm0, %v5813_v5 }
0x12cc   : > { %v5921_v0 = vpop.f32.mrb[64].mxu0 }
0x12cd   : > { %v12176_v35 = vadd.f32 %v5921_v0, %v16107_v30  ;;  %v5923_v53 = vpop.f32.mrb[65].mxu0  ;;  %v13579_v0 = vld [vmem:[%s14148_s23 + $0x60] sm:$0xff] }
0x12ce   : > { %v12177_v20 = vadd.f32 %v5923_v53, %v16110_v4  ;;  %v5925_v31 = vpop.f32.mrb[66].mxu0 }
0x12cf   : > { %v16115_v19 = vadd.f32 %v13567_v54, %v12176_v35  ;;  %v12178_v15 = vadd.f32 %v5925_v31, %v16107_v30  ;;  %v5927_v17 = vpop.f32.mrb[67].mxu0  ;;  %v13580_v31 = vld [vmem:[%s14148_s23 + $0x68] sm:$0xff] }
0x12d0   : > { %v16119_v47 = vadd.f32 %v13568_v40, %v12177_v20  ;;  %v12179_v11 = vadd.f32 %v5927_v17, %v16110_v4  ;;  %v13581_v17 = vld [vmem:[%s14148_s23 + $0x70] sm:$0xff] }
0x12d1   : > { %v16123_v8 = vadd.f32 %v13569_v32, %v12178_v15 }
0x12d2   : > { %v16126_v62 = vadd.f32 %v13570_v37, %v12179_v11  ;;  %v6066_v7 = vadd.f32 %v16119_v47, %v16115_v19  ;;  %v13582_v11 = vld [vmem:[%s14148_s23 + $0x78] sm:$0xff] }
0x12d4   : > { %6067 = vadd.xlane.f32.xlu0 %v6066_v7  ;;  %v5931_v12 = vpop.f32.mrb[68].mxu0  ;;  %v6069_v16 = vadd.f32 %v16126_v62, %v16123_v8 }
0x12d5   : > { %v12180_v58 = vadd.f32 %v5931_v12, %v16107_v30  ;;  %v5933_v39 = vpop.f32.mrb[69].mxu0 }
0x12d6   : > { %v12181_v51 = vadd.f32 %v5933_v39, %v16110_v4  ;;  %6070 = vadd.xlane.f32.xlu1 %v6069_v16  ;;  %v5935_v49 = vpop.f32.mrb[70].mxu0 }
0x12d7   : > { %v16135_v57 = vadd.f32 %v13571_v55, %v12180_v58  ;;  %v12182_v38 = vadd.f32 %v5935_v49, %v16107_v30  ;;  %v5937_v41 = vpop.f32.mrb[71].mxu0  ;;  %v13583_v49 = vld [vmem:[%s14148_s23 + $0x80] sm:$0xff] }
0x12d8   : > { %v16139_v26 = vadd.f32 %v13572_v10, %v12181_v51  ;;  %v12183_v44 = vadd.f32 %v5937_v41, %v16110_v4  ;;  %v13584_v10 = vld [vmem:[%s14148_s23 + $0x88] sm:$0xff] }
0x12d9   : > { %v16143_v23 = vadd.f32 %v13573_v22, %v12182_v38 }
0x12da   : > { %v16146_v18 = vadd.f32 %v13574_v52, %v12183_v44  ;;  %v6072_v1 = vadd.f32 %v16139_v26, %v16135_v57  ;;  %v13585_v52 = vld [vmem:[%s14148_s23 + $0x90] sm:$0xff] }
0x12dc   : > { %6073 = vadd.xlane.f32.xlu0 %v6072_v1  ;;  %v5941_v60 = vpop.f32.mrb[72].mxu0  ;;  %v6075_v48 = vadd.f32 %v16146_v18, %v16143_v23 }
0x12dd   : > { %v12184_v46 = vadd.f32 %v5941_v60, %v16107_v30  ;;  %v5943_v21 = vpop.f32.mrb[73].mxu0  ;;  %v13586_v60 = vld [vmem:[%s14148_s23 + $0x98] sm:$0xff] }
0x12de   : > { %v12185_v42 = vadd.f32 %v5943_v21, %v16110_v4  ;;  %6076 = vadd.xlane.f32.xlu1 %v6075_v48  ;;  %v5945_v61 = vpop.f32.mrb[74].mxu0 }
0x12df   : > { %v16155_v6 = vadd.f32 %v13575_v59, %v12184_v46  ;;  %v12186_v3 = vadd.f32 %v5945_v61, %v16107_v30  ;;  %v5947_v28 = vpop.f32.mrb[75].mxu0 }
0x12e0   : > { %v16159_v13 = vadd.f32 %v13576_v34, %v12185_v42  ;;  %v12187_v45 = vadd.f32 %v5947_v28, %v16110_v4  ;;  %v13587_v34 = vld [vmem:[%s14148_s23 + $0xa0] sm:$0xff] }
0x12e1   : > { %v16163_v50 = vadd.f32 %v13577_v63, %v12186_v3 }
0x12e2   : > { %v16166_v24 = vadd.f32 %v13578_v36, %v12187_v45  ;;  %v6078_v27 = vadd.f32 %v16159_v13, %v16155_v6 }
0x12e4   : > { %6079 = vadd.xlane.f32.xlu0 %v6078_v27  ;;  %v5951_v25 = vpop.f32.mrb[76].mxu0  ;;  %v6081_v5 = vadd.f32 %v16166_v24, %v16163_v50  ;;  %v13588_v27 = vld [vmem:[%s14148_s23 + $0xa8] sm:$0xff] }
0x12e5   : > { %v12188_v29 = vadd.f32 %v5951_v25, %v16107_v30  ;;  %v5953_v14 = vpop.f32.mrb[77].mxu0 }
0x12e6   : > { %v12189_v33 = vadd.f32 %v5953_v14, %v16110_v4  ;;  %6082 = vadd.xlane.f32.xlu1 %v6081_v5  ;;  %v5955_v2 = vpop.f32.mrb[78].mxu0 }
0x12e7   : > { %v16175_v35 = vadd.f32 %v13579_v0, %v12188_v29  ;;  %v12190_v53 = vadd.f32 %v5955_v2, %v16107_v30  ;;  %v5957_v20 = vpop.f32.mrb[79].mxu0  ;;  %v13589_v29 = vld [vmem:[%s14148_s23 + $0xb0] sm:$0xff] }
0x12e8   : > { %v16179_v54 = vadd.f32 %v13580_v31, %v12189_v33  ;;  %v12191_v15 = vadd.f32 %v5957_v20, %v16110_v4  ;;  %v13590_v33 = vld [vmem:[%s14148_s23 + $0xb8] sm:$0xff] }
0x12e9   : > { %v16183_v40 = vadd.f32 %v13581_v17, %v12190_v53 }
0x12ea   : > { %v16186_v32 = vadd.f32 %v13582_v11, %v12191_v15  ;;  %v6084_v37 = vadd.f32 %v16179_v54, %v16175_v35 }
0x12ec   : > { %6085 = vadd.xlane.f32.xlu0 %v6084_v37  ;;  %v5961_v7 = vpop.f32.mrb[80].mxu0  ;;  %v6087_v12 = vadd.f32 %v16186_v32, %v16183_v40  ;;  %v13591_v37 = vld [vmem:[%s14148_s23 + $0xc0] sm:$0xff] }
0x12ed   : > { %v12192_v16 = vadd.f32 %v5961_v7, %v16107_v30  ;;  %v5963_v58 = vpop.f32.mrb[81].mxu0 }
0x12ee   : > { %v12193_v39 = vadd.f32 %v5963_v58, %v16110_v4  ;;  %6088 = vadd.xlane.f32.xlu1 %v6087_v12  ;;  %v5965_v51 = vpop.f32.mrb[82].mxu0  ;;  %v13592_v58 = vld [vmem:[%s14148_s23 + $0xc8] sm:$0xff] }
0x12ef   : > { %v16195_v55 = vadd.f32 %v13583_v49, %v12192_v16  ;;  %v12194_v38 = vadd.f32 %v5965_v51, %v16107_v30  ;;  %v5967_v41 = vpop.f32.mrb[83].mxu0  ;;  %v13593_v49 = vld [vmem:[%s14148_s23 + $0xd0] sm:$0xff] }
0x12f0   : > { %v16199_v44 = vadd.f32 %v13584_v10, %v12193_v39  ;;  %v12195_v22 = vadd.f32 %v5967_v41, %v16110_v4  ;;  %v13594_v41 = vld [vmem:[%s14148_s23 + $0xd8] sm:$0xff] }
0x12f1   : > { %v16203_v1 = vadd.f32 %v13585_v52, %v12194_v38 }
0x12f2   : > { %v16206_v48 = vadd.f32 %v13586_v60, %v12195_v22  ;;  %v6090_v46 = vadd.f32 %v16199_v44, %v16195_v55 }
0x12f4   : > { %6091 = vadd.xlane.f32.xlu0 %v6090_v46  ;;  %v5971_v21 = vpop.f32.mrb[84].mxu0  ;;  %v6093_v42 = vadd.f32 %v16206_v48, %v16203_v1 }
0x12f5   : > { %v12196_v61 = vadd.f32 %v5971_v21, %v16107_v30  ;;  %v5973_v59 = vpop.f32.mrb[85].mxu0 }
0x12f6   : > { %v12197_v3 = vadd.f32 %v5973_v59, %v16110_v4  ;;  %6094 = vadd.xlane.f32.xlu1 %v6093_v42  ;;  %v5975_v28 = vpop.f32.mrb[86].mxu0  ;;  %v13595_v59 = vld [vmem:[%s14148_s23 + $0xe0] sm:$0xff] }
0x12f7   : > { %v16215_v45 = vadd.f32 %v13587_v34, %v12196_v61  ;;  %v12198_v63 = vadd.f32 %v5975_v28, %v16107_v30  ;;  %v5977_v36 = vpop.f32.mrb[87].mxu0 }
0x12f8   : > { %v16219_v25 = vadd.f32 %v13588_v27, %v12197_v3  ;;  %v12199_v5 = vadd.f32 %v5977_v36, %v16110_v4 }
0x12f9   : > { %v16223_v14 = vadd.f32 %v13589_v29, %v12198_v63  ;;  %v13596_v63 = vld [vmem:[%s14148_s23 + $0xe8] sm:$0xff] }
0x12fa   : > { %v16226_v2 = vadd.f32 %v13590_v33, %v12199_v5  ;;  %v6096_v0 = vadd.f32 %v16219_v25, %v16215_v45  ;;  %v13597_v5 = vld [vmem:[%s14148_s23 + $0xf0] sm:$0xff]  ;;  %v13598_v33 = vld [vmem:[%s14148_s23 + $0xf8] sm:$0xff]  ;;  %s19949_s23 = sld [smem:[#allocation118_spill]] }
0x12fc   : > { %6097 = vadd.xlane.f32.xlu0 %v6096_v0  ;;  %v5981_v53 = vpop.f32.mrb[88].mxu0  ;;  %v6099_v20 = vadd.f32 %v16226_v2, %v16223_v14 }
0x12fd   : > { %v12200_v31 = vadd.f32 %v5981_v53, %v16107_v30  ;;  %v5983_v15 = vpop.f32.mrb[89].mxu0 }
0x12fe   : > { %v12201_v17 = vadd.f32 %v5983_v15, %v16110_v4  ;;  %6100 = vadd.xlane.f32.xlu1 %v6099_v20  ;;  %v5985_v11 = vpop.f32.mrb[90].mxu0 }
0x12ff   : > { %v16235_v7 = vadd.f32 %v13591_v37, %v12200_v31  ;;  %v12202_v12 = vadd.f32 %v5985_v11, %v16107_v30  ;;  %v5987_v16 = vpop.f32.mrb[91].mxu0  ;;  %v6426_v31 = vld [vmem:[%s19542_s11 + $0x8] sm:$0xff]  ;;  %v6433_v37 = vld [vmem:[%s19542_s11 + $0x40] sm:$0xff] }
0x1300   : > { %v16239_v39 = vadd.f32 %v13592_v58, %v12201_v17  ;;  %v12203_v51 = vadd.f32 %v5987_v16, %v16110_v4  ;;  %v6430_v11 = vld [vmem:[%s19542_s11 + $0x28] sm:$0xff] }
0x1301   : > { %v16243_v38 = vadd.f32 %v13593_v49, %v12202_v12  ;;  %v6437_v12 = vld [vmem:[%s19542_s11 + $0x60] sm:$0xff]  ;;  %v10763_v16 = vcombine.low %v6426_v31, %v6430_v11  ;;  %v10764_v58 = vcombine.high %v6426_v31, %v6430_v11  ;;  %v6434_v49 = vld [vmem:[%s19542_s11 + $0x48] sm:$0xff] }
0x1302   : > { %v16246_v10 = vadd.f32 %v13594_v41, %v12203_v51  ;;  %v6102_v22 = vadd.f32 %v16239_v39, %v16235_v7  ;;  %v10770_v51 = vcombine.high %v6433_v37, %v6437_v12  ;;  %v6438_v41 = vld [vmem:[%s19542_s11 + $0x68] sm:$0xff]  ;;  %v6461_v31 = vld [vmem:[%s19542_s11 + $0x120] sm:$0xff] }
0x1303   : > { %7348 = vmatprep.subr.bf16.mxu0 %v10764_v58  ;;  %v6465_v58 = vld [vmem:[%s19542_s11 + $0x140] sm:$0xff] }
0x1304   : > { %6103 = vadd.xlane.f32.xlu0 %v6102_v22  ;;  %v5991_v52 = vpop.f32.mrb[92].mxu0  ;;  %v6105_v60 = vadd.f32 %v16246_v10, %v16243_v38  ;;  %v6441_v22 = vld [vmem:[%s19542_s11 + $0x80] sm:$0xff]  ;;  %7349 = vmatpush1.bf16.msra.mxu0 %v10763_v16 }
0x1305   : > { %v12204_v46 = vadd.f32 %v5991_v52, %v16107_v30  ;;  %v5993_v21 = vpop.f32.mrb[93].mxu0  ;;  %v10772_v52 = vcombine.high %v6434_v49, %v6438_v41 }
0x1306   : > { %v12205_v42 = vadd.f32 %v5993_v21, %v16110_v4  ;;  %6106 = vadd.xlane.f32.xlu1 %v6105_v60  ;;  %v5995_v61 = vpop.f32.mrb[94].mxu0  ;;  %v6445_v60 = vld [vmem:[%s19542_s11 + $0xa0] sm:$0xff]  ;;  %v6446_v21 = vld [vmem:[%s19542_s11 + $0xa8] sm:$0xff] }
0x1307   : > { %v16255_v3 = vadd.f32 %v13595_v59, %v12204_v46  ;;  %v12206_v28 = vadd.f32 %v5995_v61, %v16107_v30  ;;  %v5997_v34 = vpop.f32.mrb[95].mxu0  ;;  %v6425_v30 = vld [vmem:[%s19542_s11] sm:$0xff]  ;;  %v6442_v46 = vld [vmem:[%s19542_s11 + $0x88] sm:$0xff]  ;;  %v10771_v61 = vcombine.low %v6434_v49, %v6438_v41  ;;  %v10778_v59 = vcombine.high %v6441_v22, %v6445_v60  ;;  %7350 = vmatprep.subr.bf16.mxu0 %v10772_v52 }
0x1308   : > { %v16259_v36 = vadd.f32 %v13596_v63, %v12205_v42  ;;  %v12207_v27 = vadd.f32 %v5997_v34, %v16110_v4  ;;  %v6429_v4 = vld [vmem:[%s19542_s11 + $0x20] sm:$0xff]  ;;  %v10769_v42 = vcombine.low %v6433_v37, %v6437_v12  ;;  %v6466_v49 = vld [vmem:[%s19542_s11 + $0x148] sm:$0xff] }
0x1309   : > { %v16263_v29 = vadd.f32 %v13597_v5, %v12206_v28  ;;  %v10761_v15 = vcombine.low %v6425_v30, %v6429_v4  ;;  %v10762_v17 = vcombine.high %v6425_v30, %v6429_v4  ;;  %v10780_v28 = vcombine.high %v6442_v46, %v6446_v21  ;;  %v6449_v34 = vld [vmem:[%s19542_s11 + $0xc0] sm:$0xff]  ;;  %v6454_v5 = vld [vmem:[%s19542_s11 + $0xe8] sm:$0xff]  ;;  %7351 = vmatpush1.bf16.msra.mxu0 %v10771_v61 }
0x130a   : > { %v16266_v0 = vadd.f32 %v13598_v33, %v12207_v27  ;;  %v6108_v53 = vadd.f32 %v16259_v36, %v16255_v3  ;;  %v6453_v63 = vld [vmem:[%s19542_s11 + $0xe0] sm:$0xff]  ;;  %v6450_v27 = vld [vmem:[%s19542_s11 + $0xc8] sm:$0xff]  ;;  %v10777_v33 = vcombine.low %v6441_v22, %v6445_v60 }
0x130b   : > { %7235 = vmatprep.subr.bf16.mxu1 %v10762_v17  ;;  %7352 = vmatprep.subr.bf16.mxu0 %v10780_v28  ;;  %v10788_v30 = vcombine.high %v6450_v27, %v6454_v5  ;;  %v6457_v4 = vld [vmem:[%s19542_s11 + $0x100] sm:$0xff]  ;;  %v6462_v17 = vld [vmem:[%s19542_s11 + $0x128] sm:$0xff]  ;;  %v10785_v11 = vcombine.low %v6449_v34, %v6453_v63  ;;  %v10787_v37 = vcombine.low %v6450_v27, %v6454_v5 }
0x130c   : > { %6109 = vadd.xlane.f32.xlu0 %v6108_v53  ;;  %v6111_v20 = vadd.f32 %v16266_v0, %v16263_v29  ;;  %7236 = vmatpush1.bf16.msra.mxu1 %v10761_v15  ;;  %v10779_v53 = vcombine.low %v6442_v46, %v6446_v21  ;;  %v6458_v15 = vld [vmem:[%s19542_s11 + $0x108] sm:$0xff]  ;;  %v10794_v12 = vcombine.high %v6457_v4, %v6461_v31  ;;  %v6473_v21 = vld [vmem:[%s19542_s11 + $0x180] sm:$0xff] }
0x130d   : > { %7237 = vmatprep.subr.bf16.mxu1 %v10770_v51  ;;  %v10796_v16 = vcombine.high %v6458_v15, %v6462_v17  ;;  %v6469_v51 = vld [vmem:[%s19542_s11 + $0x160] sm:$0xff]  ;;  %v6470_v41 = vld [vmem:[%s19542_s11 + $0x168] sm:$0xff]  ;;  %v10793_v22 = vcombine.low %v6457_v4, %v6461_v31  ;;  %v10795_v52 = vcombine.low %v6458_v15, %v6462_v17 }
0x130e   : > { %6112 = vadd.xlane.f32.xlu1 %v6111_v20  ;;  %v10786_v20 = vcombine.high %v6449_v34, %v6453_v63  ;;  %7353 = vmatpush1.bf16.msra.mxu0 %v10779_v53  ;;  %v10802_v60 = vcombine.high %v6465_v58, %v6469_v51  ;;  %v10804_v46 = vcombine.high %v6466_v49, %v6470_v41  ;;  %v6474_v61 = vld [vmem:[%s19542_s11 + $0x188] sm:$0xff]  ;;  %v6481_v5 = vld [vmem:[%s19542_s11 + $0x1c0] sm:$0xff] }
0x130f   : > { %7354 = vmatprep.subr.bf16.mxu0 %v10788_v30  ;;  %v10801_v28 = vcombine.low %v6465_v58, %v6469_v51  ;;  %v10803_v34 = vcombine.low %v6466_v49, %v6470_v41  ;;  %v6482_v53 = vld [vmem:[%s19542_s11 + $0x1c8] sm:$0xff]  ;;  %v6489_v17 = vld [vmem:[%s19542_s11 + $0x200] sm:$0xff] }
0x1310   : > { %7238 = vmatpush1.bf16.msra.mxu1 %v10769_v42  ;;  %v6477_v42 = vld [vmem:[%s19542_s11 + $0x1a0] sm:$0xff] }
0x1311   : > { %7239 = vmatprep.subr.bf16.mxu1 %v10778_v59  ;;  %v6478_v59 = vld [vmem:[%s19542_s11 + $0x1a8] sm:$0xff]  ;;  %v10810_v63 = vcombine.high %v6473_v21, %v6477_v42  ;;  %v10809_v30 = vcombine.low %v6473_v21, %v6477_v42  ;;  %v6497_v41 = vld [vmem:[%s19542_s11 + $0x240] sm:$0xff] }
0x1312   : > { %7355 = vmatpush1.bf16.msra.mxu0 %v10787_v37  ;;  %v10812_v27 = vcombine.high %v6474_v61, %v6478_v59  ;;  %v10811_v4 = vcombine.low %v6474_v61, %v6478_v59  ;;  %v6490_v37 = vld [vmem:[%s19542_s11 + $0x208] sm:$0xff] }
0x1313   : > { %7356 = vmatprep.subr.bf16.mxu0 %v10796_v16 }
0x1314   : > { %7240 = vmatpush1.bf16.msra.mxu1 %v10777_v33  ;;  %v6485_v33 = vld [vmem:[%s19542_s11 + $0x1e0] sm:$0xff] }
0x1315   : > { %7241 = vmatprep.subr.bf16.mxu1 %v10786_v20  ;;  %v6486_v20 = vld [vmem:[%s19542_s11 + $0x1e8] sm:$0xff]  ;;  %v10818_v31 = vcombine.high %v6481_v5, %v6485_v33  ;;  %v10817_v16 = vcombine.low %v6481_v5, %v6485_v33 }
0x1316   : > { %7357 = vmatpush1.bf16.msra.mxu0 %v10795_v52  ;;  %v10820_v15 = vcombine.high %v6482_v53, %v6486_v20  ;;  %v10819_v58 = vcombine.low %v6482_v53, %v6486_v20  ;;  %v6498_v52 = vld [vmem:[%s19542_s11 + $0x248] sm:$0xff] }
0x1317   : > { %7358 = vmatprep.subr.bf16.mxu0 %v10804_v46 }
0x1318   : > { %7242 = vmatpush1.bf16.msra.mxu1 %v10785_v11  ;;  %v6493_v11 = vld [vmem:[%s19542_s11 + $0x220] sm:$0xff] }
0x1319   : > { %7243 = vmatprep.subr.bf16.mxu1 %v10794_v12  ;;  %v6494_v12 = vld [vmem:[%s19542_s11 + $0x228] sm:$0xff]  ;;  %v10826_v51 = vcombine.high %v6489_v17, %v6493_v11  ;;  %v10825_v46 = vcombine.low %v6489_v17, %v6493_v11 }
0x131a   : > { %7359 = vmatpush1.bf16.msra.mxu0 %v10803_v34  ;;  %v10828_v49 = vcombine.high %v6490_v37, %v6494_v12  ;;  %v10827_v21 = vcombine.low %v6490_v37, %v6494_v12 }
0x131b   : > { %7360 = vmatprep.subr.bf16.mxu0 %v10812_v27 }
0x131c   : > { %7244 = vmatpush1.bf16.msra.mxu1 %v10793_v22  ;;  %v6501_v22 = vld [vmem:[%s19542_s11 + $0x260] sm:$0xff] }
0x131d   : > { %7245 = vmatprep.subr.bf16.mxu1 %v10802_v60  ;;  %v6502_v60 = vld [vmem:[%s19542_s11 + $0x268] sm:$0xff]  ;;  %v10834_v42 = vcombine.high %v6497_v41, %v6501_v22  ;;  %v10833_v59 = vcombine.low %v6497_v41, %v6501_v22 }
0x131e   : > { %7361 = vmatpush1.bf16.msra.mxu0 %v10811_v4  ;;  %v10836_v61 = vcombine.high %v6498_v52, %v6502_v60 }
0x131f   : > { %7362 = vmatprep.subr.bf16.mxu0 %v10820_v15 }
0x1320   : > { %7246 = vmatpush1.bf16.msra.mxu1 %v10801_v28  ;;  %v10835_v28 = vcombine.low %v6498_v52, %v6502_v60 }
0x1321   : > { %7247 = vmatprep.subr.bf16.mxu1 %v10810_v63 }
0x1322   : > { %7363 = vmatpush1.bf16.msra.mxu0 %v10819_v58 }
0x1323   : > { %7364 = vmatprep.subr.bf16.mxu0 %v10828_v49 }
0x1324   : > { %7248 = vmatpush1.bf16.msra.mxu1 %v10809_v30 }
0x1325   : > { %7249 = vmatprep.subr.bf16.mxu1 %v10818_v31 }
0x1326   : > { %7365 = vmatpush1.bf16.msra.mxu0 %v10827_v21 }
0x1327   : > { %7366 = vmatprep.subr.bf16.mxu0 %v10836_v61 }
0x1328   : > { %7250 = vmatpush1.bf16.msra.mxu1 %v10817_v16 }
0x1329   : > { %7251 = vmatprep.subr.bf16.mxu1 %v10826_v51 }
0x132a   : > { %7367 = vmatpush1.bf16.msra.mxu0 %v10835_v28 }
0x132c   : > { %7252 = vmatpush1.bf16.msra.mxu1 %v10825_v46 }
0x132d   : > { %7253 = vmatprep.subr.bf16.mxu1 %v10834_v42 }
0x1330   : > { %7254 = vmatpush1.bf16.msra.mxu1 %v10833_v59 }
0x1361   : > { %v6068_v34 = vpop.xlane.xlu0 %6067 }
0x1362   : > { %v6115_v63 = vmul.f32 0.00390625, %v6068_v34 }
0x1363   : > { %v6071_v27 = vpop.xlane.xlu1 %6070 }
0x1364   : > { %v16393_v5 = vsub.f32 %v16115_v19, %v6115_v63  ;;  %v16396_v33 = vsub.f32 %v16119_v47, %v6115_v63  ;;  %v6116_v53 = vmul.f32 0.00390625, %v6071_v27  ;;  %v6506_v63 = vld [vmem:[%s19542_s11 + $0x288] sm:$0xff] }
0x1366   : > { %v6163_v20 = vmul.f32 %v16393_v5, %v16393_v5  ;;  %v6164_v30 = vmul.f32 %v16396_v33, %v16396_v33  ;;  %v16403_v4 = vsub.f32 %v16123_v8, %v6116_v53  ;;  %v16406_v31 = vsub.f32 %v16126_v62, %v6116_v53 }
0x1368   : > { %v6165_v19 = vmul.f32 %v16403_v4, %v16403_v4  ;;  %v6166_v47 = vmul.f32 %v16406_v31, %v16406_v31  ;;  %v6195_v15 = vadd.f32 %v6164_v30, %v6163_v20  ;;  %v6510_v20 = vld [vmem:[%s19542_s11 + $0x2a8] sm:$0xff] }
0x1369   : > { %v6074_v17 = vpop.xlane.xlu0 %6073 }
0x136a   : > { %v6117_v11 = vmul.f32 0.00390625, %v6074_v17  ;;  %6196 = vadd.xlane.f32.xlu0 %v6195_v15  ;;  %v6198_v37 = vadd.f32 %v6166_v47, %v6165_v19  ;;  %v10843_v47 = vcombine.low %v6506_v63, %v6510_v20  ;;  %v10844_v15 = vcombine.high %v6506_v63, %v6510_v20 }
0x136b   : > { %v6077_v12 = vpop.xlane.xlu1 %6076 }
0x136c   : > { %v16413_v16 = vsub.f32 %v16135_v57, %v6117_v11  ;;  %v16416_v8 = vsub.f32 %v16139_v26, %v6117_v11  ;;  %v6118_v62 = vmul.f32 0.00390625, %v6077_v12  ;;  %6199 = vadd.xlane.f32.xlu1 %v6198_v37  ;;  %7368 = vmatprep.subr.bf16.mxu0 %v10844_v15  ;;  %v6513_v12 = vld [vmem:[%s19542_s11 + $0x2c0] sm:$0xff] }
0x136d   : > { %7369 = vmatpush1.bf16.msra.mxu0 %v10843_v47 }
0x136e   : > { %v6167_v58 = vmul.f32 %v16413_v16, %v16413_v16  ;;  %v6168_v51 = vmul.f32 %v16416_v8, %v16416_v8  ;;  %v16423_v49 = vsub.f32 %v16143_v23, %v6118_v62  ;;  %v16426_v41 = vsub.f32 %v16146_v18, %v6118_v62  ;;  %v6517_v62 = vld [vmem:[%s19542_s11 + $0x2e0] sm:$0xff] }
0x1370   : > { %v6169_v57 = vmul.f32 %v16423_v49, %v16423_v49  ;;  %v6170_v26 = vmul.f32 %v16426_v41, %v16426_v41  ;;  %v6201_v22 = vadd.f32 %v6168_v51, %v6167_v58  ;;  %v6514_v58 = vld [vmem:[%s19542_s11 + $0x2c8] sm:$0xff] }
0x1371   : > { %v6080_v52 = vpop.xlane.xlu0 %6079 }
0x1372   : > { %v6119_v60 = vmul.f32 0.00390625, %v6080_v52  ;;  %6202 = vadd.xlane.f32.xlu0 %v6201_v22  ;;  %v6204_v46 = vadd.f32 %v6170_v26, %v6169_v57  ;;  %v10850_v22 = vcombine.high %v6513_v12, %v6517_v62  ;;  %v6518_v52 = vld [vmem:[%s19542_s11 + $0x2e8] sm:$0xff] }
0x1373   : > { %v6083_v21 = vpop.xlane.xlu1 %6082 }
0x1374   : > { %v16433_v42 = vsub.f32 %v16155_v6, %v6119_v60  ;;  %v16436_v23 = vsub.f32 %v16159_v13, %v6119_v60  ;;  %v6120_v18 = vmul.f32 0.00390625, %v6083_v21  ;;  %6205 = vadd.xlane.f32.xlu1 %v6204_v46  ;;  %v6505_v6 = vld [vmem:[%s19542_s11 + $0x280] sm:$0xff]  ;;  %v10849_v60 = vcombine.low %v6513_v12, %v6517_v62 }
0x1375   : > { %v6509_v13 = vld [vmem:[%s19542_s11 + $0x2a0] sm:$0xff]  ;;  %v10851_v46 = vcombine.low %v6514_v58, %v6518_v52  ;;  %v10852_v21 = vcombine.high %v6514_v58, %v6518_v52 }
0x1376   : > { %v6171_v61 = vmul.f32 %v16433_v42, %v16433_v42  ;;  %v6172_v59 = vmul.f32 %v16436_v23, %v16436_v23  ;;  %v16443_v28 = vsub.f32 %v16163_v50, %v6120_v18  ;;  %v16446_v34 = vsub.f32 %v16166_v24, %v6120_v18 }
0x1377   : > { %v10842_v53 = vcombine.high %v6505_v6, %v6509_v13  ;;  %v10841_v19 = vcombine.low %v6505_v6, %v6509_v13  ;;  %7370 = vmatprep.subr.bf16.mxu0 %v10852_v21  ;;  %v6525_v6 = vld [vmem:[%s19542_s11 + $0x320] sm:$0xff]  ;;  %v6522_v13 = vld [vmem:[%s19542_s11 + $0x308] sm:$0xff] }
0x1378   : > { %v6173_v27 = vmul.f32 %v16443_v28, %v16443_v28  ;;  %v6174_v50 = vmul.f32 %v16446_v34, %v16446_v34  ;;  %v6207_v24 = vadd.f32 %v6172_v59, %v6171_v61  ;;  %v6521_v59 = vld [vmem:[%s19542_s11 + $0x300] sm:$0xff]  ;;  %7371 = vmatpush1.bf16.msra.mxu0 %v10851_v46 }
0x1379   : > { %v6086_v30 = vpop.xlane.xlu0 %6085  ;;  %7255 = vmatprep.subr.bf16.mxu1 %v10842_v53  ;;  %v10857_v53 = vcombine.low %v6521_v59, %v6525_v6 }
0x137a   : > { %v6121_v17 = vmul.f32 0.00390625, %v6086_v30  ;;  %6208 = vadd.xlane.f32.xlu0 %v6207_v24  ;;  %v6210_v11 = vadd.f32 %v6174_v50, %v6173_v27  ;;  %7256 = vmatpush1.bf16.msra.mxu1 %v10841_v19  ;;  %v10858_v27 = vcombine.high %v6521_v59, %v6525_v6  ;;  %v6526_v50 = vld [vmem:[%s19542_s11 + $0x328] sm:$0xff]  ;;  %v6541_v59 = vld [vmem:[%s19542_s11 + $0x3a0] sm:$0xff] }
0x137b   : > { %v6089_v37 = vpop.xlane.xlu1 %6088  ;;  %7257 = vmatprep.subr.bf16.mxu1 %v10850_v22  ;;  %v10859_v20 = vcombine.low %v6522_v13, %v6526_v50  ;;  %v10860_v30 = vcombine.high %v6522_v13, %v6526_v50  ;;  %v6534_v22 = vld [vmem:[%s19542_s11 + $0x368] sm:$0xff] }
0x137c   : > { %v16474_v51 = vsub.f32 %v16175_v35, %v6121_v17  ;;  %v16477_v57 = vsub.f32 %v16179_v54, %v6121_v17  ;;  %v6122_v26 = vmul.f32 0.00390625, %v6089_v37  ;;  %6211 = vadd.xlane.f32.xlu1 %v6210_v11  ;;  %v6529_v17 = vld [vmem:[%s19542_s11 + $0x340] sm:$0xff]  ;;  %v6530_v37 = vld [vmem:[%s19542_s11 + $0x348] sm:$0xff] }
0x137d   : > { %7372 = vmatprep.subr.bf16.mxu0 %v10860_v30  ;;  %v6533_v11 = vld [vmem:[%s19542_s11 + $0x360] sm:$0xff]  ;;  %v10868_v46 = vcombine.high %v6530_v37, %v6534_v22  ;;  %v6538_v6 = vld [vmem:[%s19542_s11 + $0x388] sm:$0xff] }
0x137e   : > { %v6175_v18 = vmul.f32 %v16474_v51, %v16474_v51  ;;  %v6176_v35 = vmul.f32 %v16477_v57, %v16477_v57  ;;  %v16487_v54 = vsub.f32 %v16183_v40, %v6122_v26  ;;  %v16490_v61 = vsub.f32 %v16186_v32, %v6122_v26  ;;  %7258 = vmatpush1.bf16.msra.mxu1 %v10849_v60 }
0x137f   : > { %7259 = vmatprep.subr.bf16.mxu1 %v10858_v27  ;;  %7373 = vmatpush1.bf16.msra.mxu0 %v10859_v20  ;;  %v10866_v26 = vcombine.high %v6529_v17, %v6533_v11  ;;  %v10865_v52 = vcombine.low %v6529_v17, %v6533_v11  ;;  %v10867_v60 = vcombine.low %v6530_v37, %v6534_v22 }
0x1380   : > { %v6177_v40 = vmul.f32 %v16487_v54, %v16487_v54  ;;  %v6178_v32 = vmul.f32 %v16490_v61, %v16490_v61  ;;  %v6213_v63 = vadd.f32 %v6176_v35, %v6175_v18  ;;  %7374 = vmatprep.subr.bf16.mxu0 %v10868_v46  ;;  %v6537_v35 = vld [vmem:[%s19542_s11 + $0x380] sm:$0xff] }
0x1381   : > { %v6092_v24 = vpop.xlane.xlu0 %6091  ;;  %v10873_v27 = vcombine.low %v6537_v35, %v6541_v59 }
0x1382   : > { %v6123_v19 = vmul.f32 0.00390625, %v6092_v24  ;;  %6214 = vadd.xlane.f32.xlu0 %v6213_v63  ;;  %v6216_v47 = vadd.f32 %v6178_v32, %v6177_v40  ;;  %7260 = vmatpush1.bf16.msra.mxu1 %v10857_v53  ;;  %v10874_v40 = vcombine.high %v6537_v35, %v6541_v59  ;;  %v6542_v32 = vld [vmem:[%s19542_s11 + $0x3a8] sm:$0xff]  ;;  %v16588_v35 = vld [vmem:[%s19542_s11 + $0x30] sm:$0xff] }
0x1383   : > { %v6095_v15 = vpop.xlane.xlu1 %6094  ;;  %7261 = vmatprep.subr.bf16.mxu1 %v10866_v26  ;;  %7375 = vmatpush1.bf16.msra.mxu0 %v10867_v60  ;;  %v10875_v50 = vcombine.low %v6538_v6, %v6542_v32  ;;  %v10876_v24 = vcombine.high %v6538_v6, %v6542_v32  ;;  %v6550_v26 = vld [vmem:[%s19542_s11 + $0x3e8] sm:$0xff] }
0x1384   : > { %v16518_v12 = vsub.f32 %v16195_v55, %v6123_v19  ;;  %v16521_v62 = vsub.f32 %v16199_v44, %v6123_v19  ;;  %v6124_v58 = vmul.f32 0.00390625, %v6095_v15  ;;  %6217 = vadd.xlane.f32.xlu1 %v6216_v47  ;;  %v6545_v19 = vld [vmem:[%s19542_s11 + $0x3c0] sm:$0xff]  ;;  %v6546_v15 = vld [vmem:[%s19542_s11 + $0x3c8] sm:$0xff] }
0x1385   : > { %7376 = vmatprep.subr.bf16.mxu0 %v10876_v24  ;;  %v6549_v47 = vld [vmem:[%s19542_s11 + $0x3e0] sm:$0xff]  ;;  %v10884_v60 = vcombine.high %v6546_v15, %v6550_v26 }
0x1386   : > { %v6179_v21 = vmul.f32 %v16518_v12, %v16518_v12  ;;  %v6180_v55 = vmul.f32 %v16521_v62, %v16521_v62  ;;  %v16531_v44 = vsub.f32 %v16203_v1, %v6124_v58  ;;  %v16534_v18 = vsub.f32 %v16206_v48, %v6124_v58  ;;  %7262 = vmatpush1.bf16.msra.mxu1 %v10865_v52 }
0x1387   : > { %7263 = vmatprep.subr.bf16.mxu1 %v10874_v40  ;;  %7377 = vmatpush1.bf16.msra.mxu0 %v10875_v50  ;;  %v10882_v58 = vcombine.high %v6545_v19, %v6549_v47  ;;  %v10881_v22 = vcombine.low %v6545_v19, %v6549_v47  ;;  %v10883_v52 = vcombine.low %v6546_v15, %v6550_v26 }
0x1388   : > { %v6181_v1 = vmul.f32 %v16531_v44, %v16531_v44  ;;  %v6182_v48 = vmul.f32 %v16534_v18, %v16534_v18  ;;  %v6219_v13 = vadd.f32 %v6180_v55, %v6179_v21  ;;  %7378 = vmatprep.subr.bf16.mxu0 %v10884_v60  ;;  %v16583_v55 = vld [vmem:[%s19542_s11 + $0x10] sm:$0xff] }
0x1389   : > { %v6098_v63 = vpop.xlane.xlu0 %6097  ;;  %v10765_v40 = vcombine.low %v16583_v55, %v16588_v35 }
0x138a   : > { %v6125_v53 = vmul.f32 0.00390625, %v6098_v63  ;;  %6220 = vadd.xlane.f32.xlu0 %v6219_v13  ;;  %v6222_v20 = vadd.f32 %v6182_v48, %v6181_v1  ;;  %7264 = vmatpush1.bf16.msra.mxu1 %v10873_v27  ;;  %v10766_v1 = vcombine.high %v16583_v55, %v16588_v35  ;;  %v16604_v48 = vld [vmem:[%s19542_s11 + $0x38] sm:$0xff]  ;;  %v16755_v55 = vld [vmem:[%s19542_s11 + $0xd0] sm:$0xff] }
0x138b   : > { %v6101_v30 = vpop.xlane.xlu1 %6100  ;;  %7265 = vmatprep.subr.bf16.mxu1 %v10882_v58  ;;  %7379 = vmatpush1.bf16.msra.mxu0 %v10883_v52 }
0x138c   : > { %v16562_v17 = vsub.f32 %v16215_v45, %v6125_v53  ;;  %v16565_v11 = vsub.f32 %v16219_v25, %v6125_v53  ;;  %v6126_v37 = vmul.f32 0.00390625, %v6101_v30  ;;  %6223 = vadd.xlane.f32.xlu1 %v6222_v20 }
0x138e   : > { %v6183_v46 = vmul.f32 %v16562_v17, %v16562_v17  ;;  %v6184_v45 = vmul.f32 %v16565_v11, %v16565_v11  ;;  %v16575_v25 = vsub.f32 %v16223_v14, %v6126_v37  ;;  %v16578_v21 = vsub.f32 %v16226_v2, %v6126_v37  ;;  %7266 = vmatpush1.bf16.msra.mxu1 %v10881_v22  ;;  %v16593_v14 = vld [vmem:[%s19542_s11 + $0x18] sm:$0xff] }
0x138f   : > { %v10767_v32 = vcombine.low %v16593_v14, %v16604_v48  ;;  %v10768_v63 = vcombine.high %v16593_v14, %v16604_v48  ;;  %7461 = vmatprep.subr.bf16.mxu1 %v10766_v1 }
0x1390   : > { %v6185_v2 = vmul.f32 %v16575_v25, %v16575_v25  ;;  %v6186_v59 = vmul.f32 %v16578_v21, %v16578_v21  ;;  %v6225_v6 = vadd.f32 %v6184_v45, %v6183_v46 }
0x1391   : > { %v6104_v13 = vpop.xlane.xlu0 %6103  ;;  %7574 = vmatprep.subr.bf16.mxu0 %v10768_v63 }
0x1392   : > { %v6127_v27 = vmul.f32 0.00390625, %v6104_v13  ;;  %6226 = vadd.xlane.f32.xlu0 %v6225_v6  ;;  %v6228_v50 = vadd.f32 %v6186_v59, %v6185_v2 }
0x1393   : > { %v6107_v24 = vpop.xlane.xlu1 %6106 }
0x1394   : > { %v16613_v53 = vsub.f32 %v16235_v7, %v6127_v27  ;;  %v16616_v20 = vsub.f32 %v16239_v39, %v6127_v27  ;;  %v6128_v30 = vmul.f32 0.00390625, %v6107_v24  ;;  %6229 = vadd.xlane.f32.xlu1 %v6228_v50 }
0x1396   : > { %v6187_v19 = vmul.f32 %v16613_v53, %v16613_v53  ;;  %v6188_v47 = vmul.f32 %v16616_v20, %v16616_v20  ;;  %v16623_v15 = vsub.f32 %v16243_v38, %v6128_v30  ;;  %v16626_v37 = vsub.f32 %v16246_v10, %v6128_v30 }
0x1398   : > { %v6189_v7 = vmul.f32 %v16623_v15, %v16623_v15  ;;  %v6190_v39 = vmul.f32 %v16626_v37, %v16626_v37  ;;  %v6231_v58 = vadd.f32 %v6188_v47, %v6187_v19 }
0x1399   : > { %v6110_v26 = vpop.xlane.xlu0 %6109 }
0x139a   : > { %v6129_v22 = vmul.f32 0.00390625, %v6110_v26  ;;  %6232 = vadd.xlane.f32.xlu0 %v6231_v58  ;;  %v6234_v52 = vadd.f32 %v6190_v39, %v6189_v7  ;;  %v6064_v7 = vld [vmem:[%s19540_s9] sm:$0x3] }
0x139b   : > { %v6113_v60 = vpop.xlane.xlu1 %6112 }
0x139c   : > { %v16633_v46 = vsub.f32 %v16255_v3, %v6129_v22  ;;  %v16636_v38 = vsub.f32 %v16259_v36, %v6129_v22  ;;  %v6130_v10 = vmul.f32 0.00390625, %v6113_v60  ;;  %6235 = vadd.xlane.f32.xlu1 %v6234_v52  ;;  %v6065_v22 = vld [vmem:[%s19665_s17] sm:$0x3]  ;;  %v16659_v52 = vrot.slane %v6064_v7, %v16098_v43 }
0x139d   : > { %v16662_v60 = vrot.slane %v6064_v7, %v16104_v9  ;;  %v6435_v7 = vld [vmem:[%s19542_s11 + $0x50] sm:$0xff] }
0x139e   : > { %v6191_v45 = vmul.f32 %v16633_v46, %v16633_v46  ;;  %v6192_v2 = vmul.f32 %v16636_v38, %v16636_v38  ;;  %v16643_v59 = vsub.f32 %v16263_v29, %v6130_v10  ;;  %v16646_v6 = vsub.f32 %v16266_v0, %v6130_v10 }
0x13a0   : > { %v6193_v3 = vmul.f32 %v16643_v59, %v16643_v59  ;;  %v6194_v36 = vmul.f32 %v16646_v6, %v16646_v6  ;;  %v6237_v1 = vadd.f32 %v6192_v2, %v6191_v45 }
0x13a2   : > { %6238 = vadd.xlane.f32.xlu0 %v6237_v1  ;;  %v6240_v13 = vadd.f32 %v6194_v36, %v6193_v3  ;;  %v16667_v1 = vrot.slane %v6065_v22, %v16098_v43 }
0x13a4   : > { %6241 = vadd.xlane.f32.xlu1 %v6240_v13 }
0x13f7   : > { %v6197_v63 = vpop.xlane.xlu0 %6196 }
0x13f8   : > { %v6243_v27 = vmul.f32 0.00390625, %v6197_v63  ;;  %v16670_v63 = vrot.slane %v6065_v22, %v16104_v9  ;;  %v6436_v22 = vld [vmem:[%s19542_s11 + $0x58] sm:$0xff] }
0x13f9   : > { %v6200_v50 = vpop.xlane.xlu1 %6199 }
0x13fa   : > { %v6259_v24 = vadd.f32 1e-12, %v6243_v27  ;;  %v6244_v30 = vmul.f32 0.00390625, %v6200_v50 }
0x13fc   : > { %13247 = vrsqrt.f32 %v6259_v24  ;;  %v6260_v29 = vadd.f32 1e-12, %v6244_v30 }
0x13fe   : > { %13249 = vrsqrt.f32 %v6260_v29 }
0x13ff   : > { %v6203_v0 = vpop.xlane.xlu0 %6202 }
0x1400   : > { %v6245_v19 = vmul.f32 0.00390625, %v6203_v0 }
0x1401   : > { %v6206_v47 = vpop.xlane.xlu1 %6205 }
0x1402   : > { %v6261_v39 = vadd.f32 1e-12, %v6245_v19  ;;  %v6246_v58 = vmul.f32 0.00390625, %v6206_v47 }
0x1404   : > { %13251 = vrsqrt.f32 %v6261_v39  ;;  %v6262_v26 = vadd.f32 1e-12, %v6246_v58 }
0x1406   : > { %v13248_v10 = vpop.eup %13247  ;;  %13253 = vrsqrt.f32 %v6262_v26  ;;  %v6439_v26 = vld [vmem:[%s19542_s11 + $0x70] sm:$0xff] }
0x1407   : > { %v6291_v45 = vmul.f32 %v13248_v10, %v16393_v5  ;;  %v6292_v2 = vmul.f32 %v13248_v10, %v16396_v33  ;;  %v6209_v3 = vpop.xlane.xlu0 %6208  ;;  %v6440_v10 = vld [vmem:[%s19542_s11 + $0x78] sm:$0xff] }
0x1408   : > { %v13250_v36 = vpop.eup %13249  ;;  %v6247_v13 = vmul.f32 0.00390625, %v6209_v3 }
0x1409   : > { %v6334_v27 = vmul.f32 %v16659_v52, %v6291_v45  ;;  %v6293_v50 = vmul.f32 %v13250_v36, %v16403_v4  ;;  %v6294_v24 = vmul.f32 %v13250_v36, %v16406_v31  ;;  %v6212_v30 = vpop.xlane.xlu1 %6211  ;;  %v6335_v5 = vmul.f32 %v16662_v60, %v6292_v2 }
0x140a   : > { %v6263_v29 = vadd.f32 1e-12, %v6247_v13  ;;  %v6248_v33 = vmul.f32 0.00390625, %v6212_v30  ;;  %v10774_v30 = vcombine.high %v6435_v7, %v6439_v26 }
0x140b   : > { %v6336_v0 = vmul.f32 %v16659_v52, %v6293_v50  ;;  %v6337_v19 = vmul.f32 %v16662_v60, %v6294_v24  ;;  %v16682_v39 = vadd.f32 %v16667_v1, %v6334_v27  ;;  %v16688_v31 = vadd.f32 %v16670_v63, %v6335_v5 }
0x140c   : > { %13255 = vrsqrt.f32 %v6263_v29  ;;  %v6264_v47 = vadd.f32 1e-12, %v6248_v33  ;;  %v10776_v5 = vcombine.high %v6436_v22, %v6440_v10  ;;  %v16715_v29 = vld [vmem:[%s19542_s11 + $0x90] sm:$0xff] }
0x140d   : > { %19666 = vst [vmem:[#allocation20_spill] sm:$0xff] %v16682_v39  ;;  %v16685_v4 = vadd.f32 %v16667_v1, %v6336_v0  ;;  %19668 = vst [vmem:[#allocation22_spill] sm:$0xff] %v16688_v31  ;;  %v16691_v58 = vadd.f32 %v16670_v63, %v6337_v19  ;;  %v16725_v19 = vld [vmem:[%s19542_s11 + $0xb0] sm:$0xff] }
0x140e   : > { %v13252_v45 = vpop.eup %13251  ;;  %13257 = vrsqrt.f32 %v6264_v47  ;;  %v16730_v47 = vld [vmem:[%s19542_s11 + $0x98] sm:$0xff] }
0x140f   : > { %19667 = vst [vmem:[#allocation21_spill] sm:$0xff] %v16685_v4  ;;  %19669 = vst [vmem:[#allocation23_spill] sm:$0xff] %v16691_v58  ;;  %v16704_v2 = vpack.c.bf16 %v16685_v4, %v16682_v39  ;;  %v6295_v3 = vmul.f32 %v13252_v45, %v16413_v16  ;;  %v6296_v36 = vmul.f32 %v13252_v45, %v16416_v8  ;;  %v6215_v13 = vpop.xlane.xlu0 %6214 }
0x1410   : > { %v16710_v27 = vpack.c.bf16 %v16691_v58, %v16688_v31  ;;  %v13254_v50 = vpop.eup %13253  ;;  %v6249_v24 = vmul.f32 0.00390625, %v6215_v13  ;;  %v10775_v58 = vcombine.low %v6436_v22, %v6440_v10  ;;  %v16779_v22 = vld [vmem:[%s19542_s11 + $0xf8] sm:$0xff] }
0x1411   : > { %v6338_v33 = vmul.f32 %v16659_v52, %v6295_v3  ;;  %v6297_v16 = vmul.f32 %v13254_v50, %v16423_v49  ;;  %v6298_v8 = vmul.f32 %v13254_v50, %v16426_v41  ;;  %v6218_v0 = vpop.xlane.xlu1 %6217  ;;  %v16735_v49 = vld [vmem:[%s19542_s11 + $0xb8] sm:$0xff]  ;;  %v10773_v3 = vcombine.low %v6435_v7, %v6439_v26 }
0x1412   : > { %7267 = vmatprep.mubr.bf16.mxu1 %v16710_v27  ;;  %7380 = vmatprep.mubr.bf16.mxu0 %v16710_v27  ;;  %v6265_v41 = vadd.f32 1e-12, %v6249_v24  ;;  %v6250_v45 = vmul.f32 0.00390625, %v6218_v0  ;;  %v6339_v13 = vmul.f32 %v16662_v60, %v6296_v36  ;;  %v10782_v7 = vcombine.high %v16715_v29, %v16725_v19 }
0x1413   : > { %7268 = vmatmul.mubr.bf16.vlgmr.msra.gmra.mrb[0].mxu1 %v16704_v2  ;;  %7381 = vmatmul.mubr.bf16.vlgmr.msra.gmra.mrb[32].mxu0 %v16704_v2  ;;  %v6340_v50 = vmul.f32 %v16659_v52, %v6297_v16  ;;  %v6341_v24 = vmul.f32 %v16662_v60, %v6298_v8  ;;  %v10784_v26 = vcombine.high %v16730_v47, %v16735_v49 }
0x1414   : > { %7462 = vmatpush1.bf16.msra.mxu1 %v10765_v40  ;;  %7575 = vmatpush1.bf16.msra.mxu0 %v10767_v32  ;;  %13259 = vrsqrt.f32 %v6265_v41  ;;  %v6266_v0 = vadd.f32 1e-12, %v6250_v45  ;;  %v16758_v35 = vadd.f32 %v16667_v1, %v6338_v33  ;;  %v16769_v40 = vld [vmem:[%s19542_s11 + $0xf0] sm:$0xff]  ;;  %v16774_v32 = vld [vmem:[%s19542_s11 + $0xd8] sm:$0xff]  ;;  %v16782_v36 = vadd.f32 %v16670_v63, %v6339_v13 }
0x1415   : > { %7463 = vmatprep.subr.bf16.mxu1 %v10774_v30  ;;  %7576 = vmatprep.subr.bf16.mxu0 %v10776_v5  ;;  %v16761_v14 = vadd.f32 %v16667_v1, %v6340_v50  ;;  %v16764_v48 = vadd.f32 %v16670_v63, %v6341_v24  ;;  %v10781_v30 = vcombine.low %v16715_v29, %v16725_v19 }
0x1416   : > { %19670 = vst [vmem:[#allocation24_spill] sm:$0xff] %v16758_v35  ;;  %v13256_v10 = vpop.eup %13255  ;;  %13261 = vrsqrt.f32 %v6266_v0  ;;  %19673 = vst [vmem:[#allocation27_spill] sm:$0xff] %v16782_v36  ;;  %v10783_v5 = vcombine.low %v16730_v47, %v16735_v49  ;;  %v10790_v29 = vcombine.high %v16755_v55, %v16769_v40  ;;  %v10792_v19 = vcombine.high %v16774_v32, %v16779_v22  ;;  %v16811_v0 = vld [vmem:[%s19542_s11 + $0x110] sm:$0xff] }
0x1417   : > { %19671 = vst [vmem:[#allocation25_spill] sm:$0xff] %v16761_v14  ;;  %19672 = vst [vmem:[#allocation26_spill] sm:$0xff] %v16764_v48  ;;  %v16790_v33 = vpack.c.bf16 %v16761_v14, %v16758_v35  ;;  %v6299_v16 = vmul.f32 %v13256_v10, %v16433_v42  ;;  %v6300_v8 = vmul.f32 %v13256_v10, %v16436_v23  ;;  %v6221_v41 = vpop.xlane.xlu0 %6220  ;;  %v6460_v10 = vld [vmem:[%s19542_s11 + $0x118] sm:$0xff] }
0x1418   : > { %7464 = vmatpush1.bf16.msra.mxu1 %v10773_v3  ;;  %7577 = vmatpush1.bf16.msra.mxu0 %v10775_v58  ;;  %v13258_v45 = vpop.eup %13257  ;;  %v6251_v13 = vmul.f32 0.00390625, %v6221_v41  ;;  %v16796_v50 = vpack.c.bf16 %v16764_v48, %v16782_v36 }
0x1419   : > { %7465 = vmatprep.subr.bf16.mxu1 %v10782_v7  ;;  %7578 = vmatprep.subr.bf16.mxu0 %v10784_v26  ;;  %v6342_v42 = vmul.f32 %v16659_v52, %v6299_v16  ;;  %v6301_v23 = vmul.f32 %v13258_v45, %v16443_v28  ;;  %v6302_v58 = vmul.f32 %v13258_v45, %v16446_v34  ;;  %v6224_v47 = vpop.xlane.xlu1 %6223  ;;  %v6463_v26 = vld [vmem:[%s19542_s11 + $0x130] sm:$0xff]  ;;  %v6464_v16 = vld [vmem:[%s19542_s11 + $0x138] sm:$0xff] }
0x141a   : > { %v6343_v49 = vmul.f32 %v16662_v60, %v6300_v8  ;;  %v6267_v3 = vadd.f32 1e-12, %v6251_v13  ;;  %7277 = vmatprep.mubr.bf16.mxu1 %v16796_v50  ;;  %7390 = vmatprep.mubr.bf16.mxu0 %v16796_v50  ;;  %v6252_v24 = vmul.f32 0.00390625, %v6224_v47  ;;  %v10789_v28 = vcombine.low %v16755_v55, %v16769_v40  ;;  %v16836_v40 = vld [vmem:[%s19542_s11 + $0x150] sm:$0xff] }
0x141b   : > { %v6344_v7 = vmul.f32 %v16659_v52, %v6301_v23  ;;  %7278 = vmatmul.mubr.bf16.gmra.mrb[4].mxu1 %v16790_v33  ;;  %7391 = vmatmul.mubr.bf16.gmra.mrb[36].mxu0 %v16790_v33  ;;  %v6345_v34 = vmul.f32 %v16662_v60, %v6302_v58  ;;  %v16829_v8 = vadd.f32 %v16667_v1, %v6342_v42 }
0x141c   : > { %13263 = vrsqrt.f32 %v6267_v3  ;;  %v6268_v41 = vadd.f32 1e-12, %v6252_v24  ;;  %7466 = vmatpush1.bf16.msra.mxu1 %v10781_v30  ;;  %7579 = vmatpush1.bf16.msra.mxu0 %v10783_v5  ;;  %v10791_v55 = vcombine.low %v16774_v32, %v16779_v22  ;;  %v16842_v13 = vadd.f32 %v16670_v63, %v6343_v49  ;;  %v16850_v32 = vld [vmem:[%s19542_s11 + $0x170] sm:$0xff]  ;;  %v16855_v22 = vld [vmem:[%s19542_s11 + $0x158] sm:$0xff] }
0x141d   : > { %19674 = vst [vmem:[#allocation28_spill] sm:$0xff] %v16829_v8  ;;  %v16839_v45 = vadd.f32 %v16667_v1, %v6344_v7  ;;  %7467 = vmatprep.subr.bf16.mxu1 %v10790_v29  ;;  %7580 = vmatprep.subr.bf16.mxu0 %v10792_v19  ;;  %v16845_v42 = vadd.f32 %v16670_v63, %v6345_v34  ;;  %v16860_v30 = vld [vmem:[%s19542_s11 + $0x178] sm:$0xff] }
0x141e   : > { %19676 = vst [vmem:[#allocation30_spill] sm:$0xff] %v16842_v13  ;;  %v13260_v5 = vpop.eup %13259  ;;  %13265 = vrsqrt.f32 %v6268_v41  ;;  %v10797_v29 = vcombine.low %v16811_v0, %v6463_v26  ;;  %v10798_v19 = vcombine.high %v16811_v0, %v6463_v26  ;;  %v10800_v23 = vcombine.high %v6460_v10, %v6464_v16 }
0x141f   : > { %19675 = vst [vmem:[#allocation29_spill] sm:$0xff] %v16839_v45  ;;  %19677 = vst [vmem:[#allocation31_spill] sm:$0xff] %v16845_v42  ;;  %v16866_v58 = vpack.c.bf16 %v16839_v45, %v16829_v8  ;;  %v6303_v47 = vmul.f32 %v13260_v5, %v16474_v51  ;;  %v6304_v49 = vmul.f32 %v13260_v5, %v16477_v57  ;;  %v6227_v3 = vpop.xlane.xlu0 %6226 }
0x1420   : > { %v16872_v24 = vpack.c.bf16 %v16845_v42, %v16842_v13  ;;  %v13262_v7 = vpop.eup %13261  ;;  %v6253_v34 = vmul.f32 0.00390625, %v6227_v3  ;;  %7468 = vmatpush1.bf16.msra.mxu1 %v10789_v28  ;;  %7581 = vmatpush1.bf16.msra.mxu0 %v10791_v55  ;;  %v10799_v41 = vcombine.low %v6460_v10, %v6464_v16  ;;  %v10806_v0 = vcombine.high %v16836_v40, %v16850_v32  ;;  %v16887_v16 = vld [vmem:[%s19542_s11 + $0x190] sm:$0xff] }
0x1421   : > { %v10808_v26 = vcombine.high %v16855_v22, %v16860_v30  ;;  %v6346_v51 = vmul.f32 %v16659_v52, %v6303_v47  ;;  %v6305_v57 = vmul.f32 %v13262_v7, %v16487_v54  ;;  %v6306_v5 = vmul.f32 %v13262_v7, %v16490_v61  ;;  %v6230_v3 = vpop.xlane.xlu1 %6229  ;;  %7469 = vmatprep.subr.bf16.mxu1 %v10798_v19  ;;  %v6479_v19 = vld [vmem:[%s19542_s11 + $0x1b0] sm:$0xff] }
0x1422   : > { %7287 = vmatprep.mubr.bf16.mxu1 %v16872_v24  ;;  %7400 = vmatprep.mubr.bf16.mxu0 %v16872_v24  ;;  %v6269_v28 = vadd.f32 1e-12, %v6253_v34  ;;  %v6254_v55 = vmul.f32 0.00390625, %v6230_v3  ;;  %v6347_v10 = vmul.f32 %v16662_v60, %v6304_v49  ;;  %v10805_v61 = vcombine.low %v16836_v40, %v16850_v32  ;;  %v6480_v49 = vld [vmem:[%s19542_s11 + $0x1b8] sm:$0xff]  ;;  %v16912_v32 = vld [vmem:[%s19542_s11 + $0x1d0] sm:$0xff] }
0x1423   : > { %7582 = vmatprep.subr.bf16.mxu0 %v10800_v23  ;;  %v6348_v54 = vmul.f32 %v16659_v52, %v6305_v57  ;;  %7288 = vmatmul.mubr.bf16.gmra.mrb[8].mxu1 %v16866_v58  ;;  %v6349_v47 = vmul.f32 %v16662_v60, %v6306_v5  ;;  %v6476_v23 = vld [vmem:[%s19542_s11 + $0x198] sm:$0xff]  ;;  %v16905_v7 = vadd.f32 %v16667_v1, %v6346_v51 }
0x1424   : > { %7401 = vmatmul.mubr.bf16.gmra.mrb[40].mxu0 %v16866_v58  ;;  %13267 = vrsqrt.f32 %v6269_v28  ;;  %v6270_v34 = vadd.f32 1e-12, %v6254_v55  ;;  %7470 = vmatpush1.bf16.msra.mxu1 %v10797_v29  ;;  %v10807_v40 = vcombine.low %v16855_v22, %v16860_v30  ;;  %v16918_v51 = vadd.f32 %v16670_v63, %v6347_v10  ;;  %v16926_v22 = vld [vmem:[%s19542_s11 + $0x1f0] sm:$0xff]  ;;  %v16931_v30 = vld [vmem:[%s19542_s11 + $0x1d8] sm:$0xff] }
0x1425   : > { %19678 = vst [vmem:[#allocation32_spill] sm:$0xff] %v16905_v7  ;;  %7583 = vmatpush1.bf16.msra.mxu0 %v10799_v41  ;;  %v16915_v57 = vadd.f32 %v16667_v1, %v6348_v54  ;;  %7471 = vmatprep.subr.bf16.mxu1 %v10806_v0  ;;  %v16921_v5 = vadd.f32 %v16670_v63, %v6349_v47  ;;  %v16936_v29 = vld [vmem:[%s19542_s11 + $0x1f8] sm:$0xff] }
0x1426   : > { %7584 = vmatprep.subr.bf16.mxu0 %v10808_v26  ;;  %19680 = vst [vmem:[#allocation34_spill] sm:$0xff] %v16918_v51  ;;  %v13264_v41 = vpop.eup %13263  ;;  %13269 = vrsqrt.f32 %v6270_v34  ;;  %v10813_v0 = vcombine.low %v16887_v16, %v6479_v19  ;;  %v10814_v26 = vcombine.high %v16887_v16, %v6479_v19  ;;  %v10816_v3 = vcombine.high %v6476_v23, %v6480_v49 }
0x1427   : > { %19679 = vst [vmem:[#allocation33_spill] sm:$0xff] %v16915_v57  ;;  %19681 = vst [vmem:[#allocation35_spill] sm:$0xff] %v16921_v5  ;;  %v16942_v28 = vpack.c.bf16 %v16915_v57, %v16905_v7  ;;  %v6307_v55 = vmul.f32 %v13264_v41, %v16518_v12  ;;  %v6308_v10 = vmul.f32 %v13264_v41, %v16521_v62  ;;  %v6233_v54 = vpop.xlane.xlu0 %6232 }
0x1428   : > { %v16948_v47 = vpack.c.bf16 %v16921_v5, %v16918_v51  ;;  %v13266_v42 = vpop.eup %13265  ;;  %v6255_v34 = vmul.f32 0.00390625, %v6233_v54  ;;  %7472 = vmatpush1.bf16.msra.mxu1 %v10805_v61  ;;  %v10815_v45 = vcombine.low %v6476_v23, %v6480_v49  ;;  %v10822_v16 = vcombine.high %v16912_v32, %v16926_v22  ;;  %v16963_v49 = vld [vmem:[%s19542_s11 + $0x210] sm:$0xff] }
0x1429   : > { %7585 = vmatpush1.bf16.msra.mxu0 %v10807_v40  ;;  %v10824_v19 = vcombine.high %v16931_v30, %v16936_v29  ;;  %v6350_v12 = vmul.f32 %v16659_v52, %v6307_v55  ;;  %v6309_v62 = vmul.f32 %v13266_v42, %v16531_v44  ;;  %v6310_v41 = vmul.f32 %v13266_v42, %v16534_v18  ;;  %v6236_v54 = vpop.xlane.xlu1 %6235  ;;  %v6496_v55 = vld [vmem:[%s19542_s11 + $0x238] sm:$0xff] }
0x142a   : > { %7297 = vmatprep.mubr.bf16.mxu1 %v16948_v47  ;;  %7410 = vmatprep.mubr.bf16.mxu0 %v16948_v47  ;;  %v6271_v61 = vadd.f32 1e-12, %v6255_v34  ;;  %v6256_v40 = vmul.f32 0.00390625, %v6236_v54  ;;  %v6351_v23 = vmul.f32 %v16662_v60, %v6308_v10  ;;  %v10821_v18 = vcombine.low %v16912_v32, %v16926_v22  ;;  %v16988_v22 = vld [vmem:[%s19542_s11 + $0x250] sm:$0xff] }
0x142b   : > { %7473 = vmatprep.subr.bf16.mxu1 %v10814_v26  ;;  %7586 = vmatprep.subr.bf16.mxu0 %v10816_v3  ;;  %v6352_v44 = vmul.f32 %v16659_v52, %v6309_v62  ;;  %v6353_v42 = vmul.f32 %v16662_v60, %v6310_v41  ;;  %v6495_v26 = vld [vmem:[%s19542_s11 + $0x230] sm:$0xff]  ;;  %v6492_v3 = vld [vmem:[%s19542_s11 + $0x218] sm:$0xff]  ;;  %v16981_v10 = vadd.f32 %v16667_v1, %v6350_v12 }
0x142c   : > { %7298 = vmatmul.mubr.bf16.gmra.mrb[12].mxu1 %v16942_v28  ;;  %7411 = vmatmul.mubr.bf16.gmra.mrb[44].mxu0 %v16942_v28  ;;  %13271 = vrsqrt.f32 %v6271_v61  ;;  %v6272_v34 = vadd.f32 1e-12, %v6256_v40  ;;  %v10823_v32 = vcombine.low %v16931_v30, %v16936_v29  ;;  %v16994_v12 = vadd.f32 %v16670_v63, %v6351_v23  ;;  %v17007_v30 = vld [vmem:[%s19542_s11 + $0x258] sm:$0xff] }
0x142d   : > { %19682 = vst [vmem:[#allocation36_spill] sm:$0xff] %v16981_v10  ;;  %7474 = vmatpush1.bf16.msra.mxu1 %v10813_v0  ;;  %7587 = vmatpush1.bf16.msra.mxu0 %v10815_v45  ;;  %v16991_v62 = vadd.f32 %v16667_v1, %v6352_v44  ;;  %v16997_v41 = vadd.f32 %v16670_v63, %v6353_v42  ;;  %v17002_v45 = vld [vmem:[%s19542_s11 + $0x270] sm:$0xff]  ;;  %v17012_v29 = vld [vmem:[%s19542_s11 + $0x278] sm:$0xff] }
0x142e   : > { %7475 = vmatprep.subr.bf16.mxu1 %v10822_v16  ;;  %7588 = vmatprep.subr.bf16.mxu0 %v10824_v19  ;;  %19684 = vst [vmem:[#allocation38_spill] sm:$0xff] %v16994_v12  ;;  %v13268_v0 = vpop.eup %13267  ;;  %13273 = vrsqrt.f32 %v6272_v34  ;;  %v10829_v16 = vcombine.low %v16963_v49, %v6495_v26  ;;  %v10830_v19 = vcombine.high %v16963_v49, %v6495_v26 }
0x142f   : > { %19683 = vst [vmem:[#allocation37_spill] sm:$0xff] %v16991_v62  ;;  %19685 = vst [vmem:[#allocation39_spill] sm:$0xff] %v16997_v41  ;;  %v10832_v54 = vcombine.high %v6492_v3, %v6496_v55  ;;  %v17018_v61 = vpack.c.bf16 %v16991_v62, %v16981_v10  ;;  %v6311_v40 = vmul.f32 %v13268_v0, %v16562_v17  ;;  %v6239_v44 = vpop.xlane.xlu0 %6238 }
0x1430   : > { %v6312_v23 = vmul.f32 %v13268_v0, %v16565_v11  ;;  %v17024_v42 = vpack.c.bf16 %v16997_v41, %v16994_v12  ;;  %v13270_v5 = vpop.eup %13269  ;;  %v6257_v34 = vmul.f32 0.00390625, %v6239_v44  ;;  %v10831_v57 = vcombine.low %v6492_v3, %v6496_v55  ;;  %v6507_v55 = vld [vmem:[%s19542_s11 + $0x290] sm:$0xff] }
0x1431   : > { %7476 = vmatpush1.bf16.msra.mxu1 %v10821_v18  ;;  %7589 = vmatpush1.bf16.msra.mxu0 %v10823_v32  ;;  %v10838_v49 = vcombine.high %v16988_v22, %v17002_v45  ;;  %v10840_v26 = vcombine.high %v17007_v30, %v17012_v29  ;;  %v6354_v17 = vmul.f32 %v16659_v52, %v6311_v40  ;;  %v6242_v44 = vpop.xlane.xlu1 %6241 }
0x1432   : > { %v6313_v11 = vmul.f32 %v13270_v5, %v16575_v25  ;;  %v6314_v0 = vmul.f32 %v13270_v5, %v16578_v21  ;;  %7307 = vmatprep.mubr.bf16.mxu1 %v17024_v42  ;;  %7420 = vmatprep.mubr.bf16.mxu0 %v17024_v42  ;;  %v6273_v18 = vadd.f32 1e-12, %v6257_v34  ;;  %v6258_v32 = vmul.f32 0.00390625, %v6242_v44  ;;  %v6511_v5 = vld [vmem:[%s19542_s11 + $0x2b0] sm:$0xff] }
0x1433   : > { %7477 = vmatprep.subr.bf16.mxu1 %v10830_v19  ;;  %7590 = vmatprep.subr.bf16.mxu0 %v10832_v54  ;;  %v6355_v3 = vmul.f32 %v16662_v60, %v6312_v23  ;;  %v10837_v25 = vcombine.low %v16988_v22, %v17002_v45  ;;  %v6508_v19 = vld [vmem:[%s19542_s11 + $0x298] sm:$0xff]  ;;  %v17055_v23 = vadd.f32 %v16667_v1, %v6354_v17  ;;  %v17062_v45 = vld [vmem:[%s19542_s11 + $0x2d0] sm:$0xff] }
0x1434   : > { %v6356_v40 = vmul.f32 %v16659_v52, %v6313_v11  ;;  %7308 = vmatmul.mubr.bf16.gmra.mrb[16].mxu1 %v17018_v61  ;;  %7421 = vmatmul.mubr.bf16.gmra.mrb[48].mxu0 %v17018_v61  ;;  %v6357_v21 = vmul.f32 %v16662_v60, %v6314_v0  ;;  %v6512_v54 = vld [vmem:[%s19542_s11 + $0x2b8] sm:$0xff]  ;;  %13275 = vrsqrt.f32 %v6273_v18  ;;  %v6274_v34 = vadd.f32 1e-12, %v6258_v32 }
0x1435   : > { %19686 = vst [vmem:[#allocation40_spill] sm:$0xff] %v17055_v23  ;;  %7478 = vmatpush1.bf16.msra.mxu1 %v10829_v16  ;;  %7591 = vmatpush1.bf16.msra.mxu0 %v10831_v57  ;;  %v10839_v22 = vcombine.low %v17007_v30, %v17012_v29  ;;  %v17068_v17 = vadd.f32 %v16670_v63, %v6355_v3  ;;  %v6519_v57 = vld [vmem:[%s19542_s11 + $0x2f0] sm:$0xff]  ;;  %v6516_v30 = vld [vmem:[%s19542_s11 + $0x2d8] sm:$0xff] }
0x1436   : > { %v17065_v11 = vadd.f32 %v16667_v1, %v6356_v40  ;;  %7479 = vmatprep.subr.bf16.mxu1 %v10838_v49  ;;  %7592 = vmatprep.subr.bf16.mxu0 %v10840_v26  ;;  %v17071_v0 = vadd.f32 %v16670_v63, %v6357_v21  ;;  %v6520_v29 = vld [vmem:[%s19542_s11 + $0x2f8] sm:$0xff]  ;;  %v13272_v16 = vpop.eup %13271  ;;  %13277 = vrsqrt.f32 %v6274_v34  ;;  %v10845_v49 = vcombine.low %v6507_v55, %v6511_v5 }
0x1437   : > { %19688 = vst [vmem:[#allocation42_spill] sm:$0xff] %v17068_v17  ;;  %v10846_v26 = vcombine.high %v6507_v55, %v6511_v5  ;;  %v10848_v44 = vcombine.high %v6508_v19, %v6512_v54  ;;  %v6315_v32 = vmul.f32 %v13272_v16, %v16613_v53  ;;  %v6316_v3 = vmul.f32 %v13272_v16, %v16616_v20  ;;  %v6523_v20 = vld [vmem:[%s19542_s11 + $0x310] sm:$0xff] }
0x1438   : > { %19687 = vst [vmem:[#allocation41_spill] sm:$0xff] %v17065_v11  ;;  %19689 = vst [vmem:[#allocation43_spill] sm:$0xff] %v17071_v0  ;;  %v17084_v18 = vpack.c.bf16 %v17065_v11, %v17055_v23  ;;  %v17090_v40 = vpack.c.bf16 %v17071_v0, %v17068_v17  ;;  %v13274_v21 = vpop.eup %13273  ;;  %v10847_v41 = vcombine.low %v6508_v19, %v6512_v54  ;;  %v6524_v19 = vld [vmem:[%s19542_s11 + $0x318] sm:$0xff]  ;;  %v6531_v16 = vld [vmem:[%s19542_s11 + $0x350] sm:$0xff] }
0x1439   : > { %7480 = vmatpush1.bf16.msra.mxu1 %v10837_v25  ;;  %7593 = vmatpush1.bf16.msra.mxu0 %v10839_v22  ;;  %v10854_v34 = vcombine.high %v17062_v45, %v6519_v57  ;;  %v10856_v55 = vcombine.high %v6516_v30, %v6520_v29  ;;  %v6358_v5 = vmul.f32 %v16659_v52, %v6315_v32  ;;  %v6528_v54 = vld [vmem:[%s19542_s11 + $0x338] sm:$0xff] }
0x143a   : > { %v6317_v11 = vmul.f32 %v13274_v21, %v16623_v15  ;;  %v6318_v23 = vmul.f32 %v13274_v21, %v16626_v37  ;;  %7317 = vmatprep.mubr.bf16.mxu1 %v17090_v40  ;;  %7430 = vmatprep.mubr.bf16.mxu0 %v17090_v40  ;;  %v6359_v53 = vmul.f32 %v16662_v60, %v6316_v3  ;;  %v6527_v37 = vld [vmem:[%s19542_s11 + $0x330] sm:$0xff] }
0x143b   : > { %7481 = vmatprep.subr.bf16.mxu1 %v10846_v26  ;;  %7594 = vmatprep.subr.bf16.mxu0 %v10848_v44  ;;  %v17116_v22 = vadd.f32 %v16667_v1, %v6358_v5  ;;  %v10864_v3 = vcombine.high %v6524_v19, %v6528_v54 }
0x143c   : > { %v6360_v25 = vmul.f32 %v16659_v52, %v6317_v11  ;;  %7318 = vmatmul.mubr.bf16.gmra.mrb[20].mxu1 %v17084_v18  ;;  %7431 = vmatmul.mubr.bf16.gmra.mrb[52].mxu0 %v17084_v18  ;;  %v6361_v15 = vmul.f32 %v16662_v60, %v6318_v23  ;;  %v10853_v11 = vcombine.low %v17062_v45, %v6519_v57  ;;  %v6532_v45 = vld [vmem:[%s19542_s11 + $0x358] sm:$0xff] }
0x143d   : > { %19690 = vst [vmem:[#allocation44_spill] sm:$0xff] %v17116_v22  ;;  %7482 = vmatpush1.bf16.msra.mxu1 %v10845_v49  ;;  %7595 = vmatpush1.bf16.msra.mxu0 %v10847_v41  ;;  %v10855_v23 = vcombine.low %v6516_v30, %v6520_v29  ;;  %v17126_v44 = vadd.f32 %v16670_v63, %v6359_v53  ;;  %v6535_v41 = vld [vmem:[%s19542_s11 + $0x370] sm:$0xff]  ;;  %v6536_v57 = vld [vmem:[%s19542_s11 + $0x378] sm:$0xff] }
0x143e   : > { %v17123_v26 = vadd.f32 %v16667_v1, %v6360_v25  ;;  %7483 = vmatprep.subr.bf16.mxu1 %v10854_v34  ;;  %7596 = vmatprep.subr.bf16.mxu0 %v10856_v55  ;;  %v17129_v32 = vadd.f32 %v16670_v63, %v6361_v15  ;;  %v13276_v30 = vpop.eup %13275  ;;  %v10861_v29 = vcombine.low %v6523_v20, %v6527_v37 }
0x143f   : > { %19692 = vst [vmem:[#allocation46_spill] sm:$0xff] %v17126_v44  ;;  %v10862_v49 = vcombine.high %v6523_v20, %v6527_v37  ;;  %v6319_v34 = vmul.f32 %v13276_v30, %v16633_v46  ;;  %v6320_v55 = vmul.f32 %v13276_v30, %v16636_v38  ;;  %v10863_v25 = vcombine.low %v6524_v19, %v6528_v54  ;;  %v6539_v38 = vld [vmem:[%s19542_s11 + $0x390] sm:$0xff]  ;;  %v6540_v54 = vld [vmem:[%s19542_s11 + $0x398] sm:$0xff] }
0x1440   : > { %19691 = vst [vmem:[#allocation45_spill] sm:$0xff] %v17123_v26  ;;  %19693 = vst [vmem:[#allocation47_spill] sm:$0xff] %v17129_v32  ;;  %v17142_v21 = vpack.c.bf16 %v17123_v26, %v17116_v22  ;;  %v17148_v5 = vpack.c.bf16 %v17129_v32, %v17126_v44  ;;  %v13278_v53 = vpop.eup %13277  ;;  %v10870_v15 = vcombine.high %v6531_v16, %v6535_v41 }
0x1441   : > { %7484 = vmatpush1.bf16.msra.mxu1 %v10853_v11  ;;  %7597 = vmatpush1.bf16.msra.mxu0 %v10855_v23  ;;  %v10872_v0 = vcombine.high %v6532_v45, %v6536_v57  ;;  %v6362_v20 = vmul.f32 %v16659_v52, %v6319_v34  ;;  %v6321_v37 = vmul.f32 %v13278_v53, %v16643_v59  ;;  %v6544_v11 = vld [vmem:[%s19542_s11 + $0x3b8] sm:$0xff] }
0x1442   : > { %v6322_v26 = vmul.f32 %v13278_v53, %v16646_v6  ;;  %7327 = vmatprep.mubr.bf16.mxu1 %v17148_v5  ;;  %7440 = vmatprep.mubr.bf16.mxu0 %v17148_v5  ;;  %v6363_v46 = vmul.f32 %v16662_v60, %v6320_v55  ;;  %v6543_v6 = vld [vmem:[%s19542_s11 + $0x3b0] sm:$0xff]  ;;  %v10869_v23 = vcombine.low %v6531_v16, %v6535_v41  ;;  %v6552_v41 = vld [vmem:[%s19542_s11 + $0x3f8] sm:$0xff] }
0x1443   : > { %7485 = vmatprep.subr.bf16.mxu1 %v10862_v49  ;;  %7598 = vmatprep.subr.bf16.mxu0 %v10864_v3  ;;  %v6364_v19 = vmul.f32 %v16659_v52, %v6321_v37  ;;  %v17173_v52 = vadd.f32 %v16667_v1, %v6362_v20  ;;  %v10871_v30 = vcombine.low %v6532_v45, %v6536_v57  ;;  %v12801_v20 = vld [vmem:[%s19698_s22 + $0x4] ss:$8 sps:$4 sm:$0xff]   ;;  %v12799_v37 = vld [vmem:[%s19698_s22] ss:$8 sps:$4 sm:$0xff]  }
0x1444   : > { %7328 = vmatmul.mubr.bf16.gmra.mrb[24].mxu1 %v17142_v21  ;;  %7441 = vmatmul.mubr.bf16.gmra.mrb[56].mxu0 %v17142_v21  ;;  %v6365_v59 = vmul.f32 %v16662_v60, %v6322_v26  ;;  %v17179_v26 = vadd.f32 %v16670_v63, %v6363_v46  ;;  %v10878_v3 = vcombine.high %v6539_v38, %v6543_v6  ;;  %v12804_v46 = vld [vmem:[%s19698_s22 + $0x14] ss:$8 sps:$4 sm:$0xff]  }
0x1445   : > { %19694 = vst [vmem:[#allocation48_spill] sm:$0xff] %v17173_v52  ;;  %7486 = vmatpush1.bf16.msra.mxu1 %v10861_v29  ;;  %7599 = vmatpush1.bf16.msra.mxu0 %v10863_v25  ;;  %v17176_v60 = vadd.f32 %v16667_v1, %v6364_v19  ;;  %v10880_v34 = vcombine.high %v6540_v54, %v6544_v11  ;;  %v6547_v29 = vld [vmem:[%s19542_s11 + $0x3d0] sm:$0xff]  ;;  %v12805_v19 = vld [vmem:[%s19698_s22 + $0x20] ss:$8 sps:$4 sm:$0xff]  }
0x1446   : > { %7487 = vmatprep.subr.bf16.mxu1 %v10870_v15  ;;  %7600 = vmatprep.subr.bf16.mxu0 %v10872_v0  ;;  %19696 = vst [vmem:[#allocation50_spill] sm:$0xff] %v17179_v26  ;;  %v17182_v49 = vadd.f32 %v16670_v63, %v6365_v59  ;;  %v6551_v0 = vld [vmem:[%s19542_s11 + $0x3f0] sm:$0xff]  ;;  %v6548_v63 = vld [vmem:[%s19542_s11 + $0x3d8] sm:$0xff]  ;;  %v10877_v45 = vcombine.low %v6539_v38, %v6543_v6  ;;  %v12807_v38 = vld [vmem:[%s19698_s22 + $0x24] ss:$8 sps:$4 sm:$0xff]  }
0x1447   : > { %19695 = vst [vmem:[#allocation49_spill] sm:$0xff] %v17176_v60  ;;  %v17189_v16 = vpack.c.bf16 %v17176_v60, %v17173_v52  ;;  %v10879_v57 = vcombine.low %v6540_v54, %v6544_v11  ;;  %v10886_v55 = vcombine.high %v6547_v29, %v6551_v0  ;;  %v10888_v53 = vcombine.high %v6548_v63, %v6552_v41  ;;  %v12813_v59 = vld [vmem:[%s19698_s22 + $0x44] ss:$8 sps:$4 sm:$0xff]   ;;  %v12811_v6 = vld [vmem:[%s19698_s22 + $0x40] ss:$8 sps:$4 sm:$0xff]  }
0x1448   : > { %19697 = vst [vmem:[#allocation51_spill] sm:$0xff] %v17182_v49  ;;  %v17193_v1 = vpack.c.bf16 %v17182_v49, %v17179_v26  ;;  %v10885_v25 = vcombine.low %v6547_v29, %v6551_v0  ;;  %v10887_v15 = vcombine.low %v6548_v63, %v6552_v41  ;;  %v12819_v54 = vld [vmem:[%s19698_s22 + $0x64] ss:$8 sps:$4 sm:$0xff]   ;;  %v12817_v11 = vld [vmem:[%s19698_s22 + $0x60] ss:$8 sps:$4 sm:$0xff]  }
0x1449   : > { %7488 = vmatpush1.bf16.msra.mxu1 %v10869_v23  ;;  %7601 = vmatpush1.bf16.msra.mxu0 %v10871_v30  ;;  %v12825_v23 = vld [vmem:[%s19698_s22 + $0x84] ss:$8 sps:$4 sm:$0xff]   ;;  %v12823_v30 = vld [vmem:[%s19698_s22 + $0x80] ss:$8 sps:$4 sm:$0xff]  }
0x144a   : > { %7337 = vmatprep.mubr.bf16.mxu1 %v17193_v1  ;;  %7450 = vmatprep.mubr.bf16.mxu0 %v17193_v1  ;;  %v12837_v29 = vld [vmem:[%s19698_s22 + $0xc4] ss:$8 sps:$4 sm:$0xff]   ;;  %v12835_v0 = vld [vmem:[%s19698_s22 + $0xc0] ss:$8 sps:$4 sm:$0xff]  }
0x144b   : > { %7489 = vmatprep.subr.bf16.mxu1 %v10878_v3  ;;  %7602 = vmatprep.subr.bf16.mxu0 %v10880_v34  ;;  %v12831_v3 = vld [vmem:[%s19698_s22 + $0xa4] ss:$8 sps:$4 sm:$0xff]   ;;  %v12829_v34 = vld [vmem:[%s19698_s22 + $0xa0] ss:$8 sps:$4 sm:$0xff]  }
0x144c   : > { %7338 = vmatmul.mubr.bf16.gmra.mrb[28].mxu1 %v17189_v16  ;;  %7451 = vmatmul.mubr.bf16.gmra.mrb[60].mxu0 %v17189_v16  ;;  %v12843_v63 = vld [vmem:[%s19698_s22 + $0xe4] ss:$8 sps:$4 sm:$0xff]   ;;  %v12841_v41 = vld [vmem:[%s19698_s22 + $0xe0] ss:$8 sps:$4 sm:$0xff]  }
0x144d   : > { %7490 = vmatpush1.bf16.msra.mxu1 %v10877_v45  ;;  %7493 = vmatprep.mubr.bf16.mxu1 %v16710_v27  ;;  %v12849_v45 = vld [vmem:[%s19698_s22 + $0x104] ss:$8 sps:$4 sm:$0xff]  }
0x144e   : > { %7603 = vmatpush1.bf16.msra.mxu0 %v10879_v57  ;;  %7606 = vmatprep.mubr.bf16.mxu0 %v16710_v27  ;;  %v12802_v27 = vld [vmem:[%s19698_s22 + $0x10] ss:$8 sps:$4 sm:$0xff]   ;;  %v6565_v57 = vsub.s32 2, %v16095_v56 }
0x144f   : > { %7491 = vmatprep.subr.bf16.mxu1 %v10886_v55  ;;  %7604 = vmatprep.subr.bf16.mxu0 %v10888_v53  ;;  %v6553_v55 = vld [vmem:[%s19699_s20] sm:$0xff]  ;;  %s19360_s20 = scalar_lea.vmem [#allocation11], %s10167_s15  ;;  %s11023_s15 = sshll.u32 %s13942_s28, 12 }
0x1450   : > { %v17345_v53 = vrot.slane %v6553_v55, %v16098_v43  ;;  %s10045_s18 = sshll.u32 %s19360_s20, 4  ;;  %s19479_s14 = scalar_lea.hbm %s19950_s10, %s11023_s15  ;;  %s19481_s18 = int_to_ptr.vmem [resolvable:$true] %s10045_s18 }
0x1451   : > { %7492 = vmatpush1.bf16.msra.mxu1 %v10885_v25  ;;  %v17347_v25 = vrot.slane %v6553_v55, %v6565_v57  ;;  %s10032_s28 = scalar_lea.sflag [#allocation4], %s14142_s16  ;;  %p13748_p12 = scmp.lt.s32.totalorder %s19481_s18, %s13746_s30 }
0x1452   : > { %7605 = vmatpush1.bf16.msra.mxu0 %v10887_v15  ;;  %9171 = vmatprep.subr.bf16.mxu1 %v12801_v20  ;;  %v17350_v15 = vrot.slane %v6553_v55, %v16104_v9 }
0x1454   : > { %7494 = vmatmul.mubr.bf16.vlgmr.msra.gmra.mrb[32].mxu1 %v16704_v2 }
0x1455   : > { %7607 = vmatmul.mubr.bf16.vlgmr.msra.gmra.mrb[96].mxu0 %v16704_v2  ;;  %7503 = vmatprep.mubr.bf16.mxu1 %v16796_v50  ;;  %v12810_v2 = vld [vmem:[%s19698_s22 + $0x34] ss:$8 sps:$4 sm:$0xff]  }
0x1456   : > { %7616 = vmatprep.mubr.bf16.mxu0 %v16796_v50  ;;  %9172 = vmatpush1.bf16.msra.mxu1 %v12799_v37  ;;  %v12808_v50 = vld [vmem:[%s19698_s22 + $0x30] ss:$8 sps:$4 sm:$0xff]  }
0x1457   : > { %9173 = vmatprep.subr.bf16.mxu1 %v12804_v46 }
0x145a   : > { %9174 = vmatpush1.bf16.msra.mxu1 %v12802_v27 }
0x145b   : > { %9175 = vmatprep.subr.bf16.mxu1 %v12807_v38 }
0x145c   : > { %7504 = vmatmul.mubr.bf16.gmra.mrb[36].mxu1 %v16790_v33 }
0x145d   : > { %7617 = vmatmul.mubr.bf16.gmra.mrb[100].mxu0 %v16790_v33  ;;  %7513 = vmatprep.mubr.bf16.mxu1 %v16872_v24  ;;  %v12816_v33 = vld [vmem:[%s19698_s22 + $0x54] ss:$8 sps:$4 sm:$0xff]  }
0x145e   : > { %7626 = vmatprep.mubr.bf16.mxu0 %v16872_v24  ;;  %9176 = vmatpush1.bf16.msra.mxu1 %v12805_v19  ;;  %v12814_v24 = vld [vmem:[%s19698_s22 + $0x50] ss:$8 sps:$4 sm:$0xff]  }
0x145f   : > { %9177 = vmatprep.subr.bf16.mxu1 %v12810_v2 }
0x1462   : > { %9178 = vmatpush1.bf16.msra.mxu1 %v12808_v50 }
0x1463   : > { %9179 = vmatprep.subr.bf16.mxu1 %v12813_v59 }
0x1464   : > { %7514 = vmatmul.mubr.bf16.gmra.mrb[40].mxu1 %v16866_v58 }
0x1465   : > { %7627 = vmatmul.mubr.bf16.gmra.mrb[104].mxu0 %v16866_v58  ;;  %7523 = vmatprep.mubr.bf16.mxu1 %v16948_v47  ;;  %v12822_v58 = vld [vmem:[%s19698_s22 + $0x74] ss:$8 sps:$4 sm:$0xff]  }
0x1466   : > { %7636 = vmatprep.mubr.bf16.mxu0 %v16948_v47  ;;  %9180 = vmatpush1.bf16.msra.mxu1 %v12811_v6  ;;  %v12820_v47 = vld [vmem:[%s19698_s22 + $0x70] ss:$8 sps:$4 sm:$0xff]  }
0x1467   : > { %9181 = vmatprep.subr.bf16.mxu1 %v12816_v33 }
0x146a   : > { %9182 = vmatpush1.bf16.msra.mxu1 %v12814_v24 }
0x146b   : > { %9183 = vmatprep.subr.bf16.mxu1 %v12819_v54 }
0x146c   : > { %7524 = vmatmul.mubr.bf16.gmra.mrb[44].mxu1 %v16942_v28 }
0x146d   : > { %7637 = vmatmul.mubr.bf16.gmra.mrb[108].mxu0 %v16942_v28  ;;  %7533 = vmatprep.mubr.bf16.mxu1 %v17024_v42  ;;  %v12828_v28 = vld [vmem:[%s19698_s22 + $0x94] ss:$8 sps:$4 sm:$0xff]  }
0x146e   : > { %7646 = vmatprep.mubr.bf16.mxu0 %v17024_v42  ;;  %9184 = vmatpush1.bf16.msra.mxu1 %v12817_v11  ;;  %v12826_v42 = vld [vmem:[%s19698_s22 + $0x90] ss:$8 sps:$4 sm:$0xff]  }
0x146f   : > { %9185 = vmatprep.subr.bf16.mxu1 %v12822_v58 }
0x1472   : > { %9186 = vmatpush1.bf16.msra.mxu1 %v12820_v47 }
0x1473   : > { %9187 = vmatprep.subr.bf16.mxu1 %v12825_v23 }
0x1474   : > { %7534 = vmatmul.mubr.bf16.gmra.mrb[48].mxu1 %v17018_v61 }
0x1475   : > { %7647 = vmatmul.mubr.bf16.gmra.mrb[112].mxu0 %v17018_v61  ;;  %7543 = vmatprep.mubr.bf16.mxu1 %v17090_v40  ;;  %v12834_v61 = vld [vmem:[%s19698_s22 + $0xb4] ss:$8 sps:$4 sm:$0xff]  }
0x1476   : > { %7656 = vmatprep.mubr.bf16.mxu0 %v17090_v40  ;;  %9188 = vmatpush1.bf16.msra.mxu1 %v12823_v30  ;;  %v12832_v40 = vld [vmem:[%s19698_s22 + $0xb0] ss:$8 sps:$4 sm:$0xff]  }
0x1477   : > { %9189 = vmatprep.subr.bf16.mxu1 %v12828_v28  ;;  %v6573_v28 = vsub.s32 4, %v16095_v56 }
0x147a   : > { %9190 = vmatpush1.bf16.msra.mxu1 %v12826_v42 }
0x147b   : > { %9191 = vmatprep.subr.bf16.mxu1 %v12831_v3  ;;  %v6581_v3 = vsub.s32 6, %v16095_v56 }
0x147c   : > { %7544 = vmatmul.mubr.bf16.gmra.mrb[52].mxu1 %v17084_v18 }
0x147d   : > { %7657 = vmatmul.mubr.bf16.gmra.mrb[116].mxu0 %v17084_v18  ;;  %7553 = vmatprep.mubr.bf16.mxu1 %v17148_v5  ;;  %v12840_v18 = vld [vmem:[%s19698_s22 + $0xd4] ss:$8 sps:$4 sm:$0xff]  }
0x147e   : > { %7666 = vmatprep.mubr.bf16.mxu0 %v17148_v5  ;;  %9192 = vmatpush1.bf16.msra.mxu1 %v12829_v34  ;;  %v12838_v5 = vld [vmem:[%s19698_s22 + $0xd0] ss:$8 sps:$4 sm:$0xff]  }
0x147f   : > { %9193 = vmatprep.subr.bf16.mxu1 %v12834_v61 }
0x1482   : > { %9194 = vmatpush1.bf16.msra.mxu1 %v12832_v40  ;;  %v6577_v40 = vsub.s32 5, %v16095_v56 }
0x1483   : > { %9195 = vmatprep.subr.bf16.mxu1 %v12837_v29  ;;  %v6585_v29 = vsub.s32 7, %v16095_v56 }
0x1484   : > { %7554 = vmatmul.mubr.bf16.gmra.mrb[56].mxu1 %v17142_v21 }
0x1485   : > { %7667 = vmatmul.mubr.bf16.gmra.mrb[120].mxu0 %v17142_v21  ;;  %7563 = vmatprep.mubr.bf16.mxu1 %v17193_v1  ;;  %v12846_v21 = vld [vmem:[%s19698_s22 + $0xf4] ss:$8 sps:$4 sm:$0xff]  }
0x1486   : > { %7676 = vmatprep.mubr.bf16.mxu0 %v17193_v1  ;;  %9196 = vmatpush1.bf16.msra.mxu1 %v12835_v0  ;;  %v12844_v1 = vld [vmem:[%s19698_s22 + $0xf0] ss:$8 sps:$4 sm:$0xff]  }
0x1487   : > { %9197 = vmatprep.subr.bf16.mxu1 %v12840_v18 }
0x148a   : > { %9198 = vmatpush1.bf16.msra.mxu1 %v12838_v5 }
0x148b   : > { %9199 = vmatprep.subr.bf16.mxu1 %v12843_v63 }
0x148c   : > { %7564 = vmatmul.mubr.bf16.gmra.mrb[60].mxu1 %v17189_v16 }
0x148d   : > { %7677 = vmatmul.mubr.bf16.gmra.mrb[124].mxu0 %v17189_v16  ;;  %v6569_v16 = vsub.s32 3, %v16095_v56 }
0x148e   : > { %9200 = vmatpush1.bf16.msra.mxu1 %v12841_v41 }
0x148f   : > { %9201 = vmatprep.subr.bf16.mxu1 %v12846_v21  ;;  %v17352_v20 = vrot.slane %v6553_v55, %v6569_v16  ;;  %v17366_v21 = vrot.slane %v6553_v55, %v6573_v28 }
0x1491   : > { %19700 = vst [vmem:[#allocation52_spill] sm:$0xff] %v17366_v21 }
0x1492   : > { %9202 = vmatpush1.bf16.msra.mxu1 %v12844_v1 }
0x1493   : > { %9284 = vmatprep.subr.bf16.mxu1 %v12849_v45 }
0x14e6   : > { %v7269_v37 = vpop.f32.mrb[0].mxu1  ;;  %v7382_v46 = vpop.f32.mrb[32].mxu0 }
0x14e7   : > { %v7270_v27 = vadd.f32 %v7269_v37, %v17345_v53  ;;  %v7383_v38 = vadd.f32 %v7382_v46, %v17347_v25  ;;  %v7271_v19 = vpop.f32.mrb[1].mxu1  ;;  %v7384_v2 = vpop.f32.mrb[33].mxu0  ;;  %v17370_v37 = vrot.slane %v6553_v55, %v6581_v3 }
0x14e8   : > { %v7272_v50 = vadd.f32 %v7271_v19, %v17350_v15  ;;  %v7273_v59 = vpop.f32.mrb[2].mxu1  ;;  %v7386_v6 = vpop.f32.mrb[34].mxu0  ;;  %v7385_v54 = vadd.f32 %v7384_v2, %v17352_v20  ;;  %v17373_v2 = vrot.slane %v6553_v55, %v6577_v40 }
0x14e9   : > { %v7815_v33 = vmul.f32 0.70710677, %v7270_v27  ;;  %v7817_v24 = vmul.f32 0.70710677, %v7383_v38  ;;  %v7274_v58 = vadd.f32 %v7273_v59, %v17345_v53  ;;  %v7387_v47 = vadd.f32 %v7386_v6, %v17347_v25  ;;  %v7275_v23 = vpop.f32.mrb[3].mxu1  ;;  %v7388_v30 = vpop.f32.mrb[35].mxu0 }
0x14ea   : > { %v7816_v11 = vmul.f32 0.70710677, %v7272_v50  ;;  %v7276_v42 = vadd.f32 %v7275_v23, %v17350_v15  ;;  %v7818_v34 = vmul.f32 0.70710677, %v7385_v54  ;;  %v7389_v5 = vadd.f32 %v7388_v30, %v17352_v20  ;;  %19701 = vst [vmem:[#allocation53_spill] sm:$0xff] %v17370_v37  ;;  %19702 = vst [vmem:[#allocation54_spill] sm:$0xff] %v17373_v2 }
0x14eb   : > { %13279 = verf.f32 %v7815_v33  ;;  %v7823_v61 = vmul.f32 0.70710677, %v7274_v58  ;;  %v7825_v0 = vmul.f32 0.70710677, %v7387_v47  ;;  %v17375_v59 = vrot.slane %v6553_v55, %v6585_v29 }
0x14ec   : > { %13281 = verf.f32 %v7817_v24  ;;  %v7824_v18 = vmul.f32 0.70710677, %v7276_v42  ;;  %v7826_v6 = vmul.f32 0.70710677, %v7389_v5  ;;  %v7687_v30 = vmul.f32 0.5, %v7270_v27 }
0x14ed   : > { %13283 = verf.f32 %v7816_v11  ;;  %19703 = vst [vmem:[#allocation55_spill] sm:$0xff] %v17375_v59  ;;  %v7689_v28 = vmul.f32 0.5, %v7383_v38  ;;  %v17382_v29 = vmul.f32 0.5, %v7385_v54 }
0x14ee   : > { %13285 = verf.f32 %v7823_v61  ;;  %v7279_v63 = vpop.f32.mrb[4].mxu1  ;;  %v7392_v41 = vpop.f32.mrb[36].mxu0 }
0x14ef   : > { %13287 = verf.f32 %v7825_v0  ;;  %v7280_v1 = vadd.f32 %v7279_v63, %v17345_v53  ;;  %v7393_v45 = vadd.f32 %v7392_v41, %v17347_v25  ;;  %v7281_v57 = vpop.f32.mrb[5].mxu1  ;;  %v7394_v16 = vpop.f32.mrb[37].mxu0  ;;  %v7697_v63 = vmul.f32 0.5, %v7387_v47 }
0x14f0   : > { %13289 = verf.f32 %v7818_v34  ;;  %v7282_v56 = vadd.f32 %v7281_v57, %v17350_v15  ;;  %v7283_v46 = vpop.f32.mrb[6].mxu1  ;;  %v7396_v19 = vpop.f32.mrb[38].mxu0  ;;  %v7395_v24 = vadd.f32 %v7394_v16, %v17352_v20  ;;  %v17378_v34 = vmul.f32 0.5, %v7272_v50 }
0x14f1   : > { %13291 = verf.f32 %v7824_v18  ;;  %v7831_v33 = vmul.f32 0.70710677, %v7280_v1  ;;  %v7285_v11 = vpop.f32.mrb[7].mxu1  ;;  %v7398_v23 = vpop.f32.mrb[39].mxu0  ;;  %v7833_v3 = vmul.f32 0.70710677, %v7393_v45  ;;  %v7284_v0 = vadd.f32 %v7283_v46, %v17345_v53 }
0x14f2   : > { %v7832_v61 = vmul.f32 0.70710677, %v7282_v56  ;;  %v7397_v40 = vadd.f32 %v7396_v19, %v17347_v25  ;;  %v7695_v18 = vmul.f32 0.5, %v7274_v58  ;;  %v7834_v57 = vmul.f32 0.70710677, %v7395_v24 }
0x14f3   : > { %13293 = verf.f32 %v7831_v33  ;;  %v7839_v27 = vmul.f32 0.70710677, %v7284_v0  ;;  %v7286_v38 = vadd.f32 %v7285_v11, %v17350_v15  ;;  %v17385_v16 = vmul.f32 0.5, %v7276_v42 }
0x14f4   : > { %13295 = verf.f32 %v7833_v3  ;;  %v7841_v50 = vmul.f32 0.70710677, %v7397_v40  ;;  %v17388_v46 = vadd.f32 %v7398_v23, %v17352_v20  ;;  %v17390_v58 = vmul.f32 0.5, %v7389_v5 }
0x14f5   : > { %v13280_v55 = vpop.eup %13279  ;;  %13297 = verf.f32 %v7826_v6  ;;  %v17392_v47 = vmul.f32 0.5, %v7280_v1  ;;  %v17394_v42 = vmul.f32 0.5, %v7393_v45  ;;  %v17398_v44 = vmul.f32 0.5, %v7395_v24 }
0x14f6   : > { %v13282_v41 = vpop.eup %13281  ;;  %13299 = verf.f32 %v7832_v61  ;;  %v7289_v19 = vpop.f32.mrb[8].mxu1  ;;  %v8071_v49 = vadd.f32 1.0, %v13280_v55  ;;  %v17396_v61 = vmul.f32 0.5, %v7282_v56  ;;  %v7840_v5 = vmul.f32 0.70710677, %v7286_v38 }
0x14f7   : > { %v7402_v33 = vpop.f32.mrb[40].mxu0  ;;  %v13284_v54 = vpop.eup %13283  ;;  %13301 = verf.f32 %v7839_v27  ;;  %v8073_v11 = vadd.f32 1.0, %v13282_v41  ;;  %v7711_v41 = vmul.f32 0.5, %v7284_v0  ;;  %v7842_v45 = vmul.f32 0.70710677, %v17388_v46 }
0x14f8   : > { %v7291_v6 = vpop.f32.mrb[9].mxu1  ;;  %v7404_v3 = vpop.f32.mrb[41].mxu0  ;;  %13303 = verf.f32 %v7841_v50  ;;  %v7290_v56 = vadd.f32 %v7289_v19, %v17345_v53  ;;  %v17406_v17 = vmul.f32 %v8071_v49, %v7687_v30  ;;  %v17411_v24 = vadd.f32 %v7402_v33, %v17347_v25 }
0x14f9   : > { %v13286_v60 = vpop.eup %13285  ;;  %v7293_v23 = vpop.f32.mrb[10].mxu1  ;;  %13305 = verf.f32 %v7834_v57  ;;  %v17413_v57 = vmul.f32 %v8073_v11, %v7689_v28  ;;  %v8072_v12 = vadd.f32 1.0, %v13284_v54  ;;  %v7292_v54 = vadd.f32 %v7291_v6, %v17350_v15 }
0x14fa   : > { %v7406_v26 = vpop.f32.mrb[42].mxu0  ;;  %v13288_v52 = vpop.eup %13287  ;;  %v8079_v32 = vadd.f32 1.0, %v13286_v60  ;;  %v7713_v60 = vmul.f32 0.5, %v7397_v40  ;;  %13307 = verf.f32 %v7840_v5  ;;  %v7849_v49 = vmul.f32 0.70710677, %v17411_v24 }
0x14fb   : > { %v17400_v1 = vpop.f32.mrb[11].mxu1  ;;  %v17402_v55 = vpop.f32.mrb[43].mxu0  ;;  %v8081_v22 = vadd.f32 1.0, %v13288_v52  ;;  %19704 = vst [vmem:[#allocation56_spill] sm:$0xff] %v17413_v57  ;;  %v7847_v52 = vmul.f32 0.70710677, %v7290_v56  ;;  %13309 = verf.f32 %v7842_v45  ;;  %v7405_v11 = vadd.f32 %v7404_v3, %v17352_v20 }
0x14fc   : > { %v13290_v27 = vpop.eup %13289  ;;  %v17408_v62 = vmul.f32 %v8079_v32, %v7695_v18  ;;  %v17422_v18 = vmul.f32 0.5, %v7286_v38  ;;  %v17427_v7 = vmul.f32 %v8072_v12, %v17378_v34  ;;  %v7294_v38 = vadd.f32 %v7293_v23, %v17345_v53 }
0x14fd   : > { %v13292_v50 = vpop.eup %13291  ;;  %v17415_v10 = vmul.f32 %v8081_v22, %v7697_v63  ;;  %v8074_v51 = vadd.f32 1.0, %v13290_v27  ;;  %13311 = verf.f32 %v7847_v52  ;;  %v17438_v6 = vmul.f32 0.5, %v17388_v46 }
0x14fe   : > { %v13294_v0 = vpop.eup %13293  ;;  %v8080_v40 = vadd.f32 1.0, %v13292_v50  ;;  %13313 = verf.f32 %v7849_v49  ;;  %v7848_v3 = vmul.f32 0.70710677, %v7292_v54  ;;  %v7407_v13 = vadd.f32 %v7406_v26, %v17347_v25 }
0x14ff   : > { %19705 = vst [vmem:[#allocation57_spill] sm:$0xff] %v17415_v10  ;;  %v13296_v32 = vpop.eup %13295  ;;  %v7299_v28 = vpop.f32.mrb[12].mxu1  ;;  %v8087_v33 = vadd.f32 1.0, %v13294_v0  ;;  %v17435_v52 = vmul.f32 %v8074_v51, %v17382_v29  ;;  %v17445_v8 = vmul.f32 0.5, %v7290_v56  ;;  %v7850_v48 = vmul.f32 0.70710677, %v7405_v11 }
0x1500   : > { %v7412_v22 = vpop.f32.mrb[44].mxu0  ;;  %v13298_v63 = vpop.eup %13297  ;;  %v8089_v30 = vadd.f32 1.0, %v13296_v32  ;;  %v8208_v51 = vmul.f32 %v8080_v40, %v17385_v16  ;;  %13315 = verf.f32 %v7848_v3  ;;  %v7855_v4 = vmul.f32 0.70710677, %v7294_v38 }
0x1501   : > { %v7301_v5 = vpop.f32.mrb[13].mxu1  ;;  %v7414_v27 = vpop.f32.mrb[45].mxu0  ;;  %19706 = vst [vmem:[#allocation58_spill] sm:$0xff] %v17435_v52  ;;  %v8082_v23 = vadd.f32 1.0, %v13298_v63  ;;  %v17449_v29 = vmul.f32 %v8087_v33, %v17392_v47  ;;  %13317 = verf.f32 %v7850_v48  ;;  %v7857_v56 = vmul.f32 0.70710677, %v7407_v13 }
0x1502   : > { %v13300_v19 = vpop.eup %13299  ;;  %v17430_v45 = vpop.f32.mrb[14].mxu1  ;;  %v17452_v26 = vmul.f32 %v8089_v30, %v17394_v42  ;;  %13319 = verf.f32 %v7855_v4  ;;  %v17464_v42 = vadd.f32 %v17402_v55, %v17352_v20  ;;  %v17485_v40 = vmul.f32 0.5, %v7292_v54 }
0x1503   : > { %v17432_v50 = vpop.f32.mrb[46].mxu0  ;;  %v13302_v0 = vpop.eup %13301  ;;  %v8088_v46 = vadd.f32 1.0, %v13300_v19  ;;  %v17471_v48 = vmul.f32 %v8082_v23, %v17390_v58  ;;  %13321 = verf.f32 %v7857_v56  ;;  %v17490_v23 = vmul.f32 0.5, %v7405_v11 }
0x1504   : > { %v17441_v12 = vpop.f32.mrb[15].mxu1  ;;  %v17443_v34 = vpop.f32.mrb[47].mxu0  ;;  %v8095_v32 = vadd.f32 1.0, %v13302_v0  ;;  %19707 = vst [vmem:[#allocation59_spill] sm:$0xff] %v17452_v26  ;;  %v7296_v0 = vadd.f32 %v17400_v1, %v17350_v15  ;;  %v7858_v58 = vmul.f32 0.70710677, %v17464_v42  ;;  %v17499_v56 = vadd.f32 %v7301_v5, %v17350_v15 }
0x1505   : > { %v13304_v49 = vpop.eup %13303  ;;  %19709 = vst [vmem:[#allocation61_spill] sm:$0xff] %v17471_v48  ;;  %v17483_v30 = vmul.f32 %v8088_v46, %v17396_v61  ;;  %v17509_v11 = vadd.f32 %v7414_v27, %v17352_v20  ;;  %v7727_v39 = vmul.f32 0.5, %v7294_v38  ;;  %v7729_v27 = vmul.f32 0.5, %v7407_v13 }
0x1506   : > { %v13306_v14 = vpop.eup %13305  ;;  %v8097_v36 = vadd.f32 1.0, %v13304_v49  ;;  %v17454_v35 = vmul.f32 %v8095_v32, %v7711_v41  ;;  %v7856_v33 = vmul.f32 0.70710677, %v7296_v0  ;;  %v17496_v32 = vadd.f32 %v7412_v22, %v17347_v25  ;;  %v12847_v22 = vld [vmem:[%s19698_s22 + $0x100] ss:$8 sps:$4 sm:$0xff]  }
0x1507   : > { %v8090_v16 = vadd.f32 1.0, %v13306_v14  ;;  %v17466_v41 = vpop.f32.mrb[16].mxu1  ;;  %v17468_v19 = vpop.f32.mrb[48].mxu0  ;;  %v17476_v14 = vmul.f32 0.5, %v17411_v24  ;;  %v17493_v24 = vadd.f32 %v7299_v28, %v17345_v53  ;;  %v8328_v28 = vpack.c.bf16 %v8208_v51, %v17427_v7 }
0x1508   : > { %v17456_v63 = vmul.f32 %v8097_v36, %v7713_v60  ;;  %v13308_v36 = vpop.eup %13307  ;;  %v17478_v4 = vpop.f32.mrb[17].mxu1  ;;  %13323 = verf.f32 %v7856_v33  ;;  %v7865_v7 = vmul.f32 0.70710677, %v17496_v32  ;;  %v19711_v38 = vpack.c.bf16 %v17408_v62, %v17406_v17 }
0x1509   : > { %v17480_v60 = vpop.f32.mrb[49].mxu0  ;;  %v13310_v55 = vpop.eup %13309  ;;  %v17506_v1 = vmul.f32 %v8090_v16, %v17398_v44  ;;  %v8096_v47 = vadd.f32 1.0, %v13308_v36  ;;  %v7863_v9 = vmul.f32 0.70710677, %v17493_v24  ;;  %v12852_v44 = vld [vmem:[%s19698_s22 + $0x114] ss:$8 sps:$4 sm:$0xff]   ;;  %13325 = verf.f32 %v7858_v58  ;;  %9203 = vmatprep.mubr.bf16.mxu1 %v8328_v28 }
0x150a   : > { %19708 = vst [vmem:[#allocation60_spill] sm:$0xff] %v17456_v63  ;;  %v17488_v3 = vpop.f32.mrb[18].mxu1  ;;  %v13312_v49 = vpop.eup %13311  ;;  %v8098_v31 = vadd.f32 1.0, %v13310_v55  ;;  %v7864_v36 = vmul.f32 0.70710677, %v17499_v56  ;;  %9204 = vmatmul.mubr.bf16.vlgmr.msra.gmra.mrb[64].mxu1 %v19711_v38  ;;  %v7304_v13 = vadd.f32 %v17430_v45, %v17345_v53  ;;  %v17534_v58 = vadd.f32 %v17432_v50, %v17347_v25 }
0x150b   : > { %v17501_v61 = vpop.f32.mrb[50].mxu0  ;;  %v17503_v54 = vpop.f32.mrb[19].mxu1  ;;  %19710 = vst [vmem:[#allocation62_spill] sm:$0xff] %v17506_v1  ;;  %v8103_v16 = vadd.f32 1.0, %v13312_v49  ;;  %13327 = verf.f32 %v7863_v9  ;;  %v7866_v55 = vmul.f32 0.70710677, %v17509_v11  ;;  %v17528_v43 = vmul.f32 %v8096_v47, %v17422_v18  ;;  %9285 = vmatpush1.bf16.msra.mxu1 %v12847_v22 }
0x150c   : > { %v13314_v46 = vpop.eup %13313  ;;  %v17515_v5 = vpop.f32.mrb[51].mxu0  ;;  %13329 = verf.f32 %v7865_v7  ;;  %v12850_v9 = vld [vmem:[%s19698_s22 + $0x110] ss:$8 sps:$4 sm:$0xff]   ;;  %v17544_v18 = vmul.f32 %v8098_v31, %v17438_v6  ;;  %v17546_v47 = vmul.f32 0.5, %v7296_v0  ;;  %v17550_v45 = vadd.f32 %v17441_v12, %v17350_v15  ;;  %9286 = vmatprep.subr.bf16.mxu1 %v12852_v44  ;;  %v12853_v1 = vld [vmem:[%s19698_s22 + $0x120] ss:$8 sps:$4 sm:$0xff]  }
0x150d   : > { %v8105_v51 = vadd.f32 1.0, %v13314_v46  ;;  %v13316_v33 = vpop.eup %13315  ;;  %v17554_v50 = vadd.f32 %v17443_v34, %v17352_v20  ;;  %v12855_v46 = vld [vmem:[%s19698_s22 + $0x124] ss:$8 sps:$4 sm:$0xff]   ;;  %v17564_v6 = vmul.f32 %v8103_v16, %v17445_v8  ;;  %v17567_v12 = vmul.f32 0.5, %v17464_v42 }
0x150e   : > { %v13318_v17 = vpop.eup %13317  ;;  %19712 = vst [vmem:[#allocation63_spill] sm:$0xff] %v17544_v18  ;;  %13331 = verf.f32 %v7864_v36  ;;  %v7871_v0 = vmul.f32 0.70710677, %v7304_v13  ;;  %v7873_v63 = vmul.f32 0.70710677, %v17534_v58  ;;  %v8104_v42 = vadd.f32 1.0, %v13316_v33 }
0x150f   : > { %v17539_v49 = vpop.f32.mrb[20].mxu1  ;;  %v17541_v62 = vpop.f32.mrb[52].mxu0  ;;  %v17574_v38 = vmul.f32 %v8105_v51, %v17476_v14  ;;  %13333 = verf.f32 %v7866_v55  ;;  %v7872_v36 = vmul.f32 0.70710677, %v17550_v45  ;;  %9287 = vmatpush1.bf16.msra.mxu1 %v12850_v9  ;;  %v8106_v14 = vadd.f32 1.0, %v13318_v17 }
0x1510   : > { %v17559_v28 = vpop.f32.mrb[21].mxu1  ;;  %v17561_v22 = vpop.f32.mrb[53].mxu0  ;;  %13335 = verf.f32 %v7871_v0  ;;  %v7874_v55 = vmul.f32 0.70710677, %v17554_v50  ;;  %9288 = vmatprep.subr.bf16.mxu1 %v12855_v46  ;;  %v12858_v33 = vld [vmem:[%s19698_s22 + $0x134] ss:$8 sps:$4 sm:$0xff]   ;;  %v7310_v9 = vadd.f32 %v17466_v41, %v17345_v53  ;;  %v7423_v0 = vadd.f32 %v17468_v19, %v17347_v25 }
0x1511   : > { %v13320_v31 = vpop.eup %13319  ;;  %v17569_v34 = vpop.f32.mrb[22].mxu1  ;;  %19713 = vst [vmem:[#allocation64_spill] sm:$0xff] %v17574_v38  ;;  %13337 = verf.f32 %v7873_v63  ;;  %v17602_v63 = vadd.f32 %v17478_v4, %v17350_v15  ;;  %v12861_v41 = vld [vmem:[%s19698_s22 + $0x144] ss:$8 sps:$4 sm:$0xff]   ;;  %v17626_v57 = vmul.f32 0.5, %v17509_v11  ;;  %v7743_v46 = vmul.f32 0.5, %v7304_v13 }
0x1512   : > { %v17571_v44 = vpop.f32.mrb[54].mxu0  ;;  %v13322_v7 = vpop.eup %13321  ;;  %v8111_v26 = vadd.f32 1.0, %v13320_v31  ;;  %13339 = verf.f32 %v7872_v36  ;;  %v7879_v4 = vmul.f32 0.70710677, %v7310_v9  ;;  %v7881_v38 = vmul.f32 0.70710677, %v7423_v0 }
0x1513   : > { %v17577_v18 = vpop.f32.mrb[23].mxu1  ;;  %v17579_v8 = vpop.f32.mrb[55].mxu0  ;;  %v8113_v16 = vadd.f32 1.0, %v13322_v7  ;;  %13341 = verf.f32 %v7874_v55  ;;  %v17613_v7 = vmul.f32 0.5, %v17496_v32  ;;  %9289 = vmatpush1.bf16.msra.mxu1 %v12853_v1  ;;  %v17633_v1 = vmul.f32 %v8106_v14, %v17490_v23 }
0x1514   : > { %v17585_v51 = vmul.f32 %v8111_v26, %v7727_v39  ;;  %v13324_v17 = vpop.eup %13323  ;;  %v7735_v26 = vmul.f32 0.5, %v17493_v24  ;;  %v17616_v24 = vmul.f32 0.5, %v17499_v56  ;;  %v17623_v39 = vmul.f32 %v8104_v42, %v17485_v40  ;;  %9290 = vmatprep.subr.bf16.mxu1 %v12858_v33 }
0x1515   : > { %v17591_v31 = vmul.f32 %v8113_v16, %v7729_v27  ;;  %v12856_v27 = vld [vmem:[%s19698_s22 + $0x130] ss:$8 sps:$4 sm:$0xff]   ;;  %v13326_v19 = vpop.eup %13325  ;;  %19715 = vst [vmem:[#allocation66_spill] sm:$0xff] %v17633_v1  ;;  %v8112_v10 = vadd.f32 1.0, %v13324_v17  ;;  %v7745_v48 = vmul.f32 0.5, %v17534_v58  ;;  %13343 = verf.f32 %v7879_v4 }
0x1516   : > { %v13328_v55 = vpop.eup %13327  ;;  %v7880_v13 = vmul.f32 0.70710677, %v17602_v63  ;;  %v17643_v33 = vadd.f32 %v17480_v60, %v17352_v20  ;;  %v8336_v52 = vpack.c.bf16 %v17528_v43, %v17483_v30  ;;  %v8114_v17 = vadd.f32 1.0, %v13326_v19  ;;  %v12859_v43 = vld [vmem:[%s19698_s22 + $0x140] ss:$8 sps:$4 sm:$0xff]  }
0x1517   : > { %19714 = vst [vmem:[#allocation65_spill] sm:$0xff] %v17591_v31  ;;  %v17618_v16 = vpop.f32.mrb[24].mxu1  ;;  %v17620_v36 = vpop.f32.mrb[56].mxu0  ;;  %v8119_v11 = vadd.f32 1.0, %v13328_v55  ;;  %v17652_v4 = vmul.f32 0.5, %v17550_v45  ;;  %v17655_v55 = vmul.f32 0.5, %v17554_v50  ;;  %v17659_v1 = vadd.f32 %v17488_v3, %v17345_v53  ;;  %9291 = vmatpush1.bf16.msra.mxu1 %v12856_v27 }
0x1518   : > { %v17628_v32 = vpop.f32.mrb[25].mxu1  ;;  %v17630_v56 = vpop.f32.mrb[57].mxu0  ;;  %v17664_v59 = vmul.f32 0.5, %v7310_v9  ;;  %13345 = verf.f32 %v7881_v38  ;;  %v7882_v45 = vmul.f32 0.70710677, %v17643_v33  ;;  %9213 = vmatprep.mubr.bf16.mxu1 %v8336_v52  ;;  %9292 = vmatprep.subr.bf16.mxu1 %v12861_v41  ;;  %v17671_v27 = vmul.f32 %v8112_v10, %v17546_v47 }
0x1519   : > { %v13330_v31 = vpop.eup %13329  ;;  %v17636_v40 = vpop.f32.mrb[26].mxu1  ;;  %v12864_v50 = vld [vmem:[%s19698_s22 + $0x154] ss:$8 sps:$4 sm:$0xff]   ;;  %v17673_v19 = vmul.f32 0.5, %v7423_v0  ;;  %v7887_v2 = vmul.f32 0.70710677, %v17659_v1  ;;  %v19716_v38 = vpack.c.bf16 %v17454_v35, %v17449_v29  ;;  %v17681_v9 = vmul.f32 %v8119_v11, %v7735_v26 }
0x151a   : > { %v17638_v42 = vpop.f32.mrb[58].mxu0  ;;  %v17647_v23 = vpop.f32.mrb[27].mxu1  ;;  %v8121_v30 = vadd.f32 1.0, %v13330_v31  ;;  %v7427_v31 = vadd.f32 %v17501_v61, %v17347_v25  ;;  %13347 = verf.f32 %v7880_v13  ;;  %v7316_v10 = vadd.f32 %v17503_v54, %v17350_v15  ;;  %v12862_v47 = vld [vmem:[%s19698_s22 + $0x150] ss:$8 sps:$4 sm:$0xff]  }
0x151b   : > { %v17649_v14 = vpop.f32.mrb[59].mxu0  ;;  %v13332_v58 = vpop.eup %13331  ;;  %9214 = vmatmul.mubr.bf16.gmra.mrb[68].mxu1 %v19716_v38  ;;  %13349 = verf.f32 %v7887_v2 }
0x151c   : > { %v13334_v60 = vpop.eup %13333  ;;  %v8120_v37 = vadd.f32 1.0, %v13332_v58  ;;  %v7889_v61 = vmul.f32 0.70710677, %v7427_v31  ;;  %9293 = vmatpush1.bf16.msra.mxu1 %v12859_v43  ;;  %v17693_v11 = vmul.f32 %v8121_v30, %v17613_v7  ;;  %13351 = verf.f32 %v7882_v45  ;;  %v12867_v58 = vld [vmem:[%s19698_s22 + $0x164] ss:$8 sps:$4 sm:$0xff]  }
0x151d   : > { %v13336_v3 = vpop.eup %13335  ;;  %v7888_v54 = vmul.f32 0.70710677, %v7316_v10  ;;  %9294 = vmatprep.subr.bf16.mxu1 %v12864_v50  ;;  %v7429_v7 = vadd.f32 %v17515_v5, %v17352_v20  ;;  %v17713_v45 = vmul.f32 %v8114_v17, %v17567_v12  ;;  %v17732_v50 = vmul.f32 0.5, %v17643_v33 }
0x151e   : > { %v13338_v52 = vpop.eup %13337  ;;  %v8127_v41 = vadd.f32 1.0, %v13336_v3  ;;  %19717 = vst [vmem:[#allocation67_spill] sm:$0xff] %v17693_v11  ;;  %v8122_v3 = vadd.f32 1.0, %v13334_v60  ;;  %13353 = verf.f32 %v7889_v61  ;;  %v7322_v33 = vadd.f32 %v17559_v28, %v17350_v15  ;;  %v12868_v28 = vld [vmem:[%s19698_s22 + $0x170] ss:$8 sps:$4 sm:$0xff]  }
0x151f   : > { %v13340_v0 = vpop.eup %13339  ;;  %v8129_v21 = vadd.f32 1.0, %v13338_v52  ;;  %v17688_v35 = vpop.f32.mrb[28].mxu1  ;;  %19719 = vst [vmem:[#allocation69_spill] sm:$0xff] %v17713_v45  ;;  %v17718_v52 = vmul.f32 0.5, %v17602_v63  ;;  %v7890_v17 = vmul.f32 0.70710677, %v7429_v7  ;;  %13355 = verf.f32 %v7888_v54 }
0x1520   : > { %v17690_v29 = vpop.f32.mrb[60].mxu0  ;;  %v13342_v26 = vpop.eup %13341  ;;  %v17695_v13 = vmul.f32 %v8127_v41, %v7743_v46  ;;  %v8128_v61 = vadd.f32 1.0, %v13340_v0  ;;  %9295 = vmatpush1.bf16.msra.mxu1 %v12862_v47  ;;  %v12865_v63 = vld [vmem:[%s19698_s22 + $0x160] ss:$8 sps:$4 sm:$0xff]   ;;  %v7433_v45 = vadd.f32 %v17541_v62, %v17347_v25  ;;  %v12870_v0 = vld [vmem:[%s19698_s22 + $0x174] ss:$8 sps:$4 sm:$0xff]   ;;  %v17743_v47 = vmul.f32 %v8122_v3, %v17626_v57 }
0x1521   : > { %v17700_v2 = vpop.f32.mrb[29].mxu1  ;;  %v17702_v43 = vpop.f32.mrb[61].mxu0  ;;  %v17704_v38 = vmul.f32 %v8129_v21, %v7745_v48  ;;  %v7320_v21 = vadd.f32 %v17539_v49, %v17345_v53  ;;  %v8130_v12 = vadd.f32 1.0, %v13342_v26  ;;  %9296 = vmatprep.subr.bf16.mxu1 %v12867_v58  ;;  %v17740_v26 = vmul.f32 %v8120_v37, %v17616_v24 }
0x1522   : > { %v17708_v46 = vpop.f32.mrb[30].mxu1  ;;  %v17710_v30 = vpop.f32.mrb[62].mxu0  ;;  %19720 = vst [vmem:[#allocation70_spill] sm:$0xff] %v17743_v47  ;;  %v7759_v41 = vmul.f32 0.5, %v17659_v1  ;;  %v17748_v62 = vmul.f32 0.5, %v7316_v10  ;;  %13357 = verf.f32 %v7890_v17  ;;  %v17751_v58 = vmul.f32 %v8128_v61, %v17652_v4 }
0x1523   : > { %19718 = vst [vmem:[#allocation68_spill] sm:$0xff] %v17704_v38  ;;  %v17722_v48 = vpop.f32.mrb[31].mxu1  ;;  %v17724_v60 = vpop.f32.mrb[63].mxu0  ;;  %v7895_v49 = vmul.f32 0.70710677, %v7320_v21  ;;  %v7761_v38 = vmul.f32 0.5, %v7427_v31  ;;  %v17754_v37 = vmul.f32 %v8130_v12, %v17655_v55  ;;  %v17758_v57 = vadd.f32 %v17561_v22, %v17352_v20 }
0x1524   : > { %v13344_v5 = vpop.eup %13343  ;;  %v7897_v24 = vmul.f32 0.70710677, %v7433_v45  ;;  %9297 = vmatpush1.bf16.msra.mxu1 %v12865_v63  ;;  %v17765_v10 = vmul.f32 0.5, %v7429_v7  ;;  %v7896_v4 = vmul.f32 0.70710677, %v7322_v33  ;;  %v8344_v55 = vpack.c.bf16 %v17671_v27, %v17623_v39 }
0x1525   : > { %v13346_v54 = vpop.eup %13345  ;;  %v8135_v11 = vadd.f32 1.0, %v13344_v5  ;;  %19721 = vst [vmem:[#allocation71_spill] sm:$0xff] %v17754_v37  ;;  %13359 = verf.f32 %v7895_v49  ;;  %9298 = vmatprep.subr.bf16.mxu1 %v12870_v0  ;;  %v7324_v12 = vadd.f32 %v17569_v34, %v17345_v53  ;;  %v17777_v7 = vadd.f32 %v17571_v44, %v17347_v25  ;;  %v12873_v17 = vld [vmem:[%s19698_s22 + $0x184] ss:$8 sps:$4 sm:$0xff]  }
0x1526   : > { %v13348_v31 = vpop.eup %13347  ;;  %v8137_v61 = vadd.f32 1.0, %v13346_v54  ;;  %13361 = verf.f32 %v7897_v24  ;;  %v17789_v54 = vmul.f32 0.5, %v7320_v21  ;;  %9223 = vmatprep.mubr.bf16.mxu1 %v8344_v55  ;;  %v7326_v34 = vadd.f32 %v17577_v18, %v17350_v15 }
0x1527   : > { %v17763_v1 = vpop.f32.mrb[32].mxu1  ;;  %v13350_v5 = vpop.eup %13349  ;;  %v17787_v49 = vmul.f32 %v8135_v11, %v17664_v59  ;;  %v8136_v47 = vadd.f32 1.0, %v13348_v31  ;;  %v19725_v59 = vpack.c.bf16 %v17585_v51, %v17564_v6  ;;  %v7439_v11 = vadd.f32 %v17579_v8, %v17352_v20  ;;  %v12871_v31 = vld [vmem:[%s19698_s22 + $0x180] ss:$8 sps:$4 sm:$0xff]   ;;  %v12876_v51 = vld [vmem:[%s19698_s22 + $0x194] ss:$8 sps:$4 sm:$0xff]  }
0x1528   : > { %v17769_v3 = vpop.f32.mrb[96].mxu0  ;;  %v17771_v22 = vpop.f32.mrb[33].mxu1  ;;  %v8143_v0 = vadd.f32 1.0, %v13350_v5  ;;  %13363 = verf.f32 %v7896_v4  ;;  %v7905_v5 = vmul.f32 0.70710677, %v17777_v7  ;;  %9299 = vmatpush1.bf16.msra.mxu1 %v12868_v28  ;;  %v17814_v6 = vmul.f32 0.5, %v7433_v45 }
0x1529   : > { %v17782_v39 = vpop.f32.mrb[97].mxu0  ;;  %v17784_v27 = vpop.f32.mrb[34].mxu1  ;;  %9224 = vmatmul.mubr.bf16.gmra.mrb[72].mxu1 %v19725_v59  ;;  %v7904_v8 = vmul.f32 0.70710677, %v7326_v34  ;;  %9300 = vmatprep.subr.bf16.mxu1 %v12873_v17  ;;  %v7330_v45 = vadd.f32 %v17618_v16, %v17345_v53  ;;  %v12874_v16 = vld [vmem:[%s19698_s22 + $0x190] ss:$8 sps:$4 sm:$0xff]  }
0x152a   : > { %19722 = vst [vmem:[#allocation72_spill] sm:$0xff] %v17782_v39  ;;  %19723 = vst [vmem:[#allocation73_spill] sm:$0xff] %v17784_v27  ;;  %v13352_v63 = vpop.eup %13351  ;;  %v17793_v44 = vpop.f32.mrb[98].mxu0  ;;  %v7898_v39 = vmul.f32 0.70710677, %v17758_v57  ;;  %v17805_v55 = vmul.f32 %v8143_v0, %v7759_v41  ;;  %v17823_v0 = vmul.f32 0.5, %v7322_v33  ;;  %v17838_v33 = vadd.f32 %v17628_v32, %v17350_v15 }
0x152b   : > { %v17795_v24 = vpop.f32.mrb[35].mxu1  ;;  %v13354_v37 = vpop.eup %13353  ;;  %v7903_v27 = vmul.f32 0.70710677, %v7324_v12  ;;  %v7911_v32 = vmul.f32 0.70710677, %v7330_v45  ;;  %v7775_v28 = vmul.f32 0.5, %v7324_v12  ;;  %v8352_v12 = vpack.c.bf16 %v17751_v58, %v17740_v26 }
0x152c   : > { %19724 = vst [vmem:[#allocation74_spill] sm:$0xff] %v17795_v24  ;;  %v17803_v21 = vpop.f32.mrb[99].mxu0  ;;  %v8145_v18 = vadd.f32 1.0, %v13354_v37  ;;  %v17812_v24 = vmul.f32 %v8137_v61, %v17673_v19  ;;  %v13356_v41 = vpop.eup %13355  ;;  %v8138_v37 = vadd.f32 1.0, %v13352_v63  ;;  %v7906_v19 = vmul.f32 0.70710677, %v7439_v11  ;;  %9301 = vmatpush1.bf16.msra.mxu1 %v12871_v31 }
0x152d   : > { %13365 = verf.f32 %v7903_v27  ;;  %v13358_v17 = vpop.eup %13357  ;;  %v17830_v27 = vmul.f32 %v8136_v47, %v17718_v52  ;;  %v12879_v52 = vld [vmem:[%s19698_s22 + $0x1a4] ss:$8 sps:$4 sm:$0xff]   ;;  %v8144_v59 = vadd.f32 1.0, %v13356_v41  ;;  %9302 = vmatprep.subr.bf16.mxu1 %v12876_v51  ;;  %v7445_v51 = vadd.f32 %v17630_v56, %v17352_v20  ;;  %v12882_v26 = vld [vmem:[%s19698_s22 + $0x1b4] ss:$8 sps:$4 sm:$0xff]   ;;  %9233 = vmatprep.mubr.bf16.mxu1 %v8352_v12 }
0x152e   : > { %19726 = vst [vmem:[#allocation75_spill] sm:$0xff] %v17812_v24  ;;  %v17821_v4 = vmul.f32 %v8145_v18, %v7761_v38  ;;  %13367 = verf.f32 %v7905_v5  ;;  %v7443_v38 = vadd.f32 %v17620_v36, %v17347_v25  ;;  %v17851_v36 = vmul.f32 0.5, %v17758_v57 }
0x152f   : > { %13369 = verf.f32 %v7898_v39  ;;  %v17827_v61 = vpop.f32.mrb[36].mxu1  ;;  %v13360_v31 = vpop.eup %13359  ;;  %v17858_v63 = vmul.f32 %v8138_v37, %v17732_v50  ;;  %v7777_v50 = vmul.f32 0.5, %v17777_v7  ;;  %v17870_v37 = vmul.f32 0.5, %v7326_v34 }
0x1530   : > { %19727 = vst [vmem:[#allocation76_spill] sm:$0xff] %v17821_v4  ;;  %v17846_v47 = vpop.f32.mrb[100].mxu0  ;;  %v17848_v39 = vpop.f32.mrb[37].mxu1  ;;  %13371 = verf.f32 %v7904_v8  ;;  %v7913_v24 = vmul.f32 0.70710677, %v7443_v38  ;;  %9303 = vmatpush1.bf16.msra.mxu1 %v12874_v16  ;;  %v17882_v56 = vmul.f32 0.5, %v7439_v11  ;;  %v19733_v11 = vpack.c.bf16 %v17695_v13, %v17681_v9 }
0x1531   : > { %19728 = vst [vmem:[#allocation77_spill] sm:$0xff] %v17848_v39  ;;  %v17853_v18 = vpop.f32.mrb[101].mxu0  ;;  %v17855_v5 = vpop.f32.mrb[38].mxu1  ;;  %19730 = vst [vmem:[#allocation79_spill] sm:$0xff] %v17858_v63  ;;  %13373 = verf.f32 %v7906_v19  ;;  %v8146_v39 = vadd.f32 1.0, %v13358_v17  ;;  %v7334_v19 = vadd.f32 %v17636_v40, %v17345_v53  ;;  %9304 = vmatprep.subr.bf16.mxu1 %v12879_v52  ;;  %v8151_v34 = vadd.f32 1.0, %v13360_v31 }
0x1532   : > { %19729 = vst [vmem:[#allocation78_spill] sm:$0xff] %v17855_v5  ;;  %v17860_v4 = vpop.f32.mrb[102].mxu0  ;;  %v17862_v41 = vpop.f32.mrb[39].mxu1  ;;  %13375 = verf.f32 %v7911_v32  ;;  %v7912_v8 = vmul.f32 0.70710677, %v17838_v33  ;;  %v17880_v32 = vmul.f32 %v8144_v59, %v17748_v62  ;;  %v17887_v16 = vmul.f32 0.5, %v7330_v45  ;;  %9234 = vmatmul.mubr.bf16.gmra.mrb[76].mxu1 %v19733_v11 }
0x1533   : > { %v13362_v57 = vpop.eup %13361  ;;  %v17867_v5 = vpop.f32.mrb[103].mxu0  ;;  %v12877_v17 = vld [vmem:[%s19698_s22 + $0x1a0] ss:$8 sps:$4 sm:$0xff]   ;;  %13377 = verf.f32 %v7913_v24  ;;  %v7914_v7 = vmul.f32 0.70710677, %v7445_v51  ;;  %v17890_v62 = vmul.f32 %v8146_v39, %v17765_v10  ;;  %v7447_v24 = vadd.f32 %v17638_v42, %v17347_v25 }
0x1534   : > { %19731 = vst [vmem:[#allocation80_spill] sm:$0xff] %v17867_v5  ;;  %v13364_v58 = vpop.eup %13363  ;;  %v8153_v40 = vadd.f32 1.0, %v13362_v57  ;;  %v7919_v63 = vmul.f32 0.70710677, %v7334_v19  ;;  %13379 = verf.f32 %v7912_v8  ;;  %v7336_v52 = vadd.f32 %v17647_v23, %v17350_v15  ;;  %v12880_v45 = vld [vmem:[%s19698_s22 + $0x1b0] ss:$8 sps:$4 sm:$0xff]   ;;  %9305 = vmatpush1.bf16.msra.mxu1 %v12877_v17 }
0x1535   : > { %19732 = vst [vmem:[#allocation81_spill] sm:$0xff] %v17890_v62  ;;  %v17904_v39 = vmul.f32 0.5, %v7443_v38  ;;  %v7449_v42 = vadd.f32 %v17649_v14, %v17352_v20  ;;  %v12885_v9 = vld [vmem:[%s19698_s22 + $0x1c4] ss:$8 sps:$4 sm:$0xff]   ;;  %v8152_v8 = vadd.f32 1.0, %v13364_v58  ;;  %9306 = vmatprep.subr.bf16.mxu1 %v12882_v26  ;;  %v7340_v26 = vadd.f32 %v17688_v35, %v17345_v53 }
0x1536   : > { %13381 = verf.f32 %v7919_v63  ;;  %v17918_v63 = vmul.f32 %v8151_v34, %v17789_v54  ;;  %v17921_v14 = vmul.f32 %v8153_v40, %v17814_v6  ;;  %v7920_v11 = vmul.f32 0.70710677, %v7336_v52 }
0x1537   : > { %v13366_v5 = vpop.eup %13365  ;;  %v17902_v59 = vpop.f32.mrb[40].mxu1  ;;  %13383 = verf.f32 %v7914_v7  ;;  %v7922_v7 = vmul.f32 0.70710677, %v7449_v42  ;;  %v17959_v40 = vadd.f32 %v17700_v2, %v17350_v15 }
0x1538   : > { %v13368_v31 = vpop.eup %13367  ;;  %v8159_v10 = vadd.f32 1.0, %v13366_v5  ;;  %v17911_v23 = vpop.f32.mrb[104].mxu0  ;;  %v7921_v5 = vmul.f32 0.70710677, %v7447_v24  ;;  %19735 = vst [vmem:[#allocation83_spill] sm:$0xff] %v17921_v14  ;;  %9307 = vmatpush1.bf16.msra.mxu1 %v12880_v45  ;;  %v7453_v45 = vadd.f32 %v17690_v29, %v17347_v25 }
0x1539   : > { %v17913_v13 = vpop.f32.mrb[41].mxu1  ;;  %v13370_v57 = vpop.eup %13369  ;;  %v8161_v12 = vadd.f32 1.0, %v13368_v31  ;;  %9308 = vmatprep.subr.bf16.mxu1 %v12885_v9  ;;  %v17964_v9 = vmul.f32 0.5, %v7336_v52  ;;  %v12891_v29 = vld [vmem:[%s19698_s22 + $0x1e4] ss:$8 sps:$4 sm:$0xff]  }
0x153a   : > { %19734 = vst [vmem:[#allocation82_spill] sm:$0xff] %v17913_v13  ;;  %v17915_v38 = vpop.f32.mrb[105].mxu0  ;;  %v17923_v17 = vmul.f32 %v8159_v10, %v7775_v28  ;;  %v17925_v62 = vpop.f32.mrb[42].mxu1  ;;  %13385 = verf.f32 %v7921_v5  ;;  %v8154_v28 = vadd.f32 1.0, %v13370_v57  ;;  %v17940_v10 = vmul.f32 0.5, %v17838_v33 }
0x153b   : > { %v17927_v13 = vpop.f32.mrb[106].mxu0  ;;  %v13372_v58 = vpop.eup %13371  ;;  %v17929_v31 = vmul.f32 %v8161_v12, %v7777_v50  ;;  %v12883_v50 = vld [vmem:[%s19698_s22 + $0x1c0] ss:$8 sps:$4 sm:$0xff]   ;;  %v17948_v12 = vmul.f32 %v8152_v8, %v17823_v0  ;;  %v7791_v5 = vmul.f32 0.5, %v7334_v19  ;;  %v12888_v33 = vld [vmem:[%s19698_s22 + $0x1d4] ss:$8 sps:$4 sm:$0xff]   ;;  %13387 = verf.f32 %v7920_v11 }
0x153c   : > { %19736 = vst [vmem:[#allocation84_spill] sm:$0xff] %v17927_v13  ;;  %v17933_v54 = vpop.f32.mrb[43].mxu1  ;;  %v17935_v34 = vpop.f32.mrb[107].mxu0  ;;  %v17942_v13 = vmul.f32 0.5, %v7445_v51  ;;  %v8160_v51 = vadd.f32 1.0, %v13372_v58  ;;  %v7793_v8 = vmul.f32 0.5, %v7447_v24  ;;  %13389 = verf.f32 %v7922_v7  ;;  %9309 = vmatpush1.bf16.msra.mxu1 %v12883_v50 }
0x153d   : > { %19737 = vst [vmem:[#allocation85_spill] sm:$0xff] %v17929_v31  ;;  %19738 = vst [vmem:[#allocation86_spill] sm:$0xff] %v17933_v54  ;;  %v13374_v6 = vpop.eup %13373  ;;  %v12886_v0 = vld [vmem:[%s19698_s22 + $0x1d0] ss:$8 sps:$4 sm:$0xff]   ;;  %v8360_v58 = vpack.c.bf16 %v17880_v32, %v17830_v27  ;;  %v17974_v2 = vmul.f32 %v8154_v28, %v17851_v36  ;;  %v7929_v31 = vmul.f32 0.70710677, %v7453_v45  ;;  %v7455_v32 = vadd.f32 %v17702_v43, %v17352_v20 }
0x153e   : > { %19739 = vst [vmem:[#allocation87_spill] sm:$0xff] %v17935_v34  ;;  %v13376_v35 = vpop.eup %13375  ;;  %v7927_v34 = vmul.f32 0.70710677, %v7340_v26  ;;  %v8162_v57 = vadd.f32 1.0, %v13374_v6  ;;  %v17980_v54 = vmul.f32 0.5, %v7449_v42  ;;  %9310 = vmatprep.subr.bf16.mxu1 %v12888_v33  ;;  %v17990_v50 = vmul.f32 %v8160_v51, %v17870_v37 }
0x153f   : > { %v13378_v19 = vpop.eup %13377  ;;  %v17971_v11 = vpop.f32.mrb[44].mxu1  ;;  %19740 = vst [vmem:[#allocation88_spill] sm:$0xff] %v17974_v2  ;;  %v8167_v14 = vadd.f32 1.0, %v13376_v35  ;;  %v7928_v27 = vmul.f32 0.70710677, %v17959_v40  ;;  %9243 = vmatprep.mubr.bf16.mxu1 %v8360_v58  ;;  %v17992_v2 = vmul.f32 0.5, %v7340_v26  ;;  %v19742_v42 = vpack.c.bf16 %v17805_v55, %v17787_v49 }
0x1540   : > { %v17976_v24 = vpop.f32.mrb[108].mxu0  ;;  %v17978_v52 = vpop.f32.mrb[45].mxu1  ;;  %13391 = verf.f32 %v7927_v34  ;;  %v8169_v35 = vadd.f32 1.0, %v13378_v19  ;;  %v18005_v37 = vadd.f32 %v17710_v30, %v17347_v25  ;;  %v7346_v55 = vadd.f32 %v17722_v48, %v17350_v15  ;;  %9311 = vmatpush1.bf16.msra.mxu1 %v12886_v0  ;;  %v12894_v25 = vld [vmem:[%s19698_s22 + $0x1f4] ss:$8 sps:$4 sm:$0xff]  }
0x1541   : > { %v13380_v7 = vpop.eup %13379  ;;  %v17985_v36 = vpop.f32.mrb[109].mxu0  ;;  %13393 = verf.f32 %v7929_v31  ;;  %9244 = vmatmul.mubr.bf16.gmra.mrb[80].mxu1 %v19742_v42  ;;  %v18010_v31 = vmul.f32 %v8162_v57, %v17882_v56  ;;  %v18013_v49 = vmul.f32 %v8167_v14, %v17887_v16  ;;  %v18019_v51 = vadd.f32 %v17724_v60, %v17352_v20  ;;  %9312 = vmatprep.subr.bf16.mxu1 %v12891_v29 }
0x1542   : > { %v17987_v6 = vpop.f32.mrb[46].mxu1  ;;  %v13382_v28 = vpop.eup %13381  ;;  %13395 = verf.f32 %v7928_v27  ;;  %v8168_v30 = vadd.f32 1.0, %v13380_v7  ;;  %v7930_v16 = vmul.f32 0.70710677, %v7455_v32  ;;  %v7937_v20 = vmul.f32 0.70710677, %v18005_v37 }
0x1543   : > { %19741 = vst [vmem:[#allocation89_spill] sm:$0xff] %v17987_v6  ;;  %v17997_v34 = vpop.f32.mrb[110].mxu0  ;;  %v17999_v43 = vpop.f32.mrb[47].mxu1  ;;  %v8175_v58 = vadd.f32 1.0, %v13382_v28  ;;  %v7344_v6 = vadd.f32 %v17708_v46, %v17345_v53  ;;  %19743 = vst [vmem:[#allocation90_spill] sm:$0xff] %v18010_v31  ;;  %v18031_v57 = vmul.f32 %v8169_v35, %v17904_v39  ;;  %v18035_v19 = vmul.f32 0.5, %v7453_v45 }
0x1544   : > { %v13384_v33 = vpop.eup %13383  ;;  %v18007_v26 = vpop.f32.mrb[111].mxu0  ;;  %v12889_v53 = vld [vmem:[%s19698_s22 + $0x1e0] ss:$8 sps:$4 sm:$0xff]   ;;  %v7936_v60 = vmul.f32 0.70710677, %v7346_v55  ;;  %v18045_v28 = vmul.f32 0.5, %v17959_v40 }
0x1545   : > { %v13386_v46 = vpop.eup %13385  ;;  %v18027_v56 = vmul.f32 %v8175_v58, %v7791_v5  ;;  %v7935_v14 = vmul.f32 0.70710677, %v7344_v6  ;;  %v8170_v15 = vadd.f32 1.0, %v13384_v33  ;;  %19744 = vst [vmem:[#allocation91_spill] sm:$0xff] %v18031_v57  ;;  %v12892_v5 = vld [vmem:[%s19698_s22 + $0x1f0] ss:$8 sps:$4 sm:$0xff]   ;;  %9313 = vmatpush1.bf16.msra.mxu1 %v12889_v53 }
0x1546   : > { %v8177_v48 = vadd.f32 1.0, %v13386_v46  ;;  %v13388_v29 = vpop.eup %13387  ;;  %v7938_v39 = vmul.f32 0.70710677, %v18019_v51  ;;  %v18052_v33 = vmul.f32 0.5, %v7455_v32  ;;  %v19748_v58 = vld [vmem:[#allocation52_spill] sm:$0xff]  ;;  %9314 = vmatprep.subr.bf16.mxu1 %v12894_v25  ;;  %v7807_v31 = vmul.f32 0.5, %v7344_v6 }
0x1547   : > { %13397 = verf.f32 %v7935_v14  ;;  %v18040_v7 = vpop.f32.mrb[48].mxu1  ;;  %v13390_v42 = vpop.eup %13389  ;;  %v7496_v46 = vadd.f32 %v17763_v1, %v19748_v58  ;;  %v12897_v40 = vld [vmem:[%s19698_s22 + $0x204] ss:$8 sps:$4 sm:$0xff]   ;;  %v18069_v32 = vmul.f32 %v8170_v15, %v17942_v13  ;;  %v8176_v0 = vadd.f32 1.0, %v13388_v29  ;;  %v19754_v1 = vld [vmem:[#allocation55_spill] sm:$0xff]  ;;  %v19755_v57 = vld [vmem:[#allocation72_spill] sm:$0xff] }
0x1548   : > { %v18042_v27 = vmul.f32 %v8177_v48, %v7793_v8  ;;  %13399 = verf.f32 %v7937_v20  ;;  %v18048_v35 = vpop.f32.mrb[112].mxu0  ;;  %v18050_v45 = vpop.f32.mrb[49].mxu1  ;;  %v19749_v8 = vld [vmem:[#allocation53_spill] sm:$0xff]  ;;  %v18066_v20 = vmul.f32 %v8168_v30, %v17940_v10  ;;  %v19753_v10 = vld [vmem:[#allocation54_spill] sm:$0xff]  ;;  %v8368_v30 = vpack.c.bf16 %v17990_v50, %v17948_v12 }
0x1549   : > { %19746 = vst [vmem:[#allocation93_spill] sm:$0xff] %v18048_v35  ;;  %19747 = vst [vmem:[#allocation94_spill] sm:$0xff] %v18050_v45  ;;  %13401 = verf.f32 %v7930_v16  ;;  %v7609_v14 = vadd.f32 %v17769_v3, %v19749_v8  ;;  %v18061_v53 = vpop.f32.mrb[113].mxu0  ;;  %v18063_v48 = vpop.f32.mrb[50].mxu1  ;;  %v8178_v35 = vadd.f32 1.0, %v13390_v42  ;;  %v7498_v13 = vadd.f32 %v17771_v22, %v19753_v10  ;;  %9315 = vmatpush1.bf16.msra.mxu1 %v12892_v5  ;;  %v19756_v6 = vld [vmem:[#allocation73_spill] sm:$0xff] }
0x154a   : > { %19745 = vst [vmem:[#allocation92_spill] sm:$0xff] %v18042_v27  ;;  %19750 = vst [vmem:[#allocation52_spill] sm:$0xff] %v18061_v53  ;;  %13403 = verf.f32 %v7936_v60  ;;  %v18073_v3 = vpop.f32.mrb[114].mxu0  ;;  %v18075_v25 = vpop.f32.mrb[51].mxu1  ;;  %v7819_v53 = vmul.f32 0.70710677, %v7496_v46  ;;  %v7611_v29 = vadd.f32 %v19755_v57, %v19754_v1  ;;  %v7500_v27 = vadd.f32 %v19756_v6, %v19748_v58  ;;  %9397 = vmatprep.subr.bf16.mxu1 %v12897_v40 }
0x154b   : > { %19751 = vst [vmem:[#allocation53_spill] sm:$0xff] %v18063_v48  ;;  %19752 = vst [vmem:[#allocation95_spill] sm:$0xff] %v18069_v32  ;;  %v13392_v16 = vpop.eup %13391  ;;  %v7821_v45 = vmul.f32 0.70710677, %v7609_v14  ;;  %13405 = verf.f32 %v7938_v39  ;;  %v18081_v15 = vpop.f32.mrb[115].mxu0  ;;  %v18089_v39 = vadd.f32 %v17793_v44, %v19749_v8  ;;  %v7809_v22 = vmul.f32 0.5, %v18005_v37  ;;  %9253 = vmatprep.mubr.bf16.mxu1 %v8368_v30 }
0x154c   : > { %v13394_v48 = vpop.eup %13393  ;;  %13407 = verf.f32 %v7819_v53  ;;  %v18092_v42 = vmul.f32 0.5, %v7346_v55  ;;  %v7820_v12 = vmul.f32 0.70710677, %v7498_v13  ;;  %v8183_v50 = vadd.f32 1.0, %v13392_v16 }
0x154d   : > { %v13396_v60 = vpop.eup %13395  ;;  %13409 = verf.f32 %v7821_v45  ;;  %v18095_v5 = vmul.f32 0.5, %v18019_v51  ;;  %v18097_v57 = vmul.f32 0.5, %v7496_v46  ;;  %v18099_v53 = vmul.f32 0.5, %v7609_v14 }
0x154e   : > { %v19757_v44 = vpack.c.bf16 %v17923_v17, %v17918_v63  ;;  %v18107_v37 = vmul.f32 %v8176_v0, %v17964_v9  ;;  %v8185_v55 = vadd.f32 1.0, %v13394_v48  ;;  %v8184_v45 = vadd.f32 1.0, %v13396_v60  ;;  %v19763_v48 = vld [vmem:[#allocation74_spill] sm:$0xff] }
0x154f   : > { %v18104_v40 = vpop.f32.mrb[52].mxu1  ;;  %v7827_v30 = vmul.f32 0.70710677, %v7500_v27  ;;  %v18114_v14 = vmul.f32 %v8178_v35, %v17980_v54  ;;  %13411 = verf.f32 %v7820_v12  ;;  %v7822_v6 = vmul.f32 0.70710677, %v7611_v29 }
0x1550   : > { %9254 = vmatmul.mubr.bf16.gmra.mrb[84].mxu1 %v19757_v44  ;;  %v18109_v16 = vpop.f32.mrb[116].mxu0  ;;  %v18111_v51 = vpop.f32.mrb[53].mxu1  ;;  %v7829_v63 = vmul.f32 0.70710677, %v18089_v39  ;;  %v7502_v60 = vadd.f32 %v19763_v48, %v19753_v10  ;;  %v7615_v32 = vadd.f32 %v17803_v21, %v19754_v1  ;;  %v18130_v12 = vmul.f32 %v8183_v50, %v17992_v2 }
0x1551   : > { %19758 = vst [vmem:[#allocation54_spill] sm:$0xff] %v18109_v16  ;;  %19759 = vst [vmem:[#allocation55_spill] sm:$0xff] %v18111_v51  ;;  %v13398_v46 = vpop.eup %13397  ;;  %v18117_v17 = vpop.f32.mrb[117].mxu0  ;;  %13413 = verf.f32 %v7827_v30  ;;  %v18145_v2 = vmul.f32 %v8185_v55, %v18035_v19 }
0x1552   : > { %19760 = vst [vmem:[#allocation72_spill] sm:$0xff] %v18114_v14  ;;  %19761 = vst [vmem:[#allocation73_spill] sm:$0xff] %v18117_v17  ;;  %v18119_v44 = vpop.f32.mrb[54].mxu1  ;;  %v13400_v9 = vpop.eup %13399  ;;  %v8191_v0 = vadd.f32 1.0, %v13398_v46  ;;  %13415 = verf.f32 %v7829_v63  ;;  %v7506_v46 = vadd.f32 %v17827_v61, %v19748_v58  ;;  %v18138_v17 = vmul.f32 0.5, %v7498_v13 }
0x1553   : > { %19762 = vst [vmem:[#allocation96_spill] sm:$0xff] %v18119_v44  ;;  %v18125_v51 = vpop.f32.mrb[118].mxu0  ;;  %v18127_v54 = vpop.f32.mrb[55].mxu1  ;;  %v8193_v14 = vadd.f32 1.0, %v13400_v9  ;;  %v7828_v21 = vmul.f32 0.70710677, %v7502_v60  ;;  %13417 = verf.f32 %v7822_v6  ;;  %v18150_v9 = vmul.f32 %v8184_v45, %v18045_v28 }
0x1554   : > { %19764 = vst [vmem:[#allocation74_spill] sm:$0xff] %v18125_v51  ;;  %19765 = vst [vmem:[#allocation97_spill] sm:$0xff] %v18127_v54  ;;  %v13402_v35 = vpop.eup %13401  ;;  %v18134_v30 = vpop.f32.mrb[119].mxu0  ;;  %v18136_v48 = vmul.f32 %v8191_v0, %v7807_v31  ;;  %v18142_v54 = vadd.f32 %v17846_v47, %v19749_v8  ;;  %v7830_v63 = vmul.f32 0.70710677, %v7615_v32  ;;  %v18154_v0 = vmul.f32 0.5, %v7611_v29 }
0x1555   : > { %19766 = vst [vmem:[#allocation98_spill] sm:$0xff] %v18134_v30  ;;  %v13404_v44 = vpop.eup %13403  ;;  %19767 = vst [vmem:[#allocation99_spill] sm:$0xff] %v18145_v2  ;;  %v18147_v50 = vmul.f32 %v8193_v14, %v7809_v22  ;;  %v8186_v31 = vadd.f32 1.0, %v13402_v35  ;;  %13419 = verf.f32 %v7828_v21  ;;  %v7835_v22 = vmul.f32 0.70710677, %v7506_v46  ;;  %v19769_v45 = vld [vmem:[#allocation77_spill] sm:$0xff] }
0x1556   : > { %v13406_v61 = vpop.eup %13405  ;;  %v8192_v19 = vadd.f32 1.0, %v13404_v44  ;;  %v7699_v6 = vmul.f32 0.5, %v7500_v27  ;;  %13421 = verf.f32 %v7830_v63  ;;  %v7837_v28 = vmul.f32 0.70710677, %v18142_v54 }
0x1557   : > { %19768 = vst [vmem:[#allocation100_spill] sm:$0xff] %v18147_v50  ;;  %v13408_v30 = vpop.eup %13407  ;;  %v18158_v55 = vpop.f32.mrb[56].mxu1  ;;  %v7508_v35 = vadd.f32 %v19769_v45, %v19753_v10  ;;  %v8194_v51 = vadd.f32 1.0, %v13406_v61  ;;  %13423 = verf.f32 %v7835_v22  ;;  %v8376_v44 = vpack.c.bf16 %v18107_v37, %v18066_v20 }
0x1558   : > { %v13410_v14 = vpop.eup %13409  ;;  %v18163_v13 = vpop.f32.mrb[120].mxu0  ;;  %v8075_v16 = vadd.f32 1.0, %v13408_v30  ;;  %v18174_v27 = vmul.f32 %v8186_v31, %v18052_v33  ;;  %v7701_v45 = vmul.f32 0.5, %v18089_v39  ;;  %v7621_v2 = vadd.f32 %v17853_v18, %v19754_v1  ;;  %v19774_v18 = vld [vmem:[#allocation78_spill] sm:$0xff] }
0x1559   : > { %v18165_v29 = vpop.f32.mrb[57].mxu1  ;;  %v18169_v21 = vpop.f32.mrb[121].mxu0  ;;  %v8077_v63 = vadd.f32 1.0, %v13410_v14  ;;  %v18184_v20 = vmul.f32 %v8192_v19, %v18092_v42  ;;  %v18186_v37 = vmul.f32 0.5, %v7502_v60  ;;  %v18188_v22 = vmul.f32 0.5, %v7615_v32  ;;  %9263 = vmatprep.mubr.bf16.mxu1 %v8376_v44 }
0x155a   : > { %v18171_v47 = vpop.f32.mrb[58].mxu1  ;;  %19770 = vst [vmem:[#allocation77_spill] sm:$0xff] %v18174_v27  ;;  %v18179_v50 = vpop.f32.mrb[122].mxu0  ;;  %v7836_v33 = vmul.f32 0.70710677, %v7508_v35  ;;  %v18192_v14 = vmul.f32 0.5, %v7506_v46  ;;  %13425 = verf.f32 %v7837_v28  ;;  %v7510_v27 = vadd.f32 %v19774_v18, %v19748_v58 }
0x155b   : > { %19771 = vst [vmem:[#allocation101_spill] sm:$0xff] %v18179_v50  ;;  %v18181_v30 = vpop.f32.mrb[59].mxu1  ;;  %v13412_v61 = vpop.eup %13411  ;;  %v19775_v42 = vpack.c.bf16 %v18027_v56, %v18013_v49  ;;  %v18202_v60 = vmul.f32 %v8194_v51, %v18095_v5  ;;  %v18205_v19 = vmul.f32 %v8075_v16, %v18097_v57  ;;  %v7512_v28 = vadd.f32 %v17862_v41, %v19753_v10  ;;  %v19781_v41 = vld [vmem:[#allocation80_spill] sm:$0xff] }
0x155c   : > { %19772 = vst [vmem:[#allocation102_spill] sm:$0xff] %v18181_v30  ;;  %v18190_v31 = vpop.f32.mrb[123].mxu0  ;;  %v13414_v39 = vpop.eup %13413  ;;  %v7623_v30 = vadd.f32 %v17860_v4, %v19749_v8  ;;  %v18210_v44 = vmul.f32 %v8077_v63, %v18099_v53  ;;  %v7838_v4 = vmul.f32 0.70710677, %v7621_v2  ;;  %v8076_v49 = vadd.f32 1.0, %v13412_v61 }
0x155d   : > { %19773 = vst [vmem:[#allocation103_spill] sm:$0xff] %v18190_v31  ;;  %9264 = vmatmul.mubr.bf16.gmra.mrb[88].mxu1 %v19775_v42  ;;  %v13416_v32 = vpop.eup %13415  ;;  %19776 = vst [vmem:[#allocation78_spill] sm:$0xff] %v18202_v60  ;;  %v8083_v46 = vadd.f32 1.0, %v13414_v39  ;;  %v7843_v31 = vmul.f32 0.70710677, %v7510_v27  ;;  %13427 = verf.f32 %v7836_v33  ;;  %v7625_v39 = vadd.f32 %v19781_v41, %v19754_v1 }
0x155e   : > { %19777 = vst [vmem:[#allocation104_spill] sm:$0xff] %v18205_v19  ;;  %19778 = vst [vmem:[#allocation105_spill] sm:$0xff] %v18210_v44  ;;  %v8085_v18 = vadd.f32 1.0, %v13416_v32  ;;  %v13418_v50 = vpop.eup %13417  ;;  %v7845_v5 = vmul.f32 0.70710677, %v7623_v30  ;;  %v7709_v61 = vmul.f32 0.5, %v18142_v54 }
0x155f   : > { %v18212_v56 = vmul.f32 %v8083_v46, %v7699_v6  ;;  %v18214_v51 = vpop.f32.mrb[60].mxu1  ;;  %13429 = verf.f32 %v7843_v31  ;;  %v7844_v16 = vmul.f32 0.70710677, %v7512_v28  ;;  %v13420_v42 = vpop.eup %13419  ;;  %v8078_v46 = vadd.f32 1.0, %v13418_v50 }
0x1560   : > { %v18216_v57 = vmul.f32 %v8085_v18, %v7701_v45  ;;  %v18220_v53 = vpop.f32.mrb[124].mxu0  ;;  %v18222_v63 = vpop.f32.mrb[61].mxu1  ;;  %13431 = verf.f32 %v7845_v5  ;;  %v7516_v45 = vadd.f32 %v17902_v59, %v19748_v58  ;;  %v18235_v41 = vmul.f32 0.5, %v7508_v35 }
0x1561   : > { %19779 = vst [vmem:[#allocation106_spill] sm:$0xff] %v18212_v56  ;;  %v18229_v33 = vpop.f32.mrb[125].mxu0  ;;  %v18231_v31 = vpop.f32.mrb[62].mxu1  ;;  %13433 = verf.f32 %v7838_v4  ;;  %v18242_v5 = vmul.f32 %v8076_v49, %v18138_v17  ;;  %v18244_v59 = vmul.f32 0.5, %v7621_v2  ;;  %v7846_v19 = vmul.f32 0.70710677, %v7625_v39 }
0x1562   : > { %19780 = vst [vmem:[#allocation107_spill] sm:$0xff] %v18216_v57  ;;  %19782 = vst [vmem:[#allocation80_spill] sm:$0xff] %v18231_v31  ;;  %v13422_v32 = vpop.eup %13421  ;;  %v18237_v60 = vpop.f32.mrb[126].mxu0  ;;  %v7851_v56 = vmul.f32 0.70710677, %v7516_v45  ;;  %v8084_v50 = vadd.f32 1.0, %v13420_v42  ;;  %13435 = verf.f32 %v7844_v16  ;;  %v7629_v35 = vadd.f32 %v17911_v23, %v19749_v8 }
0x1563   : > { %v18239_v6 = vpop.f32.mrb[63].mxu1  ;;  %v13424_v54 = vpop.eup %13423  ;;  %19783 = vst [vmem:[#allocation108_spill] sm:$0xff] %v18242_v5  ;;  %v19785_v4 = vld [vmem:[#allocation82_spill] sm:$0xff]  ;;  %v8086_v44 = vadd.f32 1.0, %v13422_v32  ;;  %13437 = verf.f32 %v7846_v19  ;;  %v7631_v17 = vadd.f32 %v17915_v38, %v19754_v1  ;;  %v8384_v2 = vpack.c.bf16 %v18184_v20, %v18150_v9 }
0x1564   : > { %v18246_v31 = vpop.f32.mrb[127].mxu0  ;;  %v7518_v18 = vadd.f32 %v19785_v4, %v19753_v10  ;;  %v13426_v49 = vpop.eup %13425  ;;  %v18257_v57 = vmul.f32 %v8078_v46, %v18154_v0  ;;  %v8091_v42 = vadd.f32 1.0, %v13424_v54  ;;  %v7715_v16 = vmul.f32 0.5, %v7510_v27  ;;  %v19790_v46 = vld [vmem:[#allocation86_spill] sm:$0xff] }
0x1565   : > { %19784 = vst [vmem:[#allocation109_spill] sm:$0xff] %v18246_v31  ;;  %v7853_v5 = vmul.f32 0.70710677, %v7629_v35  ;;  %v7717_v31 = vmul.f32 0.5, %v7623_v30  ;;  %v18259_v23 = vmul.f32 0.5, %v7512_v28  ;;  %13439 = verf.f32 %v7851_v56  ;;  %9273 = vmatprep.mubr.bf16.mxu1 %v8384_v2 }
0x1566   : > { %v7852_v4 = vmul.f32 0.70710677, %v7518_v18  ;;  %v18262_v19 = vmul.f32 %v8084_v50, %v18186_v37  ;;  %v18264_v38 = vmul.f32 0.5, %v7625_v39  ;;  %v18266_v32 = vmul.f32 0.5, %v7516_v45  ;;  %v19788_v37 = vld [vmem:[#allocation84_spill] sm:$0xff] }
0x1567   : > { %v7854_v9 = vmul.f32 0.70710677, %v7631_v17  ;;  %v19786_v0 = vpack.c.bf16 %v18136_v48, %v18130_v12  ;;  %v13428_v27 = vpop.eup %13427  ;;  %v18272_v30 = vmul.f32 %v8086_v44, %v18188_v22  ;;  %v8093_v20 = vadd.f32 1.0, %v13426_v49  ;;  %v19791_v48 = vld [vmem:[#allocation87_spill] sm:$0xff] }
0x1568   : > { %v7520_v28 = vadd.f32 %v17925_v62, %v19748_v58  ;;  %v7633_v56 = vadd.f32 %v19788_v37, %v19749_v8  ;;  %v18279_v45 = vmul.f32 %v8091_v42, %v18192_v14  ;;  %13441 = verf.f32 %v7853_v5 }
0x1569   : > { %9274 = vmatmul.mubr.bf16.gmra.mrb[92].mxu1 %v19786_v0  ;;  %19787 = vst [vmem:[#allocation82_spill] sm:$0xff] %v18272_v30  ;;  %v13430_v39 = vpop.eup %13429  ;;  %v7522_v12 = vadd.f32 %v19790_v46, %v19753_v10  ;;  %v7635_v54 = vadd.f32 %v19791_v48, %v19754_v1  ;;  %v18285_v50 = vmul.f32 0.5, %v7629_v35  ;;  %13443 = verf.f32 %v7852_v4  ;;  %v19795_v35 = vld [vmem:[#allocation58_spill] sm:$0xff]  ;;  %v19796_v48 = vld [vmem:[#allocation61_spill] sm:$0xff] }
0x156a   : > { %19789 = vst [vmem:[#allocation84_spill] sm:$0xff] %v18279_v45  ;;  %v13432_v22 = vpop.eup %13431  ;;  %v8099_v44 = vadd.f32 1.0, %v13430_v39  ;;  %v7859_v62 = vmul.f32 0.70710677, %v7520_v28  ;;  %v8092_v49 = vadd.f32 1.0, %v13428_v27  ;;  %13445 = verf.f32 %v7854_v9 }
0x156b   : > { %v13434_v2 = vpop.eup %13433  ;;  %v8101_v0 = vadd.f32 1.0, %v13432_v22  ;;  %v7861_v37 = vmul.f32 0.70710677, %v7633_v56  ;;  %v18287_v14 = vmul.f32 %v8093_v20, %v7709_v61  ;;  %v7860_v42 = vmul.f32 0.70710677, %v7522_v12  ;;  %v19798_v61 = vld [vmem:[#allocation56_spill] sm:$0xff] }
0x156c   : > { %v18289_v5 = vmul.f32 %v8099_v44, %v7715_v16  ;;  %13447 = verf.f32 %v7859_v62  ;;  %v13436_v46 = vpop.eup %13435  ;;  %v7862_v39 = vmul.f32 0.70710677, %v7635_v54  ;;  %v8330_v4 = vpack.c.bf16 %v19796_v48, %v19795_v35  ;;  %v12895_v27 = vld [vmem:[%s19698_s22 + $0x200] ss:$8 sps:$4 sm:$0xff]   ;;  %v12900_v20 = vld [vmem:[%s19698_s22 + $0x214] ss:$8 sps:$4 sm:$0xff]  }
0x156d   : > { %19792 = vst [vmem:[#allocation86_spill] sm:$0xff] %v18287_v14  ;;  %v18291_v30 = vmul.f32 %v8101_v0, %v7717_v31  ;;  %13449 = verf.f32 %v7861_v37  ;;  %v13438_v9 = vpop.eup %13437  ;;  %v8094_v22 = vadd.f32 1.0, %v13434_v2  ;;  %v18300_v16 = vmul.f32 0.5, %v7518_v18  ;;  %v19797_v48 = vld [vmem:[#allocation57_spill] sm:$0xff]  ;;  %v19803_v14 = vld [vmem:[#allocation62_spill] sm:$0xff] }
0x156e   : > { %19793 = vst [vmem:[#allocation87_spill] sm:$0xff] %v18289_v5  ;;  %v7526_v31 = vadd.f32 %v17971_v11, %v19748_v58  ;;  %v18308_v44 = vmul.f32 %v8092_v49, %v18235_v41  ;;  %v18312_v0 = vmul.f32 0.5, %v7631_v17  ;;  %9316 = vmatprep.mubr.bf16.mxu1 %v8330_v4  ;;  %v7639_v18 = vadd.f32 %v17976_v24, %v19749_v8  ;;  %v12898_v24 = vld [vmem:[%s19698_s22 + $0x210] ss:$8 sps:$4 sm:$0xff]  }
0x156f   : > { %19794 = vst [vmem:[#allocation110_spill] sm:$0xff] %v18291_v30  ;;  %v13440_v2 = vpop.eup %13439  ;;  %v8100_v37 = vadd.f32 1.0, %v13436_v46  ;;  %13451 = verf.f32 %v7860_v42  ;;  %v7528_v35 = vadd.f32 %v17978_v52, %v19753_v10  ;;  %v19799_v41 = vpack.c.bf16 %v19797_v48, %v19798_v61  ;;  %v19804_v30 = vld [vmem:[#allocation63_spill] sm:$0xff] }
0x1570   : > { %v7867_v11 = vmul.f32 0.70710677, %v7526_v31  ;;  %v8102_v49 = vadd.f32 1.0, %v13438_v9  ;;  %13453 = verf.f32 %v7862_v39  ;;  %v7869_v62 = vmul.f32 0.70710677, %v7639_v18 }
0x1571   : > { %9317 = vmatmul.mubr.bf16.vlgmr.msra.gmra.mrb[64].mxu1 %v19799_v41  ;;  %v18323_v17 = vadd.f32 %v17985_v36, %v19754_v1  ;;  %v18329_v42 = vmul.f32 %v8094_v22, %v18244_v59  ;;  %v7731_v52 = vmul.f32 0.5, %v7520_v28  ;;  %v7733_v46 = vmul.f32 0.5, %v7633_v56  ;;  %v12903_v39 = vld [vmem:[%s19698_s22 + $0x224] ss:$8 sps:$4 sm:$0xff]  }
0x1572   : > { %9398 = vmatpush1.bf16.msra.mxu1 %v12895_v27  ;;  %13455 = verf.f32 %v7867_v11  ;;  %v13442_v4 = vpop.eup %13441  ;;  %v8107_v9 = vadd.f32 1.0, %v13440_v2  ;;  %v18334_v36 = vmul.f32 0.5, %v7522_v12  ;;  %v7868_v27 = vmul.f32 0.70710677, %v7528_v35  ;;  %v19800_v56 = vld [vmem:[#allocation89_spill] sm:$0xff] }
0x1573   : > { %9399 = vmatprep.subr.bf16.mxu1 %v12900_v20  ;;  %13457 = verf.f32 %v7869_v62  ;;  %v13444_v61 = vpop.eup %13443  ;;  %v18337_v48 = vmul.f32 %v8100_v37, %v18259_v23  ;;  %v18339_v59 = vmul.f32 0.5, %v7635_v54  ;;  %v7870_v28 = vmul.f32 0.70710677, %v18323_v17  ;;  %v12901_v54 = vld [vmem:[%s19698_s22 + $0x220] ss:$8 sps:$4 sm:$0xff]  }
0x1574   : > { %v18344_v22 = vadd.f32 %v19800_v56, %v19748_v58  ;;  %v13446_v20 = vpop.eup %13445  ;;  %v18347_v11 = vmul.f32 %v8102_v49, %v18264_v38  ;;  %v18349_v12 = vmul.f32 0.5, %v7526_v31  ;;  %v18353_v62 = vadd.f32 %v17997_v34, %v19749_v8  ;;  %v12906_v34 = vld [vmem:[%s19698_s22 + $0x234] ss:$8 sps:$4 sm:$0xff]  }
0x1575   : > { %v18357_v23 = vadd.f32 %v17999_v43, %v19753_v10  ;;  %v8109_v37 = vadd.f32 1.0, %v13442_v4  ;;  %v18362_v41 = vmul.f32 0.5, %v7639_v18  ;;  %13459 = verf.f32 %v7868_v27 }
0x1576   : > { %9400 = vmatpush1.bf16.msra.mxu1 %v12898_v24  ;;  %v13448_v2 = vpop.eup %13447  ;;  %v7875_v38 = vmul.f32 0.70710677, %v18344_v22  ;;  %v18369_v43 = vmul.f32 %v8107_v9, %v18266_v32  ;;  %13461 = verf.f32 %v7870_v28  ;;  %v7877_v24 = vmul.f32 0.70710677, %v18353_v62  ;;  %v12904_v32 = vld [vmem:[%s19698_s22 + $0x230] ss:$8 sps:$4 sm:$0xff]  }
0x1577   : > { %9401 = vmatprep.subr.bf16.mxu1 %v12903_v39  ;;  %v13450_v31 = vpop.eup %13449  ;;  %v8115_v49 = vadd.f32 1.0, %v13448_v2  ;;  %v7876_v18 = vmul.f32 0.70710677, %v18357_v23  ;;  %v7645_v4 = vadd.f32 %v18007_v26, %v19754_v1  ;;  %v8108_v39 = vadd.f32 1.0, %v13444_v61 }
0x1578   : > { %19801 = vst [vmem:[#allocation58_spill] sm:$0xff] %v18369_v43  ;;  %v8117_v56 = vadd.f32 1.0, %v13450_v31  ;;  %13463 = verf.f32 %v7875_v38  ;;  %v8338_v45 = vpack.c.bf16 %v19804_v30, %v19803_v14  ;;  %v18383_v28 = vmul.f32 %v8109_v37, %v18285_v50 }
0x1579   : > { %v18375_v27 = vmul.f32 %v8115_v49, %v7731_v52  ;;  %13465 = verf.f32 %v7877_v24  ;;  %v13452_v9 = vpop.eup %13451  ;;  %v8110_v2 = vadd.f32 1.0, %v13446_v20  ;;  %v18387_v26 = vmul.f32 0.5, %v7528_v35  ;;  %v12909_v52 = vld [vmem:[%s19698_s22 + $0x244] ss:$8 sps:$4 sm:$0xff]   ;;  %v19809_v49 = vld [vmem:[#allocation60_spill] sm:$0xff] }
0x157a   : > { %9402 = vmatpush1.bf16.msra.mxu1 %v12901_v54  ;;  %19805 = vst [vmem:[#allocation57_spill] sm:$0xff] %v18383_v28  ;;  %v18385_v38 = vmul.f32 %v8117_v56, %v7733_v46  ;;  %v13454_v30 = vpop.eup %13453  ;;  %13467 = verf.f32 %v7876_v18  ;;  %v7878_v61 = vmul.f32 0.70710677, %v7645_v4  ;;  %9326 = vmatprep.mubr.bf16.mxu1 %v8338_v45  ;;  %v18396_v50 = vadd.f32 %v18040_v7, %v19748_v58  ;;  %v19807_v54 = vld [vmem:[#allocation93_spill] sm:$0xff]  ;;  %v19810_v45 = vld [vmem:[#allocation59_spill] sm:$0xff] }
0x157b   : > { %19802 = vst [vmem:[#allocation61_spill] sm:$0xff] %v18375_v27  ;;  %9403 = vmatprep.subr.bf16.mxu1 %v12906_v34  ;;  %v18401_v20 = vmul.f32 0.5, %v18323_v17  ;;  %v7649_v37 = vadd.f32 %v19807_v54, %v19749_v8  ;;  %v19808_v34 = vld [vmem:[#allocation94_spill] sm:$0xff]  ;;  %v19811_v24 = vpack.c.bf16 %v19809_v49, %v19810_v45  ;;  %v18413_v56 = vmul.f32 %v8108_v39, %v18300_v16  ;;  %v12907_v54 = vld [vmem:[%s19698_s22 + $0x240] ss:$8 sps:$4 sm:$0xff]  }
0x157c   : > { %19806 = vst [vmem:[#allocation56_spill] sm:$0xff] %v18385_v38  ;;  %v13456_v46 = vpop.eup %13455  ;;  %v18407_v31 = vadd.f32 %v19808_v34, %v19753_v10  ;;  %v8116_v18 = vadd.f32 1.0, %v13452_v9  ;;  %13469 = verf.f32 %v7878_v61  ;;  %v7883_v17 = vmul.f32 0.70710677, %v18396_v50  ;;  %v12912_v16 = vld [vmem:[%s19698_s22 + $0x254] ss:$8 sps:$4 sm:$0xff]  }
0x157d   : > { %9327 = vmatmul.mubr.bf16.gmra.mrb[68].mxu1 %v19811_v24  ;;  %v13458_v7 = vpop.eup %13457  ;;  %v18420_v34 = vmul.f32 %v8110_v2, %v18312_v0  ;;  %v8118_v35 = vadd.f32 1.0, %v13454_v30  ;;  %v8123_v14 = vadd.f32 1.0, %v13456_v46  ;;  %v7885_v49 = vmul.f32 0.70710677, %v7649_v37 }
0x157e   : > { %9404 = vmatpush1.bf16.msra.mxu1 %v12904_v32  ;;  %v8125_v39 = vadd.f32 1.0, %v13458_v7  ;;  %13471 = verf.f32 %v7883_v17  ;;  %v7884_v9 = vmul.f32 0.70710677, %v18407_v31  ;;  %v19812_v32 = vld [vmem:[#allocation52_spill] sm:$0xff]  ;;  %v7747_v24 = vmul.f32 0.5, %v18344_v22 }
0x157f   : > { %9405 = vmatprep.subr.bf16.mxu1 %v12909_v52  ;;  %v7651_v61 = vadd.f32 %v19812_v32, %v19754_v1  ;;  %v13460_v45 = vpop.eup %13459  ;;  %v7749_v0 = vmul.f32 0.5, %v18353_v62  ;;  %v18431_v2 = vmul.f32 0.5, %v18357_v23  ;;  %v19813_v52 = vld [vmem:[#allocation53_spill] sm:$0xff]  ;;  %v18436_v7 = vmul.f32 %v8116_v18, %v18334_v36  ;;  %v12910_v22 = vld [vmem:[%s19698_s22 + $0x250] ss:$8 sps:$4 sm:$0xff]  }
0x1580   : > { %v7540_v30 = vadd.f32 %v19813_v52, %v19748_v58  ;;  %v13462_v46 = vpop.eup %13461  ;;  %v18438_v17 = vmul.f32 0.5, %v7645_v4  ;;  %13473 = verf.f32 %v7885_v49  ;;  %v18444_v23 = vmul.f32 %v8118_v35, %v18339_v59  ;;  %v12915_v4 = vld [vmem:[%s19698_s22 + $0x264] ss:$8 sps:$4 sm:$0xff]  }
0x1581   : > { %v7886_v28 = vmul.f32 0.70710677, %v7651_v61  ;;  %v18447_v32 = vmul.f32 %v8123_v14, %v18349_v12  ;;  %v7653_v36 = vadd.f32 %v18073_v3, %v19749_v8  ;;  %13475 = verf.f32 %v7884_v9  ;;  %v19819_v9 = vld [vmem:[#allocation69_spill] sm:$0xff] }
0x1582   : > { %9406 = vmatpush1.bf16.msra.mxu1 %v12907_v54  ;;  %v13464_v62 = vpop.eup %13463  ;;  %v7891_v52 = vmul.f32 0.70710677, %v7540_v30  ;;  %v18455_v54 = vmul.f32 %v8125_v39, %v18362_v41  ;;  %v7542_v59 = vadd.f32 %v18075_v25, %v19753_v10  ;;  %v8124_v12 = vadd.f32 1.0, %v13460_v45  ;;  %v19818_v39 = vld [vmem:[#allocation66_spill] sm:$0xff]  ;;  %v12913_v45 = vld [vmem:[%s19698_s22 + $0x260] ss:$8 sps:$4 sm:$0xff]  }
0x1583   : > { %19814 = vst [vmem:[#allocation89_spill] sm:$0xff] %v18447_v32  ;;  %9407 = vmatprep.subr.bf16.mxu1 %v12912_v16  ;;  %v13466_v18 = vpop.eup %13465  ;;  %v8131_v49 = vadd.f32 1.0, %v13464_v62  ;;  %v7893_v35 = vmul.f32 0.70710677, %v7653_v36  ;;  %v8126_v3 = vadd.f32 1.0, %v13462_v46  ;;  %v7655_v41 = vadd.f32 %v18081_v15, %v19754_v1 }
0x1584   : > { %19815 = vst [vmem:[#allocation62_spill] sm:$0xff] %v18455_v54  ;;  %v8133_v14 = vadd.f32 1.0, %v13466_v18  ;;  %13477 = verf.f32 %v7891_v52  ;;  %v13468_v38 = vpop.eup %13467  ;;  %v7892_v43 = vmul.f32 0.70710677, %v7542_v59  ;;  %v8346_v25 = vpack.c.bf16 %v19819_v9, %v19818_v39  ;;  %v12918_v15 = vld [vmem:[%s19698_s22 + $0x274] ss:$8 sps:$4 sm:$0xff]  }
0x1585   : > { %v18459_v16 = vmul.f32 %v8131_v49, %v7747_v24  ;;  %13479 = verf.f32 %v7886_v28  ;;  %v7755_v24 = vmul.f32 0.5, %v18396_v50  ;;  %v8132_v52 = vadd.f32 1.0, %v13468_v38  ;;  %v19822_v39 = vld [vmem:[#allocation64_spill] sm:$0xff] }
0x1586   : > { %9408 = vmatpush1.bf16.msra.mxu1 %v12910_v22  ;;  %v18461_v27 = vmul.f32 %v8133_v14, %v7749_v0  ;;  %13481 = verf.f32 %v7893_v35  ;;  %v13470_v46 = vpop.eup %13469  ;;  %v7757_v0 = vmul.f32 0.5, %v7649_v37  ;;  %v7546_v22 = vadd.f32 %v18104_v40, %v19748_v58  ;;  %9336 = vmatprep.mubr.bf16.mxu1 %v8346_v25  ;;  %v19820_v37 = vld [vmem:[#allocation54_spill] sm:$0xff]  ;;  %v19821_v35 = vld [vmem:[#allocation65_spill] sm:$0xff] }
0x1587   : > { %19816 = vst [vmem:[#allocation63_spill] sm:$0xff] %v18459_v16  ;;  %9409 = vmatprep.subr.bf16.mxu1 %v12915_v4  ;;  %v18481_v4 = vmul.f32 0.5, %v18407_v31  ;;  %v7894_v18 = vmul.f32 0.70710677, %v7655_v41  ;;  %v8134_v14 = vadd.f32 1.0, %v13470_v46  ;;  %13483 = verf.f32 %v7892_v43 }
0x1588   : > { %19817 = vst [vmem:[#allocation93_spill] sm:$0xff] %v18461_v27  ;;  %v13472_v49 = vpop.eup %13471  ;;  %v7899_v50 = vmul.f32 0.70710677, %v7546_v22  ;;  %v7659_v40 = vadd.f32 %v19820_v37, %v19749_v8  ;;  %v19823_v9 = vpack.c.bf16 %v19821_v35, %v19822_v39  ;;  %v18489_v28 = vmul.f32 %v8124_v12, %v18387_v26  ;;  %v12916_v43 = vld [vmem:[%s19698_s22 + $0x270] ss:$8 sps:$4 sm:$0xff]  }
0x1589   : > { %v18492_v38 = vmul.f32 %v8126_v3, %v18401_v20  ;;  %v18494_v31 = vmul.f32 0.5, %v7651_v61  ;;  %v7763_v25 = vmul.f32 0.5, %v7540_v30  ;;  %v8139_v37 = vadd.f32 1.0, %v13472_v49  ;;  %v12921_v26 = vld [vmem:[%s19698_s22 + $0x284] ss:$8 sps:$4 sm:$0xff]   ;;  %v19824_v30 = vld [vmem:[#allocation55_spill] sm:$0xff] }
0x158a   : > { %9337 = vmatmul.mubr.bf16.gmra.mrb[72].mxu1 %v19823_v9  ;;  %v13474_v46 = vpop.eup %13473  ;;  %v7765_v62 = vmul.f32 0.5, %v7653_v36  ;;  %13485 = verf.f32 %v7894_v18  ;;  %v7901_v35 = vmul.f32 0.70710677, %v7659_v40  ;;  %v18503_v20 = vmul.f32 %v8132_v52, %v18431_v2  ;;  %v19826_v18 = vld [vmem:[#allocation73_spill] sm:$0xff]  ;;  %v19829_v9 = vld [vmem:[#allocation74_spill] sm:$0xff] }
0x158b   : > { %9410 = vmatpush1.bf16.msra.mxu1 %v12913_v45  ;;  %v18505_v61 = vmul.f32 0.5, %v7542_v59  ;;  %13487 = verf.f32 %v7899_v50  ;;  %v7548_v12 = vadd.f32 %v19824_v30, %v19753_v10  ;;  %v13476_v3 = vpop.eup %13475  ;;  %v18510_v45 = vmul.f32 %v8134_v14, %v18438_v17  ;;  %v19827_v59 = vld [vmem:[#allocation96_spill] sm:$0xff]  ;;  %v19831_v27 = vld [vmem:[#allocation98_spill] sm:$0xff] }
0x158c   : > { %9411 = vmatprep.subr.bf16.mxu1 %v12918_v15  ;;  %v18512_v36 = vmul.f32 0.5, %v7655_v41  ;;  %v18514_v15 = vmul.f32 0.5, %v7546_v22  ;;  %v7661_v49 = vadd.f32 %v19826_v18, %v19754_v1  ;;  %v8141_v2 = vadd.f32 1.0, %v13474_v46  ;;  %v12919_v17 = vld [vmem:[%s19698_s22 + $0x280] ss:$8 sps:$4 sm:$0xff]  }
0x158d   : > { %19825 = vst [vmem:[#allocation94_spill] sm:$0xff] %v18510_v45  ;;  %v18518_v52 = vmul.f32 0.5, %v7659_v40  ;;  %13489 = verf.f32 %v7901_v35  ;;  %v7550_v50 = vadd.f32 %v19827_v59, %v19748_v58  ;;  %v18525_v14 = vmul.f32 %v8139_v37, %v7755_v24  ;;  %v19830_v46 = vld [vmem:[#allocation97_spill] sm:$0xff]  ;;  %v12924_v35 = vld [vmem:[%s19698_s22 + $0x294] ss:$8 sps:$4 sm:$0xff]  }
0x158e   : > { %v13478_v39 = vpop.eup %13477  ;;  %v7663_v30 = vadd.f32 %v19829_v9, %v19749_v8  ;;  %v7552_v40 = vadd.f32 %v19830_v46, %v19753_v10  ;;  %v8140_v18 = vadd.f32 1.0, %v13476_v3  ;;  %v7900_v59 = vmul.f32 0.70710677, %v7548_v12  ;;  %v12922_v3 = vld [vmem:[%s19698_s22 + $0x290] ss:$8 sps:$4 sm:$0xff]  }
0x158f   : > { %9412 = vmatpush1.bf16.msra.mxu1 %v12916_v43  ;;  %v13480_v41 = vpop.eup %13479  ;;  %19828 = vst [vmem:[#allocation60_spill] sm:$0xff] %v18525_v14  ;;  %v8147_v22 = vadd.f32 1.0, %v13478_v39  ;;  %v7907_v54 = vmul.f32 0.70710677, %v7550_v50  ;;  %v7665_v24 = vadd.f32 %v19831_v27, %v19754_v1  ;;  %v18538_v32 = vmul.f32 0.5, %v7548_v12 }
0x1590   : > { %9413 = vmatprep.subr.bf16.mxu1 %v12921_v26  ;;  %v13482_v43 = vpop.eup %13481  ;;  %v7909_v9 = vmul.f32 0.70710677, %v7663_v30  ;;  %v18540_v16 = vmul.f32 %v8141_v2, %v7757_v0  ;;  %v7902_v26 = vmul.f32 0.70710677, %v7661_v49  ;;  %v7908_v46 = vmul.f32 0.70710677, %v7552_v40 }
0x1591   : > { %v18536_v37 = vmul.f32 %v8147_v22, %v7763_v25  ;;  %v8149_v39 = vadd.f32 1.0, %v13482_v43  ;;  %13491 = verf.f32 %v7907_v54  ;;  %v13484_v5 = vpop.eup %13483  ;;  %v8142_v45 = vadd.f32 1.0, %v13480_v41  ;;  %v12927_v0 = vld [vmem:[%s19698_s22 + $0x2a4] ss:$8 sps:$4 sm:$0xff]  }
0x1592   : > { %19832 = vst [vmem:[#allocation59_spill] sm:$0xff] %v18540_v16  ;;  %13493 = verf.f32 %v7909_v9  ;;  %v18552_v54 = vmul.f32 0.5, %v7661_v49  ;;  %v7910_v12 = vmul.f32 0.70710677, %v7665_v24  ;;  %v19834_v2 = vld [vmem:[#allocation70_spill] sm:$0xff]  ;;  %v8148_v9 = vadd.f32 1.0, %v13484_v5 }
0x1593   : > { %9414 = vmatpush1.bf16.msra.mxu1 %v12919_v17  ;;  %v18547_v25 = vmul.f32 %v8149_v39, %v7765_v62  ;;  %13495 = verf.f32 %v7900_v59  ;;  %v19835_v17 = vld [vmem:[#allocation71_spill] sm:$0xff]  ;;  %v7556_v62 = vadd.f32 %v18158_v55, %v19748_v58  ;;  %v7558_v49 = vadd.f32 %v18165_v29, %v19753_v10 }
0x1594   : > { %9415 = vmatprep.subr.bf16.mxu1 %v12924_v35  ;;  %v8354_v22 = vpack.c.bf16 %v19835_v17, %v19834_v2  ;;  %v13486_v43 = vpop.eup %13485  ;;  %13497 = verf.f32 %v7908_v46  ;;  %v7669_v35 = vadd.f32 %v18163_v13, %v19749_v8  ;;  %v18566_v59 = vadd.f32 %v18169_v21, %v19754_v1  ;;  %v12925_v46 = vld [vmem:[%s19698_s22 + $0x2a0] ss:$8 sps:$4 sm:$0xff]   ;;  %v19837_v2 = vld [vmem:[#allocation67_spill] sm:$0xff] }
0x1595   : > { %19833 = vst [vmem:[#allocation52_spill] sm:$0xff] %v18547_v25  ;;  %v13488_v39 = vpop.eup %13487  ;;  %13499 = verf.f32 %v7910_v12  ;;  %v18572_v55 = vmul.f32 %v8140_v18, %v18481_v4  ;;  %v18575_v13 = vmul.f32 %v8142_v45, %v18494_v31  ;;  %v7915_v5 = vmul.f32 0.70710677, %v7556_v62  ;;  %v19836_v12 = vld [vmem:[#allocation68_spill] sm:$0xff]  ;;  %v19844_v25 = vld [vmem:[#allocation81_spill] sm:$0xff] }
0x1596   : > { %9346 = vmatprep.mubr.bf16.mxu1 %v8354_v22  ;;  %13501 = verf.f32 %v7902_v26  ;;  %v19838_v29 = vpack.c.bf16 %v19836_v12, %v19837_v2  ;;  %v12930_v21 = vld [vmem:[%s19698_s22 + $0x2b4] ss:$8 sps:$4 sm:$0xff]   ;;  %v8150_v17 = vadd.f32 1.0, %v13486_v43  ;;  %v7779_v22 = vmul.f32 0.5, %v7550_v50  ;;  %v12928_v50 = vld [vmem:[%s19698_s22 + $0x2b0] ss:$8 sps:$4 sm:$0xff]  }
0x1597   : > { %9416 = vmatpush1.bf16.msra.mxu1 %v12922_v3  ;;  %v13490_v3 = vpop.eup %13489  ;;  %v7781_v41 = vmul.f32 0.5, %v7663_v30  ;;  %v7917_v4 = vmul.f32 0.70710677, %v7669_v35  ;;  %v8155_v18 = vadd.f32 1.0, %v13488_v39  ;;  %v18583_v27 = vmul.f32 0.5, %v7552_v40  ;;  %v19839_v43 = vld [vmem:[#allocation101_spill] sm:$0xff] }
0x1598   : > { %9347 = vmatmul.mubr.bf16.gmra.mrb[76].mxu1 %v19838_v29  ;;  %9417 = vmatprep.subr.bf16.mxu1 %v12927_v0  ;;  %13503 = verf.f32 %v7915_v5  ;;  %v7916_v31 = vmul.f32 0.70710677, %v7558_v49  ;;  %v18586_v45 = vmul.f32 %v8148_v9, %v18505_v61  ;;  %v18588_v26 = vmul.f32 0.5, %v7665_v24  ;;  %v12933_v61 = vld [vmem:[%s19698_s22 + $0x2c4] ss:$8 sps:$4 sm:$0xff]   ;;  %v19841_v2 = vld [vmem:[#allocation103_spill] sm:$0xff] }
0x1599   : > { %13505 = verf.f32 %v7917_v4  ;;  %v7918_v0 = vmul.f32 0.70710677, %v18566_v59  ;;  %v8157_v30 = vadd.f32 1.0, %v13490_v3  ;;  %v7560_v40 = vadd.f32 %v18171_v47, %v19748_v58  ;;  %v19840_v5 = vld [vmem:[#allocation102_spill] sm:$0xff] }
0x159a   : > { %13507 = verf.f32 %v7916_v31  ;;  %v7673_v39 = vadd.f32 %v19839_v43, %v19749_v8  ;;  %v18602_v9 = vmul.f32 %v8150_v17, %v18512_v36  ;;  %v7562_v12 = vadd.f32 %v19840_v5, %v19753_v10  ;;  %v12931_v36 = vld [vmem:[%s19698_s22 + $0x2c0] ss:$8 sps:$4 sm:$0xff]  }
0x159b   : > { %9418 = vmatpush1.bf16.msra.mxu1 %v12925_v46  ;;  %v13492_v24 = vpop.eup %13491  ;;  %v18604_v46 = vmul.f32 0.5, %v7556_v62  ;;  %v18610_v47 = vadd.f32 %v19841_v2, %v19754_v1  ;;  %v18615_v4 = vmul.f32 0.5, %v7669_v35  ;;  %v7923_v31 = vmul.f32 0.70710677, %v7560_v40 }
0x159c   : > { %9419 = vmatprep.subr.bf16.mxu1 %v12930_v21  ;;  %v13494_v29 = vpop.eup %13493  ;;  %v18613_v21 = vmul.f32 %v8155_v18, %v18514_v15  ;;  %v8163_v3 = vadd.f32 1.0, %v13492_v24  ;;  %13509 = verf.f32 %v7918_v0  ;;  %v7925_v43 = vmul.f32 0.70710677, %v7673_v39  ;;  %v19843_v0 = vld [vmem:[#allocation79_spill] sm:$0xff] }
0x159d   : > { %v13496_v62 = vpop.eup %13495  ;;  %v8165_v17 = vadd.f32 1.0, %v13494_v29  ;;  %v7924_v5 = vmul.f32 0.70710677, %v7562_v12  ;;  %v18621_v16 = vmul.f32 %v8157_v30, %v18518_v52  ;;  %v18625_v18 = vmul.f32 0.5, %v7558_v49  ;;  %v12936_v52 = vld [vmem:[%s19698_s22 + $0x2d4] ss:$8 sps:$4 sm:$0xff]  }
0x159e   : > { %v13498_v2 = vpop.eup %13497  ;;  %v18623_v15 = vmul.f32 %v8163_v3, %v7779_v22  ;;  %13511 = verf.f32 %v7923_v31  ;;  %v7926_v29 = vmul.f32 0.70710677, %v18610_v47  ;;  %v8362_v14 = vpack.c.bf16 %v19844_v25, %v19843_v0 }
0x159f   : > { %9420 = vmatpush1.bf16.msra.mxu1 %v12928_v50  ;;  %19842 = vst [vmem:[#allocation53_spill] sm:$0xff] %v18621_v16  ;;  %v13500_v35 = vpop.eup %13499  ;;  %v18627_v24 = vmul.f32 %v8165_v17, %v7781_v41  ;;  %13513 = verf.f32 %v7925_v43  ;;  %v8156_v22 = vadd.f32 1.0, %v13496_v62  ;;  %v18638_v30 = vmul.f32 0.5, %v18566_v59  ;;  %v12934_v59 = vld [vmem:[%s19698_s22 + $0x2d0] ss:$8 sps:$4 sm:$0xff]  }
0x15a0   : > { %9421 = vmatprep.subr.bf16.mxu1 %v12933_v61  ;;  %v13502_v50 = vpop.eup %13501  ;;  %13515 = verf.f32 %v7924_v5  ;;  %9356 = vmatprep.mubr.bf16.mxu1 %v8362_v14  ;;  %v18644_v25 = vadd.f32 %v18214_v51, %v19748_v58  ;;  %v18648_v61 = vadd.f32 %v18220_v53, %v19749_v8  ;;  %v8164_v31 = vadd.f32 1.0, %v13498_v2  ;;  %v19845_v14 = vld [vmem:[#allocation76_spill] sm:$0xff]  ;;  %v19846_v43 = vld [vmem:[#allocation75_spill] sm:$0xff] }
0x15a1   : > { %13517 = verf.f32 %v7926_v29  ;;  %v8166_v62 = vadd.f32 1.0, %v13500_v35  ;;  %v18655_v17 = vadd.f32 %v18222_v63, %v19753_v10  ;;  %v18659_v51 = vadd.f32 %v18229_v33, %v19754_v1  ;;  %v19848_v63 = vld [vmem:[#allocation80_spill] sm:$0xff] }
0x15a2   : > { %v13504_v3 = vpop.eup %13503  ;;  %v19847_v53 = vpack.c.bf16 %v19845_v14, %v19846_v43  ;;  %v18667_v29 = vadd.f32 1.0, %v13502_v50  ;;  %v7931_v35 = vmul.f32 0.70710677, %v18644_v25  ;;  %v18672_v0 = vadd.f32 %v19848_v63, %v19748_v58  ;;  %v12937_v58 = vld [vmem:[%s19698_s22 + $0x2e0] ss:$8 sps:$4 sm:$0xff]   ;;  %v19851_v63 = vld [vmem:[#allocation90_spill] sm:$0xff] }
0x15a3   : > { %9422 = vmatpush1.bf16.msra.mxu1 %v12931_v36  ;;  %v12939_v36 = vld [vmem:[%s19698_s22 + $0x2e4] ss:$8 sps:$4 sm:$0xff]   ;;  %v13506_v5 = vpop.eup %13505  ;;  %v8171_v2 = vadd.f32 1.0, %v13504_v3  ;;  %v18675_v41 = vmul.f32 %v8156_v22, %v18538_v32  ;;  %v7933_v43 = vmul.f32 0.70710677, %v18648_v61  ;;  %v7795_v49 = vmul.f32 0.5, %v7560_v40 }
0x15a4   : > { %9357 = vmatmul.mubr.bf16.gmra.mrb[80].mxu1 %v19847_v53  ;;  %9423 = vmatprep.subr.bf16.mxu1 %v12936_v52  ;;  %v13508_v33 = vpop.eup %13507  ;;  %v8173_v14 = vadd.f32 1.0, %v13506_v5  ;;  %v7932_v53 = vmul.f32 0.70710677, %v18655_v17  ;;  %v7797_v50 = vmul.f32 0.5, %v7673_v39  ;;  %v7796_v16 = vmul.f32 0.5, %v7562_v12  ;;  %v19849_v5 = vld [vmem:[#allocation109_spill] sm:$0xff] }
0x15a5   : > { %13519 = verf.f32 %v7931_v35  ;;  %v18683_v52 = vmul.f32 %v8164_v31, %v18583_v27  ;;  %v18686_v32 = vmul.f32 %v8166_v62, %v18588_v26  ;;  %v7798_v22 = vmul.f32 0.5, %v18610_v47  ;;  %v12942_v40 = vld [vmem:[%s19698_s22 + $0x2f4] ss:$8 sps:$4 sm:$0xff]  }
0x15a6   : > { %v7934_v3 = vmul.f32 0.70710677, %v18659_v51  ;;  %v13510_v39 = vpop.eup %13509  ;;  %v18694_v12 = vmul.f32 %v8171_v2, %v18604_v46  ;;  %13521 = verf.f32 %v7933_v43  ;;  %v7939_v27 = vmul.f32 0.70710677, %v18672_v0  ;;  %v19850_v35 = vld [vmem:[#allocation88_spill] sm:$0xff] }
0x15a7   : > { %9424 = vmatpush1.bf16.msra.mxu1 %v12934_v59  ;;  %v8172_v59 = vadd.f32 1.0, %v13508_v33  ;;  %v18698_v26 = vmul.f32 %v8173_v14, %v18615_v4  ;;  %13523 = verf.f32 %v7932_v53  ;;  %v18702_v47 = vadd.f32 %v18237_v60, %v19749_v8  ;;  %v12940_v8 = vld [vmem:[%s19698_s22 + $0x2f0] ss:$8 sps:$4 sm:$0xff]  }
0x15a8   : > { %9425 = vmatprep.subr.bf16.mxu1 %v12939_v36  ;;  %v13512_v31 = vpop.eup %13511  ;;  %v18706_v62 = vadd.f32 %v18239_v6, %v19753_v10  ;;  %13525 = verf.f32 %v7939_v27  ;;  %v18710_v2 = vadd.f32 %v19849_v5, %v19754_v1  ;;  %v8370_v4 = vpack.c.bf16 %v19851_v63, %v19850_v35  ;;  %v12945_v1 = vld [vmem:[%s19698_s22 + $0x304] ss:$8 sps:$4 sm:$0xff]  }
0x15a9   : > { %v13514_v36 = vpop.eup %13513  ;;  %v8179_v46 = vadd.f32 1.0, %v13512_v31  ;;  %v8174_v33 = vadd.f32 1.0, %v13510_v39  ;;  %13527 = verf.f32 %v7934_v3  ;;  %v7941_v10 = vmul.f32 0.70710677, %v18702_v47  ;;  %v19852_v31 = vld [vmem:[#allocation85_spill] sm:$0xff] }
0x15aa   : > { %v13516_v60 = vpop.eup %13515  ;;  %v8181_v14 = vadd.f32 1.0, %v13514_v36  ;;  %v18722_v43 = vmul.f32 %v8172_v59, %v18625_v18  ;;  %v7940_v27 = vmul.f32 0.70710677, %v18706_v62  ;;  %9366 = vmatprep.mubr.bf16.mxu1 %v8370_v4  ;;  %v19853_v36 = vld [vmem:[#allocation83_spill] sm:$0xff]  ;;  %v19857_v4 = vld [vmem:[#allocation77_spill] sm:$0xff] }
0x15ab   : > { %9426 = vmatpush1.bf16.msra.mxu1 %v12937_v58  ;;  %v13518_v6 = vpop.eup %13517  ;;  %v18724_v53 = vmul.f32 %v8179_v46, %v7795_v49  ;;  %v8180_v58 = vadd.f32 1.0, %v13516_v60  ;;  %13529 = verf.f32 %v7941_v10  ;;  %v19854_v5 = vpack.c.bf16 %v19852_v31, %v19853_v36  ;;  %v19855_v49 = vld [vmem:[#allocation95_spill] sm:$0xff]  ;;  %v19856_v46 = vld [vmem:[#allocation72_spill] sm:$0xff]  ;;  %v19858_v60 = vld [vmem:[#allocation78_spill] sm:$0xff] }
0x15ac   : > { %9427 = vmatprep.subr.bf16.mxu1 %v12942_v40  ;;  %v18727_v39 = vmul.f32 %v8181_v14, %v7797_v50  ;;  %v8182_v3 = vadd.f32 1.0, %v13518_v6  ;;  %v7942_v40 = vmul.f32 0.70710677, %v18710_v2  ;;  %13531 = verf.f32 %v7940_v27  ;;  %v19859_v6 = vld [vmem:[#allocation108_spill] sm:$0xff] }
0x15ad   : > { %9367 = vmatmul.mubr.bf16.gmra.mrb[84].mxu1 %v19854_v5  ;;  %v18735_v59 = vmul.f32 %v8180_v58, %v7796_v16  ;;  %v8378_v35 = vpack.c.bf16 %v19856_v46, %v19855_v49  ;;  %v8386_v14 = vpack.c.bf16 %v19858_v60, %v19857_v4  ;;  %v8332_v16 = vpack.c.bf16 %v18262_v19, %v19859_v6  ;;  %v19861_v49 = vld [vmem:[#allocation94_spill] sm:$0xff] }
0x15ae   : > { %v18741_v63 = vmul.f32 %v8182_v3, %v7798_v22  ;;  %13533 = verf.f32 %v7942_v40  ;;  %v8340_v58 = vpack.c.bf16 %v18337_v48, %v18308_v44  ;;  %v18755_v27 = vmul.f32 %v18667_v29, %v18552_v54  ;;  %v19860_v40 = vld [vmem:[#allocation82_spill] sm:$0xff]  ;;  %v19863_v54 = vld [vmem:[#allocation91_spill] sm:$0xff] }
0x15af   : > { %9428 = vmatpush1.bf16.msra.mxu1 %v12940_v8  ;;  %v13520_v10 = vpop.eup %13519  ;;  %9376 = vmatprep.mubr.bf16.mxu1 %v8378_v35  ;;  %v8348_v8 = vpack.c.bf16 %v18436_v7, %v18413_v56  ;;  %v18764_v48 = vmul.f32 %v8174_v33, %v18638_v30  ;;  %v7803_v6 = vmul.f32 0.5, %v18644_v25  ;;  %v7811_v50 = vmul.f32 0.5, %v18672_v0  ;;  %v12960_v56 = vld [vmem:[%s19698_s22 + $0x354] ss:$8 sps:$4 sm:$0xff]   ;;  %v19874_v7 = vld [vmem:[#allocation61_spill] sm:$0xff] }
0x15b0   : > { %9510 = vmatprep.subr.bf16.mxu1 %v12945_v1  ;;  %v13522_v44 = vpop.eup %13521  ;;  %v8187_v5 = vadd.f32 1.0, %v13520_v10  ;;  %v19862_v10 = vld [vmem:[#allocation92_spill] sm:$0xff]  ;;  %v7805_v30 = vmul.f32 0.5, %v18648_v61  ;;  %v7804_v25 = vmul.f32 0.5, %v18655_v17  ;;  %v7813_v0 = vmul.f32 0.5, %v18702_v47 }
0x15b1   : > { %v13524_v36 = vpop.eup %13523  ;;  %v19864_v31 = vpack.c.bf16 %v19862_v10, %v19863_v54  ;;  %v8189_v46 = vadd.f32 1.0, %v13522_v44  ;;  %v7812_v44 = vmul.f32 0.5, %v18706_v62  ;;  %v19865_v62 = vld [vmem:[#allocation100_spill] sm:$0xff]  ;;  %v12951_v10 = vld [vmem:[%s19698_s22 + $0x324] ss:$8 sps:$4 sm:$0xff]  }
0x15b2   : > { %v13526_v4 = vpop.eup %13525  ;;  %v18785_v18 = vmul.f32 %v8187_v5, %v7803_v6  ;;  %v8188_v19 = vadd.f32 1.0, %v13524_v36 }
0x15b3   : > { %v13528_v60 = vpop.eup %13527  ;;  %v8195_v29 = vadd.f32 1.0, %v13526_v4  ;;  %v18796_v61 = vmul.f32 %v8189_v46, %v7805_v30 }
0x15b4   : > { %v8190_v1 = vadd.f32 1.0, %v13528_v60  ;;  %v18801_v36 = vmul.f32 %v8188_v19, %v7804_v25  ;;  %v19868_v19 = vld [vmem:[#allocation106_spill] sm:$0xff]  ;;  %v19869_v60 = vld [vmem:[#allocation104_spill] sm:$0xff] }
0x15b5   : > { %9377 = vmatmul.mubr.bf16.gmra.mrb[88].mxu1 %v19864_v31  ;;  %v13530_v35 = vpop.eup %13529  ;;  %v18788_v3 = vmul.f32 %v8195_v29, %v7811_v50  ;;  %v7806_v31 = vmul.f32 0.5, %v18659_v51  ;;  %v7814_v29 = vmul.f32 0.5, %v18710_v2  ;;  %v19870_v6 = vpack.c.bf16 %v19868_v19, %v19869_v60  ;;  %v12949_v25 = vld [vmem:[%s19698_s22 + $0x320] ss:$8 sps:$4 sm:$0xff]  }
0x15b6   : > { %9386 = vmatprep.mubr.bf16.mxu1 %v8386_v14  ;;  %v13532_v33 = vpop.eup %13531  ;;  %v8197_v4 = vadd.f32 1.0, %v13530_v35  ;;  %v19881_v60 = vpack.c.bf16 %v18586_v45, %v18572_v55  ;;  %v12972_v55 = vld [vmem:[%s19698_s22 + $0x394] ss:$8 sps:$4 sm:$0xff]  }
0x15b7   : > { %v8387_v14 = vpack.c.bf16 %v18788_v3, %v18785_v18  ;;  %v8196_v54 = vadd.f32 1.0, %v13532_v33  ;;  %v18805_v5 = vmul.f32 %v8190_v1, %v7806_v31  ;;  %v19866_v33 = vld [vmem:[#allocation99_spill] sm:$0xff]  ;;  %v19882_v45 = vld [vmem:[#allocation60_spill] sm:$0xff]  ;;  %v19893_v18 = vld [vmem:[#allocation110_spill] sm:$0xff] }
0x15b8   : > { %v13534_v22 = vpop.eup %13533  ;;  %v18798_v50 = vmul.f32 %v8197_v4, %v7813_v0  ;;  %v19867_v46 = vpack.c.bf16 %v19865_v62, %v19866_v33  ;;  %v12948_v1 = vld [vmem:[%s19698_s22 + $0x314] ss:$8 sps:$4 sm:$0xff]   ;;  %v19877_v62 = vpack.c.bf16 %v18503_v20, %v18489_v28  ;;  %v12958_v33 = vld [vmem:[%s19698_s22 + $0x350] ss:$8 sps:$4 sm:$0xff]  }
0x15b9   : > { %v8198_v17 = vadd.f32 1.0, %v13534_v22  ;;  %v18803_v47 = vmul.f32 %v8196_v54, %v7812_v44  ;;  %v12943_v22 = vld [vmem:[%s19698_s22 + $0x300] ss:$8 sps:$4 sm:$0xff]   ;;  %v19871_v0 = vld [vmem:[#allocation87_spill] sm:$0xff]  ;;  %v12957_v54 = vld [vmem:[%s19698_s22 + $0x344] ss:$8 sps:$4 sm:$0xff]  }
0x15ba   : > { %v8389_v51 = vpack.c.bf16 %v18798_v50, %v18796_v61  ;;  %v19872_v4 = vld [vmem:[#allocation84_spill] sm:$0xff]  ;;  %v12952_v44 = vld [vmem:[%s19698_s22 + $0x330] ss:$8 sps:$4 sm:$0xff]  }
0x15bb   : > { %v18809_v35 = vmul.f32 %v8198_v17, %v7814_v29  ;;  %v8388_v30 = vpack.c.bf16 %v18803_v47, %v18801_v36  ;;  %v19873_v31 = vpack.c.bf16 %v19871_v0, %v19872_v4  ;;  %v12955_v29 = vld [vmem:[%s19698_s22 + $0x340] ss:$8 sps:$4 sm:$0xff]   ;;  %v12966_v28 = vld [vmem:[%s19698_s22 + $0x374] ss:$8 sps:$4 sm:$0xff]   ;;  %v12970_v0 = vld [vmem:[%s19698_s22 + $0x390] ss:$8 sps:$4 sm:$0xff]   ;;  %v19888_v36 = vpack.c.bf16 %v19860_v40, %v18257_v57 }
0x15bc   : > { %v19878_v20 = vld [vmem:[#allocation63_spill] sm:$0xff]  ;;  %v12975_v4 = vld [vmem:[%s19698_s22 + $0x3a4] ss:$8 sps:$4 sm:$0xff]   ;;  %v19896_v57 = vpack.c.bf16 %v18444_v23, %v18420_v34  ;;  %v19897_v40 = vld [vmem:[#allocation56_spill] sm:$0xff]  ;;  %v19908_v23 = vpack.c.bf16 %v18686_v32, %v18755_v27 }
0x15bd   : > { %9387 = vmatmul.mubr.bf16.gmra.mrb[92].mxu1 %v19867_v46  ;;  %v8390_v2 = vpack.c.bf16 %v18809_v35, %v18805_v5  ;;  %v12963_v46 = vld [vmem:[%s19698_s22 + $0x364] ss:$8 sps:$4 sm:$0xff]   ;;  %v12988_v47 = vld [vmem:[%s19698_s22 + $0x3f0] ss:$8 sps:$4 sm:$0xff]  }
0x15be   : > { %9429 = vmatprep.mubr.bf16.mxu1 %v8332_v16  ;;  %v12946_v16 = vld [vmem:[%s19698_s22 + $0x310] ss:$8 sps:$4 sm:$0xff]  }
0x15bf   : > { %v19894_v3 = vld [vmem:[#allocation86_spill] sm:$0xff] }
0x15c5   : > { %9430 = vmatmul.mubr.bf16.vlgmr.msra.gmra.mrb[64].mxu1 %v19870_v6  ;;  %v12964_v6 = vld [vmem:[%s19698_s22 + $0x370] ss:$8 sps:$4 sm:$0xff]  }
0x15c6   : > { %9439 = vmatprep.mubr.bf16.mxu1 %v8340_v58  ;;  %9511 = vmatpush1.bf16.msra.mxu1 %v12943_v22  ;;  %v12954_v58 = vld [vmem:[%s19698_s22 + $0x334] ss:$8 sps:$4 sm:$0xff]   ;;  %v12961_v22 = vld [vmem:[%s19698_s22 + $0x360] ss:$8 sps:$4 sm:$0xff]  }
0x15c7   : > { %9512 = vmatprep.subr.bf16.mxu1 %v12948_v1  ;;  %v19879_v1 = vld [vmem:[#allocation89_spill] sm:$0xff] }
0x15c8   : > { %v19880_v19 = vpack.c.bf16 %v19878_v20, %v19879_v1  ;;  %v19906_v20 = vld [vmem:[#allocation59_spill] sm:$0xff]  ;;  %v19909_v1 = vld [vmem:[#allocation53_spill] sm:$0xff] }
0x15ca   : > { %9513 = vmatpush1.bf16.msra.mxu1 %v12946_v16  ;;  %v12969_v16 = vld [vmem:[%s19698_s22 + $0x384] ss:$8 sps:$4 sm:$0xff]  }
0x15cb   : > { %9514 = vmatprep.subr.bf16.mxu1 %v12951_v10  ;;  %v12967_v10 = vld [vmem:[%s19698_s22 + $0x380] ss:$8 sps:$4 sm:$0xff]  }
0x15cd   : > { %9440 = vmatmul.mubr.bf16.gmra.mrb[68].mxu1 %v19873_v31  ;;  %v19886_v31 = vpack.c.bf16 %v18735_v59, %v18722_v43  ;;  %v19887_v43 = vpack.c.bf16 %v18724_v53, %v18694_v12  ;;  %v12982_v59 = vld [vmem:[%s19698_s22 + $0x3d0] ss:$8 sps:$4 sm:$0xff]   ;;  %v12985_v12 = vld [vmem:[%s19698_s22 + $0x3e0] ss:$8 sps:$4 sm:$0xff]   ;;  %v12990_v53 = vld [vmem:[%s19698_s22 + $0x3f4] ss:$8 sps:$4 sm:$0xff]  }
0x15ce   : > { %9449 = vmatprep.mubr.bf16.mxu1 %v8348_v8  ;;  %9515 = vmatpush1.bf16.msra.mxu1 %v12949_v25  ;;  %v19875_v8 = vld [vmem:[#allocation58_spill] sm:$0xff]  ;;  %v19883_v25 = vpack.c.bf16 %v18536_v37, %v19882_v45  ;;  %v12973_v37 = vld [vmem:[%s19698_s22 + $0x3a0] ss:$8 sps:$4 sm:$0xff]  }
0x15cf   : > { %9516 = vmatprep.subr.bf16.mxu1 %v12954_v58  ;;  %v19876_v17 = vpack.c.bf16 %v19874_v7, %v19875_v8  ;;  %v19884_v58 = vpack.c.bf16 %v18683_v52, %v18675_v41  ;;  %v12978_v41 = vld [vmem:[%s19698_s22 + $0x3b4] ss:$8 sps:$4 sm:$0xff]   ;;  %v19885_v52 = vpack.c.bf16 %v18623_v15, %v18613_v21  ;;  %v12979_v21 = vld [vmem:[%s19698_s22 + $0x3c0] ss:$8 sps:$4 sm:$0xff]   ;;  %v19892_v8 = vpack.c.bf16 %v18347_v11, %v18329_v42 }
0x15d0   : > { %v12984_v15 = vld [vmem:[%s19698_s22 + $0x3d4] ss:$8 sps:$4 sm:$0xff]   ;;  %v19904_v11 = vpack.c.bf16 %v18602_v9, %v18575_v13  ;;  %v19912_v13 = vpack.c.bf16 %v18727_v39, %v18698_v26  ;;  %v8519_v9 = vld [vmem:[%s19913_s24] sm:$0x3] }
0x15d2   : > { %9517 = vmatpush1.bf16.msra.mxu1 %v12952_v44  ;;  %v12976_v44 = vld [vmem:[%s19698_s22 + $0x3b0] ss:$8 sps:$4 sm:$0xff]  }
0x15d3   : > { %9518 = vmatprep.subr.bf16.mxu1 %v12957_v54  ;;  %v12981_v54 = vld [vmem:[%s19698_s22 + $0x3c4] ss:$8 sps:$4 sm:$0xff]  }
0x15d5   : > { %9450 = vmatmul.mubr.bf16.gmra.mrb[72].mxu1 %v19876_v17  ;;  %v19898_v17 = vld [vmem:[#allocation57_spill] sm:$0xff] }
0x15d6   : > { %9459 = vmatprep.mubr.bf16.mxu1 %v19877_v62  ;;  %9519 = vmatpush1.bf16.msra.mxu1 %v12955_v29  ;;  %v12987_v29 = vld [vmem:[%s19698_s22 + $0x3e4] ss:$8 sps:$4 sm:$0xff]   ;;  %v19899_v62 = vpack.c.bf16 %v19897_v40, %v19898_v17 }
0x15d7   : > { %9520 = vmatprep.subr.bf16.mxu1 %v12960_v56  ;;  %v19890_v56 = vld [vmem:[#allocation105_spill] sm:$0xff] }
0x15da   : > { %9521 = vmatpush1.bf16.msra.mxu1 %v12958_v33  ;;  %v19900_v33 = vpack.c.bf16 %v19861_v49, %v18492_v38  ;;  %v19910_v38 = vpack.c.bf16 %v18627_v24, %v19909_v1  ;;  %v19911_v49 = vpack.c.bf16 %v18741_v63, %v18764_v48  ;;  %v19914_v24 = vld [vmem:[#allocation18_spill] sm:$0xff]  ;;  %v19915_v63 = vld [vmem:[#allocation19_spill] sm:$0xff] }
0x15db   : > { %9522 = vmatprep.subr.bf16.mxu1 %v12963_v46  ;;  %v19901_v46 = vld [vmem:[#allocation93_spill] sm:$0xff]  ;;  %v19005_v32 = vrot.slane %v8519_v9, %v19914_v24  ;;  %v19008_v27 = vrot.slane %v8519_v9, %v19915_v63  ;;  %v19928_v9 = vld [vmem:[#allocation32_spill] sm:$0xff] }
0x15dd   : > { %9460 = vmatmul.mubr.bf16.gmra.mrb[76].mxu1 %v19880_v19  ;;  %v19917_v19 = vld [vmem:[#allocation22_spill] sm:$0xff] }
0x15de   : > { %9469 = vmatprep.mubr.bf16.mxu1 %v19881_v60  ;;  %9523 = vmatpush1.bf16.msra.mxu1 %v12961_v22  ;;  %v19902_v22 = vld [vmem:[#allocation62_spill] sm:$0xff] }
0x15df   : > { %9524 = vmatprep.subr.bf16.mxu1 %v12966_v28  ;;  %v19903_v42 = vpack.c.bf16 %v19901_v46, %v19902_v22  ;;  %v19905_v28 = vld [vmem:[#allocation52_spill] sm:$0xff]  ;;  %v19926_v22 = vld [vmem:[#allocation29_spill] sm:$0xff] }
0x15e0   : > { %v19907_v34 = vpack.c.bf16 %v19905_v28, %v19906_v20 }
0x15e2   : > { %9525 = vmatpush1.bf16.msra.mxu1 %v12964_v6 }
0x15e3   : > { %9526 = vmatprep.subr.bf16.mxu1 %v12969_v16  ;;  %v19918_v16 = vld [vmem:[#allocation21_spill] sm:$0xff] }
0x15e5   : > { %9470 = vmatmul.mubr.bf16.gmra.mrb[80].mxu1 %v19883_v25 }
0x15e6   : > { %9479 = vmatprep.mubr.bf16.mxu1 %v19884_v58  ;;  %9527 = vmatpush1.bf16.msra.mxu1 %v12967_v10 }
0x15e7   : > { %9528 = vmatprep.subr.bf16.mxu1 %v12972_v55  ;;  %v19919_v55 = vld [vmem:[#allocation23_spill] sm:$0xff] }
0x15ea   : > { %9529 = vmatpush1.bf16.msra.mxu1 %v12970_v0 }
0x15eb   : > { %9530 = vmatprep.subr.bf16.mxu1 %v12975_v4 }
0x15ed   : > { %9480 = vmatmul.mubr.bf16.gmra.mrb[84].mxu1 %v19885_v52 }
0x15ee   : > { %9489 = vmatprep.mubr.bf16.mxu1 %v19886_v31  ;;  %9531 = vmatpush1.bf16.msra.mxu1 %v12973_v37  ;;  %v19920_v31 = vld [vmem:[#allocation24_spill] sm:$0xff] }
0x15ef   : > { %9532 = vmatprep.subr.bf16.mxu1 %v12978_v41 }
0x15f2   : > { %9533 = vmatpush1.bf16.msra.mxu1 %v12976_v44 }
0x15f3   : > { %9534 = vmatprep.subr.bf16.mxu1 %v12981_v54 }
0x15f5   : > { %9490 = vmatmul.mubr.bf16.gmra.mrb[88].mxu1 %v19887_v43 }
0x15f6   : > { %9499 = vmatprep.mubr.bf16.mxu1 %v8388_v30  ;;  %9535 = vmatpush1.bf16.msra.mxu1 %v12979_v21  ;;  %v19889_v30 = vld [vmem:[#allocation107_spill] sm:$0xff] }
0x15f7   : > { %9536 = vmatprep.subr.bf16.mxu1 %v12984_v15  ;;  %v19891_v7 = vpack.c.bf16 %v19889_v30, %v19890_v56  ;;  %v19921_v15 = vld [vmem:[#allocation27_spill] sm:$0xff] }
0x15fa   : > { %9537 = vmatpush1.bf16.msra.mxu1 %v12982_v59 }
0x15fb   : > { %9538 = vmatprep.subr.bf16.mxu1 %v12987_v29  ;;  %v19922_v29 = vld [vmem:[#allocation25_spill] sm:$0xff] }
0x15fd   : > { %9500 = vmatmul.mubr.bf16.gmra.mrb[92].mxu1 %v8387_v14  ;;  %v19895_v14 = vpack.c.bf16 %v19893_v18, %v19894_v3 }
0x15fe   : > { %9539 = vmatpush1.bf16.msra.mxu1 %v12985_v12  ;;  %9542 = vmatprep.mubr.bf16.mxu1 %v19888_v36 }
0x15ff   : > { %9540 = vmatprep.subr.bf16.mxu1 %v12990_v53  ;;  %v19923_v53 = vld [vmem:[#allocation26_spill] sm:$0xff] }
0x1602   : > { %9541 = vmatpush1.bf16.msra.mxu1 %v12988_v47 }
0x1605   : > { %9543 = vmatmul.mubr.bf16.vlgmr.msra.gmra.mrb[64].mxu1 %v19891_v7 }
0x1606   : > { %9552 = vmatprep.mubr.bf16.mxu1 %v19892_v8 }
0x160d   : > { %9553 = vmatmul.mubr.bf16.gmra.mrb[68].mxu1 %v19895_v14  ;;  %v19924_v14 = vld [vmem:[#allocation28_spill] sm:$0xff] }
0x160e   : > { %9562 = vmatprep.mubr.bf16.mxu1 %v19896_v57 }
0x1615   : > { %9563 = vmatmul.mubr.bf16.gmra.mrb[72].mxu1 %v19899_v62  ;;  %v19925_v62 = vld [vmem:[#allocation30_spill] sm:$0xff] }
0x1616   : > { %9572 = vmatprep.mubr.bf16.mxu1 %v19900_v33 }
0x161d   : > { %9573 = vmatmul.mubr.bf16.gmra.mrb[76].mxu1 %v19903_v42 }
0x161e   : > { %9582 = vmatprep.mubr.bf16.mxu1 %v19904_v11  ;;  %v19927_v11 = vld [vmem:[#allocation31_spill] sm:$0xff] }
0x1625   : > { %9583 = vmatmul.mubr.bf16.gmra.mrb[80].mxu1 %v19907_v34 }
0x1626   : > { %9592 = vmatprep.mubr.bf16.mxu1 %v19908_v23 }
0x162d   : > { %9593 = vmatmul.mubr.bf16.gmra.mrb[84].mxu1 %v19910_v38 }
0x162e   : > { %9602 = vmatprep.mubr.bf16.mxu1 %v19911_v49 }
0x1635   : > { %9603 = vmatmul.mubr.bf16.gmra.mrb[88].mxu1 %v19912_v13 }
0x1636   : > { %9612 = vmatprep.mubr.bf16.mxu1 %v8390_v2  ;;  %v19916_v2 = vld [vmem:[#allocation20_spill] sm:$0xff] }
0x163d   : > { %9613 = vmatmul.mubr.bf16.gmra.mrb[92].mxu1 %v8389_v51 }
0x16d8   : > { %v9544_v26 = vpop.f32.mrb[64].mxu1 }
0x16d9   : > { %v12208_v39 = vadd.f32 %v9544_v26, %v19005_v32  ;;  %v9546_v48 = vpop.f32.mrb[65].mxu1 }
0x16da   : > { %v12209_v5 = vadd.f32 %v9546_v48, %v19008_v27  ;;  %v9548_v35 = vpop.f32.mrb[66].mxu1 }
0x16db   : > { %v19013_v61 = vadd.f32 %v12208_v39, %v19916_v2  ;;  %v12210_v50 = vadd.f32 %v9548_v35, %v19005_v32  ;;  %v9550_v51 = vpop.f32.mrb[67].mxu1 }
0x16dc   : > { %v19017_v60 = vadd.f32 %v12209_v5, %v19917_v19  ;;  %v12211_v6 = vadd.f32 %v9550_v51, %v19008_v27  ;;  %v19929_v5 = vld [vmem:[#allocation34_spill] sm:$0xff]  ;;  %v19931_v19 = vld [vmem:[#allocation35_spill] sm:$0xff] }
0x16dd   : > { %v19021_v10 = vadd.f32 %v12210_v50, %v19918_v16  ;;  %v19930_v50 = vld [vmem:[#allocation33_spill] sm:$0xff] }
0x16de   : > { %v19024_v45 = vadd.f32 %v12211_v6, %v19919_v55  ;;  %v9657_v25 = vadd.f32 %v19017_v60, %v19013_v61 }
0x16e0   : > { %v9554_v58 = vpop.f32.mrb[68].mxu1  ;;  %9658 = vadd.xlane.f32.xlu0 %v9657_v25  ;;  %v9660_v0 = vadd.f32 %v19024_v45, %v19021_v10 }
0x16e1   : > { %v12212_v4 = vadd.f32 %v9554_v58, %v19005_v32  ;;  %v9556_v37 = vpop.f32.mrb[69].mxu1 }
0x16e2   : > { %v12213_v41 = vadd.f32 %v9556_v37, %v19008_v27  ;;  %v9558_v52 = vpop.f32.mrb[70].mxu1  ;;  %9661 = vadd.xlane.f32.xlu1 %v9660_v0 }
0x16e3   : > { %v19033_v44 = vadd.f32 %v12212_v4, %v19920_v31  ;;  %v12214_v54 = vadd.f32 %v9558_v52, %v19005_v32  ;;  %v9560_v21 = vpop.f32.mrb[71].mxu1 }
0x16e4   : > { %v19037_v43 = vadd.f32 %v12213_v41, %v19921_v15  ;;  %v12215_v59 = vadd.f32 %v9560_v21, %v19008_v27  ;;  %v19932_v41 = vld [vmem:[#allocation36_spill] sm:$0xff]  ;;  %v19933_v21 = vld [vmem:[#allocation38_spill] sm:$0xff] }
0x16e5   : > { %v19041_v12 = vadd.f32 %v12214_v54, %v19922_v29  ;;  %v19934_v29 = vld [vmem:[#allocation37_spill] sm:$0xff] }
0x16e6   : > { %v19044_v36 = vadd.f32 %v12215_v59, %v19923_v53  ;;  %v9663_v47 = vadd.f32 %v19037_v43, %v19033_v44 }
0x16e8   : > { %v9564_v30 = vpop.f32.mrb[72].mxu1  ;;  %9664 = vadd.xlane.f32.xlu0 %v9663_v47  ;;  %v9666_v56 = vadd.f32 %v19044_v36, %v19041_v12  ;;  %v19935_v47 = vld [vmem:[#allocation39_spill] sm:$0xff] }
0x16e9   : > { %v12216_v7 = vadd.f32 %v9564_v30, %v19005_v32  ;;  %v9566_v8 = vpop.f32.mrb[73].mxu1 }
0x16ea   : > { %v12217_v18 = vadd.f32 %v9566_v8, %v19008_v27  ;;  %v9568_v3 = vpop.f32.mrb[74].mxu1  ;;  %9667 = vadd.xlane.f32.xlu1 %v9666_v56 }
0x16eb   : > { %v19053_v57 = vadd.f32 %v12216_v7, %v19924_v14  ;;  %v12218_v40 = vadd.f32 %v9568_v3, %v19005_v32  ;;  %v9570_v17 = vpop.f32.mrb[75].mxu1 }
0x16ec   : > { %v19057_v33 = vadd.f32 %v12217_v18, %v19925_v62  ;;  %v12219_v46 = vadd.f32 %v9570_v17, %v19008_v27  ;;  %v19936_v17 = vld [vmem:[#allocation40_spill] sm:$0xff] }
0x16ed   : > { %v19061_v42 = vadd.f32 %v12218_v40, %v19926_v22 }
0x16ee   : > { %v19064_v28 = vadd.f32 %v12219_v46, %v19927_v11  ;;  %v9669_v20 = vadd.f32 %v19057_v33, %v19053_v57  ;;  %v19937_v11 = vld [vmem:[#allocation42_spill] sm:$0xff] }
0x16f0   : > { %v9574_v34 = vpop.f32.mrb[76].mxu1  ;;  %9670 = vadd.xlane.f32.xlu0 %v9669_v20  ;;  %v9672_v23 = vadd.f32 %v19064_v28, %v19061_v42 }
0x16f1   : > { %v12220_v1 = vadd.f32 %v9574_v34, %v19005_v32  ;;  %v9576_v38 = vpop.f32.mrb[77].mxu1 }
0x16f2   : > { %v12221_v49 = vadd.f32 %v9576_v38, %v19008_v27  ;;  %v9578_v13 = vpop.f32.mrb[78].mxu1  ;;  %9673 = vadd.xlane.f32.xlu1 %v9672_v23  ;;  %v19938_v23 = vld [vmem:[#allocation41_spill] sm:$0xff]  ;;  %v19939_v38 = vld [vmem:[#allocation43_spill] sm:$0xff] }
0x16f3   : > { %v19073_v26 = vadd.f32 %v12220_v1, %v19928_v9  ;;  %v12222_v39 = vadd.f32 %v9578_v13, %v19005_v32  ;;  %v9580_v48 = vpop.f32.mrb[79].mxu1 }
0x16f4   : > { %v19077_v35 = vadd.f32 %v12221_v49, %v19929_v5  ;;  %v12223_v2 = vadd.f32 %v9580_v48, %v19008_v27 }
0x16f5   : > { %v19081_v51 = vadd.f32 %v12222_v39, %v19930_v50 }
0x16f6   : > { %v19084_v6 = vadd.f32 %v12223_v2, %v19931_v19  ;;  %v9675_v16 = vadd.f32 %v19077_v35, %v19073_v26  ;;  %v19940_v19 = vld [vmem:[#allocation44_spill] sm:$0xff] }
0x16f8   : > { %v9584_v55 = vpop.f32.mrb[80].mxu1  ;;  %9676 = vadd.xlane.f32.xlu0 %v9675_v16  ;;  %v9678_v25 = vadd.f32 %v19084_v6, %v19081_v51 }
0x16f9   : > { %v12224_v58 = vadd.f32 %v9584_v55, %v19005_v32  ;;  %v9586_v0 = vpop.f32.mrb[81].mxu1 }
0x16fa   : > { %v12225_v4 = vadd.f32 %v9586_v0, %v19008_v27  ;;  %v9588_v37 = vpop.f32.mrb[82].mxu1  ;;  %9679 = vadd.xlane.f32.xlu1 %v9678_v25 }
0x16fb   : > { %v19093_v52 = vadd.f32 %v12224_v58, %v19932_v41  ;;  %v12226_v31 = vadd.f32 %v9588_v37, %v19005_v32  ;;  %v9590_v54 = vpop.f32.mrb[83].mxu1  ;;  %v19941_v58 = vld [vmem:[#allocation46_spill] sm:$0xff]  ;;  %v19942_v37 = vld [vmem:[#allocation45_spill] sm:$0xff] }
0x16fc   : > { %v19097_v15 = vadd.f32 %v12225_v4, %v19933_v21  ;;  %v12227_v59 = vadd.f32 %v9590_v54, %v19008_v27 }
0x16fd   : > { %v19101_v53 = vadd.f32 %v12226_v31, %v19934_v29  ;;  %v19943_v31 = vld [vmem:[#allocation47_spill] sm:$0xff] }
0x16fe   : > { %v19104_v30 = vadd.f32 %v12227_v59, %v19935_v47  ;;  %v9681_v56 = vadd.f32 %v19097_v15, %v19093_v52 }
0x1700   : > { %v9594_v7 = vpop.f32.mrb[84].mxu1  ;;  %9682 = vadd.xlane.f32.xlu0 %v9681_v56  ;;  %v9684_v8 = vadd.f32 %v19104_v30, %v19101_v53 }
0x1701   : > { %v12228_v18 = vadd.f32 %v9594_v7, %v19005_v32  ;;  %v9596_v3 = vpop.f32.mrb[85].mxu1 }
0x1702   : > { %v12229_v14 = vadd.f32 %v9596_v3, %v19008_v27  ;;  %v9598_v40 = vpop.f32.mrb[86].mxu1  ;;  %9685 = vadd.xlane.f32.xlu1 %v9684_v8 }
0x1703   : > { %v19113_v62 = vadd.f32 %v12228_v18, %v19936_v17  ;;  %v12230_v46 = vadd.f32 %v9598_v40, %v19005_v32  ;;  %v9600_v22 = vpop.f32.mrb[87].mxu1  ;;  %v19944_v18 = vld [vmem:[#allocation48_spill] sm:$0xff]  ;;  %v19945_v17 = vld [vmem:[#allocation50_spill] sm:$0xff] }
0x1704   : > { %v19117_v20 = vadd.f32 %v12229_v14, %v19937_v11  ;;  %v12231_v34 = vadd.f32 %v9600_v22, %v19008_v27  ;;  %v19946_v11 = vld [vmem:[#allocation49_spill] sm:$0xff] }
0x1705   : > { %v19121_v1 = vadd.f32 %v12230_v46, %v19938_v23  ;;  %v19947_v23 = vld [vmem:[#allocation51_spill] sm:$0xff] }
0x1706   : > { %v19124_v49 = vadd.f32 %v12231_v34, %v19939_v38  ;;  %v9687_v13 = vadd.f32 %v19117_v20, %v19113_v62 }
0x1708   : > { %v9604_v9 = vpop.f32.mrb[88].mxu1  ;;  %9688 = vadd.xlane.f32.xlu0 %v9687_v13  ;;  %v9690_v39 = vadd.f32 %v19124_v49, %v19121_v1 }
0x1709   : > { %v12232_v48 = vadd.f32 %v9604_v9, %v19005_v32  ;;  %v9606_v5 = vpop.f32.mrb[89].mxu1 }
0x170a   : > { %v12233_v2 = vadd.f32 %v9606_v5, %v19008_v27  ;;  %v9608_v50 = vpop.f32.mrb[90].mxu1  ;;  %9691 = vadd.xlane.f32.xlu1 %v9690_v39 }
0x170b   : > { %v19133_v16 = vadd.f32 %v12232_v48, %v19940_v19  ;;  %v12234_v55 = vadd.f32 %v9608_v50, %v19005_v32  ;;  %v9610_v25 = vpop.f32.mrb[91].mxu1 }
0x170c   : > { %v19137_v0 = vadd.f32 %v12233_v2, %v19941_v58  ;;  %v12235_v4 = vadd.f32 %v9610_v25, %v19008_v27 }
0x170d   : > { %v19141_v41 = vadd.f32 %v12234_v55, %v19942_v37 }
0x170e   : > { %v19144_v54 = vadd.f32 %v12235_v4, %v19943_v31  ;;  %v9693_v21 = vadd.f32 %v19137_v0, %v19133_v16 }
0x1710   : > { %v9614_v59 = vpop.f32.mrb[92].mxu1  ;;  %9694 = vadd.xlane.f32.xlu0 %v9693_v21  ;;  %v9696_v29 = vadd.f32 %v19144_v54, %v19141_v41 }
0x1711   : > { %v12236_v47 = vadd.f32 %v9614_v59, %v19005_v32  ;;  %v9616_v56 = vpop.f32.mrb[93].mxu1 }
0x1712   : > { %v12237_v7 = vadd.f32 %v9616_v56, %v19008_v27  ;;  %v9618_v8 = vpop.f32.mrb[94].mxu1  ;;  %9697 = vadd.xlane.f32.xlu1 %v9696_v29 }
0x1713   : > { %v19153_v3 = vadd.f32 %v12236_v47, %v19944_v18  ;;  %v12238_v14 = vadd.f32 %v9618_v8, %v19005_v32  ;;  %v9620_v40 = vpop.f32.mrb[95].mxu1 }
0x1714   : > { %v19157_v46 = vadd.f32 %v12237_v7, %v19945_v17  ;;  %v12239_v22 = vadd.f32 %v9620_v40, %v19008_v27 }
0x1715   : > { %v19161_v34 = vadd.f32 %v12238_v14, %v19946_v11 }
0x1716   : > { %v19164_v38 = vadd.f32 %v12239_v22, %v19947_v23  ;;  %v9699_v13 = vadd.f32 %v19157_v46, %v19153_v3 }
0x1718   : > { %9700 = vadd.xlane.f32.xlu0 %v9699_v13  ;;  %v9702_v9 = vadd.f32 %v19164_v38, %v19161_v34 }
0x171a   : > { %9703 = vadd.xlane.f32.xlu1 %v9702_v9 }
0x176d   : > { %v9659_v32 = vpop.xlane.xlu0 %9658 }
0x176e   : > { %v9705_v39 = vmul.f32 0.00390625, %v9659_v32 }
0x176f   : > { %v9662_v48 = vpop.xlane.xlu1 %9661 }
0x1770   : > { %v19171_v5 = vsub.f32 %v19013_v61, %v9705_v39  ;;  %v19174_v27 = vsub.f32 %v19017_v60, %v9705_v39  ;;  %v9706_v2 = vmul.f32 0.00390625, %v9662_v48 }
0x1772   : > { %v9753_v50 = vmul.f32 %v19171_v5, %v19171_v5  ;;  %v9754_v19 = vmul.f32 %v19174_v27, %v19174_v27  ;;  %v19181_v55 = vsub.f32 %v19021_v10, %v9706_v2  ;;  %v19184_v25 = vsub.f32 %v19024_v45, %v9706_v2 }
0x1774   : > { %v9755_v61 = vmul.f32 %v19181_v55, %v19181_v55  ;;  %v9756_v60 = vmul.f32 %v19184_v25, %v19184_v25  ;;  %v9785_v58 = vadd.f32 %v9754_v19, %v9753_v50 }
0x1775   : > { %v9665_v4 = vpop.xlane.xlu0 %9664 }
0x1776   : > { %v9707_v37 = vmul.f32 0.00390625, %v9665_v4  ;;  %9786 = vadd.xlane.f32.xlu0 %v9785_v58  ;;  %v9788_v31 = vadd.f32 %v9756_v60, %v9755_v61 }
0x1777   : > { %v9668_v21 = vpop.xlane.xlu1 %9667 }
0x1778   : > { %v19191_v59 = vsub.f32 %v19033_v44, %v9707_v37  ;;  %v19194_v10 = vsub.f32 %v19037_v43, %v9707_v37  ;;  %v9708_v45 = vmul.f32 0.00390625, %v9668_v21  ;;  %9789 = vadd.xlane.f32.xlu1 %v9788_v31 }
0x177a   : > { %v9757_v29 = vmul.f32 %v19191_v59, %v19191_v59  ;;  %v9758_v47 = vmul.f32 %v19194_v10, %v19194_v10  ;;  %v19201_v56 = vsub.f32 %v19041_v12, %v9708_v45  ;;  %v19204_v7 = vsub.f32 %v19044_v36, %v9708_v45 }
0x177c   : > { %v9759_v44 = vmul.f32 %v19201_v56, %v19201_v56  ;;  %v9760_v43 = vmul.f32 %v19204_v7, %v19204_v7  ;;  %v9791_v8 = vadd.f32 %v9758_v47, %v9757_v29 }
0x177d   : > { %v9671_v18 = vpop.xlane.xlu0 %9670 }
0x177e   : > { %v9709_v14 = vmul.f32 0.00390625, %v9671_v18  ;;  %9792 = vadd.xlane.f32.xlu0 %v9791_v8  ;;  %v9794_v40 = vadd.f32 %v9760_v43, %v9759_v44 }
0x177f   : > { %v9674_v17 = vpop.xlane.xlu1 %9673 }
0x1780   : > { %v19211_v22 = vsub.f32 %v19053_v57, %v9709_v14  ;;  %v19214_v12 = vsub.f32 %v19057_v33, %v9709_v14  ;;  %v9710_v36 = vmul.f32 0.00390625, %v9674_v17  ;;  %9795 = vadd.xlane.f32.xlu1 %v9794_v40 }
0x1782   : > { %v9761_v11 = vmul.f32 %v19211_v22, %v19211_v22  ;;  %v9762_v23 = vmul.f32 %v19214_v12, %v19214_v12  ;;  %v19221_v13 = vsub.f32 %v19061_v42, %v9710_v36  ;;  %v19224_v9 = vsub.f32 %v19064_v28, %v9710_v36 }
0x1784   : > { %v9763_v57 = vmul.f32 %v19221_v13, %v19221_v13  ;;  %v9764_v33 = vmul.f32 %v19224_v9, %v19224_v9  ;;  %v9797_v32 = vadd.f32 %v9762_v23, %v9761_v11 }
0x1785   : > { %v9677_v39 = vpop.xlane.xlu0 %9676 }
0x1786   : > { %v9711_v48 = vmul.f32 0.00390625, %v9677_v39  ;;  %9798 = vadd.xlane.f32.xlu0 %v9797_v32  ;;  %v9800_v2 = vadd.f32 %v9764_v33, %v9763_v57 }
0x1787   : > { %v9680_v50 = vpop.xlane.xlu1 %9679 }
0x1788   : > { %v19231_v19 = vsub.f32 %v19073_v26, %v9711_v48  ;;  %v19234_v42 = vsub.f32 %v19077_v35, %v9711_v48  ;;  %v9712_v28 = vmul.f32 0.00390625, %v9680_v50  ;;  %9801 = vadd.xlane.f32.xlu1 %v9800_v2 }
0x178a   : > { %v9765_v61 = vmul.f32 %v19231_v19, %v19231_v19  ;;  %v9766_v60 = vmul.f32 %v19234_v42, %v19234_v42  ;;  %v19241_v58 = vsub.f32 %v19081_v51, %v9712_v28  ;;  %v19244_v4 = vsub.f32 %v19084_v6, %v9712_v28 }
0x178c   : > { %v9767_v26 = vmul.f32 %v19241_v58, %v19241_v58  ;;  %v9768_v35 = vmul.f32 %v19244_v4, %v19244_v4  ;;  %v9803_v37 = vadd.f32 %v9766_v60, %v9765_v61 }
0x178d   : > { %v9683_v31 = vpop.xlane.xlu0 %9682 }
0x178e   : > { %v9713_v21 = vmul.f32 0.00390625, %v9683_v31  ;;  %9804 = vadd.xlane.f32.xlu0 %v9803_v37  ;;  %v9806_v45 = vadd.f32 %v9768_v35, %v9767_v26 }
0x178f   : > { %v9686_v29 = vpop.xlane.xlu1 %9685 }
0x1790   : > { %v19251_v47 = vsub.f32 %v19093_v52, %v9713_v21  ;;  %v19254_v51 = vsub.f32 %v19097_v15, %v9713_v21  ;;  %v9714_v6 = vmul.f32 0.00390625, %v9686_v29  ;;  %9807 = vadd.xlane.f32.xlu1 %v9806_v45 }
0x1792   : > { %v9769_v44 = vmul.f32 %v19251_v47, %v19251_v47  ;;  %v9770_v43 = vmul.f32 %v19254_v51, %v19254_v51  ;;  %v19261_v8 = vsub.f32 %v19101_v53, %v9714_v6  ;;  %v19264_v18 = vsub.f32 %v19104_v30, %v9714_v6 }
0x1794   : > { %v9771_v52 = vmul.f32 %v19261_v8, %v19261_v8  ;;  %v9772_v15 = vmul.f32 %v19264_v18, %v19264_v18  ;;  %v9809_v14 = vadd.f32 %v9770_v43, %v9769_v44 }
0x1795   : > { %v9689_v40 = vpop.xlane.xlu0 %9688 }
0x1796   : > { %v9715_v17 = vmul.f32 0.00390625, %v9689_v40  ;;  %9810 = vadd.xlane.f32.xlu0 %v9809_v14  ;;  %v9812_v36 = vadd.f32 %v9772_v15, %v9771_v52 }
0x1797   : > { %v9692_v11 = vpop.xlane.xlu1 %9691 }
0x1798   : > { %v19271_v23 = vsub.f32 %v19113_v62, %v9715_v17  ;;  %v19274_v53 = vsub.f32 %v19117_v20, %v9715_v17  ;;  %v9716_v30 = vmul.f32 0.00390625, %v9692_v11  ;;  %9813 = vadd.xlane.f32.xlu1 %v9812_v36 }
0x179a   : > { %v9773_v57 = vmul.f32 %v19271_v23, %v19271_v23  ;;  %v9774_v33 = vmul.f32 %v19274_v53, %v19274_v53  ;;  %v19281_v32 = vsub.f32 %v19121_v1, %v9716_v30  ;;  %v19284_v39 = vsub.f32 %v19124_v49, %v9716_v30 }
0x179c   : > { %v9775_v62 = vmul.f32 %v19281_v32, %v19281_v32  ;;  %v9776_v20 = vmul.f32 %v19284_v39, %v19284_v39  ;;  %v9815_v48 = vadd.f32 %v9774_v33, %v9773_v57 }
0x179d   : > { %v9695_v2 = vpop.xlane.xlu0 %9694 }
0x179e   : > { %v9717_v50 = vmul.f32 0.00390625, %v9695_v2  ;;  %9816 = vadd.xlane.f32.xlu0 %v9815_v48  ;;  %v9818_v28 = vadd.f32 %v9776_v20, %v9775_v62  ;;  %v9655_v2 = vld [vmem:[%s19948_s13] sm:$0x3]  ;;  %s13741_s13 = scalar_lea.vmem %s19481_s18, 4096 }
0x179f   : > { %v9698_v61 = vpop.xlane.xlu1 %9697  ;;  %p13742_p10 = scmp.ne.s32.totalorder %s19481_s18, %s13741_s13 }
0x17a0   : > { %v19291_v60 = vsub.f32 %v19133_v16, %v9717_v50  ;;  %v19294_v1 = vsub.f32 %v19137_v0, %v9717_v50  ;;  %v9718_v49 = vmul.f32 0.00390625, %v9698_v61  ;;  %9819 = vadd.xlane.f32.xlu1 %v9818_v28  ;;  %v9656_v61 = vld [vmem:[%s19949_s23] sm:$0x3]  ;;  %s13747_s23 = scalar_lea.vmem %s13746_s30, 8192 }
0x17a1   : > { %p13743_p5 = pnand %p13742_p10, %p14092_p3  ;;  %p13749_p1 = scmp.lt.s32.totalorder %s13747_s23, %s13741_s13 }
0x17a2   : > { %v9777_v26 = vmul.f32 %v19291_v60, %v19291_v60  ;;  %v9778_v35 = vmul.f32 %v19294_v1, %v19294_v1  ;;  %v19301_v37 = vsub.f32 %v19141_v41, %v9718_v49  ;;  %v19304_v31 = vsub.f32 %v19144_v54, %v9718_v49 }
0x17a3   : > { %p13744_p7 = pneg %p13743_p5  ;;  %p13750_p2 = por %p13749_p1, %p13748_p12 }
0x17a4   : > { %v9779_v16 = vmul.f32 %v19301_v37, %v19301_v37  ;;  %v9780_v0 = vmul.f32 %v19304_v31, %v19304_v31  ;;  %v9821_v21 = vadd.f32 %v9778_v35, %v9777_v26  ;;  %v19337_v26 = vrot.slane %v9655_v2, %v19914_v24 }
0x17a5   : > { %v9701_v45 = vpop.xlane.xlu0 %9700  ;;  %v19340_v35 = vrot.slane %v9655_v2, %v19915_v63  ;;  %p13751_p13 = pnand %p13750_p2, %p13744_p7 }
0x17a6   : > { %v9719_v29 = vmul.f32 0.00390625, %v9701_v45  ;;  %9822 = vadd.xlane.f32.xlu0 %v9821_v21  ;;  %v9824_v6 = vadd.f32 %v9780_v0, %v9779_v16  ;;  %v19343_v0 = vrot.slane %v9656_v61, %v19914_v24  ;;  %v19346_v21 = vrot.slane %v9656_v61, %v19915_v63 }
0x17a7   : > { %v9704_v44 = vpop.xlane.xlu1 %9703 }
0x17a8   : > { %v19311_v43 = vsub.f32 %v19153_v3, %v9719_v29  ;;  %v19314_v41 = vsub.f32 %v19157_v46, %v9719_v29  ;;  %v9720_v54 = vmul.f32 0.00390625, %v9704_v44  ;;  %9825 = vadd.xlane.f32.xlu1 %v9824_v6 }
0x17aa   : > { %v9781_v52 = vmul.f32 %v19311_v43, %v19311_v43  ;;  %v9782_v15 = vmul.f32 %v19314_v41, %v19314_v41  ;;  %v19321_v14 = vsub.f32 %v19161_v34, %v9720_v54  ;;  %v19324_v40 = vsub.f32 %v19164_v38, %v9720_v54 }
0x17ac   : > { %v9783_v3 = vmul.f32 %v19321_v14, %v19321_v14  ;;  %v9784_v46 = vmul.f32 %v19324_v40, %v19324_v40  ;;  %v9827_v17 = vadd.f32 %v9782_v15, %v9781_v52 }
0x17ae   : > { %9828 = vadd.xlane.f32.xlu0 %v9827_v17  ;;  %v9830_v36 = vadd.f32 %v9784_v46, %v9783_v3 }
0x17b0   : > { %9831 = vadd.xlane.f32.xlu1 %v9830_v36 }
0x1803   : > { %v9787_v11 = vpop.xlane.xlu0 %9786 }
0x1804   : > { %v9833_v30 = vmul.f32 0.00390625, %v9787_v11 }
0x1805   : > { %v9790_v57 = vpop.xlane.xlu1 %9789 }
0x1806   : > { %v9849_v33 = vadd.f32 1e-12, %v9833_v30  ;;  %v9834_v62 = vmul.f32 0.00390625, %v9790_v57 }
0x1808   : > { %13535 = vrsqrt.f32 %v9849_v33  ;;  %v9850_v34 = vadd.f32 1e-12, %v9834_v62 }
0x180a   : > { %13537 = vrsqrt.f32 %v9850_v34 }
0x180b   : > { %v9793_v38 = vpop.xlane.xlu0 %9792 }
0x180c   : > { %v9835_v20 = vmul.f32 0.00390625, %v9793_v38 }
0x180d   : > { %v9796_v48 = vpop.xlane.xlu1 %9795 }
0x180e   : > { %v9851_v50 = vadd.f32 1e-12, %v9835_v20  ;;  %v9836_v28 = vmul.f32 0.00390625, %v9796_v48 }
0x1810   : > { %13539 = vrsqrt.f32 %v9851_v50  ;;  %v9852_v49 = vadd.f32 1e-12, %v9836_v28 }
0x1812   : > { %v13536_v16 = vpop.eup %13535  ;;  %13541 = vrsqrt.f32 %v9852_v49 }
0x1813   : > { %v9881_v45 = vmul.f32 %v13536_v16, %v19171_v5  ;;  %v9882_v29 = vmul.f32 %v13536_v16, %v19174_v27  ;;  %v9799_v6 = vpop.xlane.xlu0 %9798 }
0x1814   : > { %v13538_v44 = vpop.eup %13537  ;;  %v9837_v54 = vmul.f32 0.00390625, %v9799_v6 }
0x1815   : > { %v9924_v52 = vmul.f32 %v19337_v26, %v9881_v45  ;;  %v9925_v15 = vmul.f32 %v19340_v35, %v9882_v29  ;;  %v9883_v3 = vmul.f32 %v13538_v44, %v19181_v55  ;;  %v9884_v24 = vmul.f32 %v13538_v44, %v19184_v25  ;;  %v9802_v46 = vpop.xlane.xlu1 %9801 }
0x1816   : > { %v9853_v17 = vadd.f32 1e-12, %v9837_v54  ;;  %v9838_v63 = vmul.f32 0.00390625, %v9802_v46 }
0x1817   : > { %v9967_v36 = vadd.f32 %v19343_v0, %v9924_v52  ;;  %v9968_v5 = vadd.f32 %v19346_v21, %v9925_v15  ;;  %v9926_v27 = vmul.f32 %v19337_v26, %v9883_v3  ;;  %v9927_v11 = vmul.f32 %v19340_v35, %v9884_v24 }
0x1818   : > { %13543 = vrsqrt.f32 %v9853_v17  ;;  %v9854_v30 = vadd.f32 1e-12, %v9838_v63 }
0x1819   : > { %9999 = vst [vmem:[%s19360_s20] sm:$0xff] %v9967_v36  ;;  %10000 = vst [vmem:[%s19360_s20 + $0x8] sm:$0xff] %v9968_v5  ;;  %v9969_v55 = vadd.f32 %v19343_v0, %v9926_v27  ;;  %v9970_v25 = vadd.f32 %v19346_v21, %v9927_v11 }
0x181a   : > { %v13540_v57 = vpop.eup %13539  ;;  %13545 = vrsqrt.f32 %v9854_v30 }
0x181b   : > { %10001 = vst [vmem:[%s19360_s20 + $0x10] sm:$0xff] %v9969_v55  ;;  %10002 = vst [vmem:[%s19360_s20 + $0x18] sm:$0xff] %v9970_v25  ;;  %v9885_v33 = vmul.f32 %v13540_v57, %v19191_v59  ;;  %v9886_v62 = vmul.f32 %v13540_v57, %v19194_v10  ;;  %v9805_v34 = vpop.xlane.xlu0 %9804 }
0x181c   : > { %v13542_v38 = vpop.eup %13541  ;;  %v9839_v20 = vmul.f32 0.00390625, %v9805_v34 }
0x181d   : > { %v9928_v48 = vmul.f32 %v19337_v26, %v9885_v33  ;;  %v9929_v2 = vmul.f32 %v19340_v35, %v9886_v62  ;;  %v9887_v50 = vmul.f32 %v13542_v38, %v19201_v56  ;;  %v9888_v28 = vmul.f32 %v13542_v38, %v19204_v7  ;;  %v9808_v61 = vpop.xlane.xlu1 %9807 }
0x181e   : > { %v9855_v49 = vadd.f32 1e-12, %v9839_v20  ;;  %v9840_v59 = vmul.f32 0.00390625, %v9808_v61 }
0x181f   : > { %v9971_v10 = vadd.f32 %v19343_v0, %v9928_v48  ;;  %v9972_v16 = vadd.f32 %v19346_v21, %v9929_v2  ;;  %v9930_v45 = vmul.f32 %v19337_v26, %v9887_v50  ;;  %v9931_v29 = vmul.f32 %v19340_v35, %v9888_v28 }
0x1820   : > { %13547 = vrsqrt.f32 %v9855_v49  ;;  %v9856_v6 = vadd.f32 1e-12, %v9840_v59 }
0x1821   : > { %10003 = vst [vmem:[%s19360_s20 + $0x20] sm:$0xff] %v9971_v10  ;;  %10004 = vst [vmem:[%s19360_s20 + $0x28] sm:$0xff] %v9972_v16  ;;  %v9973_v56 = vadd.f32 %v19343_v0, %v9930_v45  ;;  %v9974_v7 = vadd.f32 %v19346_v21, %v9931_v29 }
0x1822   : > { %v13544_v44 = vpop.eup %13543  ;;  %13549 = vrsqrt.f32 %v9856_v6 }
0x1823   : > { %10005 = vst [vmem:[%s19360_s20 + $0x30] sm:$0xff] %v9973_v56  ;;  %10006 = vst [vmem:[%s19360_s20 + $0x38] sm:$0xff] %v9974_v7  ;;  %v9889_v54 = vmul.f32 %v13544_v44, %v19211_v22  ;;  %v9890_v52 = vmul.f32 %v13544_v44, %v19214_v12  ;;  %v9811_v15 = vpop.xlane.xlu0 %9810 }
0x1824   : > { %v13546_v3 = vpop.eup %13545  ;;  %v9841_v24 = vmul.f32 0.00390625, %v9811_v15 }
0x1825   : > { %v9932_v46 = vmul.f32 %v19337_v26, %v9889_v54  ;;  %v9933_v17 = vmul.f32 %v19340_v35, %v9890_v52  ;;  %v9891_v63 = vmul.f32 %v13546_v3, %v19221_v13  ;;  %v9892_v36 = vmul.f32 %v13546_v3, %v19224_v9  ;;  %v9814_v5 = vpop.xlane.xlu1 %9813 }
0x1826   : > { %v9857_v27 = vadd.f32 1e-12, %v9841_v24  ;;  %v9842_v22 = vmul.f32 0.00390625, %v9814_v5 }
0x1827   : > { %v9975_v12 = vadd.f32 %v19343_v0, %v9932_v46  ;;  %v9976_v11 = vadd.f32 %v19346_v21, %v9933_v17  ;;  %v9934_v30 = vmul.f32 %v19337_v26, %v9891_v63  ;;  %v9935_v55 = vmul.f32 %v19340_v35, %v9892_v36 }
0x1828   : > { %13551 = vrsqrt.f32 %v9857_v27  ;;  %v9858_v25 = vadd.f32 1e-12, %v9842_v22 }
0x1829   : > { %10007 = vst [vmem:[%s19360_s20 + $0x40] sm:$0xff] %v9975_v12  ;;  %10008 = vst [vmem:[%s19360_s20 + $0x48] sm:$0xff] %v9976_v11  ;;  %v9977_v13 = vadd.f32 %v19343_v0, %v9934_v30  ;;  %v9978_v9 = vadd.f32 %v19346_v21, %v9935_v55 }
0x182a   : > { %v13548_v57 = vpop.eup %13547  ;;  %13553 = vrsqrt.f32 %v9858_v25 }
0x182b   : > { %10009 = vst [vmem:[%s19360_s20 + $0x50] sm:$0xff] %v9977_v13  ;;  %10010 = vst [vmem:[%s19360_s20 + $0x58] sm:$0xff] %v9978_v9  ;;  %v9893_v33 = vmul.f32 %v13548_v57, %v19231_v19  ;;  %v9894_v62 = vmul.f32 %v13548_v57, %v19234_v42  ;;  %v9817_v34 = vpop.xlane.xlu0 %9816 }
0x182c   : > { %v13550_v38 = vpop.eup %13549  ;;  %v9843_v20 = vmul.f32 0.00390625, %v9817_v34 }
0x182d   : > { %v9936_v48 = vmul.f32 %v19337_v26, %v9893_v33  ;;  %v9937_v2 = vmul.f32 %v19340_v35, %v9894_v62  ;;  %v9895_v50 = vmul.f32 %v13550_v38, %v19241_v58  ;;  %v9896_v28 = vmul.f32 %v13550_v38, %v19244_v4  ;;  %v9820_v61 = vpop.xlane.xlu1 %9819 }
0x182e   : > { %v9859_v49 = vadd.f32 1e-12, %v9843_v20  ;;  %v9844_v19 = vmul.f32 0.00390625, %v9820_v61 }
0x182f   : > { %v9979_v42 = vadd.f32 %v19343_v0, %v9936_v48  ;;  %v9980_v59 = vadd.f32 %v19346_v21, %v9937_v2  ;;  %v9938_v10 = vmul.f32 %v19337_v26, %v9895_v50  ;;  %v9939_v16 = vmul.f32 %v19340_v35, %v9896_v28 }
0x1830   : > { %13555 = vrsqrt.f32 %v9859_v49  ;;  %v9860_v45 = vadd.f32 1e-12, %v9844_v19 }
0x1831   : > { %10011 = vst [vmem:[%s19360_s20 + $0x60] sm:$0xff] %v9979_v42  ;;  %10012 = vst [vmem:[%s19360_s20 + $0x68] sm:$0xff] %v9980_v59  ;;  %v9981_v58 = vadd.f32 %v19343_v0, %v9938_v10  ;;  %v9982_v4 = vadd.f32 %v19346_v21, %v9939_v16 }
0x1832   : > { %v13552_v29 = vpop.eup %13551  ;;  %13557 = vrsqrt.f32 %v9860_v45 }
0x1833   : > { %10013 = vst [vmem:[%s19360_s20 + $0x70] sm:$0xff] %v9981_v58  ;;  %10014 = vst [vmem:[%s19360_s20 + $0x78] sm:$0xff] %v9982_v4  ;;  %v9897_v6 = vmul.f32 %v13552_v29, %v19251_v47  ;;  %v9898_v56 = vmul.f32 %v13552_v29, %v19254_v51  ;;  %v9823_v7 = vpop.xlane.xlu0 %9822 }
0x1834   : > { %v13554_v44 = vpop.eup %13553  ;;  %v9845_v54 = vmul.f32 0.00390625, %v9823_v7 }
0x1835   : > { %v9940_v52 = vmul.f32 %v19337_v26, %v9897_v6  ;;  %v9941_v15 = vmul.f32 %v19340_v35, %v9898_v56  ;;  %v9899_v3 = vmul.f32 %v13554_v44, %v19261_v8  ;;  %v9900_v24 = vmul.f32 %v13554_v44, %v19264_v18  ;;  %v9826_v46 = vpop.xlane.xlu1 %9825 }
0x1836   : > { %v9861_v17 = vadd.f32 1e-12, %v9845_v54  ;;  %v9846_v47 = vmul.f32 0.00390625, %v9826_v46 }
0x1837   : > { %v9983_v51 = vadd.f32 %v19343_v0, %v9940_v52  ;;  %v9984_v63 = vadd.f32 %v19346_v21, %v9941_v15  ;;  %v9942_v36 = vmul.f32 %v19337_v26, %v9899_v3  ;;  %v9943_v5 = vmul.f32 %v19340_v35, %v9900_v24 }
0x1838   : > { %13559 = vrsqrt.f32 %v9861_v17  ;;  %v9862_v27 = vadd.f32 1e-12, %v9846_v47 }
0x1839   : > { %10015 = vst [vmem:[%s19360_s20 + $0x80] sm:$0xff] %v9983_v51  ;;  %10016 = vst [vmem:[%s19360_s20 + $0x88] sm:$0xff] %v9984_v63  ;;  %v9985_v8 = vadd.f32 %v19343_v0, %v9942_v36  ;;  %v9986_v18 = vadd.f32 %v19346_v21, %v9943_v5 }
0x183a   : > { %v13556_v22 = vpop.eup %13555  ;;  %13561 = vrsqrt.f32 %v9862_v27 }
0x183b   : > { %10017 = vst [vmem:[%s19360_s20 + $0x90] sm:$0xff] %v9985_v8  ;;  %10018 = vst [vmem:[%s19360_s20 + $0x98] sm:$0xff] %v9986_v18  ;;  %v9901_v12 = vmul.f32 %v13556_v22, %v19271_v23  ;;  %v9902_v11 = vmul.f32 %v13556_v22, %v19274_v53  ;;  %v9829_v30 = vpop.xlane.xlu0 %9828 }
0x183c   : > { %v13558_v55 = vpop.eup %13557  ;;  %v9847_v25 = vmul.f32 0.00390625, %v9829_v30 }
0x183d   : > { %v9944_v13 = vmul.f32 %v19337_v26, %v9901_v12  ;;  %v9945_v9 = vmul.f32 %v19340_v35, %v9902_v11  ;;  %v9903_v57 = vmul.f32 %v13558_v55, %v19281_v32  ;;  %v9904_v33 = vmul.f32 %v13558_v55, %v19284_v39  ;;  %v9832_v62 = vpop.xlane.xlu1 %9831 }
0x183e   : > { %v9863_v34 = vadd.f32 1e-12, %v9847_v25  ;;  %v9848_v23 = vmul.f32 0.00390625, %v9832_v62 }
0x183f   : > { %v9987_v53 = vadd.f32 %v19343_v0, %v9944_v13  ;;  %v9988_v38 = vadd.f32 %v19346_v21, %v9945_v9  ;;  %v9946_v20 = vmul.f32 %v19337_v26, %v9903_v57  ;;  %v9947_v48 = vmul.f32 %v19340_v35, %v9904_v33 }
0x1840   : > { %13563 = vrsqrt.f32 %v9863_v34  ;;  %v9864_v2 = vadd.f32 1e-12, %v9848_v23 }
0x1841   : > { %10019 = vst [vmem:[%s19360_s20 + $0xa0] sm:$0xff] %v9987_v53  ;;  %10020 = vst [vmem:[%s19360_s20 + $0xa8] sm:$0xff] %v9988_v38  ;;  %v9989_v32 = vadd.f32 %v19343_v0, %v9946_v20  ;;  %v9990_v39 = vadd.f32 %v19346_v21, %v9947_v48 }
0x1842   : > { %v13560_v50 = vpop.eup %13559  ;;  %13565 = vrsqrt.f32 %v9864_v2 }
0x1843   : > { %10021 = vst [vmem:[%s19360_s20 + $0xb0] sm:$0xff] %v9989_v32  ;;  %10022 = vst [vmem:[%s19360_s20 + $0xb8] sm:$0xff] %v9990_v39  ;;  %v9905_v28 = vmul.f32 %v13560_v50, %v19291_v60  ;;  %v9906_v61 = vmul.f32 %v13560_v50, %v19294_v1 }
0x1844   : > { %v13562_v49 = vpop.eup %13561 }
0x1845   : > { %v9948_v19 = vmul.f32 %v19337_v26, %v9905_v28  ;;  %v9949_v42 = vmul.f32 %v19340_v35, %v9906_v61  ;;  %v9907_v59 = vmul.f32 %v13562_v49, %v19301_v37  ;;  %v9908_v10 = vmul.f32 %v13562_v49, %v19304_v31 }
0x1847   : > { %v9991_v16 = vadd.f32 %v19343_v0, %v9948_v19  ;;  %v9992_v45 = vadd.f32 %v19346_v21, %v9949_v42  ;;  %v9950_v58 = vmul.f32 %v19337_v26, %v9907_v59  ;;  %v9951_v60 = vmul.f32 %v19340_v35, %v9908_v10 }
0x1849   : > { %10023 = vst [vmem:[%s19360_s20 + $0xc0] sm:$0xff] %v9991_v16  ;;  %10024 = vst [vmem:[%s19360_s20 + $0xc8] sm:$0xff] %v9992_v45  ;;  %v9993_v1 = vadd.f32 %v19343_v0, %v9950_v58  ;;  %v9994_v4 = vadd.f32 %v19346_v21, %v9951_v60 }
0x184a   : > { %v13564_v29 = vpop.eup %13563 }
0x184b   : > { %10025 = vst [vmem:[%s19360_s20 + $0xd0] sm:$0xff] %v9993_v1  ;;  %10026 = vst [vmem:[%s19360_s20 + $0xd8] sm:$0xff] %v9994_v4  ;;  %v9909_v37 = vmul.f32 %v13564_v29, %v19311_v43  ;;  %v9910_v31 = vmul.f32 %v13564_v29, %v19314_v41 }
0x184c   : > { %v13566_v6 = vpop.eup %13565 }
0x184d   : > { %v9952_v56 = vmul.f32 %v19337_v26, %v9909_v37  ;;  %v9953_v7 = vmul.f32 %v19340_v35, %v9910_v31  ;;  %v9911_v44 = vmul.f32 %v13566_v6, %v19321_v14  ;;  %v9912_v54 = vmul.f32 %v13566_v6, %v19324_v40 }
0x184f   : > { %v9995_v43 = vadd.f32 %v19343_v0, %v9952_v56  ;;  %v9996_v52 = vadd.f32 %v19346_v21, %v9953_v7  ;;  %v9954_v41 = vmul.f32 %v19337_v26, %v9911_v44  ;;  %v9955_v15 = vmul.f32 %v19340_v35, %v9912_v54 }
0x1851   : > { %10027 = vst [vmem:[%s19360_s20 + $0xe0] sm:$0xff] %v9995_v43  ;;  %10028 = vst [vmem:[%s19360_s20 + $0xe8] sm:$0xff] %v9996_v52  ;;  %v9997_v14 = vadd.f32 %v19343_v0, %v9954_v41  ;;  %v9998_v40 = vadd.f32 %v19346_v21, %v9955_v15 }
0x1853   : > { %10029 = vst [vmem:[%s19360_s20 + $0xf0] sm:$0xff] %v9997_v14  ;;  %10030 = vst [vmem:[%s19360_s20 + $0xf8] sm:$0xff] %v9998_v40 }
0x1854   : > { %13754 = shalt.err (!%p13751_p13)
}
0x1855   : > { %s13755_s20 = scalar_lea.hbm %s19479_s14, 4096  ;;  %s13759_s24 = scalar_lea.hbm %s19950_s10, 8192 }
0x1856   : > { %p13756_p9 = scmp.ne.s32.totalorder %s19479_s14, %s13755_s20  ;;  %p13760_p4 = scmp.lt.u32.totalorder %s19479_s14, %s19950_s10 }
0x1857   : > { %p13761_p8 = scmp.lt.u32.totalorder %s13759_s24, %s13755_s20  ;;  %p13763_p10 = scmp.lt.u32.totalorder %s13755_s20, %s19479_s14 }
0x1858   : > { %p13757_p0 = pnand %p13756_p9, %p14092_p3 }
0x1859   : > { %p13762_p6 = por %p13761_p8, %p13760_p4 }
0x185a   : > { %p13758_p11 = pneg %p13757_p0 }
0x185b   : > { %p13764_p5 = por %p13763_p10, %p13762_p6 }
0x185d   : > { %p13765_p7 = pnand %p13764_p5, %p13758_p11 }
0x185f   : > { %13768 = shalt.err (!%p13765_p7)
}
0x1860   : > { %s13829_s13 = smov 256   ;;  %s13830_s23 = smov 16  }
0x1861   : > { %12482 = dma.vmem_to_hbm [thread:$0]  (%p14092_p3), %s19481_s18, 4096, %s19479_s14, %s10032_s28, %s13829_s13, %s13829_s13, %s13830_s23  }
0x1862 PF: > { %s19951_s15 = sld [smem:[#allocation16_spill]]  ;;  %s19952_s17 = sld [smem:[#allocation17_spill]] }
0x1863   : > { %p19954_p1 = scmp.ge.s32.totalorder %s13815_s27, 2 }
0x1868   : > { %s10060_s1 = sand.u32 1, %s19951_s15   ;;  %p19953_p12 = scmp.ne.s32.totalorder %s19952_s17, 0 }
0x1869   : > { %s10061_s20 = scalar_lea.sflag [#allocation4], %s10060_s1 }
0x186a   : > { %p12502_p2 = pnand %p19954_p1, %p19953_p12 }
0x186c   : > { %13798 = dma.done.wait (!%p12502_p2), %s10061_s20, 4096  }
0x186d   : > { %13800 = vsyncadd (!%p12502_p2), %s10061_s20, 4294963200  ;;  %p32_p13 = scmp.ge.s32.totalorder %s14079_s12, 4   ;;  %s19955_s24 = smov %s13807_s25 }
0x186e   : > { %s19956_s25 = smov %s13811_s26  ;;  %s19957_s26 = smov %s14088_s19 }
0x186f   : > { %s19958_s27 = smov %s14079_s12  ;;  %34 = sbr.rel (!%p32_p13) target bundleno = 17 (0x11), region = 170 }
0x1876   :  { %10066 = vsyncpa [#allocation3], 1 }
0x1877   :  { %10068 = vsyncpa [#allocation3 + $0x1], 1 }
0x1878   :  { %10069 = vsyncpa [#allocation6], 1 }
0x1879   :  { %10070 = vsyncpa [#allocation9], 1 }
0x187a   :  { %10071 = vsyncpa [#allocation4], 1 }
0x187b   :  { %10073 = vsyncpa [#allocation4 + $0x1], 1 }

</bundles_post_ra>
